<compile_context>
chip_gen: v5e
topology: v5e:2x2
jax: 0.10.0
libtpu: 0.0.40
codegen_flags: <defaults>
</compile_context>

<pallas_src>
import functools
import math

import jax
import jax.numpy as jnp
from jax import lax
from jax.experimental import pallas as pl
from jax.experimental.pallas import tpu as pltpu

PADW = 8  # sublane-aligned left/right zero pad in the column-padded scratches

_PARALLEL = pltpu.CompilerParams(dimension_semantics=("parallel",))


# ----------------------------------------------------------------------------
# In-kernel helpers
# ----------------------------------------------------------------------------
def _zero(ref):
    ref[...] = jnp.zeros(ref.shape, ref.dtype)


def _store_interior(pad_ref, val, r0=0):
    """Store `val` (rows, W, C) into the zero-padded scratch at row r0+1 and the
    sublane-aligned column offset PADW (fully aligned store)."""
    rows, W, _ = val.shape
    pad_ref[r0 + 1:r0 + 1 + rows, PADW:PADW + W, :] = val


def _build_imcol(pad_ref, im_ref, H, W, chunk=8):
    """Build the dx-im2col scratch once per conv:
       im[p, j, v*C:(v+1)*C] = pad[p, j + v - 1]   (v = 0,1,2 column taps).
    Halo rows/cols of `pad_ref` are zero, so im gets the conv zero padding."""
    base = PADW - 1
    for p0 in range(0, H + 2, chunk):
        pc = min(chunk, H + 2 - p0)
        im_ref[p0:p0 + pc] = jnp.concatenate(
            [pad_ref[p0:p0 + pc, base + v:base + v + W, :] for v in range(3)],
            axis=-1)


def _conv3x3(im_ref, w_ref, r0, rt, W):
    """3x3/stride-1 conv for output rows [r0, r0+rt) from the im2col scratch.
    w_ref: (3, 3*Cin, Cout) bf16, dy-major with dx folded into K.
    Returns (rt*W, Cout) float32 (3 MXU matmuls, K = 3*Cin)."""
    K = im_ref.shape[-1]
    acc = jnp.dot(im_ref[r0:r0 + rt].reshape(rt * W, K), w_ref[0],
                  preferred_element_type=jnp.float32)
    acc = acc + jnp.dot(im_ref[r0 + 1:r0 + 1 + rt].reshape(rt * W, K), w_ref[1],
                        preferred_element_type=jnp.float32)
    acc = acc + jnp.dot(im_ref[r0 + 2:r0 + 2 + rt].reshape(rt * W, K), w_ref[2],
                        preferred_element_type=jnp.float32)
    return acc


# ----------------------------------------------------------------------------
# Kernel bodies
# ----------------------------------------------------------------------------
def _block_s1_kernel(x_ref, w2_ref, t2_ref, w1_ref, t1_ref, o_ref,
                     xpad, midpad, imx, immid, *, rt):
    """Fused stride==1 BasicBlockDec:
       relu(conv1(relu(conv2(x)+t2)) + t1 + x); BN scales are pre-folded into
       the weights; the intermediate activation never leaves VMEM."""
    _, H, W, C = x_ref.shape
    # Halos must be zero every grid step: with a "parallel" batch grid each
    # TensorCore owns its own (uninitialised) scratch, so a program_id==0
    # zero-once guard is not safe.  Interior is fully overwritten below.
    _zero(xpad)
    _zero(midpad)
    _store_interior(xpad, x_ref[0])
    _build_imcol(xpad, imx, H, W)
    t2 = t2_ref[...]                       # hoisted out of the row loop
    for r0 in range(0, H, rt):
        y = jnp.maximum(_conv3x3(imx, w2_ref, r0, rt, W) + t2, 0.0)
        _store_interior(midpad, y.reshape(rt, W, C).astype(midpad.dtype), r0)
    _build_imcol(midpad, immid, H, W)
    t1 = t1_ref[...]
    for r0 in range(0, H, rt):
        y = _conv3x3(immid, w1_ref, r0, rt, W) + t1
        y = y + x_ref[0, r0:r0 + rt].reshape(rt * W, C).astype(jnp.float32)
        y = jnp.maximum(y, 0.0)
        o_ref[0, r0:r0 + rt] = y.reshape(rt, W, C).astype(o_ref.dtype)


def _block_up_kernel(x_ref, w2_ref, t2_ref, wp1_ref, wpsc_ref, tsh_ref, o_ref,
                     xpad, midpad, imx, immid, *, rt):
    """Fused stride!=1 BasicBlockDec.

    mid = relu(conv2(x)+t2), then the 3x3 convs on the 2x-nearest-upsampled
    mid / x (ResizeConv2d main path + shortcut) are computed as parity-
    decomposed 2x2 convs directly at original resolution:
      out[2i+a, 2j+b] uses mid/x rows {i-1,i} (a=0) or {i,i+1} (a=1) and the
      column taps are pre-folded into wp*[a, ui] (both b parities stacked
      along N with zero-padded K blocks, so N = 2*Cout = lane dense).
    Output layout: o[0, a*H + i, j, b*Cout + c] = y[2i+a, 2j+b, c]."""
    _, H, W, C = x_ref.shape
    n2 = o_ref.shape[-1]                   # 2 * Cout
    _zero(xpad)
    _zero(midpad)
    _store_interior(xpad, x_ref[0])
    _build_imcol(xpad, imx, H, W)
    t2 = t2_ref[...]
    for r0 in range(0, H, rt):
        y = jnp.maximum(_conv3x3(imx, w2_ref, r0, rt, W) + t2, 0.0)
        _store_interior(midpad, y.reshape(rt, W, C).astype(midpad.dtype), r0)
    _build_imcol(midpad, immid, H, W)
    tsh = tsh_ref[...]                     # (1, 2*Cout), hoisted
    for a in range(2):                     # output row parity
        for r0 in range(0, H, rt):
            acc = jnp.zeros((rt * W, n2), jnp.float32)
            for ui in range(2):            # the two row taps of the 2x2 kernel
                s = r0 + a + ui            # im row = padded row of the tap
                lm = immid[s:s + rt].reshape(rt * W, 3 * C)
                lx = imx[s:s + rt].reshape(rt * W, 3 * C)
                acc = acc + jnp.dot(lm, wp1_ref[a, ui],
                                    preferred_element_type=jnp.float32)
                acc = acc + jnp.dot(lx, wpsc_ref[a, ui],
                                    preferred_element_type=jnp.float32)
            y = jnp.maximum(acc + tsh, 0.0)
            o_ref[0, a * H + r0:a * H + r0 + rt] = (
                y.reshape(rt, W, n2).astype(o_ref.dtype))


# ----------------------------------------------------------------------------
# Parameter folding (plain JAX, outside the kernels)
# ----------------------------------------------------------------------------
def _fold_params(p, stride):
    """Fold BN scale into bf16 weights and conv bias / BN shift into fp32 t."""
    def fw(w, s):
        return (w * s.reshape(1, 1, 1, -1)).astype(jnp.bfloat16)

    f = {"w2": fw(p["w2"], p["s2"]), "t2": p["t2"], "w1": fw(p["w1"], p["s1"])}
    if stride == 1:
        f["t1"] = p["t1"]
    else:
        f["t1"] = p["t1"] + p["s1"] * p["b1"]
        f["wsc"] = fw(p["wsc"], p["ssc"])
        f["tsc"] = p["tsc"] + p["ssc"] * p["bsc"]
    return f


def _parity_pack(w):
    """(3,3,Cin,Cout) conv kernel (BN scale already folded) -> parity weights
    (2, 2, 3*Cin, 2*Cout): [row parity a, row tap ui, K, both col parities]."""
    w = w.astype(jnp.float32)
    cin, cout = w.shape[2], w.shape[3]
    rows = [jnp.stack([w[0], w[1] + w[2]]),       # a=0: row taps at (-1, 0)
            jnp.stack([w[0] + w[1], w[2]])]       # a=1: row taps at (0, +1)
    z = jnp.zeros((1, cin, cout), jnp.float32)
    packed = []
    for a in range(2):
        per_ui = []
        for ui in range(2):
            r = rows[a][ui]                                        # (3,Cin,Cout)
            # K blocks = column offsets (-1, 0, +1) of the im2col scratch.
            k0 = jnp.concatenate([r[0:1], (r[1] + r[2])[None], z], 0)   # b=0
            k1 = jnp.concatenate([z, (r[0] + r[1])[None], r[2:3]], 0)   # b=1
            per_ui.append(jnp.concatenate(
                [k0.reshape(3 * cin, cout), k1.reshape(3 * cin, cout)], axis=-1))
        packed.append(jnp.stack(per_ui))
    return jnp.stack(packed).astype(jnp.bfloat16)   # (2, 2, 3*Cin, 2*Cout)


# ----------------------------------------------------------------------------
# pallas_call wrappers
# ----------------------------------------------------------------------------
def _row_tile(H, W, cout, budget_bytes=64 * 1024):
    """Largest divisor of H whose fp32 accumulator (t*W, cout) fits the budget.
    64 KiB -> M=128 (safe register pressure); sweep 128 KiB on v6e/v7x."""
    for t in range(H, 0, -1):
        if H % t == 0 and t * W * cout * 4 <= budget_bytes:
            return t
    return 1


def _scratches(H, W, C):
    return [pltpu.VMEM((H + 2, W + 2 * PADW, C), jnp.bfloat16),   # xpad
            pltpu.VMEM((H + 2, W + 2 * PADW, C), jnp.bfloat16),   # midpad
            pltpu.VMEM((H + 2, W, 3 * C), jnp.bfloat16),          # imx
            pltpu.VMEM((H + 2, W, 3 * C), jnp.bfloat16)]          # immid


def _fused_block_s1(x, f):
    B, H, W, C = x.shape
    rt = _row_tile(H, W, C)
    kern = functools.partial(_block_s1_kernel, rt=rt)
    xspec = pl.BlockSpec((1, H, W, C), lambda n: (n, 0, 0, 0))
    wspec = pl.BlockSpec((3, 3 * C, C), lambda n: (0, 0, 0))
    vspec = pl.BlockSpec((1, C), lambda n: (0, 0))
    return pl.pallas_call(
        kern,
        out_shape=jax.ShapeDtypeStruct((B, H, W, C), jnp.bfloat16),
        grid=(B,),
        in_specs=[xspec, wspec, vspec, wspec, vspec],
        out_specs=xspec,
        scratch_shapes=_scratches(H, W, C),
        compiler_params=_PARALLEL,
    )(x, f["w2"].reshape(3, 3 * C, C), f["t2"],
      f["w1"].reshape(3, 3 * C, C), f["t1"])


def _fused_block_up(x, f):
    B, H, W, C = x.shape
    cout = f["w1"].shape[-1]
    n2 = 2 * cout
    wp1 = _parity_pack(f["w1"])
    wpsc = _parity_pack(f["wsc"])
    sh = f["t1"] + f["tsc"]
    tsh = jnp.concatenate([sh, sh], axis=-1)        # (1, 2*Cout)
    rt = _row_tile(H, W, n2)
    kern = functools.partial(_block_up_kernel, rt=rt)
    xspec = pl.BlockSpec((1, H, W, C), lambda n: (n, 0, 0, 0))
    w2spec = pl.BlockSpec((3, 3 * C, C), lambda n: (0, 0, 0))
    wpspec = pl.BlockSpec((2, 2, 3 * C, n2), lambda n: (0, 0, 0, 0))
    return pl.pallas_call(
        kern,
        out_shape=jax.ShapeDtypeStruct((B, 2 * H, W, n2), jnp.bfloat16),
        grid=(B,),
        in_specs=[xspec, w2spec, pl.BlockSpec((1, C), lambda n: (0, 0)),
                  wpspec, wpspec, pl.BlockSpec((1, n2), lambda n: (0, 0))],
        out_specs=pl.BlockSpec((1, 2 * H, W, n2), lambda n: (n, 0, 0, 0)),
        scratch_shapes=_scratches(H, W, C),
        compiler_params=_PARALLEL,
    )(x, f["w2"].reshape(3, 3 * C, C), f["t2"], wp1, wpsc, tsh)


# ----------------------------------------------------------------------------
# Module forward (NCHW in / NCHW out, matching the torch module)
# ----------------------------------------------------------------------------
def basic_block_dec(x_nchw, p, stride):
    """BasicBlockDec.forward."""
    f = _fold_params(p, stride)
    x = jnp.transpose(x_nchw, (0, 2, 3, 1)).astype(jnp.bfloat16)   # NHWC, bf16
    B, H, W, C = x.shape
    if stride == 1:
        y = _fused_block_s1(x, f)                                  # (B,H,W,C)
        return jnp.transpose(y, (0, 3, 1, 2))
    cout = f["w1"].shape[-1]
    o = _fused_block_up(x, f)                                      # (B,2H,W,2*cout)
    # o[b, a*H+i, j, p*cout+c] = y_up[b, 2i+a, 2j+p, c]; one XLA transpose
    # (also covers the NHWC->NCHW transpose) undoes the parity blocking.
    o = o.reshape(B, 2, H, W, 2, cout)
    o = jnp.transpose(o, (0, 5, 2, 1, 3, 4)).reshape(B, cout, 2 * H, 2 * W)
    return o


# ----------------------------------------------------------------------------
# Pure-JAX reference (upsample-then-conv, same folded bf16 weights)
# ----------------------------------------------------------------------------
def upsample_nearest(x, s):
    x = jnp.repeat(x, s, axis=1)
    x = jnp.repeat(x, s, axis=2)
    return x


def _conv_ref(x, w):
    return lax.conv_general_dilated(
        x, w, window_strides=(1, 1), padding="SAME",
        dimension_numbers=("NHWC", "HWIO", "NHWC"),
        preferred_element_type=jnp.float32)


def basic_block_dec_reference(x_nchw, p, stride):
    f = _fold_params(p, stride)
    x = jnp.transpose(x_nchw, (0, 2, 3, 1)).astype(jnp.bfloat16)
    mid = jnp.maximum(_conv_ref(x, f["w2"]) + f["t2"], 0.0).astype(jnp.bfloat16)
    if stride == 1:
        y = _conv_ref(mid, f["w1"]) + f["t1"] + x.astype(jnp.float32)
    else:
        y = (_conv_ref(upsample_nearest(mid, stride), f["w1"]) + f["t1"]
             + _conv_ref(upsample_nearest(x, stride), f["wsc"]) + f["tsc"])
    y = jnp.maximum(y, 0.0)
    return jnp.transpose(y, (0, 3, 1, 2))


# ----------------------------------------------------------------------------
# Deterministic parameter initialization (shapes from the module's __init__)
# ----------------------------------------------------------------------------
def init_block_params(key, in_planes, stride):
    planes = in_planes // stride
    keys = iter(jax.random.split(key, 12))

    def conv_w(cin, cout):
        w = jax.random.normal(next(keys), (3, 3, cin, cout), jnp.float32)
        return w / math.sqrt(9.0 * cin)

    def bias(c):
        return 0.1 * jax.random.normal(next(keys), (1, c), jnp.float32)

    def bn_fold(c):
        # inference-mode BatchNorm folded into scale/shift.
        k1, k2, k3, k4 = jax.random.split(next(keys), 4)
        gamma = 1.0 + 0.1 * jax.random.normal(k1, (c,), jnp.float32)
        beta = 0.1 * jax.random.normal(k2, (c,), jnp.float32)
        mean = 0.1 * jax.random.normal(k3, (c,), jnp.float32)
        var = 1.0 + 0.1 * jnp.abs(jax.random.normal(k4, (c,), jnp.float32))
        s = gamma / jnp.sqrt(var + 1e-5)
        t = beta - s * mean
        return s.reshape(1, c), t.reshape(1, c)

    p = {"w2": conv_w(in_planes, in_planes)}
    p["s2"], p["t2"] = bn_fold(in_planes)
    p["w1"] = conv_w(in_planes, planes)
    p["s1"], p["t1"] = bn_fold(planes)
    if stride != 1:
        p["b1"] = bias(planes)           # ResizeConv2d conv bias
        p["wsc"] = conv_w(in_planes, planes)
        p["bsc"] = bias(planes)
        p["ssc"], p["tsc"] = bn_fold(planes)
    return p


# ----------------------------------------------------------------------------
if __name__ == "__main__":
    key = jax.random.PRNGKey(0)
    k_x, k_p1, k_p2 = jax.random.split(key, 3)

    B, C, H, W = 2, 128, 16, 16
    x = jax.random.normal(k_x, (B, C, H, W), jnp.float32)          # NCHW (torch)
    p_s1 = init_block_params(k_p1, in_planes=C, stride=1)
    p_s2 = init_block_params(k_p2, in_planes=C, stride=2)

    block_s1 = jax.jit(functools.partial(basic_block_dec, stride=1))
    block_s2 = jax.jit(functools.partial(basic_block_dec, stride=2))

    out1 = jax.block_until_ready(block_s1(x, p_s1))                # (2,128,16,16)
    out2 = jax.block_until_ready(block_s2(x, p_s2))                # (2, 64,32,32)

    assert out1.shape == (B, C, H, W), out1.shape
    assert out2.shape == (B, C // 2, 2 * H, 2 * W), out2.shape

    ref1 = basic_block_dec_reference(x, p_s1, 1)
    ref2 = basic_block_dec_reference(x, p_s2, 2)
    for got, ref in ((out1, ref1), (out2, ref2)):
        got = got.astype(jnp.float32)
        assert bool(jnp.all(jnp.isfinite(got)))
        # bf16 outputs + bf16 folded weights: scaled max-abs error check.
        err = float(jnp.max(jnp.abs(got - ref) / (1.0 + jnp.abs(ref))))
        assert err < 3e-2, err

    print("KERNEL_OK")
</pallas_src>

<mosaic_0001>
module attributes {stable_mosaic.version = 11 : i64} {
  func.func @_block_s1_kernel(%arg0: i32, %arg1: memref<1x16x16x128xbf16, #tpu.memory_space<vmem>>, %arg2: memref<3x384x128xbf16, #tpu.memory_space<vmem>>, %arg3: memref<1x128xf32, #tpu.memory_space<vmem>>, %arg4: memref<3x384x128xbf16, #tpu.memory_space<vmem>>, %arg5: memref<1x128xf32, #tpu.memory_space<vmem>>, %arg6: memref<1x16x16x128xbf16, #tpu.memory_space<vmem>>, %arg7: memref<18x32x128xbf16, #tpu.memory_space<vmem>>, %arg8: memref<18x32x128xbf16, #tpu.memory_space<vmem>>, %arg9: memref<18x16x384xbf16, #tpu.memory_space<vmem>>, %arg10: memref<18x16x384xbf16, #tpu.memory_space<vmem>>) attributes {dimension_semantics = [#tpu.dimension_semantics<parallel>], iteration_bounds = array<i64: 2>, scalar_prefetch = 0 : i64, scratch_operands = 4 : i64, tpu.core_type = #tpu.core_type<tc>, window_params = [{transform_indices = @transform_0, window_bounds = array<i64: 1, 16, 16, 128>}, {pipeline_mode = #tpu.pipeline_mode<synchronous>, transform_indices = @transform_1, window_bounds = array<i64: 3, 384, 128>}, {pipeline_mode = #tpu.pipeline_mode<synchronous>, transform_indices = @transform_2, window_bounds = array<i64: 1, 128>}, {pipeline_mode = #tpu.pipeline_mode<synchronous>, transform_indices = @transform_3, window_bounds = array<i64: 3, 384, 128>}, {pipeline_mode = #tpu.pipeline_mode<synchronous>, transform_indices = @transform_4, window_bounds = array<i64: 1, 128>}, {transform_indices = @transform_5, window_bounds = array<i64: 1, 16, 16, 128>}]} {
    %cst = arith.constant 0.000000e+00 : bf16
    %0 = vector.broadcast %cst : bf16 to vector<18x32x128xbf16>
    %c0 = arith.constant 0 : index
    %c0_0 = arith.constant 0 : index
    %c0_1 = arith.constant 0 : index
    %1 = vector.load %arg7[%c0, %c0_0, %c0_1] : memref<18x32x128xbf16, #tpu.memory_space<vmem>>, vector<18x32x128xbf16>
    tpu.vector_store %arg7[%c0, %c0_0, %c0_1], %0 {strides = array<i32>} : memref<18x32x128xbf16, #tpu.memory_space<vmem>>, vector<18x32x128xbf16>,
    %cst_2 = arith.constant 0.000000e+00 : bf16
    %2 = vector.broadcast %cst_2 : bf16 to vector<18x32x128xbf16>
    %c0_3 = arith.constant 0 : index
    %c0_4 = arith.constant 0 : index
    %c0_5 = arith.constant 0 : index
    %3 = vector.load %arg8[%c0_3, %c0_4, %c0_5] : memref<18x32x128xbf16, #tpu.memory_space<vmem>>, vector<18x32x128xbf16>
    tpu.vector_store %arg8[%c0_3, %c0_4, %c0_5], %2 {strides = array<i32>} : memref<18x32x128xbf16, #tpu.memory_space<vmem>>, vector<18x32x128xbf16>,
    %c0_6 = arith.constant 0 : index
    %c0_7 = arith.constant 0 : index
    %c0_8 = arith.constant 0 : index
    %c0_9 = arith.constant 0 : index
    %4 = vector.load %arg1[%c0_6, %c0_7, %c0_8, %c0_9] : memref<1x16x16x128xbf16, #tpu.memory_space<vmem>>, vector<1x16x16x128xbf16>
    %5 = vector.shape_cast %4 : vector<1x16x16x128xbf16> to vector<16x16x128xbf16>
    %c1 = arith.constant 1 : index
    %c8 = arith.constant 8 : index
    %c0_10 = arith.constant 0 : index
    %6 = vector.load %arg7[%c1, %c8, %c0_10] : memref<18x32x128xbf16, #tpu.memory_space<vmem>>, vector<16x16x128xbf16>
    tpu.vector_store %arg7[%c1, %c8, %c0_10], %5 {strides = array<i32>} : memref<18x32x128xbf16, #tpu.memory_space<vmem>>, vector<16x16x128xbf16>,
    %c0_11 = arith.constant 0 : index
    %c7 = arith.constant 7 : index
    %c0_12 = arith.constant 0 : index
    %7 = vector.load %arg7[%c0_11, %c7, %c0_12] : memref<18x32x128xbf16, #tpu.memory_space<vmem>>, vector<8x16x128xbf16>
    %c0_13 = arith.constant 0 : index
    %c8_14 = arith.constant 8 : index
    %c0_15 = arith.constant 0 : index
    %8 = vector.load %arg7[%c0_13, %c8_14, %c0_15] : memref<18x32x128xbf16, #tpu.memory_space<vmem>>, vector<8x16x128xbf16>
    %c0_16 = arith.constant 0 : index
    %c9 = arith.constant 9 : index
    %c0_17 = arith.constant 0 : index
    %9 = vector.load %arg7[%c0_16, %c9, %c0_17] : memref<18x32x128xbf16, #tpu.memory_space<vmem>>, vector<8x16x128xbf16>
    %10 = tpu.concatenate %7, %8, %9 in 2 : vector<8x16x128xbf16>, vector<8x16x128xbf16>, vector<8x16x128xbf16> -> vector<8x16x384xbf16>
    %c0_18 = arith.constant 0 : index
    %c0_19 = arith.constant 0 : index
    %c0_20 = arith.constant 0 : index
    %11 = vector.load %arg9[%c0_18, %c0_19, %c0_20] : memref<18x16x384xbf16, #tpu.memory_space<vmem>>, vector<8x16x384xbf16>
    tpu.vector_store %arg9[%c0_18, %c0_19, %c0_20], %10 {strides = array<i32>} : memref<18x16x384xbf16, #tpu.memory_space<vmem>>, vector<8x16x384xbf16>,
    %c8_21 = arith.constant 8 : index
    %c7_22 = arith.constant 7 : index
    %c0_23 = arith.constant 0 : index
    %12 = vector.load %arg7[%c8_21, %c7_22, %c0_23] : memref<18x32x128xbf16, #tpu.memory_space<vmem>>, vector<8x16x128xbf16>
    %c8_24 = arith.constant 8 : index
    %c8_25 = arith.constant 8 : index
    %c0_26 = arith.constant 0 : index
    %13 = vector.load %arg7[%c8_24, %c8_25, %c0_26] : memref<18x32x128xbf16, #tpu.memory_space<vmem>>, vector<8x16x128xbf16>
    %c8_27 = arith.constant 8 : index
    %c9_28 = arith.constant 9 : index
    %c0_29 = arith.constant 0 : index
    %14 = vector.load %arg7[%c8_27, %c9_28, %c0_29] : memref<18x32x128xbf16, #tpu.memory_space<vmem>>, vector<8x16x128xbf16>
    %15 = tpu.concatenate %12, %13, %14 in 2 : vector<8x16x128xbf16>, vector<8x16x128xbf16>, vector<8x16x128xbf16> -> vector<8x16x384xbf16>
    %c8_30 = arith.constant 8 : index
    %c0_31 = arith.constant 0 : index
    %c0_32 = arith.constant 0 : index
    %16 = vector.load %arg9[%c8_30, %c0_31, %c0_32] : memref<18x16x384xbf16, #tpu.memory_space<vmem>>, vector<8x16x384xbf16>
    tpu.vector_store %arg9[%c8_30, %c0_31, %c0_32], %15 {strides = array<i32>} : memref<18x16x384xbf16, #tpu.memory_space<vmem>>, vector<8x16x384xbf16>,
    %c16 = arith.constant 16 : index
    %c7_33 = arith.constant 7 : index
    %c0_34 = arith.constant 0 : index
    %17 = vector.load %arg7[%c16, %c7_33, %c0_34] : memref<18x32x128xbf16, #tpu.memory_space<vmem>>, vector<2x16x128xbf16>
    %c16_35 = arith.constant 16 : index
    %c8_36 = arith.constant 8 : index
    %c0_37 = arith.constant 0 : index
    %18 = vector.load %arg7[%c16_35, %c8_36, %c0_37] : memref<18x32x128xbf16, #tpu.memory_space<vmem>>, vector<2x16x128xbf16>
    %c16_38 = arith.constant 16 : index
    %c9_39 = arith.constant 9 : index
    %c0_40 = arith.constant 0 : index
    %19 = vector.load %arg7[%c16_38, %c9_39, %c0_40] : memref<18x32x128xbf16, #tpu.memory_space<vmem>>, vector<2x16x128xbf16>
    %20 = tpu.concatenate %17, %18, %19 in 2 : vector<2x16x128xbf16>, vector<2x16x128xbf16>, vector<2x16x128xbf16> -> vector<2x16x384xbf16>
    %c16_41 = arith.constant 16 : index
    %c0_42 = arith.constant 0 : index
    %c0_43 = arith.constant 0 : index
    %21 = vector.load %arg9[%c16_41, %c0_42, %c0_43] : memref<18x16x384xbf16, #tpu.memory_space<vmem>>, vector<2x16x384xbf16>
    tpu.vector_store %arg9[%c16_41, %c0_42, %c0_43], %20 {strides = array<i32>} : memref<18x16x384xbf16, #tpu.memory_space<vmem>>, vector<2x16x384xbf16>,
    %c0_44 = arith.constant 0 : index
    %c0_45 = arith.constant 0 : index
    %22 = vector.load %arg3[%c0_44, %c0_45] : memref<1x128xf32, #tpu.memory_space<vmem>>, vector<1x128xf32>
    %c0_46 = arith.constant 0 : index
    %c0_47 = arith.constant 0 : index
    %c0_48 = arith.constant 0 : index
    %23 = vector.load %arg9[%c0_46, %c0_47, %c0_48] : memref<18x16x384xbf16, #tpu.memory_space<vmem>>, vector<8x16x384xbf16>
    %24 = vector.shape_cast %23 : vector<8x16x384xbf16> to vector<128x384xbf16>
    %c0_49 = arith.constant 0 : index
    %c0_50 = arith.constant 0 : index
    %c0_51 = arith.constant 0 : index
    %25 = vector.load %arg2[%c0_49, %c0_50, %c0_51] : memref<3x384x128xbf16, #tpu.memory_space<vmem>>, vector<1x384x128xbf16>
    %26 = vector.shape_cast %25 : vector<1x384x128xbf16> to vector<384x128xbf16>
    %cst_52 = arith.constant dense<0.000000e+00> : vector<128x128xf32>
    %27 = tpu.matmul %24, %26, %cst_52 {dimension_numbers = #tpu.dot_dimension_numbers<[1], [0], [0], [1], [0, 0, 1, 1], [], []>} : vector<128x384xbf16>, vector<384x128xbf16>, vector<128x128xf32> -> vector<128x128xf32>
    %c1_53 = arith.constant 1 : index
    %c0_54 = arith.constant 0 : index
    %c0_55 = arith.constant 0 : index
    %28 = vector.load %arg9[%c1_53, %c0_54, %c0_55] : memref<18x16x384xbf16, #tpu.memory_space<vmem>>, vector<8x16x384xbf16>
    %29 = vector.shape_cast %28 : vector<8x16x384xbf16> to vector<128x384xbf16>
    %c1_56 = arith.constant 1 : index
    %c0_57 = arith.constant 0 : index
    %c0_58 = arith.constant 0 : index
    %30 = vector.load %arg2[%c1_56, %c0_57, %c0_58] : memref<3x384x128xbf16, #tpu.memory_space<vmem>>, vector<1x384x128xbf16>
    %31 = vector.shape_cast %30 : vector<1x384x128xbf16> to vector<384x128xbf16>
    %cst_59 = arith.constant dense<0.000000e+00> : vector<128x128xf32>
    %32 = tpu.matmul %29, %31, %cst_59 {dimension_numbers = #tpu.dot_dimension_numbers<[1], [0], [0], [1], [0, 0, 1, 1], [], []>} : vector<128x384xbf16>, vector<384x128xbf16>, vector<128x128xf32> -> vector<128x128xf32>
    %33 = arith.addf %27, %32 : vector<128x128xf32>
    %c2 = arith.constant 2 : index
    %c0_60 = arith.constant 0 : index
    %c0_61 = arith.constant 0 : index
    %34 = vector.load %arg9[%c2, %c0_60, %c0_61] : memref<18x16x384xbf16, #tpu.memory_space<vmem>>, vector<8x16x384xbf16>
    %35 = vector.shape_cast %34 : vector<8x16x384xbf16> to vector<128x384xbf16>
    %c2_62 = arith.constant 2 : index
    %c0_63 = arith.constant 0 : index
    %c0_64 = arith.constant 0 : index
    %36 = vector.load %arg2[%c2_62, %c0_63, %c0_64] : memref<3x384x128xbf16, #tpu.memory_space<vmem>>, vector<1x384x128xbf16>
    %37 = vector.shape_cast %36 : vector<1x384x128xbf16> to vector<384x128xbf16>
    %cst_65 = arith.constant dense<0.000000e+00> : vector<128x128xf32>
    %38 = tpu.matmul %35, %37, %cst_65 {dimension_numbers = #tpu.dot_dimension_numbers<[1], [0], [0], [1], [0, 0, 1, 1], [], []>} : vector<128x384xbf16>, vector<384x128xbf16>, vector<128x128xf32> -> vector<128x128xf32>
    %39 = arith.addf %33, %38 : vector<128x128xf32>
    %40 = vector.broadcast %22 : vector<1x128xf32> to vector<128x128xf32>
    %41 = arith.addf %39, %40 : vector<128x128xf32>
    %cst_66 = arith.constant 0.000000e+00 : f32
    %42 = vector.broadcast %cst_66 : f32 to vector<128x128xf32>
    %43 = arith.maximumf %41, %42 : vector<128x128xf32>
    %44 = vector.shape_cast %43 : vector<128x128xf32> to vector<8x16x128xf32>
    %45 = arith.truncf %44 : vector<8x16x128xf32> to vector<8x16x128xbf16>
    %c1_67 = arith.constant 1 : index
    %c8_68 = arith.constant 8 : index
    %c0_69 = arith.constant 0 : index
    %46 = vector.load %arg8[%c1_67, %c8_68, %c0_69] : memref<18x32x128xbf16, #tpu.memory_space<vmem>>, vector<8x16x128xbf16>
    tpu.vector_store %arg8[%c1_67, %c8_68, %c0_69], %45 {strides = array<i32>} : memref<18x32x128xbf16, #tpu.memory_space<vmem>>, vector<8x16x128xbf16>,
    %c8_70 = arith.constant 8 : index
    %c0_71 = arith.constant 0 : index
    %c0_72 = arith.constant 0 : index
    %47 = vector.load %arg9[%c8_70, %c0_71, %c0_72] : memref<18x16x384xbf16, #tpu.memory_space<vmem>>, vector<8x16x384xbf16>
    %48 = vector.shape_cast %47 : vector<8x16x384xbf16> to vector<128x384xbf16>
    %c0_73 = arith.constant 0 : index
    %c0_74 = arith.constant 0 : index
    %c0_75 = arith.constant 0 : index
    %49 = vector.load %arg2[%c0_73, %c0_74, %c0_75] : memref<3x384x128xbf16, #tpu.memory_space<vmem>>, vector<1x384x128xbf16>
    %50 = vector.shape_cast %49 : vector<1x384x128xbf16> to vector<384x128xbf16>
    %cst_76 = arith.constant dense<0.000000e+00> : vector<128x128xf32>
    %51 = tpu.matmul %48, %50, %cst_76 {dimension_numbers = #tpu.dot_dimension_numbers<[1], [0], [0], [1], [0, 0, 1, 1], [], []>} : vector<128x384xbf16>, vector<384x128xbf16>, vector<128x128xf32> -> vector<128x128xf32>
    %c9_77 = arith.constant 9 : index
    %c0_78 = arith.constant 0 : index
    %c0_79 = arith.constant 0 : index
    %52 = vector.load %arg9[%c9_77, %c0_78, %c0_79] : memref<18x16x384xbf16, #tpu.memory_space<vmem>>, vector<8x16x384xbf16>
    %53 = vector.shape_cast %52 : vector<8x16x384xbf16> to vector<128x384xbf16>
    %c1_80 = arith.constant 1 : index
    %c0_81 = arith.constant 0 : index
    %c0_82 = arith.constant 0 : index
    %54 = vector.load %arg2[%c1_80, %c0_81, %c0_82] : memref<3x384x128xbf16, #tpu.memory_space<vmem>>, vector<1x384x128xbf16>
    %55 = vector.shape_cast %54 : vector<1x384x128xbf16> to vector<384x128xbf16>
    %cst_83 = arith.constant dense<0.000000e+00> : vector<128x128xf32>
    %56 = tpu.matmul %53, %55, %cst_83 {dimension_numbers = #tpu.dot_dimension_numbers<[1], [0], [0], [1], [0, 0, 1, 1], [], []>} : vector<128x384xbf16>, vector<384x128xbf16>, vector<128x128xf32> -> vector<128x128xf32>
    %57 = arith.addf %51, %56 : vector<128x128xf32>
    %c10 = arith.constant 10 : index
    %c0_84 = arith.constant 0 : index
    %c0_85 = arith.constant 0 : index
    %58 = vector.load %arg9[%c10, %c0_84, %c0_85] : memref<18x16x384xbf16, #tpu.memory_space<vmem>>, vector<8x16x384xbf16>
    %59 = vector.shape_cast %58 : vector<8x16x384xbf16> to vector<128x384xbf16>
    %c2_86 = arith.constant 2 : index
    %c0_87 = arith.constant 0 : index
    %c0_88 = arith.constant 0 : index
    %60 = vector.load %arg2[%c2_86, %c0_87, %c0_88] : memref<3x384x128xbf16, #tpu.memory_space<vmem>>, vector<1x384x128xbf16>
    %61 = vector.shape_cast %60 : vector<1x384x128xbf16> to vector<384x128xbf16>
    %cst_89 = arith.constant dense<0.000000e+00> : vector<128x128xf32>
    %62 = tpu.matmul %59, %61, %cst_89 {dimension_numbers = #tpu.dot_dimension_numbers<[1], [0], [0], [1], [0, 0, 1, 1], [], []>} : vector<128x384xbf16>, vector<384x128xbf16>, vector<128x128xf32> -> vector<128x128xf32>
    %63 = arith.addf %57, %62 : vector<128x128xf32>
    %64 = vector.broadcast %22 : vector<1x128xf32> to vector<128x128xf32>
    %65 = arith.addf %63, %64 : vector<128x128xf32>
    %cst_90 = arith.constant 0.000000e+00 : f32
    %66 = vector.broadcast %cst_90 : f32 to vector<128x128xf32>
    %67 = arith.maximumf %65, %66 : vector<128x128xf32>
    %68 = vector.shape_cast %67 : vector<128x128xf32> to vector<8x16x128xf32>
    %69 = arith.truncf %68 : vector<8x16x128xf32> to vector<8x16x128xbf16>
    %c9_91 = arith.constant 9 : index
    %c8_92 = arith.constant 8 : index
    %c0_93 = arith.constant 0 : index
    %70 = vector.load %arg8[%c9_91, %c8_92, %c0_93] : memref<18x32x128xbf16, #tpu.memory_space<vmem>>, vector<8x16x128xbf16>
    tpu.vector_store %arg8[%c9_91, %c8_92, %c0_93], %69 {strides = array<i32>} : memref<18x32x128xbf16, #tpu.memory_space<vmem>>, vector<8x16x128xbf16>,
    %c0_94 = arith.constant 0 : index
    %c7_95 = arith.constant 7 : index
    %c0_96 = arith.constant 0 : index
    %71 = vector.load %arg8[%c0_94, %c7_95, %c0_96] : memref<18x32x128xbf16, #tpu.memory_space<vmem>>, vector<8x16x128xbf16>
    %c0_97 = arith.constant 0 : index
    %c8_98 = arith.constant 8 : index
    %c0_99 = arith.constant 0 : index
    %72 = vector.load %arg8[%c0_97, %c8_98, %c0_99] : memref<18x32x128xbf16, #tpu.memory_space<vmem>>, vector<8x16x128xbf16>
    %c0_100 = arith.constant 0 : index
    %c9_101 = arith.constant 9 : index
    %c0_102 = arith.constant 0 : index
    %73 = vector.load %arg8[%c0_100, %c9_101, %c0_102] : memref<18x32x128xbf16, #tpu.memory_space<vmem>>, vector<8x16x128xbf16>
    %74 = tpu.concatenate %71, %72, %73 in 2 : vector<8x16x128xbf16>, vector<8x16x128xbf16>, vector<8x16x128xbf16> -> vector<8x16x384xbf16>
    %c0_103 = arith.constant 0 : index
    %c0_104 = arith.constant 0 : index
    %c0_105 = arith.constant 0 : index
    %75 = vector.load %arg10[%c0_103, %c0_104, %c0_105] : memref<18x16x384xbf16, #tpu.memory_space<vmem>>, vector<8x16x384xbf16>
    tpu.vector_store %arg10[%c0_103, %c0_104, %c0_105], %74 {strides = array<i32>} : memref<18x16x384xbf16, #tpu.memory_space<vmem>>, vector<8x16x384xbf16>,
    %c8_106 = arith.constant 8 : index
    %c7_107 = arith.constant 7 : index
    %c0_108 = arith.constant 0 : index
    %76 = vector.load %arg8[%c8_106, %c7_107, %c0_108] : memref<18x32x128xbf16, #tpu.memory_space<vmem>>, vector<8x16x128xbf16>
    %c8_109 = arith.constant 8 : index
    %c8_110 = arith.constant 8 : index
    %c0_111 = arith.constant 0 : index
    %77 = vector.load %arg8[%c8_109, %c8_110, %c0_111] : memref<18x32x128xbf16, #tpu.memory_space<vmem>>, vector<8x16x128xbf16>
    %c8_112 = arith.constant 8 : index
    %c9_113 = arith.constant 9 : index
    %c0_114 = arith.constant 0 : index
    %78 = vector.load %arg8[%c8_112, %c9_113, %c0_114] : memref<18x32x128xbf16, #tpu.memory_space<vmem>>, vector<8x16x128xbf16>
    %79 = tpu.concatenate %76, %77, %78 in 2 : vector<8x16x128xbf16>, vector<8x16x128xbf16>, vector<8x16x128xbf16> -> vector<8x16x384xbf16>
    %c8_115 = arith.constant 8 : index
    %c0_116 = arith.constant 0 : index
    %c0_117 = arith.constant 0 : index
    %80 = vector.load %arg10[%c8_115, %c0_116, %c0_117] : memref<18x16x384xbf16, #tpu.memory_space<vmem>>, vector<8x16x384xbf16>
    tpu.vector_store %arg10[%c8_115, %c0_116, %c0_117], %79 {strides = array<i32>} : memref<18x16x384xbf16, #tpu.memory_space<vmem>>, vector<8x16x384xbf16>,
    %c16_118 = arith.constant 16 : index
    %c7_119 = arith.constant 7 : index
    %c0_120 = arith.constant 0 : index
    %81 = vector.load %arg8[%c16_118, %c7_119, %c0_120] : memref<18x32x128xbf16, #tpu.memory_space<vmem>>, vector<2x16x128xbf16>
    %c16_121 = arith.constant 16 : index
    %c8_122 = arith.constant 8 : index
    %c0_123 = arith.constant 0 : index
    %82 = vector.load %arg8[%c16_121, %c8_122, %c0_123] : memref<18x32x128xbf16, #tpu.memory_space<vmem>>, vector<2x16x128xbf16>
    %c16_124 = arith.constant 16 : index
    %c9_125 = arith.constant 9 : index
    %c0_126 = arith.constant 0 : index
    %83 = vector.load %arg8[%c16_124, %c9_125, %c0_126] : memref<18x32x128xbf16, #tpu.memory_space<vmem>>, vector<2x16x128xbf16>
    %84 = tpu.concatenate %81, %82, %83 in 2 : vector<2x16x128xbf16>, vector<2x16x128xbf16>, vector<2x16x128xbf16> -> vector<2x16x384xbf16>
    %c16_127 = arith.constant 16 : index
    %c0_128 = arith.constant 0 : index
    %c0_129 = arith.constant 0 : index
    %85 = vector.load %arg10[%c16_127, %c0_128, %c0_129] : memref<18x16x384xbf16, #tpu.memory_space<vmem>>, vector<2x16x384xbf16>
    tpu.vector_store %arg10[%c16_127, %c0_128, %c0_129], %84 {strides = array<i32>} : memref<18x16x384xbf16, #tpu.memory_space<vmem>>, vector<2x16x384xbf16>,
    %c0_130 = arith.constant 0 : index
    %c0_131 = arith.constant 0 : index
    %86 = vector.load %arg5[%c0_130, %c0_131] : memref<1x128xf32, #tpu.memory_space<vmem>>, vector<1x128xf32>
    %c0_132 = arith.constant 0 : index
    %c0_133 = arith.constant 0 : index
    %c0_134 = arith.constant 0 : index
    %87 = vector.load %arg10[%c0_132, %c0_133, %c0_134] : memref<18x16x384xbf16, #tpu.memory_space<vmem>>, vector<8x16x384xbf16>
    %88 = vector.shape_cast %87 : vector<8x16x384xbf16> to vector<128x384xbf16>
    %c0_135 = arith.constant 0 : index
    %c0_136 = arith.constant 0 : index
    %c0_137 = arith.constant 0 : index
    %89 = vector.load %arg4[%c0_135, %c0_136, %c0_137] : memref<3x384x128xbf16, #tpu.memory_space<vmem>>, vector<1x384x128xbf16>
    %90 = vector.shape_cast %89 : vector<1x384x128xbf16> to vector<384x128xbf16>
    %cst_138 = arith.constant dense<0.000000e+00> : vector<128x128xf32>
    %91 = tpu.matmul %88, %90, %cst_138 {dimension_numbers = #tpu.dot_dimension_numbers<[1], [0], [0], [1], [0, 0, 1, 1], [], []>} : vector<128x384xbf16>, vector<384x128xbf16>, vector<128x128xf32> -> vector<128x128xf32>
    %c1_139 = arith.constant 1 : index
    %c0_140 = arith.constant 0 : index
    %c0_141 = arith.constant 0 : index
    %92 = vector.load %arg10[%c1_139, %c0_140, %c0_141] : memref<18x16x384xbf16, #tpu.memory_space<vmem>>, vector<8x16x384xbf16>
    %93 = vector.shape_cast %92 : vector<8x16x384xbf16> to vector<128x384xbf16>
    %c1_142 = arith.constant 1 : index
    %c0_143 = arith.constant 0 : index
    %c0_144 = arith.constant 0 : index
    %94 = vector.load %arg4[%c1_142, %c0_143, %c0_144] : memref<3x384x128xbf16, #tpu.memory_space<vmem>>, vector<1x384x128xbf16>
    %95 = vector.shape_cast %94 : vector<1x384x128xbf16> to vector<384x128xbf16>
    %cst_145 = arith.constant dense<0.000000e+00> : vector<128x128xf32>
    %96 = tpu.matmul %93, %95, %cst_145 {dimension_numbers = #tpu.dot_dimension_numbers<[1], [0], [0], [1], [0, 0, 1, 1], [], []>} : vector<128x384xbf16>, vector<384x128xbf16>, vector<128x128xf32> -> vector<128x128xf32>
    %97 = arith.addf %91, %96 : vector<128x128xf32>
    %c2_146 = arith.constant 2 : index
    %c0_147 = arith.constant 0 : index
    %c0_148 = arith.constant 0 : index
    %98 = vector.load %arg10[%c2_146, %c0_147, %c0_148] : memref<18x16x384xbf16, #tpu.memory_space<vmem>>, vector<8x16x384xbf16>
    %99 = vector.shape_cast %98 : vector<8x16x384xbf16> to vector<128x384xbf16>
    %c2_149 = arith.constant 2 : index
    %c0_150 = arith.constant 0 : index
    %c0_151 = arith.constant 0 : index
    %100 = vector.load %arg4[%c2_149, %c0_150, %c0_151] : memref<3x384x128xbf16, #tpu.memory_space<vmem>>, vector<1x384x128xbf16>
    %101 = vector.shape_cast %100 : vector<1x384x128xbf16> to vector<384x128xbf16>
    %cst_152 = arith.constant dense<0.000000e+00> : vector<128x128xf32>
    %102 = tpu.matmul %99, %101, %cst_152 {dimension_numbers = #tpu.dot_dimension_numbers<[1], [0], [0], [1], [0, 0, 1, 1], [], []>} : vector<128x384xbf16>, vector<384x128xbf16>, vector<128x128xf32> -> vector<128x128xf32>
    %103 = arith.addf %97, %102 : vector<128x128xf32>
    %104 = vector.broadcast %86 : vector<1x128xf32> to vector<128x128xf32>
    %105 = arith.addf %103, %104 : vector<128x128xf32>
    %c0_153 = arith.constant 0 : index
    %c0_154 = arith.constant 0 : index
    %c0_155 = arith.constant 0 : index
    %c0_156 = arith.constant 0 : index
    %106 = vector.load %arg1[%c0_153, %c0_154, %c0_155, %c0_156] : memref<1x16x16x128xbf16, #tpu.memory_space<vmem>>, vector<1x8x16x128xbf16>
    %107 = vector.shape_cast %106 : vector<1x8x16x128xbf16> to vector<8x16x128xbf16>
    %108 = vector.shape_cast %107 : vector<8x16x128xbf16> to vector<128x128xbf16>
    %109 = arith.extf %108 : vector<128x128xbf16> to vector<128x128xf32>
    %110 = arith.addf %105, %109 : vector<128x128xf32>
    %cst_157 = arith.constant 0.000000e+00 : f32
    %111 = vector.broadcast %cst_157 : f32 to vector<128x128xf32>
    %112 = arith.maximumf %110, %111 : vector<128x128xf32>
    %113 = vector.shape_cast %112 : vector<128x128xf32> to vector<8x16x128xf32>
    %114 = arith.truncf %113 : vector<8x16x128xf32> to vector<8x16x128xbf16>
    %c0_158 = arith.constant 0 : index
    %c0_159 = arith.constant 0 : index
    %c0_160 = arith.constant 0 : index
    %c0_161 = arith.constant 0 : index
    %115 = vector.load %arg6[%c0_158, %c0_159, %c0_160, %c0_161] : memref<1x16x16x128xbf16, #tpu.memory_space<vmem>>, vector<1x8x16x128xbf16>
    %116 = vector.shape_cast %115 : vector<1x8x16x128xbf16> to vector<8x16x128xbf16>
    %117 = vector.shape_cast %114 : vector<8x16x128xbf16> to vector<1x8x16x128xbf16>
    tpu.vector_store %arg6[%c0_158, %c0_159, %c0_160, %c0_161], %117 {strides = array<i32>} : memref<1x16x16x128xbf16, #tpu.memory_space<vmem>>, vector<1x8x16x128xbf16>,
    %c8_162 = arith.constant 8 : index
    %c0_163 = arith.constant 0 : index
    %c0_164 = arith.constant 0 : index
    %118 = vector.load %arg10[%c8_162, %c0_163, %c0_164] : memref<18x16x384xbf16, #tpu.memory_space<vmem>>, vector<8x16x384xbf16>
    %119 = vector.shape_cast %118 : vector<8x16x384xbf16> to vector<128x384xbf16>
    %c0_165 = arith.constant 0 : index
    %c0_166 = arith.constant 0 : index
    %c0_167 = arith.constant 0 : index
    %120 = vector.load %arg4[%c0_165, %c0_166, %c0_167] : memref<3x384x128xbf16, #tpu.memory_space<vmem>>, vector<1x384x128xbf16>
    %121 = vector.shape_cast %120 : vector<1x384x128xbf16> to vector<384x128xbf16>
    %cst_168 = arith.constant dense<0.000000e+00> : vector<128x128xf32>
    %122 = tpu.matmul %119, %121, %cst_168 {dimension_numbers = #tpu.dot_dimension_numbers<[1], [0], [0], [1], [0, 0, 1, 1], [], []>} : vector<128x384xbf16>, vector<384x128xbf16>, vector<128x128xf32> -> vector<128x128xf32>
    %c9_169 = arith.constant 9 : index
    %c0_170 = arith.constant 0 : index
    %c0_171 = arith.constant 0 : index
    %123 = vector.load %arg10[%c9_169, %c0_170, %c0_171] : memref<18x16x384xbf16, #tpu.memory_space<vmem>>, vector<8x16x384xbf16>
    %124 = vector.shape_cast %123 : vector<8x16x384xbf16> to vector<128x384xbf16>
    %c1_172 = arith.constant 1 : index
    %c0_173 = arith.constant 0 : index
    %c0_174 = arith.constant 0 : index
    %125 = vector.load %arg4[%c1_172, %c0_173, %c0_174] : memref<3x384x128xbf16, #tpu.memory_space<vmem>>, vector<1x384x128xbf16>
    %126 = vector.shape_cast %125 : vector<1x384x128xbf16> to vector<384x128xbf16>
    %cst_175 = arith.constant dense<0.000000e+00> : vector<128x128xf32>
    %127 = tpu.matmul %124, %126, %cst_175 {dimension_numbers = #tpu.dot_dimension_numbers<[1], [0], [0], [1], [0, 0, 1, 1], [], []>} : vector<128x384xbf16>, vector<384x128xbf16>, vector<128x128xf32> -> vector<128x128xf32>
    %128 = arith.addf %122, %127 : vector<128x128xf32>
    %c10_176 = arith.constant 10 : index
    %c0_177 = arith.constant 0 : index
    %c0_178 = arith.constant 0 : index
    %129 = vector.load %arg10[%c10_176, %c0_177, %c0_178] : memref<18x16x384xbf16, #tpu.memory_space<vmem>>, vector<8x16x384xbf16>
    %130 = vector.shape_cast %129 : vector<8x16x384xbf16> to vector<128x384xbf16>
    %c2_179 = arith.constant 2 : index
    %c0_180 = arith.constant 0 : index
    %c0_181 = arith.constant 0 : index
    %131 = vector.load %arg4[%c2_179, %c0_180, %c0_181] : memref<3x384x128xbf16, #tpu.memory_space<vmem>>, vector<1x384x128xbf16>
    %132 = vector.shape_cast %131 : vector<1x384x128xbf16> to vector<384x128xbf16>
    %cst_182 = arith.constant dense<0.000000e+00> : vector<128x128xf32>
    %133 = tpu.matmul %130, %132, %cst_182 {dimension_numbers = #tpu.dot_dimension_numbers<[1], [0], [0], [1], [0, 0, 1, 1], [], []>} : vector<128x384xbf16>, vector<384x128xbf16>, vector<128x128xf32> -> vector<128x128xf32>
    %134 = arith.addf %128, %133 : vector<128x128xf32>
    %135 = vector.broadcast %86 : vector<1x128xf32> to vector<128x128xf32>
    %136 = arith.addf %134, %135 : vector<128x128xf32>
    %c0_183 = arith.constant 0 : index
    %c8_184 = arith.constant 8 : index
    %c0_185 = arith.constant 0 : index
    %c0_186 = arith.constant 0 : index
    %137 = vector.load %arg1[%c0_183, %c8_184, %c0_185, %c0_186] : memref<1x16x16x128xbf16, #tpu.memory_space<vmem>>, vector<1x8x16x128xbf16>
    %138 = vector.shape_cast %137 : vector<1x8x16x128xbf16> to vector<8x16x128xbf16>
    %139 = vector.shape_cast %138 : vector<8x16x128xbf16> to vector<128x128xbf16>
    %140 = arith.extf %139 : vector<128x128xbf16> to vector<128x128xf32>
    %141 = arith.addf %136, %140 : vector<128x128xf32>
    %cst_187 = arith.constant 0.000000e+00 : f32
    %142 = vector.broadcast %cst_187 : f32 to vector<128x128xf32>
    %143 = arith.maximumf %141, %142 : vector<128x128xf32>
    %144 = vector.shape_cast %143 : vector<128x128xf32> to vector<8x16x128xf32>
    %145 = arith.truncf %144 : vector<8x16x128xf32> to vector<8x16x128xbf16>
    %c0_188 = arith.constant 0 : index
    %c8_189 = arith.constant 8 : index
    %c0_190 = arith.constant 0 : index
    %c0_191 = arith.constant 0 : index
    %146 = vector.load %arg6[%c0_188, %c8_189, %c0_190, %c0_191] : memref<1x16x16x128xbf16, #tpu.memory_space<vmem>>, vector<1x8x16x128xbf16>
    %147 = vector.shape_cast %146 : vector<1x8x16x128xbf16> to vector<8x16x128xbf16>
    %148 = vector.shape_cast %145 : vector<8x16x128xbf16> to vector<1x8x16x128xbf16>
    tpu.vector_store %arg6[%c0_188, %c8_189, %c0_190, %c0_191], %148 {strides = array<i32>} : memref<1x16x16x128xbf16, #tpu.memory_space<vmem>>, vector<1x8x16x128xbf16>,
    return
  }
  func.func @transform_0(%arg0: i32) -> (i32, i32, i32, i32) {
    %c0_i32 = arith.constant 0 : i32
    %c0_i32_0 = arith.constant 0 : i32
    %c0_i32_1 = arith.constant 0 : i32
    %c0_i32_2 = arith.constant 0 : i32
    return %arg0, %c0_i32, %c0_i32_0, %c0_i32_1 : i32, i32, i32, i32
  }
  func.func @transform_1(%arg0: i32) -> (i32, i32, i32) {
    %c0_i32 = arith.constant 0 : i32
    %c0_i32_0 = arith.constant 0 : i32
    %c0_i32_1 = arith.constant 0 : i32
    %c0_i32_2 = arith.constant 0 : i32
    return %c0_i32, %c0_i32_0, %c0_i32_1 : i32, i32, i32
  }
  func.func @transform_2(%arg0: i32) -> (i32, i32) {
    %c0_i32 = arith.constant 0 : i32
    %c0_i32_0 = arith.constant 0 : i32
    %c0_i32_1 = arith.constant 0 : i32
    return %c0_i32, %c0_i32_0 : i32, i32
  }
  func.func @transform_3(%arg0: i32) -> (i32, i32, i32) {
    %c0_i32 = arith.constant 0 : i32
    %c0_i32_0 = arith.constant 0 : i32
    %c0_i32_1 = arith.constant 0 : i32
    %c0_i32_2 = arith.constant 0 : i32
    return %c0_i32, %c0_i32_0, %c0_i32_1 : i32, i32, i32
  }
  func.func @transform_4(%arg0: i32) -> (i32, i32) {
    %c0_i32 = arith.constant 0 : i32
    %c0_i32_0 = arith.constant 0 : i32
    %c0_i32_1 = arith.constant 0 : i32
    return %c0_i32, %c0_i32_0 : i32, i32
  }
  func.func @transform_5(%arg0: i32) -> (i32, i32, i32, i32) {
    %c0_i32 = arith.constant 0 : i32
    %c0_i32_0 = arith.constant 0 : i32
    %c0_i32_1 = arith.constant 0 : i32
    %c0_i32_2 = arith.constant 0 : i32
    return %arg0, %c0_i32, %c0_i32_0, %c0_i32_1 : i32, i32, i32, i32
  }
}

</mosaic_0001>

<bundles_post_ra>
// kernel: basic_block_dec.1
= control target key start
LH: loop header
LB: loop body
LE: loop exit
PB: predicated region body
PF: predicated region fallthrough
CT: control target
= control target key end

     0   :  { %10 = vsyncpa [#allocation7], 0  ;;  %s17004_s0 = inlined_call_operand.vmem [shape: bf16[2,16,16,128], index: 0, kind: input, shape index: {}]   ;;  %s17005_s1 = inlined_call_operand.vmem [shape: bf16[3,384,128], index: 1, kind: input, shape index: {}]   ;;  %s17006_s2 = inlined_call_operand.vmem [shape: f32[1,128], index: 2, kind: input, shape index: {}]   ;;  %s17007_s3 = inlined_call_operand.vmem [shape: bf16[3,384,128], index: 3, kind: input, shape index: {}]   ;;  %s17008_s4 = inlined_call_operand.vmem [shape: f32[1,128], index: 4, kind: input, shape index: {}]   ;;  %s17009_s5 = inlined_call_operand.hbm [shape: bf16[2,16,16,128], index: 5, kind: output, shape index: {}]  }
   0x1   :  { %12 = vsyncpa [#allocation7 + $0x1], 0  ;;  %s13859_s18 = smov 0   ;;  %s13861_s19 = smov 0  }
   0x2   :  { %s13863_s20 = smov 0   ;;  %s13865_s21 = smov 0  }
   0x3 LB: > { %s13880_s22 = sadd.s32 4294967295, %s13824_s21   ;;  %s10119_s23 = sadd.s32 4294967294, %s13824_s21   ;;  %s13824_s21 = sphi %s13865_s21, %s17097_s21   ;;  %s13820_s20 = sphi %s13863_s20, %s17096_s20   ;;  %s13816_s19 = sphi %s13861_s19, %s17095_s19   ;;  %s13812_s18 = sphi %s13859_s18, %s17094_s18  }
   0x4   : > { %s13884_s24 = sadd.s32 1, %s13824_s21   ;;  %s135_s25 = sadd.s32 1, %s13820_s20 }
   0x5   : > { %s132_s26 = ssub.s32 %s13824_s21, %s13884_s24  ;;  %p145_p0 = scmp.ne.s32.totalorder %s13820_s20, %s13816_s19 }
   0x6   : > { %p133_p1 = scmp.eq.s32.totalorder %s132_s26, 0  ;;  %p146_p2 = scmp.eq.s32.totalorder %s13880_s22, 1 }
   0x7   : > { %p151_p3 = scmp.ne.s32.totalorder %s13816_s19, %s13812_s18  ;;  %p152_p4 = scmp.eq.s32.totalorder %s10119_s23, 1 }
   0x8   : > { %s13895_s27 = scalar_select %p133_p1, %s13820_s20, %s135_s25  }
   0x9   : > { %p13897_p5 = por %p146_p2, %p145_p0  ;;  %p13901_p6 = por %p152_p4, %p151_p3 }
   0xa   : > { %p10122_p7 = scmp.ge.s32.totalorder %s13824_s21, 1  ;;  %p190_p8 = scmp.lt.s32.totalorder %s13824_s21, 3 }
   0xc   : > { %p191_p9 = pnand %p10122_p7, %p190_p8 }
   0xe   : > { %194 = sbr.rel (%p191_p9) target bundleno = 1495 (0x5d7), region = 40 }
  0x13   : > { %v12955_v0 = vld [vmem:[%s17005_s1 + $0x38] sm:$0xff]  ;;  %v13826_v4 = vmov 0   ;;  %v12954_v5 = vld [vmem:[%s17005_s1 + $0x30] sm:$0xff]  ;;  %v12953_v9 = vld [vmem:[%s17005_s1 + $0x28] sm:$0xff]  ;;  %vm13722_vm0 = vcmask 1043456  ;;  %p218_p10 = scmp.lt.s32.totalorder %s13880_s22, 1 }
  0x14   : > { %v13019_v1 = vld [vmem:[%s17005_s1 + $0x178] sm:$0xff]  ;;  %224 = vst [vmem:[#allocation2] sm:$0xf] %v13826_v4  ;;  %2879 = vmatpush.bf16.msra.mxu3 %v12955_v0  ;;  %v13018_v6 = vld [vmem:[%s17005_s1 + $0x170] sm:$0xff]  ;;  %v13017_v10 = vld [vmem:[%s17005_s1 + $0x168] sm:$0xff]  ;;  %vm609_vm4 = vcmask 1042432  }
  0x15   : > { %v13003_v2 = vld [vmem:[%s17005_s1 + $0xf8] sm:$0xff]  ;;  %2558 = vmatpush.bf16.msra.mxu2 %v13019_v1  ;;  %225 = vst [vmem:[#allocation2 + $0x4] sm:$0xf] %v13826_v4  ;;  %v13002_v7 = vld [vmem:[%s17005_s1 + $0xf0] sm:$0xff]  ;;  %v13001_v11 = vld [vmem:[%s17005_s1 + $0xe8] sm:$0xff]  ;;  %s219_s30 = scalar_select %p218_p10, %s13880_s22, 1 }
  0x16   : > { %v13011_v3 = vld [vmem:[%s17005_s1 + $0x138] sm:$0xff]  ;;  %2460 = vmatpush.bf16.msra.mxu0 %v13003_v2  ;;  %v13010_v8 = vld [vmem:[%s17005_s1 + $0x130] sm:$0xff]  ;;  %226 = vst [vmem:[#allocation2 + $0x8] sm:$0xf] %v13826_v4  ;;  %v13009_v12 = vld [vmem:[%s17005_s1 + $0x128] sm:$0xff]  ;;  %s215_s10 = sand.u32 1, %s13816_s19  }
  0x17   : > { %2509 = vmatpush.bf16.msra.mxu1 %v13011_v3  ;;  %227 = vst [vmem:[#allocation2 + $0xc] sm:$0xf] %v13826_v4  ;;  %v12952_v13 = vld [vmem:[%s17005_s1 + $0x20] sm:$0xff]  ;;  %v12951_v19 = vld [vmem:[%s17005_s1 + $0x18] sm:$0xff]  ;;  %v12950_v28 = vld [vmem:[%s17005_s1 + $0x10] sm:$0xff]  ;;  %s12923_s6 = sshll.u32 %s219_s30, 7 }
  0x18   : > { %2880 = vmatpush.bf16.msra.mxu3 %v12954_v5  ;;  %228 = vst [vmem:[#allocation2 + $0x10] sm:$0xf] %v13826_v4  ;;  %v13016_v14 = vld [vmem:[%s17005_s1 + $0x160] sm:$0xff]  ;;  %v13015_v20 = vld [vmem:[%s17005_s1 + $0x158] sm:$0xff]  ;;  %v13014_v29 = vld [vmem:[%s17005_s1 + $0x150] sm:$0xff]  ;;  %s14164_s9 = scalar_lea.vmem %s17004_s0, %s12923_s6  ;;  %s10123_s11 = sshll.u32 %s215_s10, 7 }
  0x19   : > { %2559 = vmatpush.bf16.msra.mxu2 %v13018_v6  ;;  %229 = vst [vmem:[#allocation2 + $0x14] sm:$0xf] %v13826_v4  ;;  %v13000_v16 = vld [vmem:[%s17005_s1 + $0xe0] sm:$0xff]  ;;  %v12999_v21 = vld [vmem:[%s17005_s1 + $0xd8] sm:$0xff]  ;;  %v12998_v30 = vld [vmem:[%s17005_s1 + $0xd0] sm:$0xff]  ;;  %s16671_s12 = scalar_lea.vmem [#allocation6], %s10123_s11 }
  0x1a   : > { %2461 = vmatpush.bf16.msra.mxu0 %v13002_v7  ;;  %230 = vst [vmem:[#allocation2 + $0x18] sm:$0xf] %v13826_v4  ;;  %v13008_v17 = vld [vmem:[%s17005_s1 + $0x120] sm:$0xff]  ;;  %v13007_v22 = vld [vmem:[%s17005_s1 + $0x118] sm:$0xff]  ;;  %v13006_v31 = vld [vmem:[%s17005_s1 + $0x110] sm:$0xff]  ;;  %s13500_s16 = sshll.u32 %s13880_s22, 7 }
  0x1b   : > { %2510 = vmatpush.bf16.msra.mxu1 %v13010_v8  ;;  %231 = vst [vmem:[#allocation2 + $0x1c] sm:$0xf] %v13826_v4  ;;  %v433_v25 = vld [vmem:[#allocation2] sm:$0x8]  ;;  %v12949_v35 = vld [vmem:[%s17005_s1 + $0x8] sm:$0xff]  ;;  %v372_v3 = vld [vmem:[%s14164_s9 + $0x10] sm:$0xff]   ;;  %s10053_s23 = scalar_lea.hbm %s17009_s5, %s13500_s16 }
  0x1c   : > { %2881 = vmatpush.bf16.msra.mxu3 %v12953_v9  ;;  %232 = vst [vmem:[#allocation2 + $0x20] sm:$0xf] %v13826_v4  ;;  %v489_v32 = vunpack.c.l.b16 %v433_v25  ;;  %v13013_v36 = vld [vmem:[%s17005_s1 + $0x148] sm:$0xff]  ;;  %vm722_vm1 = vsmask.f32 256  ;;  %v12948_v46 = vld [vmem:[%s17005_s1] sm:$0xff] }
  0x1d   : > { %2560 = vmatpush.bf16.msra.mxu2 %v13017_v10  ;;  %v13957_v15 = vld [vmem:[#allocation2 + $0x4] sm:$0xff]   ;;  %233 = vst [vmem:[#allocation2 + $0x24] sm:$0xf] %v13826_v4  ;;  %vm723_vm2 = vsmask.f32 4368  ;;  %v13051_v7 = vld [vmem:[%s17005_s1 + $0x1b8] sm:$0xff] }
  0x1e   : > { %2462 = vmatpush.bf16.msra.mxu0 %v13001_v11  ;;  %v491_v18 = vunpack.c.h.b16 %v13957_v15  ;;  %234 = vst [vmem:[#allocation2 + $0x28] sm:$0xf] %v13826_v4  ;;  %v522_v23 = vshrl.u32 %v13957_v15, 16  ;;  %v525_v24 = vshll.u32 %v13957_v15, 16  ;;  %v12997_v37 = vld [vmem:[%s17005_s1 + $0xc8] sm:$0xff]  ;;  %v13012_v47 = vld [vmem:[%s17005_s1 + $0x140] sm:$0xff]  ;;  %vm14038_vm3 = vmor %vm722_vm1, %vm723_vm2 }
  0x1f   : > { %2511 = vmatpush.bf16.msra.mxu1 %v13009_v12  ;;  %235 = vst [vmem:[#allocation2 + $0x2c] sm:$0xf] %v13826_v4  ;;  %v13005_v38 = vld [vmem:[%s17005_s1 + $0x108] sm:$0xff]  ;;  %v12996_v49 = vld [vmem:[%s17005_s1 + $0xc0] sm:$0xff]  ;;  %v13059_v8 = vld [vmem:[%s17005_s1 + $0x1f8] sm:$0xff]  ;;  %s10054_s25 = sshll.u32 %s16671_s12, 4  ;;  %s10055_s25 = int_to_ptr.vmem [resolvable:$true] %s10054_s25 }
  0x20   : > { %2882 = vmatpush.bf16.msra.mxu3 %v12952_v13  ;;  %236 = vst [vmem:[#allocation2 + $0x30] sm:$0xf] %v13826_v4  ;;  %v524_v26 = vrot.slane %v522_v23, 4  ;;  %v527_v27 = vrot.slane %v525_v24, 5  ;;  %v13004_v53 = vld [vmem:[%s17005_s1 + $0x100] sm:$0xff]  ;;  %v370_v0 = vld [vmem:[%s14164_s9 + $0x8] sm:$0xff]  }
  0x21   : > { %2561 = vmatpush.bf16.msra.mxu2 %v13016_v14  ;;  %237 = vst [vmem:[#allocation2 + $0x34] sm:$0xf] %v13826_v4  ;;  %v368_v63 = vld [vmem:[%s14164_s9] sm:$0xff]   ;;  %v436_v12 = vld [vmem:[#allocation2 + $0x10] sm:$0x8]  ;;  %v12971_v14 = vld [vmem:[%s17005_s1 + $0xb8] sm:$0xff] }
  0x22   : > { %2463 = vmatpush.bf16.msra.mxu0 %v13000_v16  ;;  %238 = vst [vmem:[#allocation2 + $0x38] sm:$0xf] %v13826_v4  ;;  %v528_v33 = vor.u32 %v527_v27, %v524_v26  ;;  %v458_v1 = vld [vmem:[#allocation2 + $0x1c] sm:$0x1]  ;;  %s10056_s26 = sshll.u32 %s10053_s23, 4  ;;  %s10042_s22 = scalar_lea.sflag [#allocation7], %s215_s10  ;;  %s10057_s26 = int_to_ptr.hbm [resolvable:$true] %s10056_s26 }
  0x23   : > { %2512 = vmatpush.bf16.msra.mxu1 %v13008_v17  ;;  %239 = vst [vmem:[#allocation2 + $0x3c] sm:$0xf] %v13826_v4  ;;  %v594_v5 = vunpack.c.l.b16 %v458_v1  ;;  %v12963_v16 = vld [vmem:[%s17005_s1 + $0x78] sm:$0xff]  ;;  %s13776_s30 = sshra.s32 %s10057_s26, 4  ;;  %s13782_s11 = scalar_lea.hbm %s17009_s5, 256  ;;  %s13777_s30 = int_to_ptr.hbm [resolvable:$true] %s13776_s30 }
  0x24   : > { %2883 = vmatpush.bf16.msra.mxu3 %v12951_v19  ;;  %240 = vst [vmem:[#allocation2 + $0x40] sm:$0xf] %v13826_v4  ;;  %v634_v34 = vunpack.c.l.b16 %v528_v33  ;;  %v13723_v40 = vsel %vm13722_vm0, %v13957_v15, %v528_v33  ;;  %s13778_s6 = scalar_lea.hbm %s13777_s30, 128  ;;  %p13783_p0 = scmp.lt.s32.totalorder %s13777_s30, %s17009_s5 }
  0x25   : > { %2562 = vmatpush.bf16.msra.mxu2 %v13015_v20  ;;  %241 = vst [vmem:[#allocation2 + $0x44] sm:$0xf] %v13826_v4  ;;  %v731_v43 = vshrl.u32 %v13723_v40, 16  ;;  %v734_v44 = vshll.u32 %v13723_v40, 16  ;;  %v602_v9 = vpack.c.b16 %v594_v5, %v594_v5  ;;  %p13779_p11 = scmp.ne.s32.totalorder %s13777_s30, %s13778_s6  ;;  %p13784_p1 = scmp.lt.s32.totalorder %s13782_s11, %s13778_s6 }
  0x26   : > { %2464 = vmatpush.bf16.msra.mxu0 %v12999_v21  ;;  %242 = vst [vmem:[#allocation2 + $0x48] sm:$0xf] %v13826_v4  ;;  %v674_v39 = vpack.c.b16 %v634_v34, %v489_v32  ;;  %v678_v41 = vpack.c.b16 %v634_v34, %v491_v18  ;;  %v459_v2 = vld [vmem:[#allocation2 + $0x2c] sm:$0x1] }
  0x27   : > { %2513 = vmatpush.bf16.msra.mxu1 %v13007_v22  ;;  %243 = vst [vmem:[#allocation2 + $0x4c] sm:$0xf] %v13826_v4  ;;  %v733_v51 = vrot.slane %v731_v43, 7  ;;  %v595_v6 = vunpack.c.l.b16 %v459_v2  ;;  %v614_v19 = vrot.slane %v602_v9, 5  ;;  %v492_v22 = vunpack.c.l.b16 %v436_v12  ;;  %p13780_p12 = pnand %p13779_p11, %p13897_p5  ;;  %p13785_p2 = por %p13784_p1, %p13783_p0 }
  0x28   : > { %2884 = vmatpush.bf16.msra.mxu3 %v12950_v28  ;;  %244 = vst [vmem:[#allocation2 + $0x50] sm:$0xf] %v13826_v4  ;;  %v726_v42 = vshrl.u32 %v674_v39, 16  ;;  %v753_v45 = vshrl.u32 %v678_v41, 16  ;;  %v756_v48 = vshll.u32 %v678_v41, 16 }
  0x29   : > { %2563 = vmatpush.bf16.msra.mxu2 %v13014_v29  ;;  %245 = vst [vmem:[#allocation2 + $0x54] sm:$0xf] %v13826_v4  ;;  %v736_v55 = vor.u32 %v734_v44, %v733_v51  ;;  %v751_v56 = vrot.slane %v733_v51, 4  ;;  %v603_v10 = vpack.c.b16 %v595_v6, %v595_v6  ;;  %p13781_p13 = pneg %p13780_p12 }
  0x2a   : > { %2465 = vmatpush.bf16.msra.mxu0 %v12998_v30  ;;  %246 = vst [vmem:[#allocation2 + $0x58] sm:$0xf] %v13826_v4  ;;  %v10126_v50 = vrot.slane %v726_v42, 11  ;;  %v755_v52 = vrot.slane %v753_v45, 7  ;;  %v460_v20 = vld [vmem:[#allocation2 + $0x3c] sm:$0x1] }
  0x2b   : > { %2514 = vmatpush.bf16.msra.mxu1 %v13006_v31  ;;  %247 = vst [vmem:[#allocation2 + $0x5c] sm:$0xf] %v13826_v4  ;;  %v617_v23 = vrot.slane %v603_v10, 5  ;;  %v596_v24 = vunpack.c.l.b16 %v460_v20  ;;  %p13786_p3 = pnand %p13785_p2, %p13781_p13 }
  0x2c   : > { %2885 = vmatpush.bf16.msra.mxu3 %v12949_v35  ;;  %248 = vst [vmem:[#allocation2 + $0x60] sm:$0xf] %v13826_v4  ;;  %v758_v57 = vor.u32 %v756_v48, %v755_v52  ;;  %v737_v58 = vsel %vm14038_vm3, %v10126_v50, %v736_v55  ;;  %v374_v48 = vld [vmem:[%s14164_s9 + $0x18] sm:$0xff]  }
  0x2d   : > { %2564 = vmatpush.bf16.msra.mxu2 %v13013_v36  ;;  %249 = vst [vmem:[#allocation2 + $0x64] sm:$0xf] %v13826_v4  ;;  %v14195_v31 = vpack.c.b16 %v596_v24, %v596_v24 }
  0x2e   : > { %2466 = vmatpush.bf16.msra.mxu0 %v12997_v37  ;;  %250 = vst [vmem:[#allocation2 + $0x68] sm:$0xf] %v13826_v4  ;;  %v759_v59 = vsel %vm14038_vm3, %v751_v56, %v758_v57 }
  0x2f   : > { %2515 = vmatpush.bf16.msra.mxu1 %v13005_v38  ;;  %251 = vst [vmem:[#allocation2 + $0x6c] sm:$0xf] %v13826_v4 }
  0x30   : > { %2886 = vmatpush.bf16.msra.mxu3 %v12948_v46  ;;  %252 = vst [vmem:[#allocation2 + $0x70] sm:$0xf] %v13826_v4 }
  0x31   : > { %2565 = vmatpush.bf16.msra.mxu2 %v13012_v47  ;;  %253 = vst [vmem:[#allocation2 + $0x74] sm:$0xf] %v13826_v4 }
  0x32   : > { %2467 = vmatpush.bf16.msra.mxu0 %v12996_v49  ;;  %1109 = vst [vmem:[#allocation4] sm:$0xff] %v737_v58 }
  0x33   : > { %2516 = vmatpush.bf16.msra.mxu1 %v13004_v53  ;;  %1111 = vst [vmem:[#allocation4 + $0xc] sm:$0xff] %v759_v59 }
  0x34   : > { %254 = vst [vmem:[#allocation2 + $0x78] sm:$0xf] %v13826_v4  ;;  %3429 = vmatpush.bf16.msrb.mxu3 %v13059_v8 }
  0x35   : > { %255 = vst [vmem:[#allocation2 + $0x7c] sm:$0xf] %v13826_v4  ;;  %3380 = vmatpush.bf16.msrb.mxu2 %v13051_v7 }
  0x36   : > { %256 = vst [vmem:[#allocation2 + $0x80] sm:$0xf] %v13826_v4  ;;  %2928 = vmatpush.bf16.msrb.mxu0 %v12963_v16 }
  0x37   : > { %257 = vst [vmem:[#allocation2 + $0x84] sm:$0xf] %v13826_v4  ;;  %2977 = vmatpush.bf16.msrb.mxu1 %v12971_v14 }
  0x38   : > { %258 = vst [vmem:[#allocation2 + $0x88] sm:$0xf] %v13826_v4 }
  0x39   : > { %v10404_v60 = vld [vmem:[#allocation4] sm:$0xf]  ;;  %259 = vst [vmem:[#allocation2 + $0x8c] sm:$0xf] %v13826_v4 }
  0x3a   : > { %v12925_v61 = vld [vmem:[#allocation4 + $0x8] sm:$0xf0]  ;;  %260 = vst [vmem:[#allocation2 + $0x90] sm:$0xf] %v13826_v4 }
  0x3b   : > { %v10405_v62 = vor.u32 %v12925_v61, %v10404_v60  ;;  %261 = vst [vmem:[#allocation2 + $0x94] sm:$0xf] %v13826_v4  ;;  %v13050_v61 = vld [vmem:[%s17005_s1 + $0x1b0] sm:$0xff] }
  0x3c   : > { %262 = vst [vmem:[#allocation2 + $0x98] sm:$0xf] %v13826_v4  ;;  %3381 = vmatpush.bf16.msrb.mxu2 %v13050_v61  ;;  %v376_v61 = vld [vmem:[%s14164_s9 + $0x20] sm:$0xff]  }
  0x3d   : > { %2887 = vmatmul.bf16.vlgmr.msra.gmra.mxu3 %v10405_v62  ;;  %263 = vst [vmem:[#allocation2 + $0x9c] sm:$0xf] %v13826_v4  ;;  %v13058_v62 = vld [vmem:[%s17005_s1 + $0x1f0] sm:$0xff] }
  0x3e   : > { %264 = vst [vmem:[#allocation2 + $0xa0] sm:$0xf] %v13826_v4  ;;  %3430 = vmatpush.bf16.msrb.mxu3 %v13058_v62 }
  0x3f   : > { %265 = vst [vmem:[#allocation2 + $0xa4] sm:$0xf] %v13826_v4 }
  0x40   : > { %266 = vst [vmem:[#allocation2 + $0xa8] sm:$0xf] %v13826_v4 }
  0x41   : > { %267 = vst [vmem:[#allocation2 + $0xac] sm:$0xf] %v13826_v4 }
  0x42   : > { %268 = vst [vmem:[#allocation2 + $0xb0] sm:$0xf] %v13826_v4 }
  0x43   : > { %269 = vst [vmem:[#allocation2 + $0xb4] sm:$0xf] %v13826_v4 }
  0x44   : > { %270 = vst [vmem:[#allocation2 + $0xb8] sm:$0xf] %v13826_v4 }
  0x45   : > { %271 = vst [vmem:[#allocation2 + $0xbc] sm:$0xf] %v13826_v4 }
  0x46   : > { %272 = vst [vmem:[#allocation2 + $0xc0] sm:$0xf] %v13826_v4 }
  0x47   : > { %273 = vst [vmem:[#allocation2 + $0xc4] sm:$0xf] %v13826_v4 }
  0x48   : > { %274 = vst [vmem:[#allocation2 + $0xc8] sm:$0xf] %v13826_v4 }
  0x49   : > { %275 = vst [vmem:[#allocation2 + $0xcc] sm:$0xf] %v13826_v4 }
  0x4a   : > { %276 = vst [vmem:[#allocation2 + $0xd0] sm:$0xf] %v13826_v4 }
  0x4b   : > { %277 = vst [vmem:[#allocation2 + $0xd4] sm:$0xf] %v13826_v4 }
  0x4c   : > { %278 = vst [vmem:[#allocation2 + $0xd8] sm:$0xf] %v13826_v4 }
  0x4d   : > { %279 = vst [vmem:[#allocation2 + $0xdc] sm:$0xf] %v13826_v4 }
  0x4e   : > { %280 = vst [vmem:[#allocation2 + $0xe0] sm:$0xf] %v13826_v4 }
  0x4f   : > { %281 = vst [vmem:[#allocation2 + $0xe4] sm:$0xf] %v13826_v4 }
  0x50   : > { %282 = vst [vmem:[#allocation2 + $0xe8] sm:$0xf] %v13826_v4 }
  0x51   : > { %283 = vst [vmem:[#allocation2 + $0xec] sm:$0xf] %v13826_v4 }
  0x52   : > { %284 = vst [vmem:[#allocation2 + $0xf0] sm:$0xf] %v13826_v4 }
  0x53   : > { %285 = vst [vmem:[#allocation2 + $0xf4] sm:$0xf] %v13826_v4 }
  0x54   : > { %286 = vst [vmem:[#allocation2 + $0xf8] sm:$0xf] %v13826_v4 }
  0x55   : > { %287 = vst [vmem:[#allocation2 + $0xfc] sm:$0xf] %v13826_v4 }
  0x56   : > { %288 = vst [vmem:[#allocation2 + $0x100] sm:$0xf] %v13826_v4 }
  0x57   : > { %289 = vst [vmem:[#allocation2 + $0x104] sm:$0xf] %v13826_v4 }
  0x58   : > { %290 = vst [vmem:[#allocation2 + $0x108] sm:$0xf] %v13826_v4 }
  0x59   : > { %291 = vst [vmem:[#allocation2 + $0x10c] sm:$0xf] %v13826_v4 }
  0x5a   : > { %292 = vst [vmem:[#allocation2 + $0x110] sm:$0xf] %v13826_v4 }
  0x5b   : > { %293 = vst [vmem:[#allocation2 + $0x114] sm:$0xf] %v13826_v4 }
  0x5c   : > { %294 = vst [vmem:[#allocation2 + $0x118] sm:$0xf] %v13826_v4 }
  0x5d   : > { %295 = vst [vmem:[#allocation2 + $0x11c] sm:$0xf] %v13826_v4 }
  0x5e   : > { %296 = vst [vmem:[#allocation3] sm:$0xf] %v13826_v4 }
  0x5f   : > { %297 = vst [vmem:[#allocation3 + $0x4] sm:$0xf] %v13826_v4 }
  0x60   : > { %298 = vst [vmem:[#allocation3 + $0x8] sm:$0xf] %v13826_v4 }
  0x61   : > { %299 = vst [vmem:[#allocation3 + $0xc] sm:$0xf] %v13826_v4 }
  0x62   : > { %300 = vst [vmem:[#allocation3 + $0x10] sm:$0xf] %v13826_v4 }
  0x63   : > { %301 = vst [vmem:[#allocation3 + $0x14] sm:$0xf] %v13826_v4 }
  0x64   : > { %302 = vst [vmem:[#allocation3 + $0x18] sm:$0xf] %v13826_v4 }
  0x65   : > { %303 = vst [vmem:[#allocation3 + $0x1c] sm:$0xf] %v13826_v4 }
  0x66   : > { %304 = vst [vmem:[#allocation3 + $0x20] sm:$0xf] %v13826_v4 }
  0x67   : > { %305 = vst [vmem:[#allocation3 + $0x24] sm:$0xf] %v13826_v4 }
  0x68   : > { %306 = vst [vmem:[#allocation3 + $0x28] sm:$0xf] %v13826_v4 }
  0x69   : > { %307 = vst [vmem:[#allocation3 + $0x2c] sm:$0xf] %v13826_v4 }
  0x6a   : > { %308 = vst [vmem:[#allocation3 + $0x30] sm:$0xf] %v13826_v4 }
  0x6b   : > { %309 = vst [vmem:[#allocation3 + $0x34] sm:$0xf] %v13826_v4 }
  0x6c   : > { %310 = vst [vmem:[#allocation3 + $0x38] sm:$0xf] %v13826_v4 }
  0x6d   : > { %311 = vst [vmem:[#allocation3 + $0x3c] sm:$0xf] %v13826_v4 }
  0x6e   : > { %312 = vst [vmem:[#allocation3 + $0x40] sm:$0xf] %v13826_v4 }
  0x6f   : > { %313 = vst [vmem:[#allocation3 + $0x44] sm:$0xf] %v13826_v4 }
  0x70   : > { %314 = vst [vmem:[#allocation3 + $0x48] sm:$0xf] %v13826_v4 }
  0x71   : > { %315 = vst [vmem:[#allocation3 + $0x4c] sm:$0xf] %v13826_v4 }
  0x72   : > { %316 = vst [vmem:[#allocation3 + $0x50] sm:$0xf] %v13826_v4 }
  0x73   : > { %317 = vst [vmem:[#allocation3 + $0x54] sm:$0xf] %v13826_v4 }
  0x74   : > { %318 = vst [vmem:[#allocation3 + $0x58] sm:$0xf] %v13826_v4 }
  0x75   : > { %319 = vst [vmem:[#allocation3 + $0x5c] sm:$0xf] %v13826_v4 }
  0x76   : > { %320 = vst [vmem:[#allocation3 + $0x60] sm:$0xf] %v13826_v4 }
  0x77   : > { %321 = vst [vmem:[#allocation3 + $0x64] sm:$0xf] %v13826_v4 }
  0x78   : > { %322 = vst [vmem:[#allocation3 + $0x68] sm:$0xf] %v13826_v4 }
  0x79   : > { %323 = vst [vmem:[#allocation3 + $0x6c] sm:$0xf] %v13826_v4 }
  0x7a   : > { %324 = vst [vmem:[#allocation3 + $0x70] sm:$0xf] %v13826_v4 }
  0x7b   : > { %325 = vst [vmem:[#allocation3 + $0x74] sm:$0xf] %v13826_v4 }
  0x7c   : > { %326 = vst [vmem:[#allocation3 + $0x78] sm:$0xf] %v13826_v4 }
  0x7d   : > { %327 = vst [vmem:[#allocation3 + $0x7c] sm:$0xf] %v13826_v4 }
  0x7e   : > { %328 = vst [vmem:[#allocation3 + $0x80] sm:$0xf] %v13826_v4 }
  0x7f   : > { %329 = vst [vmem:[#allocation3 + $0x84] sm:$0xf] %v13826_v4 }
  0x80   : > { %330 = vst [vmem:[#allocation3 + $0x88] sm:$0xf] %v13826_v4 }
  0x81   : > { %331 = vst [vmem:[#allocation3 + $0x8c] sm:$0xf] %v13826_v4 }
  0x82   : > { %332 = vst [vmem:[#allocation3 + $0x90] sm:$0xf] %v13826_v4 }
  0x83   : > { %333 = vst [vmem:[#allocation3 + $0x94] sm:$0xf] %v13826_v4 }
  0x84   : > { %334 = vst [vmem:[#allocation3 + $0x98] sm:$0xf] %v13826_v4 }
  0x85   : > { %335 = vst [vmem:[#allocation3 + $0x9c] sm:$0xf] %v13826_v4 }
  0x86   : > { %336 = vst [vmem:[#allocation3 + $0xa0] sm:$0xf] %v13826_v4 }
  0x87   : > { %337 = vst [vmem:[#allocation3 + $0xa4] sm:$0xf] %v13826_v4 }
  0x88   : > { %338 = vst [vmem:[#allocation3 + $0xa8] sm:$0xf] %v13826_v4 }
  0x89   : > { %339 = vst [vmem:[#allocation3 + $0xac] sm:$0xf] %v13826_v4 }
  0x8a   : > { %340 = vst [vmem:[#allocation3 + $0xb0] sm:$0xf] %v13826_v4 }
  0x8b   : > { %341 = vst [vmem:[#allocation3 + $0xb4] sm:$0xf] %v13826_v4 }
  0x8c   : > { %342 = vst [vmem:[#allocation3 + $0xb8] sm:$0xf] %v13826_v4 }
  0x8d   : > { %343 = vst [vmem:[#allocation3 + $0xbc] sm:$0xf] %v13826_v4 }
  0x8e   : > { %344 = vst [vmem:[#allocation3 + $0xc0] sm:$0xf] %v13826_v4 }
  0x8f   : > { %345 = vst [vmem:[#allocation3 + $0xc4] sm:$0xf] %v13826_v4 }
  0x90   : > { %346 = vst [vmem:[#allocation3 + $0xc8] sm:$0xf] %v13826_v4 }
  0x91   : > { %347 = vst [vmem:[#allocation3 + $0xcc] sm:$0xf] %v13826_v4 }
  0x92   : > { %348 = vst [vmem:[#allocation3 + $0xd0] sm:$0xf] %v13826_v4 }
  0x93   : > { %349 = vst [vmem:[#allocation3 + $0xd4] sm:$0xf] %v13826_v4 }
  0x94   : > { %350 = vst [vmem:[#allocation3 + $0xd8] sm:$0xf] %v13826_v4 }
  0x95   : > { %351 = vst [vmem:[#allocation3 + $0xdc] sm:$0xf] %v13826_v4 }
  0x96   : > { %352 = vst [vmem:[#allocation3 + $0xe0] sm:$0xf] %v13826_v4 }
  0x97   : > { %353 = vst [vmem:[#allocation3 + $0xe4] sm:$0xf] %v13826_v4 }
  0x98   : > { %354 = vst [vmem:[#allocation3 + $0xe8] sm:$0xf] %v13826_v4 }
  0x99   : > { %355 = vst [vmem:[#allocation3 + $0xec] sm:$0xf] %v13826_v4 }
  0x9a   : > { %356 = vst [vmem:[#allocation3 + $0xf0] sm:$0xf] %v13826_v4 }
  0x9b   : > { %357 = vst [vmem:[#allocation3 + $0xf4] sm:$0xf] %v13826_v4 }
  0x9c   : > { %358 = vst [vmem:[#allocation3 + $0xf8] sm:$0xf] %v13826_v4 }
  0x9d   : > { %359 = vst [vmem:[#allocation3 + $0xfc] sm:$0xf] %v13826_v4 }
  0x9e   : > { %360 = vst [vmem:[#allocation3 + $0x100] sm:$0xf] %v13826_v4 }
  0x9f   : > { %361 = vst [vmem:[#allocation3 + $0x104] sm:$0xf] %v13826_v4 }
  0xa0   : > { %362 = vst [vmem:[#allocation3 + $0x108] sm:$0xf] %v13826_v4 }
  0xa1   : > { %363 = vst [vmem:[#allocation3 + $0x10c] sm:$0xf] %v13826_v4 }
  0xa2   : > { %364 = vst [vmem:[#allocation3 + $0x110] sm:$0xf] %v13826_v4 }
  0xa3   : > { %365 = vst [vmem:[#allocation3 + $0x114] sm:$0xf] %v13826_v4 }
  0xa4   : > { %366 = vst [vmem:[#allocation3 + $0x118] sm:$0xf] %v13826_v4 }
  0xa5   : > { %367 = vst [vmem:[#allocation3 + $0x11c] sm:$0xf] %v13826_v4 }
  0xa6   : > { %401 = vst [vmem:[#allocation2 + $0x14] sm:$0xff] %v368_v63  }
  0xa7   : > { %403 = vst [vmem:[#allocation2 + $0x24] sm:$0xff] %v370_v0  }
  0xa8   : > { %405 = vst [vmem:[#allocation2 + $0x34] sm:$0xff] %v372_v3  }
  0xa9   : > { %407 = vst [vmem:[#allocation2 + $0x44] sm:$0xff] %v374_v48  }
  0xaa   : > { %409 = vst [vmem:[#allocation2 + $0x54] sm:$0xff] %v376_v61  }
  0xad   : > { %v437_v4 = vld [vmem:[#allocation2 + $0x14] sm:$0xff]  }
  0xae   : > { %v494_v11 = vunpack.c.h.b16 %v437_v4  ;;  %v14180_v13 = vld [vmem:[#allocation2 + $0x24] sm:$0xff]   ;;  %v613_v25 = vrot.slane %v437_v4, 5  ;;  %v530_v26 = vshrl.u32 %v437_v4, 16  ;;  %v533_v27 = vshll.u32 %v437_v4, 16 }
  0xaf   : > { %v497_v17 = vunpack.c.h.b16 %v14180_v13  ;;  %v14189_v18 = vld [vmem:[#allocation2 + $0x34] sm:$0xff]   ;;  %v616_v28 = vrot.slane %v14180_v13, 5  ;;  %v538_v29 = vshrl.u32 %v14180_v13, 16  ;;  %v541_v30 = vshll.u32 %v14180_v13, 16 }
  0xb0   : > { %v500_v21 = vunpack.c.h.b16 %v14189_v18  ;;  %v615_v32 = vsel %vm609_vm4, %v613_v25, %v614_v19  ;;  %v640_v33 = vunpack.c.l.b16 %v613_v25  ;;  %v642_v34 = vunpack.c.h.b16 %v613_v25  ;;  %v12970_v25 = vld [vmem:[%s17005_s1 + $0xb0] sm:$0xff] }
  0xb1   : > { %v532_v35 = vrot.slane %v530_v26, 4  ;;  %v643_v36 = vunpack.c.l.b16 %v615_v32  ;;  %v535_v37 = vrot.slane %v533_v27, 5  ;;  %v618_v38 = vsel %vm609_vm4, %v616_v28, %v617_v23  ;;  %2978 = vmatpush.bf16.msrb.mxu1 %v12970_v25 }
  0xb2   : > { %v645_v39 = vunpack.c.l.b16 %v616_v28  ;;  %v681_v40 = vpack.c.b16 %v640_v33, %v640_v33  ;;  %v683_v41 = vpack.c.b16 %v642_v34, %v642_v34  ;;  %v647_v42 = vunpack.c.h.b16 %v616_v28 }
  0xb3   : > { %v648_v43 = vunpack.c.l.b16 %v618_v38  ;;  %v685_v44 = vpack.c.b16 %v643_v36, %v643_v36  ;;  %v536_v45 = vor.u32 %v535_v37, %v532_v35  ;;  %v540_v47 = vrot.slane %v538_v29, 4  ;;  %v12962_v36 = vld [vmem:[%s17005_s1 + $0x70] sm:$0xff] }
  0xb4   : > { %v687_v46 = vpack.c.b16 %v645_v39, %v645_v39  ;;  %v783_v49 = vshrl.u32 %v681_v40, 16  ;;  %v788_v50 = vshrl.u32 %v683_v41, 16  ;;  %v791_v51 = vshll.u32 %v683_v41, 16  ;;  %2929 = vmatpush.bf16.msrb.mxu0 %v12962_v36 }
  0xb5   : > { %v689_v52 = vpack.c.b16 %v647_v42, %v647_v42  ;;  %v806_v53 = vshrl.u32 %v685_v44, 16  ;;  %v809_v55 = vshll.u32 %v685_v44, 16  ;;  %v639_v56 = vunpack.c.l.b16 %v536_v45 }
  0xb6   : > { %v10129_v57 = vrot.slane %v783_v49, 11  ;;  %v790_v58 = vrot.slane %v788_v50, 7  ;;  %v691_v59 = vpack.c.b16 %v648_v43, %v648_v43  ;;  %v827_v60 = vshrl.u32 %v687_v46, 16 }
  0xb7   : > { %v808_v63 = vrot.slane %v806_v53, 7  ;;  %v680_v0 = vpack.c.b16 %v639_v56, %v492_v22  ;;  %v13725_v1 = vsel %vm13722_vm0, %v437_v4, %v536_v45  ;;  %v684_v2 = vpack.c.b16 %v639_v56, %v494_v11  ;;  %v439_v22 = vld [vmem:[#allocation2 + $0x20] sm:$0x8] }
  0xb8   : > { %v793_v3 = vor.u32 %v791_v51, %v790_v58  ;;  %v804_v5 = vrot.slane %v790_v58, 4  ;;  %v10131_v6 = vrot.slane %v827_v60, 11  ;;  %v832_v7 = vshrl.u32 %v689_v52, 16 }
  0xb9   : > { %v811_v8 = vor.u32 %v809_v55, %v808_v63  ;;  %v770_v9 = vshrl.u32 %v680_v0, 16  ;;  %v775_v10 = vshrl.u32 %v13725_v1, 16  ;;  %v778_v12 = vshll.u32 %v13725_v1, 16 }
  0xba   : > { %v794_v14 = vsel %vm14038_vm3, %v10129_v57, %v793_v3  ;;  %v797_v16 = vshrl.u32 %v684_v2, 16  ;;  %v800_v19 = vshll.u32 %v684_v2, 16  ;;  %v834_v20 = vrot.slane %v832_v7, 7  ;;  %v14237_v2 = vld [vmem:[#allocation2 + $0x44] sm:$0xff]  }
  0xbb   : > { %v812_v4 = vsel %vm14038_vm3, %v804_v5, %v811_v8  ;;  %1114 = vst [vmem:[#allocation4 + $0x20] sm:$0xf] %v794_v14  ;;  %v10128_v11 = vrot.slane %v770_v9, 11  ;;  %v777_v23 = vrot.slane %v775_v10, 7  ;;  %v835_v24 = vshll.u32 %v689_v52, 16  ;;  %v13057_v14 = vld [vmem:[%s17005_s1 + $0x1e8] sm:$0xff] }
  0xbc   : > { %1116 = vst [vmem:[#allocation4 + $0x2c] sm:$0xf] %v812_v4  ;;  %v799_v26 = vrot.slane %v797_v16, 7  ;;  %v848_v27 = vrot.slane %v834_v20, 4  ;;  %v850_v28 = vshrl.u32 %v691_v59, 16  ;;  %v853_v29 = vshll.u32 %v691_v59, 16  ;;  %3431 = vmatpush.bf16.msrb.mxu3 %v13057_v14 }
  0xbd   : > { %v780_v32 = vor.u32 %v778_v12, %v777_v23  ;;  %v795_v33 = vrot.slane %v777_v23, 4  ;;  %v837_v34 = vor.u32 %v835_v24, %v834_v20  ;;  %v543_v35 = vrot.slane %v541_v30, 5  ;;  %v461_v8 = vld [vmem:[#allocation2 + $0x4c] sm:$0x1]  ;;  %v442_v16 = vld [vmem:[#allocation2 + $0x30] sm:$0x8] }
  0xbe   : > { %v802_v37 = vor.u32 %v800_v19, %v799_v26  ;;  %v852_v38 = vrot.slane %v850_v28, 7  ;;  %v619_v39 = vrot.slane %v14189_v18, 5  ;;  %v620_v40 = vrot.slane %v14195_v31, 5 }
  0xbf   : > { %v781_v41 = vsel %vm14038_vm3, %v10128_v11, %v780_v32  ;;  %v838_v42 = vsel %vm14038_vm3, %v10131_v6, %v837_v34  ;;  %v495_v43 = vunpack.c.l.b16 %v439_v22  ;;  %v544_v44 = vor.u32 %v543_v35, %v540_v47 }
  0xc0   : > { %v803_v30 = vsel %vm14038_vm3, %v795_v33, %v802_v37  ;;  %1113 = vst [vmem:[#allocation4 + $0x18] sm:$0xff] %v781_v41  ;;  %v855_v45 = vor.u32 %v853_v29, %v852_v38  ;;  %v621_v46 = vsel %vm609_vm4, %v619_v39, %v620_v40  ;;  %v650_v48 = vunpack.c.l.b16 %v619_v39  ;;  %v12961_v40 = vld [vmem:[%s17005_s1 + $0x68] sm:$0xff] }
  0xc1   : > { %1115 = vst [vmem:[#allocation4 + $0x24] sm:$0xff] %v803_v30  ;;  %v644_v31 = vunpack.c.l.b16 %v544_v44  ;;  %v652_v49 = vunpack.c.h.b16 %v619_v39  ;;  %v653_v50 = vunpack.c.l.b16 %v621_v46  ;;  %v546_v53 = vshrl.u32 %v14189_v18, 16  ;;  %v12969_v39 = vld [vmem:[%s17005_s1 + $0xa8] sm:$0xff]  ;;  %2930 = vmatpush.bf16.msrb.mxu0 %v12961_v40 }
  0xc2   : > { %v10220_v51 = vld [vmem:[#allocation4 + $0x20] sm:$0xf]  ;;  %v856_v52 = vsel %vm14038_vm3, %v848_v27, %v855_v45  ;;  %1118 = vst [vmem:[#allocation4 + $0x38] sm:$0xf] %v838_v42  ;;  %v693_v47 = vpack.c.b16 %v650_v48, %v650_v48  ;;  %v549_v55 = vshll.u32 %v14189_v18, 16  ;;  %v13727_v58 = vsel %vm13722_vm0, %v14180_v13, %v544_v44  ;;  %2979 = vmatpush.bf16.msrb.mxu1 %v12969_v39 }
  0xc3   : > { %v12974_v56 = vld [vmem:[#allocation4 + $0x28] sm:$0xf0]  ;;  %1120 = vst [vmem:[#allocation4 + $0x44] sm:$0xf] %v856_v52  ;;  %v686_v57 = vpack.c.b16 %v644_v31, %v495_v43  ;;  %v690_v59 = vpack.c.b16 %v644_v31, %v497_v17  ;;  %v695_v60 = vpack.c.b16 %v652_v49, %v652_v49  ;;  %v697_v63 = vpack.c.b16 %v653_v50, %v653_v50 }
  0xc4   : > { %v10221_v62 = vor.u32 %v12974_v56, %v10220_v51  ;;  %v871_v0 = vshrl.u32 %v693_v47, 16  ;;  %v548_v1 = vrot.slane %v546_v53, 4  ;;  %v819_v5 = vshrl.u32 %v13727_v58, 16  ;;  %v13049_v17 = vld [vmem:[%s17005_s1 + $0x1a8] sm:$0xff] }
  0xc5   : > { %v814_v3 = vshrl.u32 %v686_v57, 16  ;;  %v822_v6 = vshll.u32 %v13727_v58, 16  ;;  %v841_v7 = vshrl.u32 %v690_v59, 16  ;;  %v844_v9 = vshll.u32 %v690_v59, 16  ;;  %3382 = vmatpush.bf16.msrb.mxu2 %v13049_v17 }
  0xc6   : > { %2566 = vmatmul.bf16.vlgmr.msra.gmra.mxu2 %v10221_v62  ;;  %v10133_v10 = vrot.slane %v871_v0, 11  ;;  %v876_v12 = vshrl.u32 %v695_v60, 16  ;;  %v879_v13 = vshll.u32 %v695_v60, 16  ;;  %v503_v4 = vunpack.c.h.b16 %v14237_v2 }
  0xc7   : > { %v10212_v19 = vld [vmem:[#allocation4 + $0x18] sm:$0xf]  ;;  %v12972_v20 = vld [vmem:[#allocation4 + $0x1c] sm:$0xf]  ;;  %v597_v25 = vunpack.c.l.b16 %v461_v8  ;;  %v10130_v29 = vrot.slane %v814_v3, 11  ;;  %v821_v32 = vrot.slane %v819_v5, 7  ;;  %v498_v37 = vunpack.c.l.b16 %v442_v16 }
  0xc8   : > { %v10416_v22 = vld [vmem:[#allocation4 + $0x18] sm:$0xf]  ;;  %v12973_v11 = vld [vmem:[#allocation4 + $0x20] sm:$0xf0]  ;;  %v10214_v23 = vld [vmem:[#allocation4 + $0x24] sm:$0xf0] }
  0xc9   : > { %v12928_v24 = vld [vmem:[#allocation4 + $0x20] sm:$0xf0]  ;;  %v10213_v26 = vor.u32 %v12973_v11, %v10212_v19  ;;  %v10217_v27 = vor.u32 %v12972_v20, %v10214_v23  ;;  %v843_v33 = vrot.slane %v841_v7, 7  ;;  %v878_v34 = vrot.slane %v876_v12, 7  ;;  %v10232_v30 = vld [vmem:[#allocation4 + $0x38] sm:$0xf] }
  0xca   : > { %v10417_v28 = vor.u32 %v12928_v24, %v10416_v22  ;;  %v894_v35 = vshrl.u32 %v697_v63, 16  ;;  %v897_v36 = vshll.u32 %v697_v63, 16  ;;  %v551_v38 = vrot.slane %v549_v55, 5  ;;  %v12977_v45 = vld [vmem:[#allocation4 + $0x40] sm:$0xf0]  ;;  %v14269_v12 = vld [vmem:[#allocation2 + $0x54] sm:$0xff]  }
  0xcb   : > { %2468 = vmatmul.bf16.vlgmr.msra.gmra.mxu0 %v10213_v26  ;;  %2517 = vmatmul.bf16.vlgmr.msra.gmra.mxu1 %v10217_v27  ;;  %v824_v41 = vor.u32 %v822_v6, %v821_v32  ;;  %v839_v42 = vrot.slane %v821_v32, 4  ;;  %v846_v43 = vor.u32 %v844_v9, %v843_v33  ;;  %v881_v44 = vor.u32 %v879_v13, %v878_v34  ;;  %v14266_v5 = vld [vmem:[#allocation2 + $0x40] sm:$0x8]  ;;  %v378_v13 = vld [vmem:[%s14164_s9 + $0x28] sm:$0xff]   ;;  %v462_v16 = vld [vmem:[#allocation2 + $0x5c] sm:$0x1] }
  0xcc   : > { %2892 = vmatmul.bf16.gmra.mxu3 %v10417_v28  ;;  %v892_v46 = vrot.slane %v878_v34, 4  ;;  %v896_v48 = vrot.slane %v894_v35, 7  ;;  %v552_v31 = vor.u32 %v551_v38, %v548_v1  ;;  %v605_v49 = vpack.c.b16 %v597_v25, %v597_v25  ;;  %411 = vst [vmem:[#allocation2 + $0x64] sm:$0xff] %v378_v13  }
  0xcd   : > { %v825_v50 = vsel %vm14038_vm3, %v10130_v29, %v824_v41  ;;  %v847_v51 = vsel %vm14038_vm3, %v839_v42, %v846_v43  ;;  %v882_v52 = vsel %vm14038_vm3, %v10133_v10, %v881_v44  ;;  %v622_v47 = vrot.slane %v14237_v2, 5  ;;  %v13048_v42 = vld [vmem:[%s17005_s1 + $0x1a0] sm:$0xff] }
  0xce   : > { %1117 = vst [vmem:[#allocation4 + $0x30] sm:$0xff] %v825_v50  ;;  %v899_v53 = vor.u32 %v897_v36, %v896_v48  ;;  %v649_v55 = vunpack.c.l.b16 %v552_v31  ;;  %v623_v56 = vrot.slane %v605_v49, 5  ;;  %v10233_v57 = vor.u32 %v12977_v45, %v10232_v30  ;;  %v13056_v43 = vld [vmem:[%s17005_s1 + $0x1e0] sm:$0xff]  ;;  %3383 = vmatpush.bf16.msrb.mxu2 %v13048_v42 }
  0xcf   : > { %1119 = vst [vmem:[#allocation4 + $0x3c] sm:$0xff] %v847_v51  ;;  %v655_v58 = vunpack.c.l.b16 %v622_v47  ;;  %v657_v59 = vunpack.c.h.b16 %v622_v47  ;;  %v13729_v62 = vsel %vm13722_vm0, %v14189_v18, %v552_v31  ;;  %v554_v6 = vshrl.u32 %v14237_v2, 16  ;;  %3432 = vmatpush.bf16.msrb.mxu3 %v13056_v43 }
  0xd0   : > { %v900_v60 = vsel %vm14038_vm3, %v892_v46, %v899_v53  ;;  %1122 = vst [vmem:[#allocation4 + $0x50] sm:$0xf] %v882_v52  ;;  %v692_v61 = vpack.c.b16 %v649_v55, %v498_v37  ;;  %v696_v63 = vpack.c.b16 %v649_v55, %v500_v21  ;;  %v624_v0 = vsel %vm609_vm4, %v622_v47, %v623_v56  ;;  %v12968_v55 = vld [vmem:[%s17005_s1 + $0xa0] sm:$0xff] }
  0xd1   : > { %1124 = vst [vmem:[#allocation4 + $0x5c] sm:$0xf] %v900_v60  ;;  %v699_v1 = vpack.c.b16 %v655_v58, %v655_v58  ;;  %v701_v3 = vpack.c.b16 %v657_v59, %v657_v59  ;;  %v863_v8 = vshrl.u32 %v13729_v62, 16  ;;  %v866_v9 = vshll.u32 %v13729_v62, 16  ;;  %v12960_v56 = vld [vmem:[%s17005_s1 + $0x60] sm:$0xff]  ;;  %2980 = vmatpush.bf16.msrb.mxu1 %v12968_v55 }
  0xd2   : > { %v858_v7 = vshrl.u32 %v692_v61, 16  ;;  %v885_v10 = vshrl.u32 %v696_v63, 16  ;;  %v888_v17 = vshll.u32 %v696_v63, 16  ;;  %v658_v14 = vunpack.c.l.b16 %v624_v0  ;;  %2931 = vmatpush.bf16.msrb.mxu0 %v12960_v56 }
  0xd3   : > { %v915_v18 = vshrl.u32 %v699_v1, 16  ;;  %v920_v21 = vshrl.u32 %v701_v3, 16  ;;  %v865_v20 = vrot.slane %v863_v8, 7  ;;  %v923_v11 = vshll.u32 %v701_v3, 16 }
  0xd4   : > { %v10132_v19 = vrot.slane %v858_v7, 11  ;;  %v887_v22 = vrot.slane %v885_v10, 7  ;;  %v703_v26 = vpack.c.b16 %v658_v14, %v658_v14  ;;  %v501_v27 = vunpack.c.l.b16 %v14266_v5 }
  0xd5   : > { %v10224_v23 = vld [vmem:[#allocation4 + $0x30] sm:$0xf]  ;;  %v12975_v24 = vld [vmem:[#allocation4 + $0x34] sm:$0xf]  ;;  %v868_v33 = vor.u32 %v866_v9, %v865_v20  ;;  %v506_v35 = vunpack.c.h.b16 %v14269_v12  ;;  %v598_v36 = vunpack.c.l.b16 %v462_v16  ;;  %v883_v41 = vrot.slane %v865_v20, 4 }
  0xd6   : > { %2571 = vmatmul.bf16.gmra.mxu2 %v10233_v57  ;;  %v10428_v25 = vld [vmem:[#allocation4 + $0x30] sm:$0xf]  ;;  %v12976_v28 = vld [vmem:[#allocation4 + $0x38] sm:$0xf0]  ;;  %v10226_v29 = vld [vmem:[#allocation4 + $0x3c] sm:$0xf0]  ;;  %v890_v34 = vor.u32 %v888_v17, %v887_v22 }
  0xd7   : > { %v12931_v32 = vld [vmem:[#allocation4 + $0x38] sm:$0xf0]  ;;  %v10225_v37 = vor.u32 %v12976_v28, %v10224_v23  ;;  %v10229_v38 = vor.u32 %v12975_v24, %v10226_v29  ;;  %v14274_v40 = vld [vmem:[#allocation4 + $0x50] sm:$0xf]  ;;  %v869_v30 = vsel %vm14038_vm3, %v10132_v19, %v868_v33  ;;  %v10135_v45 = vrot.slane %v915_v18, 11  ;;  %v14295_v57 = vld [vmem:[#allocation2 + $0x64] sm:$0xff]  }
  0xd8   : > { %v10429_v39 = vor.u32 %v12931_v32, %v10428_v25  ;;  %v14282_v44 = vld [vmem:[#allocation4 + $0x58] sm:$0xf0]  ;;  %v922_v46 = vrot.slane %v920_v21, 7  ;;  %v938_v48 = vshrl.u32 %v703_v26, 16  ;;  %v891_v31 = vsel %vm14038_vm3, %v883_v41, %v890_v34  ;;  %1121 = vst [vmem:[#allocation4 + $0x48] sm:$0xff] %v869_v30 }
  0xd9   : > { %v941_v49 = vshll.u32 %v703_v26, 16  ;;  %v556_v50 = vrot.slane %v554_v6, 4  ;;  %v557_v51 = vshll.u32 %v14237_v2, 16  ;;  %1123 = vst [vmem:[#allocation4 + $0x54] sm:$0xff] %v891_v31  ;;  %v10245_v58 = vor.u32 %v14282_v44, %v14274_v40  ;;  %v448_v6 = vld [vmem:[#allocation2 + $0x50] sm:$0x8] }
  0xda   : > { %v925_v52 = vor.u32 %v923_v11, %v922_v46  ;;  %v936_v47 = vrot.slane %v922_v46, 4  ;;  %v940_v53 = vrot.slane %v938_v48, 7  ;;  %v606_v60 = vpack.c.b16 %v598_v36, %v598_v36  ;;  %v13047_v48 = vld [vmem:[%s17005_s1 + $0x198] sm:$0xff] }
  0xdb   : > { %2473 = vmatmul.bf16.gmra.mxu0 %v10225_v37  ;;  %2522 = vmatmul.bf16.gmra.mxu1 %v10229_v38  ;;  %v559_v59 = vrot.slane %v557_v51, 5  ;;  %v625_v63 = vrot.slane %v14269_v12, 5  ;;  %v562_v0 = vshrl.u32 %v14269_v12, 16  ;;  %v565_v7 = vshll.u32 %v14269_v12, 16  ;;  %v380_v38 = vld [vmem:[%s14164_s9 + $0x30] sm:$0xff]   ;;  %v13055_v31 = vld [vmem:[%s17005_s1 + $0x1d8] sm:$0xff] }
  0xdc   : > { %2897 = vmatmul.bf16.gmra.mxu3 %v10429_v39  ;;  %v926_v61 = vsel %vm14038_vm3, %v10135_v45, %v925_v52  ;;  %v943_v62 = vor.u32 %v941_v49, %v940_v53  ;;  %v626_v3 = vrot.slane %v606_v60, 5  ;;  %v509_v8 = vunpack.c.h.b16 %v14295_v57  ;;  %413 = vst [vmem:[#allocation2 + $0x74] sm:$0xff] %v380_v38   ;;  %3384 = vmatpush.bf16.msrb.mxu2 %v13047_v48 }
  0xdd   : > { %1126 = vst [vmem:[#allocation4 + $0x68] sm:$0xf] %v926_v61  ;;  %v560_v1 = vor.u32 %v559_v59, %v556_v50  ;;  %v660_v10 = vunpack.c.l.b16 %v625_v63  ;;  %v662_v13 = vunpack.c.h.b16 %v625_v63  ;;  %v564_v17 = vrot.slane %v562_v0, 4  ;;  %3433 = vmatpush.bf16.msrb.mxu3 %v13055_v31  ;;  %v463_v61 = vld [vmem:[#allocation2 + $0x6c] sm:$0x1] }
  0xde   : > { %v944_v9 = vsel %vm14038_vm3, %v936_v47, %v943_v62  ;;  %v627_v18 = vsel %vm609_vm4, %v625_v63, %v626_v3  ;;  %v567_v21 = vrot.slane %v565_v7, 5  ;;  %v504_v23 = vunpack.c.l.b16 %v448_v6 }
  0xdf   : > { %1128 = vst [vmem:[#allocation4 + $0x74] sm:$0xf] %v944_v9  ;;  %v654_v14 = vunpack.c.l.b16 %v560_v1  ;;  %v10236_v16 = vld [vmem:[#allocation4 + $0x48] sm:$0xf]  ;;  %v12978_v19 = vld [vmem:[#allocation4 + $0x4c] sm:$0xf]  ;;  %v663_v20 = vunpack.c.l.b16 %v627_v18  ;;  %v705_v22 = vpack.c.b16 %v660_v10, %v660_v10  ;;  %v707_v11 = vpack.c.b16 %v662_v13, %v662_v13 }
  0xe0   : > { %v12979_v24 = vld [vmem:[#allocation4 + $0x50] sm:$0xf0]  ;;  %v10238_v25 = vld [vmem:[#allocation4 + $0x54] sm:$0xf0]  ;;  %v13731_v28 = vsel %vm13722_vm0, %v14237_v2, %v560_v1  ;;  %v10440_v34 = vld [vmem:[#allocation4 + $0x48] sm:$0xf]  ;;  %v568_v37 = vor.u32 %v567_v21, %v564_v17  ;;  %v599_v21 = vunpack.c.l.b16 %v463_v61 }
  0xe1   : > { %v698_v26 = vpack.c.b16 %v654_v14, %v501_v27  ;;  %v702_v29 = vpack.c.b16 %v654_v14, %v503_v4  ;;  %v10237_v32 = vor.u32 %v12979_v24, %v10236_v16  ;;  %v10241_v33 = vor.u32 %v12978_v19, %v10238_v25  ;;  %v12934_v43 = vld [vmem:[#allocation4 + $0x50] sm:$0xf0]  ;;  %v12967_v10 = vld [vmem:[%s17005_s1 + $0x98] sm:$0xff] }
  0xe2   : > { %v709_v36 = vpack.c.b16 %v663_v20, %v663_v20  ;;  %v907_v40 = vshrl.u32 %v13731_v28, 16  ;;  %v910_v41 = vshll.u32 %v13731_v28, 16  ;;  %v959_v27 = vshrl.u32 %v705_v22, 16  ;;  %v12959_v13 = vld [vmem:[%s17005_s1 + $0x58] sm:$0xff]  ;;  %2981 = vmatpush.bf16.msrb.mxu1 %v12967_v10  ;;  %v13054_v61 = vld [vmem:[%s17005_s1 + $0x1d0] sm:$0xff] }
  0xe3   : > { %v902_v39 = vshrl.u32 %v698_v26, 16  ;;  %v929_v42 = vshrl.u32 %v702_v29, 16  ;;  %v932_v5 = vshll.u32 %v702_v29, 16  ;;  %v964_v44 = vshrl.u32 %v707_v11, 16  ;;  %2932 = vmatpush.bf16.msrb.mxu0 %v12959_v13  ;;  %v14340_v28 = vld [vmem:[#allocation2 + $0x74] sm:$0xff]   ;;  %3434 = vmatpush.bf16.msrb.mxu3 %v13054_v61 }
  0xe4   : > { %v967_v30 = vshll.u32 %v707_v11, 16  ;;  %v909_v2 = vrot.slane %v907_v40, 7  ;;  %v982_v46 = vshrl.u32 %v709_v36, 16  ;;  %v10137_v49 = vrot.slane %v959_v27, 11  ;;  %v10256_v3 = vld [vmem:[#allocation4 + $0x68] sm:$0xf] }
  0xe5   : > { %v10134_v45 = vrot.slane %v902_v39, 11  ;;  %v931_v4 = vrot.slane %v929_v42, 7  ;;  %v966_v50 = vrot.slane %v964_v44, 7  ;;  %v985_v51 = vshll.u32 %v709_v36, 16  ;;  %v464_v36 = vld [vmem:[#allocation2 + $0x7c] sm:$0x1] }
  0xe6   : > { %2576 = vmatmul.bf16.gmra.mxu2 %v10245_v58  ;;  %v659_v52 = vunpack.c.l.b16 %v568_v37  ;;  %v10441_v47 = vor.u32 %v12934_v43, %v10440_v34  ;;  %v912_v53 = vor.u32 %v910_v41, %v909_v2  ;;  %v927_v55 = vrot.slane %v909_v2, 4 }
  0xe7   : > { %v934_v56 = vor.u32 %v932_v5, %v931_v4  ;;  %v969_v58 = vor.u32 %v967_v30, %v966_v50  ;;  %v980_v59 = vrot.slane %v966_v50, 4  ;;  %v984_v60 = vrot.slane %v982_v46, 7  ;;  %v451_v46 = vld [vmem:[#allocation2 + $0x60] sm:$0x8] }
  0xe8   : > { %v913_v62 = vsel %vm14038_vm3, %v10134_v45, %v912_v53  ;;  %v704_v0 = vpack.c.b16 %v659_v52, %v504_v23  ;;  %v708_v1 = vpack.c.b16 %v659_v52, %v506_v35  ;;  %v13733_v9 = vsel %vm13722_vm0, %v14269_v12, %v568_v37  ;;  %v12983_v35 = vld [vmem:[#allocation4 + $0x70] sm:$0xf0] }
  0xe9   : > { %v935_v63 = vsel %vm14038_vm3, %v927_v55, %v934_v56  ;;  %1125 = vst [vmem:[#allocation4 + $0x60] sm:$0xff] %v913_v62  ;;  %v970_v6 = vsel %vm14038_vm3, %v10137_v49, %v969_v58  ;;  %v987_v7 = vor.u32 %v985_v51, %v984_v60  ;;  %v951_v12 = vshrl.u32 %v13733_v9, 16  ;;  %v382_v51 = vld [vmem:[%s14164_s9 + $0x38] sm:$0xff]   ;;  %v13046_v60 = vld [vmem:[%s17005_s1 + $0x190] sm:$0xff] }
  0xea   : > { %1127 = vst [vmem:[#allocation4 + $0x6c] sm:$0xff] %v935_v63  ;;  %v946_v17 = vshrl.u32 %v704_v0, 16  ;;  %v973_v14 = vshrl.u32 %v708_v1, 16  ;;  %v976_v18 = vshll.u32 %v708_v1, 16  ;;  %v954_v19 = vshll.u32 %v13733_v9, 16  ;;  %3385 = vmatpush.bf16.msrb.mxu2 %v13046_v60 }
  0xeb   : > { %2478 = vmatmul.bf16.gmra.mxu0 %v10237_v32  ;;  %2527 = vmatmul.bf16.gmra.mxu1 %v10241_v33  ;;  %v988_v16 = vsel %vm14038_vm3, %v980_v59, %v987_v7  ;;  %1130 = vst [vmem:[#allocation4 + $0x80] sm:$0xf] %v970_v6  ;;  %v628_v20 = vrot.slane %v14295_v57, 5  ;;  %v607_v11 = vpack.c.b16 %v599_v21, %v599_v21  ;;  %v953_v24 = vrot.slane %v951_v12, 7  ;;  %v1166_v60 = vld [vmem:[#allocation2 + $0x8c] sm:$0x1] }
  0xec   : > { %2902 = vmatmul.bf16.gmra.mxu3 %v10441_v47  ;;  %1132 = vst [vmem:[#allocation4 + $0x8c] sm:$0xf] %v988_v16  ;;  %v975_v22 = vrot.slane %v973_v14, 7  ;;  %v10136_v23 = vrot.slane %v946_v17, 11  ;;  %v10257_v29 = vor.u32 %v12983_v35, %v10256_v3  ;;  %v570_v34 = vshrl.u32 %v14295_v57, 16 }
  0xed   : > { %v665_v25 = vunpack.c.l.b16 %v628_v20  ;;  %v667_v26 = vunpack.c.h.b16 %v628_v20  ;;  %v629_v33 = vrot.slane %v607_v11, 5  ;;  %v956_v37 = vor.u32 %v954_v19, %v953_v24  ;;  %415 = vst [vmem:[#allocation2 + $0x84] sm:$0xff] %v382_v51  }
  0xee   : > { %v978_v32 = vor.u32 %v976_v18, %v975_v22  ;;  %v971_v38 = vrot.slane %v953_v24, 4  ;;  %v573_v43 = vshll.u32 %v14295_v57, 16  ;;  %v512_v5 = vunpack.c.h.b16 %v14340_v28 }
  0xef   : > { %v711_v39 = vpack.c.b16 %v665_v25, %v665_v25  ;;  %v713_v40 = vpack.c.b16 %v667_v26, %v667_v26  ;;  %v630_v42 = vsel %vm609_vm4, %v628_v20, %v629_v33  ;;  %v957_v45 = vsel %vm14038_vm3, %v10136_v23, %v956_v37 }
  0xf0   : > { %v10248_v41 = vld [vmem:[#allocation4 + $0x60] sm:$0xf]  ;;  %v12981_v44 = vld [vmem:[#allocation4 + $0x64] sm:$0xf]  ;;  %v979_v2 = vsel %vm14038_vm3, %v971_v38, %v978_v32  ;;  %v668_v4 = vunpack.c.l.b16 %v630_v42  ;;  %v600_v48 = vunpack.c.l.b16 %v464_v36  ;;  %1129 = vst [vmem:[#allocation4 + $0x78] sm:$0xff] %v957_v45  ;;  %v572_v56 = vrot.slane %v570_v34, 4 }
  0xf1   : > { %v12982_v27 = vld [vmem:[#allocation4 + $0x68] sm:$0xf0]  ;;  %v10250_v30 = vld [vmem:[#allocation4 + $0x6c] sm:$0xf0]  ;;  %v10452_v49 = vld [vmem:[#allocation4 + $0x60] sm:$0xf]  ;;  %v507_v7 = vunpack.c.l.b16 %v451_v46 }
  0xf2   : > { %v10249_v31 = vor.u32 %v12982_v27, %v10248_v41  ;;  %v1003_v50 = vshrl.u32 %v711_v39, 16  ;;  %v12937_v52 = vld [vmem:[#allocation4 + $0x68] sm:$0xf0]  ;;  %1131 = vst [vmem:[#allocation4 + $0x84] sm:$0xff] %v979_v2  ;;  %v715_v47 = vpack.c.b16 %v668_v4, %v668_v4  ;;  %v1008_v53 = vshrl.u32 %v713_v40, 16  ;;  %v12966_v34 = vld [vmem:[%s17005_s1 + $0x90] sm:$0xff] }
  0xf3   : > { %v1011_v55 = vshll.u32 %v713_v40, 16  ;;  %v10253_v58 = vor.u32 %v12981_v44, %v10250_v30  ;;  %v575_v62 = vrot.slane %v573_v43, 5  ;;  %v608_v3 = vpack.c.b16 %v600_v48, %v600_v48  ;;  %v14358_v18 = vld [vmem:[#allocation4 + $0x80] sm:$0xf]  ;;  %v14360_v21 = vld [vmem:[#allocation4 + $0x88] sm:$0xf0]  ;;  %2982 = vmatpush.bf16.msrb.mxu1 %v12966_v34 }
  0xf4   : > { %v10139_v59 = vrot.slane %v1003_v50, 11  ;;  %v1010_v63 = vrot.slane %v1008_v53, 7  ;;  %v1026_v0 = vshrl.u32 %v715_v47, 16  ;;  %v1029_v1 = vshll.u32 %v715_v47, 16  ;;  %v12958_v36 = vld [vmem:[%s17005_s1 + $0x50] sm:$0xff] }
  0xf5   : > { %v10453_v6 = vor.u32 %v12937_v52, %v10452_v49  ;;  %v576_v9 = vor.u32 %v575_v62, %v572_v56  ;;  %v631_v10 = vrot.slane %v14340_v28, 5  ;;  %v632_v14 = vrot.slane %v608_v3, 5  ;;  %2933 = vmatpush.bf16.msrb.mxu0 %v12958_v36  ;;  %v454_v48 = vld [vmem:[#allocation2 + $0x70] sm:$0x8] }
  0xf6   : > { %2581 = vmatmul.bf16.gmra.mxu2 %v10257_v29  ;;  %v1013_v13 = vor.u32 %v1011_v55, %v1010_v63  ;;  %v1024_v35 = vrot.slane %v1010_v63, 4  ;;  %v1028_v17 = vrot.slane %v1026_v0, 7  ;;  %v578_v19 = vshrl.u32 %v14340_v28, 16 }
  0xf7   : > { %v664_v16 = vunpack.c.l.b16 %v576_v9  ;;  %v670_v12 = vunpack.c.l.b16 %v631_v10  ;;  %v633_v11 = vsel %vm609_vm4, %v631_v10, %v632_v14  ;;  %v672_v23 = vunpack.c.h.b16 %v631_v10  ;;  %v10260_v49 = vld [vmem:[#allocation4 + $0x78] sm:$0xf]  ;;  %v12984_v61 = vld [vmem:[#allocation4 + $0x7c] sm:$0xf]  ;;  %v13053_v14 = vld [vmem:[%s17005_s1 + $0x1c8] sm:$0xff] }
  0xf8   : > { %v1014_v20 = vsel %vm14038_vm3, %v10139_v59, %v1013_v13  ;;  %v1031_v22 = vor.u32 %v1029_v1, %v1028_v17  ;;  %v13735_v25 = vsel %vm13722_vm0, %v14295_v57, %v576_v9  ;;  %v673_v29 = vunpack.c.l.b16 %v633_v11  ;;  %v10464_v63 = vld [vmem:[#allocation4 + $0x78] sm:$0xf]  ;;  %v13045_v17 = vld [vmem:[%s17005_s1 + $0x188] sm:$0xff]  ;;  %3435 = vmatpush.bf16.msrb.mxu3 %v13053_v14 }
  0xf9   : > { %v710_v24 = vpack.c.b16 %v664_v16, %v507_v7  ;;  %v714_v26 = vpack.c.b16 %v664_v16, %v509_v8  ;;  %v10269_v32 = vor.u32 %v14360_v21, %v14358_v18  ;;  %1134 = vst [vmem:[#allocation4 + $0x98] sm:$0xf] %v1014_v20  ;;  %v995_v57 = vshrl.u32 %v13735_v25, 16  ;;  %v12985_v50 = vld [vmem:[#allocation4 + $0x80] sm:$0xf0]  ;;  %3386 = vmatpush.bf16.msrb.mxu2 %v13045_v17 }
  0xfa   : > { %v1032_v33 = vsel %vm14038_vm3, %v1024_v35, %v1031_v22  ;;  %v998_v8 = vshll.u32 %v13735_v25, 16  ;;  %v717_v40 = vpack.c.b16 %v670_v12, %v670_v12  ;;  %v719_v41 = vpack.c.b16 %v672_v23, %v672_v23  ;;  %v10262_v62 = vld [vmem:[#allocation4 + $0x84] sm:$0xf0] }
  0xfb   : > { %2483 = vmatmul.bf16.gmra.mxu0 %v10249_v31  ;;  %2532 = vmatmul.bf16.gmra.mxu1 %v10253_v58  ;;  %1136 = vst [vmem:[#allocation4 + $0xa4] sm:$0xf] %v1032_v33  ;;  %v990_v37 = vshrl.u32 %v710_v24, 16  ;;  %v1017_v38 = vshrl.u32 %v714_v26, 16  ;;  %v1020_v39 = vshll.u32 %v714_v26, 16  ;;  %v721_v42 = vpack.c.b16 %v673_v29, %v673_v29  ;;  %v14380_v31 = vld [vmem:[#allocation2 + $0x84] sm:$0xff]  }
  0xfc   : > { %2907 = vmatmul.bf16.gmra.mxu3 %v10453_v6  ;;  %v997_v27 = vrot.slane %v995_v57, 7  ;;  %v580_v30 = vrot.slane %v578_v19, 4  ;;  %v1047_v45 = vshrl.u32 %v717_v40, 16  ;;  %v1052_v2 = vshrl.u32 %v719_v41, 16  ;;  %v12940_v6 = vld [vmem:[#allocation4 + $0x80] sm:$0xf0] }
  0xfd   : > { %v10138_v43 = vrot.slane %v990_v37, 11  ;;  %v1019_v44 = vrot.slane %v1017_v38, 7  ;;  %v1055_v4 = vshll.u32 %v719_v41, 16  ;;  %v1070_v46 = vshrl.u32 %v721_v42, 16  ;;  %v1142_v37 = vld [vmem:[#allocation2 + $0x80] sm:$0x8] }
  0xfe   : > { %v1000_v51 = vor.u32 %v998_v8, %v997_v27  ;;  %v1015_v52 = vrot.slane %v997_v27, 4  ;;  %v1073_v53 = vshll.u32 %v721_v42, 16  ;;  %v10141_v55 = vrot.slane %v1047_v45, 11  ;;  %v12965_v40 = vld [vmem:[%s17005_s1 + $0x88] sm:$0xff] }
  0xff   : > { %v1022_v47 = vor.u32 %v1020_v39, %v1019_v44  ;;  %v1054_v56 = vrot.slane %v1052_v2, 7  ;;  %v1072_v58 = vrot.slane %v1070_v46, 7  ;;  %v581_v59 = vshll.u32 %v14340_v28, 16  ;;  %v12957_v41 = vld [vmem:[%s17005_s1 + $0x48] sm:$0xff]  ;;  %2983 = vmatpush.bf16.msrb.mxu1 %v12965_v40 }
 0x100   : > { %v1001_v0 = vsel %vm14038_vm3, %v10138_v43, %v1000_v51  ;;  %v1200_v3 = vunpack.c.h.b16 %v14380_v31  ;;  %v10261_v35 = vor.u32 %v12985_v50, %v10260_v49  ;;  %v510_v18 = vunpack.c.l.b16 %v454_v48  ;;  %v14400_v25 = vld [vmem:[#allocation4 + $0x98] sm:$0xf]  ;;  %2934 = vmatpush.bf16.msrb.mxu0 %v12957_v41 }
 0x101   : > { %v1023_v1 = vsel %vm14038_vm3, %v1015_v52, %v1022_v47  ;;  %1133 = vst [vmem:[#allocation4 + $0x90] sm:$0xff] %v1001_v0  ;;  %v1057_v7 = vor.u32 %v1055_v4, %v1054_v56  ;;  %v1068_v9 = vrot.slane %v1054_v56, 4  ;;  %v1075_v10 = vor.u32 %v1073_v53, %v1072_v58 }
 0x102   : > { %v583_v13 = vrot.slane %v581_v59, 5  ;;  %1135 = vst [vmem:[#allocation4 + $0x9c] sm:$0xff] %v1023_v1  ;;  %v1302_v21 = vunpack.c.l.b16 %v1166_v60  ;;  %v10265_v16 = vor.u32 %v12984_v61, %v10262_v62  ;;  %v10465_v22 = vor.u32 %v12940_v6, %v10464_v63 }
 0x103   : > { %v1058_v12 = vsel %vm14038_vm3, %v10141_v55, %v1057_v7  ;;  %v1076_v19 = vsel %vm14038_vm3, %v1068_v9, %v1075_v10  ;;  %v1318_v23 = vrot.slane %v14380_v31, 5  ;;  %v1231_v24 = vshrl.u32 %v14380_v31, 16 }
 0x104   : > { %v584_v20 = vor.u32 %v583_v13, %v580_v30  ;;  %1138 = vst [vmem:[#allocation4 + $0xb0] sm:$0xf] %v1058_v12  ;;  %v1310_v11 = vpack.c.b16 %v1302_v21, %v1302_v21  ;;  %v1234_v29 = vshll.u32 %v14380_v31, 16  ;;  %v1198_v49 = vunpack.c.l.b16 %v1142_v37  ;;  %v457_v21 = vld [vmem:[#allocation2 + $0xc] sm:$0x1] }
 0x105   : > { %1140 = vst [vmem:[#allocation4 + $0xbc] sm:$0xf] %v1076_v19  ;;  %v1343_v34 = vunpack.c.l.b16 %v1318_v23  ;;  %v1345_v36 = vunpack.c.h.b16 %v1318_v23  ;;  %v1233_v57 = vrot.slane %v1231_v24, 4  ;;  %v610_v37 = vrot.slane %v13957_v15, 5  ;;  %v12964_v15 = vld [vmem:[%s17005_s1 + $0x80] sm:$0xff] }
 0x106   : > { %2586 = vmatmul.bf16.gmra.mxu2 %v10269_v32  ;;  %v669_v26 = vunpack.c.l.b16 %v584_v20  ;;  %v12989_v32 = vld [vmem:[#allocation4 + $0xa0] sm:$0xf0]  ;;  %v1319_v33 = vrot.slane %v1310_v11, 5  ;;  %v13737_v38 = vsel %vm13722_vm0, %v14340_v28, %v584_v20  ;;  %v1236_v42 = vrot.slane %v1234_v29, 5  ;;  %2984 = vmatpush.bf16.msrb.mxu1 %v12964_v15 }
 0x107   : > { %v1383_v28 = vpack.c.b16 %v1343_v34, %v1343_v34  ;;  %v10281_v45 = vor.u32 %v12989_v32, %v14400_v25  ;;  %v1039_v53 = vshrl.u32 %v13737_v38, 16  ;;  %v1042_v55 = vshll.u32 %v13737_v38, 16  ;;  %v13052_v29 = vld [vmem:[%s17005_s1 + $0x1c0] sm:$0xff] }
 0x108   : > { %v716_v8 = vpack.c.b16 %v669_v26, %v510_v18  ;;  %v720_v39 = vpack.c.b16 %v669_v26, %v512_v5  ;;  %v14413_v43 = vld [vmem:[#allocation4 + $0x90] sm:$0xf]  ;;  %v14415_v27 = vld [vmem:[#allocation4 + $0x94] sm:$0xf]  ;;  %v1320_v30 = vsel %vm609_vm4, %v1318_v23, %v1319_v33  ;;  %v1385_v5 = vpack.c.b16 %v1345_v36, %v1345_v36  ;;  %v13044_v26 = vld [vmem:[%s17005_s1 + $0x180] sm:$0xff]  ;;  %3436 = vmatpush.bf16.msrb.mxu3 %v13052_v29 }
 0x109   : > { %v14417_v44 = vld [vmem:[#allocation4 + $0x90] sm:$0xf]  ;;  %v14421_v2 = vld [vmem:[#allocation4 + $0x98] sm:$0xf0]  ;;  %v14423_v4 = vld [vmem:[#allocation4 + $0x9c] sm:$0xf0]  ;;  %v1346_v48 = vunpack.c.l.b16 %v1320_v30  ;;  %v1237_v47 = vor.u32 %v1236_v42, %v1233_v57  ;;  %v593_v33 = vunpack.c.l.b16 %v457_v21  ;;  %3387 = vmatpush.bf16.msrb.mxu2 %v13044_v26  ;;  %v635_v41 = vunpack.c.l.b16 %v610_v37 }
 0x10a   : > { %v14425_v46 = vld [vmem:[#allocation4 + $0x98] sm:$0xf0]  ;;  %v10273_v50 = vor.u32 %v14421_v2, %v14413_v43  ;;  %v10277_v51 = vor.u32 %v14415_v27, %v14423_v4  ;;  %v1034_v52 = vshrl.u32 %v716_v8, 16  ;;  %v1061_v56 = vshrl.u32 %v720_v39, 16  ;;  %v12956_v30 = vld [vmem:[%s17005_s1 + $0x40] sm:$0xff] }
 0x10b   : > { %2488 = vmatmul.bf16.gmra.mxu0 %v10261_v35  ;;  %2537 = vmatmul.bf16.gmra.mxu1 %v10265_v16  ;;  %v1064_v58 = vshll.u32 %v720_v39, 16  ;;  %v10477_v59 = vor.u32 %v14425_v46, %v14417_v44  ;;  %v1387_v60 = vpack.c.b16 %v1346_v48, %v1346_v48  ;;  %v1444_v61 = vshrl.u32 %v1383_v28, 16 }
 0x10c   : > { %2912 = vmatmul.bf16.gmra.mxu3 %v10465_v22  ;;  %v1449_v62 = vshrl.u32 %v1385_v5, 16  ;;  %v10140_v63 = vrot.slane %v1034_v52, 11  ;;  %v1041_v0 = vrot.slane %v1039_v53, 7  ;;  %v1063_v1 = vrot.slane %v1061_v56, 7  ;;  %2935 = vmatpush.bf16.msrb.mxu0 %v12956_v30 }
 0x10d   : > { %v1452_v6 = vshll.u32 %v1385_v5, 16  ;;  %v10143_v7 = vrot.slane %v1444_v61, 11  ;;  %v1467_v10 = vshrl.u32 %v1387_v60, 16  ;;  %v1470_v13 = vshll.u32 %v1387_v60, 16 }
 0x10e   : > { %v1451_v9 = vrot.slane %v1449_v62, 7  ;;  %v1044_v35 = vor.u32 %v1042_v55, %v1041_v0  ;;  %v1059_v17 = vrot.slane %v1041_v0, 4  ;;  %v1066_v14 = vor.u32 %v1064_v58, %v1063_v1 }
 0x10f   : > { %v1342_v18 = vunpack.c.l.b16 %v1237_v47  ;;  %v1469_v19 = vrot.slane %v1467_v10, 7  ;;  %v13739_v32 = vsel %vm13722_vm0, %v14380_v31, %v1237_v47  ;;  %v601_v39 = vpack.c.b16 %v593_v33, %v593_v33  ;;  %v13020_v33 = vld [vmem:[#allocation4 + $0x34] sm:$0xf] }
 0x110   : > { %v1454_v16 = vor.u32 %v1452_v6, %v1451_v9  ;;  %v1465_v12 = vrot.slane %v1451_v9, 4  ;;  %v1045_v20 = vsel %vm14038_vm3, %v10140_v63, %v1044_v35  ;;  %v1067_v22 = vsel %vm14038_vm3, %v1059_v17, %v1066_v14 }
 0x111   : > { %v1382_v11 = vpack.c.b16 %v1342_v18, %v1198_v49  ;;  %v1386_v23 = vpack.c.b16 %v1342_v18, %v1200_v3  ;;  %1137 = vst [vmem:[#allocation4 + $0xa8] sm:$0xff] %v1045_v20  ;;  %v1472_v25 = vor.u32 %v1470_v13, %v1469_v19  ;;  %v1436_v8 = vshrl.u32 %v13739_v32, 16  ;;  %v13163_v19 = vld [vmem:[%s17005_s1 + $0x178] sm:$0xff] }
 0x112   : > { %v1455_v24 = vsel %vm14038_vm3, %v10143_v7, %v1454_v16  ;;  %1139 = vst [vmem:[#allocation4 + $0xb4] sm:$0xff] %v1067_v22  ;;  %v1439_v38 = vshll.u32 %v13739_v32, 16  ;;  %v637_v31 = vunpack.c.h.b16 %v610_v37  ;;  %v611_v27 = vrot.slane %v601_v39, 5  ;;  %v13147_v20 = vld [vmem:[%s17005_s1 + $0xf8] sm:$0xff]  ;;  %4142 = vmatpush.bf16.msra.mxu3 %v13163_v19  ;;  %v13146_v39 = vld [vmem:[%s17005_s1 + $0xf0] sm:$0xff] }
 0x113   : > { %v1431_v3 = vshrl.u32 %v1382_v11, 16  ;;  %v1458_v34 = vshrl.u32 %v1386_v23, 16  ;;  %v1461_v36 = vshll.u32 %v1386_v23, 16  ;;  %v1473_v57 = vsel %vm14038_vm3, %v1465_v12, %v1472_v25  ;;  %1816 = vst [vmem:[#allocation4 + $0xc8] sm:$0xf] %v1455_v24  ;;  %v13155_v12 = vld [vmem:[%s17005_s1 + $0x138] sm:$0xff]  ;;  %4044 = vmatpush.bf16.msra.mxu1 %v13147_v20 }
 0x114   : > { %1818 = vst [vmem:[#allocation4 + $0xd4] sm:$0xf] %v1473_v57  ;;  %v1438_v43 = vrot.slane %v1436_v8, 7  ;;  %v675_v28 = vpack.c.b16 %v635_v41, %v635_v41  ;;  %v612_v2 = vsel %vm609_vm4, %v610_v37, %v611_v27  ;;  %v677_v4 = vpack.c.b16 %v637_v31, %v637_v31  ;;  %4093 = vmatpush.bf16.msra.mxu2 %v13155_v12  ;;  %v13067_v23 = vld [vmem:[%s17005_s1 + $0x238] sm:$0xff]  ;;  %v13154_v57 = vld [vmem:[%s17005_s1 + $0x130] sm:$0xff] }
 0x115   : > { %v1460_v40 = vrot.slane %v1458_v34, 7  ;;  %v10142_v42 = vrot.slane %v1431_v3, 11  ;;  %v638_v46 = vunpack.c.l.b16 %v612_v2  ;;  %3478 = vmatpush.bf16.msra.mxu0 %v13067_v23  ;;  %v10646_v3 = vld [vmem:[#allocation4 + $0x3c] sm:$0xf0]  ;;  %v13162_v8 = vld [vmem:[%s17005_s1 + $0x170] sm:$0xff] }
 0x116   : > { %2591 = vmatmul.bf16.gmra.mxu2 %v10281_v45  ;;  %v1441_v5 = vor.u32 %v1439_v38, %v1438_v43  ;;  %v1456_v45 = vrot.slane %v1438_v43, 4  ;;  %v739_v47 = vshrl.u32 %v675_v28, 16  ;;  %v744_v53 = vshrl.u32 %v677_v4, 16  ;;  %v2888_v38 = vpop.f32.mrf.mxu3  ;;  %4143 = vmatpush.bf16.msra.mxu3 %v13162_v8  ;;  %v13021_v41 = vld [vmem:[#allocation4 + $0x38] sm:$0xf0]  ;;  %v13066_v31 = vld [vmem:[%s17005_s1 + $0x230] sm:$0xff] }
 0x117   : > { %v1463_v44 = vor.u32 %v1461_v36, %v1460_v40  ;;  %v679_v52 = vpack.c.b16 %v638_v46, %v638_v46  ;;  %v747_v55 = vshll.u32 %v677_v4, 16  ;;  %v10649_v37 = vor.u32 %v13020_v33, %v10646_v3  ;;  %4045 = vmatpush.bf16.msra.mxu1 %v13146_v39  ;;  %v10644_v40 = vld [vmem:[#allocation4 + $0x30] sm:$0xf]  ;;  %v12924_v43 = vld [vmem:[#allocation4 + $0x4] sm:$0xf] }
 0x118   : > { %v1442_v48 = vsel %vm14038_vm3, %v10142_v42, %v1441_v5  ;;  %v10127_v60 = vrot.slane %v739_v47, 11  ;;  %v746_v61 = vrot.slane %v744_v53, 7  ;;  %v10284_v62 = vld [vmem:[#allocation4 + $0xa8] sm:$0xf]  ;;  %v12990_v63 = vld [vmem:[#allocation4 + $0xac] sm:$0xf]  ;;  %4094 = vmatpush.bf16.msra.mxu2 %v13154_v57  ;;  %v10645_v42 = vor.u32 %v13021_v41, %v10644_v40 }
 0x119   : > { %v1464_v49 = vsel %vm14038_vm3, %v1456_v45, %v1463_v44  ;;  %1815 = vst [vmem:[#allocation4 + $0xc0] sm:$0xff] %v1442_v48  ;;  %v762_v56 = vshrl.u32 %v679_v52, 16  ;;  %v765_v58 = vshll.u32 %v679_v52, 16  ;;  %v12991_v1 = vld [vmem:[#allocation4 + $0xb0] sm:$0xf0]  ;;  %3479 = vmatpush.bf16.msra.mxu0 %v13066_v31  ;;  %v13161_v52 = vld [vmem:[%s17005_s1 + $0x168] sm:$0xff] }
 0x11a   : > { %1817 = vst [vmem:[#allocation4 + $0xcc] sm:$0xff] %v1464_v49  ;;  %v10286_v6 = vld [vmem:[#allocation4 + $0xb4] sm:$0xf0]  ;;  %v749_v7 = vor.u32 %v747_v55, %v746_v61  ;;  %v760_v9 = vrot.slane %v746_v61, 4  ;;  %v10488_v10 = vld [vmem:[#allocation4 + $0xa8] sm:$0xf]  ;;  %v10285_v14 = vor.u32 %v12991_v1, %v10284_v62  ;;  %4144 = vmatpush.bf16.msra.mxu3 %v13161_v52 }
 0x11b   : > { %2493 = vmatmul.bf16.gmra.mxu0 %v10273_v50  ;;  %2542 = vmatmul.bf16.gmra.mxu1 %v10277_v51  ;;  %v10292_v50 = vld [vmem:[#allocation4 + $0xb0] sm:$0xf]  ;;  %v12992_v51 = vld [vmem:[#allocation4 + $0xb8] sm:$0xf0]  ;;  %v764_v0 = vrot.slane %v762_v56, 7  ;;  %v10289_v18 = vor.u32 %v12990_v63, %v10286_v6  ;;  %v13145_v53 = vld [vmem:[%s17005_s1 + $0xe8] sm:$0xff] }
 0x11c   : > { %2917 = vmatmul.bf16.gmra.mxu3 %v10477_v59  ;;  %v10293_v59 = vor.u32 %v12992_v51, %v10292_v50  ;;  %v12946_v13 = vld [vmem:[#allocation4 + $0xb0] sm:$0xf0]  ;;  %v750_v17 = vsel %vm14038_vm3, %v10127_v60, %v749_v7  ;;  %v10304_v22 = vld [vmem:[#allocation4 + $0xc8] sm:$0xf]  ;;  %v10406_v27 = vld [vmem:[#allocation4 + $0xc] sm:$0xf0]  ;;  %4046 = vmatpush.bf16.msra.mxu1 %v13145_v53 }
 0x11d   : > { %v767_v35 = vor.u32 %v765_v58, %v764_v0  ;;  %1110 = vst [vmem:[#allocation4 + $0x8] sm:$0xf] %v750_v17  ;;  %v10489_v16 = vor.u32 %v12946_v13, %v10488_v10  ;;  %v12995_v11 = vld [vmem:[#allocation4 + $0xd0] sm:$0xf0]  ;;  %v13023_v28 = vld [vmem:[#allocation4 + $0x4c] sm:$0xf]  ;;  %v10409_v45 = vor.u32 %v12924_v43, %v10406_v27 }
 0x11e   : > { %v10305_v24 = vor.u32 %v12995_v11, %v10304_v22  ;;  %v2890_v30 = vpop.f32.mrf.mxu3  ;;  %v10658_v5 = vld [vmem:[#allocation4 + $0x54] sm:$0xf0]  ;;  %v13153_v51 = vld [vmem:[%s17005_s1 + $0x128] sm:$0xff]  ;;  %v12927_v7 = vld [vmem:[#allocation4 + $0x1c] sm:$0xf] }
 0x11f   : > { %v768_v21 = vsel %vm14038_vm3, %v760_v9, %v767_v35  ;;  %v10661_v48 = vor.u32 %v13023_v28, %v10658_v5  ;;  %4095 = vmatpush.bf16.msra.mxu2 %v13153_v51  ;;  %v10656_v58 = vld [vmem:[#allocation4 + $0x48] sm:$0xf]  ;;  %v10424_v10 = vld [vmem:[#allocation4 + $0x20] sm:$0xf]  ;;  %v12929_v13 = vld [vmem:[#allocation4 + $0x28] sm:$0xf0] }
 0x120   : > { %1112 = vst [vmem:[#allocation4 + $0x14] sm:$0xf] %v768_v21  ;;  %v10296_v25 = vld [vmem:[#allocation4 + $0xc0] sm:$0xf]  ;;  %v12993_v29 = vld [vmem:[#allocation4 + $0xc4] sm:$0xf]  ;;  %v10425_v21 = vor.u32 %v12929_v13, %v10424_v10 }
 0x121   : > { %v12994_v26 = vld [vmem:[#allocation4 + $0xc8] sm:$0xf0]  ;;  %v10298_v32 = vld [vmem:[#allocation4 + $0xcc] sm:$0xf0]  ;;  %v10418_v9 = vld [vmem:[#allocation4 + $0x24] sm:$0xf0] }
 0x122   : > { %v10297_v34 = vor.u32 %v12994_v26, %v10296_v25  ;;  %v10301_v36 = vor.u32 %v12993_v29, %v10298_v32  ;;  %v13065_v0 = vld [vmem:[%s17005_s1 + $0x228] sm:$0xff]  ;;  %v13026_v35 = vld [vmem:[#allocation4 + $0x64] sm:$0xf]  ;;  %v10670_v17 = vld [vmem:[#allocation4 + $0x6c] sm:$0xf0] }
 0x123   : > { %3480 = vmatpush.bf16.msra.mxu0 %v13065_v0  ;;  %v10673_v20 = vor.u32 %v13026_v35, %v10670_v17  ;;  %v13152_v23 = vld [vmem:[%s17005_s1 + $0x120] sm:$0xff]  ;;  %v13027_v3 = vld [vmem:[#allocation4 + $0x68] sm:$0xf0]  ;;  %v12930_v40 = vld [vmem:[#allocation4 + $0x34] sm:$0xf] }
 0x124   : > { %v10412_v44 = vld [vmem:[#allocation4 + $0x8] sm:$0xf]  ;;  %v13144_v26 = vld [vmem:[%s17005_s1 + $0xe0] sm:$0xff]  ;;  %4096 = vmatpush.bf16.msra.mxu2 %v13152_v23  ;;  %v10436_v31 = vld [vmem:[#allocation4 + $0x38] sm:$0xf] }
 0x125   : > { %4047 = vmatpush.bf16.msra.mxu1 %v13144_v26  ;;  %v10668_v33 = vld [vmem:[#allocation4 + $0x60] sm:$0xf]  ;;  %v13029_v43 = vld [vmem:[#allocation4 + $0x7c] sm:$0xf]  ;;  %v10682_v27 = vld [vmem:[#allocation4 + $0x84] sm:$0xf0] }
 0x126   : > { %2596 = vmatmul.bf16.gmra.mxu2 %v10293_v59  ;;  %v13024_v59 = vld [vmem:[#allocation4 + $0x50] sm:$0xf0]  ;;  %v13064_v8 = vld [vmem:[%s17005_s1 + $0x220] sm:$0xff]  ;;  %v13143_v51 = vld [vmem:[%s17005_s1 + $0xd8] sm:$0xff] }
 0x127   : > { %v12926_v15 = vld [vmem:[#allocation4 + $0x10] sm:$0xf0]  ;;  %v10657_v1 = vor.u32 %v13024_v59, %v10656_v58  ;;  %3481 = vmatpush.bf16.msra.mxu0 %v13064_v8  ;;  %v10430_v41 = vld [vmem:[#allocation4 + $0x3c] sm:$0xf0]  ;;  %v13030_v58 = vld [vmem:[#allocation4 + $0x80] sm:$0xf0] }
 0x128   : > { %v10413_v2 = vor.u32 %v12926_v15, %v10412_v44  ;;  %v10433_v15 = vor.u32 %v12930_v40, %v10430_v41  ;;  %v384_v52 = vld [vmem:[%s14164_s9 + $0x40] sm:$0xff]   ;;  %v12935_v10 = vld [vmem:[#allocation4 + $0x58] sm:$0xf0]  ;;  %v13032_v13 = vld [vmem:[#allocation4 + $0x94] sm:$0xf] }
 0x129   : > { %4048 = vmatpush.bf16.msra.mxu1 %v13143_v51  ;;  %417 = vst [vmem:[#allocation2 + $0x94] sm:$0xff] %v384_v52   ;;  %v10694_v35 = vld [vmem:[#allocation4 + $0x9c] sm:$0xf0]  ;;  %v13158_v26 = vld [vmem:[%s17005_s1 + $0x150] sm:$0xff]  ;;  %v13033_v40 = vld [vmem:[#allocation4 + $0x98] sm:$0xf0] }
 0x12b   : > { %2498 = vmatmul.bf16.gmra.mxu0 %v10285_v14  ;;  %2547 = vmatmul.bf16.gmra.mxu1 %v10289_v18  ;;  %v10421_v18 = vor.u32 %v12927_v7, %v10418_v9  ;;  %v10442_v7 = vld [vmem:[#allocation4 + $0x54] sm:$0xf0]  ;;  %v10448_v9 = vld [vmem:[#allocation4 + $0x50] sm:$0xf] }
 0x12c   : > { %2922 = vmatmul.bf16.gmra.mxu3 %v10489_v16 }
 0x130   : > { %v14538_v17 = vld [vmem:[#allocation2 + $0x94] sm:$0xff]  }
 0x136   : > { %2601 = vmatmul.bf16.gmra.mxu2 %v10305_v24  ;;  %v13160_v24 = vld [vmem:[%s17005_s1 + $0x160] sm:$0xff] }
 0x137   : > { %4145 = vmatpush.bf16.msra.mxu3 %v13160_v24 }
 0x13b   : > { %2503 = vmatmul.bf16.gmra.mxu0 %v10297_v34  ;;  %2552 = vmatmul.bf16.gmra.mxu1 %v10301_v36 }
 0x13c   : > { %3437 = vmatmul.bf16.vlgmr.msrb.gmra.mxu3 %v10649_v37 }
 0x146   : > { %3388 = vmatmul.bf16.vlgmr.msrb.gmra.mxu2 %v10645_v42  ;;  %v12932_v42 = vld [vmem:[#allocation4 + $0x40] sm:$0xf0] }
 0x148   : > { %v2469_v4 = vpop.f32.mrf.mxu0  ;;  %v2518_v46 = vpop.f32.mrf.mxu1 }
 0x149   : > { %v2519_v49 = vadd.f32 %v2518_v46, %v2469_v4  ;;  %v2567_v50 = vpop.f32.mrf.mxu2 }
 0x14b   : > { %v2568_v47 = vadd.f32 %v2567_v50, %v2519_v49  ;;  %2936 = vmatmul.bf16.vlgmr.msrb.gmra.mxu0 %v10409_v45  ;;  %2985 = vmatmul.bf16.vlgmr.msrb.gmra.mxu1 %v10413_v2  ;;  %v10685_v2 = vor.u32 %v13029_v43, %v10682_v27  ;;  %v13159_v49 = vld [vmem:[%s17005_s1 + $0x158] sm:$0xff] }
 0x14c   : > { %3442 = vmatmul.bf16.gmra.mxu3 %v10661_v48  ;;  %v13151_v48 = vld [vmem:[%s17005_s1 + $0x118] sm:$0xff] }
 0x14d   : > { %v14500_v55 = vadd.f32 %v2888_v38, %v2568_v47  ;;  %v10669_v38 = vor.u32 %v13027_v3, %v10668_v33  ;;  %4097 = vmatpush.bf16.msra.mxu2 %v13151_v48  ;;  %4146 = vmatpush.bf16.msra.mxu3 %v13159_v49  ;;  %v1242_v33 = vshll.u32 %v14538_v17, 16  ;;  %v10454_v48 = vld [vmem:[#allocation4 + $0x6c] sm:$0xf0]  ;;  %v10460_v49 = vld [vmem:[#allocation4 + $0x68] sm:$0xf] }
 0x14f   : > { %v2893_v56 = vpop.f32.mrf.mxu3 }
 0x150   : > { %v2471_v60 = vpop.f32.mrf.mxu0  ;;  %v2520_v61 = vpop.f32.mrf.mxu1 }
 0x151   : > { %v2521_v62 = vadd.f32 %v2520_v61, %v2471_v60  ;;  %v2569_v63 = vpop.f32.mrf.mxu2  ;;  %4147 = vmatpush.bf16.msra.mxu3 %v13158_v26 }
 0x153   : > { %v2570_v6 = vadd.f32 %v2569_v63, %v2521_v62  ;;  %v13063_v63 = vld [vmem:[%s17005_s1 + $0x218] sm:$0xff] }
 0x154   : > { %3482 = vmatpush.bf16.msra.mxu0 %v13063_v63 }
 0x155   : > { %v14505_v14 = vadd.f32 %v2890_v30, %v2570_v6  ;;  %v10437_v30 = vor.u32 %v12932_v42, %v10436_v31  ;;  %v12933_v6 = vld [vmem:[#allocation4 + $0x4c] sm:$0xf] }
 0x156   : > { %3393 = vmatmul.bf16.gmra.mxu2 %v10657_v1 }
 0x157   : > { %v2895_v16 = vpop.f32.mrf.mxu3 }
 0x158   : > { %v2474_v12 = vpop.f32.mrf.mxu0  ;;  %v2523_v19 = vpop.f32.mrf.mxu1 }
 0x159   : > { %v2524_v22 = vadd.f32 %v2523_v19, %v2474_v12  ;;  %v2572_v11 = vpop.f32.mrf.mxu2  ;;  %v10449_v12 = vor.u32 %v12935_v10, %v10448_v9 }
 0x15b   : > { %v2573_v25 = vadd.f32 %v2572_v11, %v2524_v22  ;;  %2941 = vmatmul.bf16.gmra.mxu0 %v10421_v18  ;;  %2990 = vmatmul.bf16.gmra.mxu1 %v10425_v21  ;;  %v1203_v21 = vunpack.c.h.b16 %v14538_v17  ;;  %v10697_v11 = vor.u32 %v13032_v13, %v10694_v35 }
 0x15c   : > { %3447 = vmatmul.bf16.gmra.mxu3 %v10673_v20 }
 0x15d   : > { %v14516_v29 = vadd.f32 %v2893_v56, %v2573_v25  ;;  %v10680_v56 = vld [vmem:[#allocation4 + $0x78] sm:$0xf]  ;;  %v13150_v25 = vld [vmem:[%s17005_s1 + $0x110] sm:$0xff] }
 0x15e   : > { %v10681_v0 = vor.u32 %v13030_v58, %v10680_v56  ;;  %4098 = vmatpush.bf16.msra.mxu2 %v13150_v25  ;;  %v13035_v56 = vld [vmem:[#allocation4 + $0xac] sm:$0xf]  ;;  %v10706_v58 = vld [vmem:[#allocation4 + $0xb4] sm:$0xf0] }
 0x15f   : > { %v2898_v32 = vpop.f32.mrf.mxu3  ;;  %v10709_v13 = vor.u32 %v13035_v56, %v10706_v58  ;;  %v13141_v25 = vld [vmem:[%s17005_s1 + $0xc8] sm:$0xff]  ;;  %v10718_v56 = vld [vmem:[#allocation4 + $0xcc] sm:$0xf0] }
 0x160   : > { %v2476_v34 = vpop.f32.mrf.mxu0  ;;  %v2525_v36 = vpop.f32.mrf.mxu1 }
 0x161   : > { %v2526_v37 = vadd.f32 %v2525_v36, %v2476_v34  ;;  %v2574_v57 = vpop.f32.mrf.mxu2  ;;  %v13142_v34 = vld [vmem:[%s17005_s1 + $0xd0] sm:$0xff] }
 0x162   : > { %4049 = vmatpush.bf16.msra.mxu1 %v13142_v34 }
 0x163   : > { %v2575_v39 = vadd.f32 %v2574_v57, %v2526_v37  ;;  %v1244_v37 = vrot.slane %v1242_v33, 5 }
 0x165   : > { %v14521_v44 = vadd.f32 %v2895_v16, %v2575_v39  ;;  %v10445_v16 = vor.u32 %v12933_v6, %v10442_v7  ;;  %v10692_v39 = vld [vmem:[#allocation4 + $0x90] sm:$0xf] }
 0x166   : > { %3398 = vmatmul.bf16.gmra.mxu2 %v10669_v38  ;;  %4050 = vmatpush.bf16.msra.mxu1 %v13141_v25 }
 0x167   : > { %v2900_v28 = vpop.f32.mrf.mxu3 }
 0x168   : > { %v2479_v5 = vpop.f32.mrf.mxu0  ;;  %v2528_v45 = vpop.f32.mrf.mxu1 }
 0x169   : > { %v2529_v4 = vadd.f32 %v2528_v45, %v2479_v5  ;;  %v2577_v46 = vpop.f32.mrf.mxu2 }
 0x16b   : > { %v2578_v50 = vadd.f32 %v2577_v46, %v2529_v4  ;;  %2946 = vmatmul.bf16.gmra.mxu0 %v10433_v15  ;;  %2995 = vmatmul.bf16.gmra.mxu1 %v10437_v30  ;;  %v13062_v15 = vld [vmem:[%s17005_s1 + $0x210] sm:$0xff]  ;;  %v12936_v46 = vld [vmem:[#allocation4 + $0x64] sm:$0xf] }
 0x16c   : > { %3452 = vmatmul.bf16.gmra.mxu3 %v10685_v2  ;;  %v1145_v30 = vld [vmem:[#allocation2 + $0x90] sm:$0x8]  ;;  %3483 = vmatpush.bf16.msra.mxu0 %v13062_v15  ;;  %v10457_v63 = vor.u32 %v12936_v46, %v10454_v48  ;;  %v10466_v46 = vld [vmem:[#allocation4 + $0x84] sm:$0xf0]  ;;  %v10472_v48 = vld [vmem:[#allocation4 + $0x80] sm:$0xf] }
 0x16d   : > { %v14533_v47 = vadd.f32 %v2898_v32, %v2578_v50  ;;  %v1239_v32 = vshrl.u32 %v14538_v17, 16  ;;  %v1201_v5 = vunpack.c.l.b16 %v1145_v30  ;;  %v12938_v50 = vld [vmem:[#allocation4 + $0x70] sm:$0xf0]  ;;  %v13061_v30 = vld [vmem:[%s17005_s1 + $0x208] sm:$0xff] }
 0x16f   : > { %v2903_v53 = vpop.f32.mrf.mxu3  ;;  %v1241_v36 = vrot.slane %v1239_v32, 4 }
 0x170   : > { %v2481_v59 = vpop.f32.mrf.mxu0  ;;  %v2530_v60 = vpop.f32.mrf.mxu1  ;;  %3484 = vmatpush.bf16.msra.mxu0 %v13061_v30 }
 0x171   : > { %v2531_v61 = vadd.f32 %v2530_v60, %v2481_v59  ;;  %v2579_v62 = vpop.f32.mrf.mxu2  ;;  %v1245_v8 = vor.u32 %v1244_v37, %v1241_v36 }
 0x173   : > { %v2580_v1 = vadd.f32 %v2579_v62, %v2531_v61  ;;  %v1347_v42 = vunpack.c.l.b16 %v1245_v8  ;;  %v13741_v45 = vsel %vm13722_vm0, %v14538_v17, %v1245_v8  ;;  %v10704_v8 = vld [vmem:[#allocation4 + $0xa8] sm:$0xf] }
 0x174   : > { %v1480_v52 = vshrl.u32 %v13741_v45, 16  ;;  %v1483_v62 = vshll.u32 %v13741_v45, 16 }
 0x175   : > { %v14540_v18 = vadd.f32 %v2900_v28, %v2580_v1  ;;  %v10693_v28 = vor.u32 %v13033_v40, %v10692_v39  ;;  %v1392_v2 = vpack.c.b16 %v1347_v42, %v1203_v21  ;;  %v1388_v51 = vpack.c.b16 %v1347_v42, %v1201_v5  ;;  %v13036_v39 = vld [vmem:[#allocation4 + $0xb0] sm:$0xf0] }
 0x176   : > { %3403 = vmatmul.bf16.gmra.mxu2 %v10681_v0  ;;  %v1482_v61 = vrot.slane %v1480_v52, 7  ;;  %v10461_v0 = vor.u32 %v12938_v50, %v10460_v49  ;;  %v12941_v49 = vld [vmem:[#allocation4 + $0x88] sm:$0xf0] }
 0x177   : > { %v2905_v19 = vpop.f32.mrf.mxu3  ;;  %v1475_v60 = vshrl.u32 %v1388_v51, 16  ;;  %v1505_v7 = vshll.u32 %v1392_v2, 16 }
 0x178   : > { %v2484_v20 = vpop.f32.mrf.mxu0  ;;  %v2533_v22 = vpop.f32.mrf.mxu1  ;;  %v1485_v35 = vor.u32 %v1483_v62, %v1482_v61 }
 0x179   : > { %v2534_v23 = vadd.f32 %v2533_v22, %v2484_v20  ;;  %v2582_v24 = vpop.f32.mrf.mxu2  ;;  %v10144_v20 = vrot.slane %v1475_v60, 11  ;;  %v1500_v22 = vrot.slane %v1482_v61, 4 }
 0x17b   : > { %v2583_v3 = vadd.f32 %v2582_v24, %v2534_v23  ;;  %2951 = vmatmul.bf16.gmra.mxu0 %v10445_v16  ;;  %3000 = vmatmul.bf16.gmra.mxu1 %v10449_v12  ;;  %v13149_v12 = vld [vmem:[%s17005_s1 + $0x108] sm:$0xff]  ;;  %v1167_v23 = vld [vmem:[#allocation2 + $0x9c] sm:$0x1]  ;;  %v1486_v26 = vsel %vm14038_vm3, %v10144_v20, %v1485_v35 }
 0x17c   : > { %3457 = vmatmul.bf16.gmra.mxu3 %v10697_v11  ;;  %v1303_v32 = vunpack.c.l.b16 %v1167_v23  ;;  %4099 = vmatpush.bf16.msra.mxu2 %v13149_v12  ;;  %1819 = vst [vmem:[#allocation4 + $0xd8] sm:$0xff] %v1486_v26  ;;  %v13140_v26 = vld [vmem:[%s17005_s1 + $0xc0] sm:$0xff] }
 0x17d   : > { %v14554_v57 = vadd.f32 %v2903_v53, %v2583_v3  ;;  %v1502_v53 = vshrl.u32 %v1392_v2, 16  ;;  %v1321_v3 = vrot.slane %v14538_v17, 5  ;;  %4051 = vmatpush.bf16.msra.mxu1 %v13140_v26 }
 0x17e   : > { %v1311_v34 = vpack.c.b16 %v1303_v32, %v1303_v32 }
 0x17f   : > { %v2908_v38 = vpop.f32.mrf.mxu3  ;;  %v1504_v6 = vrot.slane %v1502_v53, 7  ;;  %v1350_v42 = vunpack.c.h.b16 %v1321_v3  ;;  %v13038_v53 = vld [vmem:[#allocation4 + $0xc4] sm:$0xf] }
 0x180   : > { %v2486_v41 = vpop.f32.mrf.mxu0  ;;  %v2535_v31 = vpop.f32.mrf.mxu1  ;;  %v1322_v40 = vrot.slane %v1311_v34, 5 }
 0x181   : > { %v2536_v43 = vadd.f32 %v2535_v31, %v2486_v41  ;;  %v2584_v27 = vpop.f32.mrf.mxu2  ;;  %v1507_v11 = vor.u32 %v1505_v7, %v1504_v6  ;;  %v1391_v45 = vpack.c.b16 %v1350_v42, %v1350_v42 }
 0x182   : > { %v1323_v17 = vsel %vm609_vm4, %v1321_v3, %v1322_v40  ;;  %v13039_v40 = vld [vmem:[#allocation4 + $0xc8] sm:$0xf0] }
 0x183   : > { %v2585_v4 = vadd.f32 %v2584_v27, %v2536_v43  ;;  %v1508_v33 = vsel %vm14038_vm3, %v1500_v22, %v1507_v11  ;;  %v386_v43 = vld [vmem:[%s14164_s9 + $0x48] sm:$0xff]   ;;  %v1351_v5 = vunpack.c.l.b16 %v1323_v17  ;;  %v1493_v52 = vshrl.u32 %v1391_v45, 16 }
 0x184   : > { %1821 = vst [vmem:[#allocation4 + $0xe4] sm:$0xff] %v1508_v33  ;;  %v1496_v62 = vshll.u32 %v1391_v45, 16 }
 0x185   : > { %v14561_v59 = vadd.f32 %v2905_v19, %v2585_v4  ;;  %v13157_v19 = vld [vmem:[%s17005_s1 + $0x148] sm:$0xff]  ;;  %419 = vst [vmem:[#allocation2 + $0xa4] sm:$0xff] %v386_v43   ;;  %v12939_v4 = vld [vmem:[#allocation4 + $0x7c] sm:$0xf]  ;;  %v1393_v51 = vpack.c.b16 %v1351_v5, %v1351_v5  ;;  %v1495_v61 = vrot.slane %v1493_v52, 7 }
 0x186   : > { %3408 = vmatmul.bf16.gmra.mxu2 %v10693_v28  ;;  %4148 = vmatpush.bf16.msra.mxu3 %v13157_v19  ;;  %v1348_v28 = vunpack.c.l.b16 %v1321_v3  ;;  %v13156_v19 = vld [vmem:[%s17005_s1 + $0x140] sm:$0xff] }
 0x187   : > { %v2910_v1 = vpop.f32.mrf.mxu3  ;;  %v1511_v7 = vshrl.u32 %v1393_v51, 16  ;;  %v1498_v35 = vor.u32 %v1496_v62, %v1495_v61  ;;  %v1509_v22 = vrot.slane %v1495_v61, 4 }
 0x188   : > { %v2489_v9 = vpop.f32.mrf.mxu0  ;;  %v2538_v10 = vpop.f32.mrf.mxu1  ;;  %v1389_v50 = vpack.c.b16 %v1348_v28, %v1348_v28  ;;  %v388_v28 = vld [vmem:[%s14164_s9 + $0x50] sm:$0xff]  }
 0x189   : > { %v2539_v21 = vadd.f32 %v2538_v10, %v2489_v9  ;;  %v2587_v16 = vpop.f32.mrf.mxu2  ;;  %v1513_v11 = vrot.slane %v1511_v7, 7  ;;  %421 = vst [vmem:[#allocation2 + $0xb4] sm:$0xff] %v388_v28   ;;  %v13041_v7 = vld [vmem:[#allocation4 + $0xdc] sm:$0xf] }
 0x18a   : > { %v1488_v60 = vshrl.u32 %v1389_v50, 16  ;;  %4149 = vmatpush.bf16.msra.mxu3 %v13156_v19  ;;  %v1169_v28 = vld [vmem:[#allocation2 + $0xbc] sm:$0x1] }
 0x18b   : > { %v2588_v24 = vadd.f32 %v2587_v16, %v2539_v21  ;;  %2956 = vmatmul.bf16.gmra.mxu0 %v10457_v63  ;;  %3005 = vmatmul.bf16.gmra.mxu1 %v10461_v0  ;;  %v10469_v63 = vor.u32 %v12939_v4, %v10466_v46  ;;  %v10473_v0 = vor.u32 %v12941_v49, %v10472_v48  ;;  %v1514_v21 = vshll.u32 %v1393_v51, 16  ;;  %v13060_v4 = vld [vmem:[%s17005_s1 + $0x200] sm:$0xff] }
 0x18c   : > { %3462 = vmatmul.bf16.gmra.mxu3 %v10709_v13  ;;  %v10721_v13 = vor.u32 %v13038_v53, %v10718_v56  ;;  %v10145_v20 = vrot.slane %v1488_v60, 11  ;;  %v14596_v23 = vld [vmem:[#allocation2 + $0xa4] sm:$0xff]   ;;  %v10484_v56 = vld [vmem:[#allocation4 + $0x98] sm:$0xf]  ;;  %3485 = vmatpush.bf16.msra.mxu0 %v13060_v4 }
 0x18d   : > { %v14577_v36 = vadd.f32 %v2908_v38, %v2588_v24  ;;  %v10705_v38 = vor.u32 %v13036_v39, %v10704_v8  ;;  %v1168_v24 = vld [vmem:[#allocation2 + $0xac] sm:$0x1]  ;;  %v1206_v33 = vunpack.c.h.b16 %v14596_v23  ;;  %v1516_v3 = vor.u32 %v1514_v21, %v1513_v11  ;;  %v10716_v39 = vld [vmem:[#allocation4 + $0xc0] sm:$0xf]  ;;  %v12944_v60 = vld [vmem:[#allocation4 + $0xa0] sm:$0xf0] }
 0x18e   : > { %v1499_v32 = vsel %vm14038_vm3, %v10145_v20, %v1498_v35  ;;  %v1304_v34 = vunpack.c.l.b16 %v1168_v24  ;;  %v1324_v43 = vrot.slane %v14596_v23, 5  ;;  %v10717_v50 = vor.u32 %v13039_v40, %v10716_v39 }
 0x18f   : > { %v14579_v37 = vpop.f32.mrf.mxu3  ;;  %1820 = vst [vmem:[#allocation4 + $0xe0] sm:$0xf] %v1499_v32 }
 0x190   : > { %v2491_v41 = vpop.f32.mrf.mxu0  ;;  %v2540_v31 = vpop.f32.mrf.mxu1  ;;  %v1355_v46 = vunpack.c.h.b16 %v1324_v43  ;;  %v1353_v52 = vunpack.c.l.b16 %v1324_v43 }
 0x191   : > { %v2541_v27 = vadd.f32 %v2540_v31, %v2491_v41  ;;  %v2589_v15 = vpop.f32.mrf.mxu2  ;;  %v1517_v41 = vsel %vm14038_vm3, %v1509_v22, %v1516_v3  ;;  %v1312_v31 = vpack.c.b16 %v1304_v34, %v1304_v34 }
 0x192   : > { %1822 = vst [vmem:[#allocation4 + $0xec] sm:$0xf] %v1517_v41  ;;  %v1397_v62 = vpack.c.b16 %v1355_v46, %v1355_v46 }
 0x193   : > { %v2590_v2 = vadd.f32 %v2589_v15, %v2541_v27  ;;  %v1247_v27 = vshrl.u32 %v14596_v23, 16  ;;  %v1250_v15 = vshll.u32 %v14596_v23, 16 }
 0x194   : > { %v1537_v21 = vshrl.u32 %v1397_v62, 16  ;;  %v1540_v20 = vshll.u32 %v1397_v62, 16 }
 0x195   : > { %v14586_v58 = vadd.f32 %v2910_v1, %v2590_v2  ;;  %v13148_v1 = vld [vmem:[%s17005_s1 + $0x100] sm:$0xff]  ;;  %v1249_v48 = vrot.slane %v1247_v27, 4  ;;  %v1252_v49 = vrot.slane %v1250_v15, 5 }
 0x196   : > { %3413 = vmatmul.bf16.gmra.mxu2 %v10705_v38  ;;  %v12942_v38 = vld [vmem:[#allocation4 + $0x94] sm:$0xf]  ;;  %v10478_v2 = vld [vmem:[#allocation4 + $0x9c] sm:$0xf0]  ;;  %v1539_v24 = vrot.slane %v1537_v21, 7 }
 0x197   : > { %v14588_v6 = vpop.f32.mrf.mxu3  ;;  %4100 = vmatpush.bf16.msra.mxu2 %v13148_v1  ;;  %v10485_v1 = vor.u32 %v12944_v60, %v10484_v56  ;;  %v10728_v56 = vld [vmem:[#allocation4 + $0xd8] sm:$0xf]  ;;  %v12945_v21 = vld [vmem:[#allocation4 + $0xac] sm:$0xf] }
 0x198   : > { %v2494_v9 = vpop.f32.mrf.mxu0  ;;  %v2543_v10 = vpop.f32.mrf.mxu1  ;;  %v1542_v15 = vor.u32 %v1540_v20, %v1539_v24  ;;  %v10490_v20 = vld [vmem:[#allocation4 + $0xb4] sm:$0xf0] }
 0x199   : > { %v2544_v16 = vadd.f32 %v2543_v10, %v2494_v9  ;;  %v2592_v12 = vpop.f32.mrf.mxu2  ;;  %v10730_v9 = vld [vmem:[#allocation4 + $0xe4] sm:$0xf0]  ;;  %v1395_v10 = vpack.c.b16 %v1353_v52, %v1353_v52 }
 0x19a   : > { %v10733_v11 = vor.u32 %v13041_v7, %v10730_v9 }
 0x19b   : > { %v2593_v25 = vadd.f32 %v2592_v12, %v2544_v16  ;;  %2961 = vmatmul.bf16.gmra.mxu0 %v10469_v63  ;;  %3010 = vmatmul.bf16.gmra.mxu1 %v10473_v0  ;;  %v1253_v63 = vor.u32 %v1252_v49, %v1249_v48  ;;  %v10481_v0 = vor.u32 %v12942_v38, %v10478_v2  ;;  %v1532_v19 = vshrl.u32 %v1395_v10, 16 }
 0x19c   : > { %3467 = vmatmul.bf16.gmra.mxu3 %v10721_v13  ;;  %v1148_v13 = vld [vmem:[#allocation2 + $0xa0] sm:$0x8] }
 0x19d   : > { %v14605_v8 = vadd.f32 %v14579_v37, %v2593_v25  ;;  %v1325_v37 = vrot.slane %v1312_v31, 5  ;;  %v1204_v16 = vunpack.c.l.b16 %v1148_v13  ;;  %v1352_v12 = vunpack.c.l.b16 %v1253_v63 }
 0x19e   : > { %v13743_v39 = vsel %vm13722_vm0, %v14596_v23, %v1253_v63  ;;  %v10147_v27 = vrot.slane %v1532_v19, 11  ;;  %v13115_v23 = vld [vmem:[%s17005_s1 + $0xb8] sm:$0xff] }
 0x19f   : > { %v14609_v42 = vpop.f32.mrf.mxu3  ;;  %v1326_v51 = vsel %vm609_vm4, %v1324_v43, %v1325_v37  ;;  %v1394_v34 = vpack.c.b16 %v1352_v12, %v1204_v16  ;;  %v1398_v40 = vpack.c.b16 %v1352_v12, %v1206_v33  ;;  %v14628_v37 = vld [vmem:[#allocation2 + $0xb4] sm:$0xff]   ;;  %v1524_v2 = vshrl.u32 %v13743_v39, 16  ;;  %4561 = vmatpush.bf16.msrb.mxu2 %v13115_v23 }
 0x1a0   : > { %v2496_v30 = vpop.f32.mrf.mxu0  ;;  %v2545_v17 = vpop.f32.mrf.mxu1  ;;  %v1356_v61 = vunpack.c.l.b16 %v1326_v51  ;;  %v13107_v33 = vld [vmem:[%s17005_s1 + $0x78] sm:$0xff]  ;;  %v1527_v4 = vshll.u32 %v13743_v39, 16  ;;  %v1209_v52 = vunpack.c.h.b16 %v14628_v37 }
 0x1a1   : > { %v2546_v5 = vadd.f32 %v2545_v17, %v2496_v30  ;;  %v2594_v45 = vpop.f32.mrf.mxu2  ;;  %v1553_v30 = vrot.slane %v1539_v24, 4  ;;  %v1519_v38 = vshrl.u32 %v1394_v34, 16  ;;  %v1546_v49 = vshrl.u32 %v1398_v40, 16  ;;  %4512 = vmatpush.bf16.msrb.mxu1 %v13107_v33  ;;  %v390_v12 = vld [vmem:[%s14164_s9 + $0x58] sm:$0xff]  }
 0x1a2   : > { %v1399_v35 = vpack.c.b16 %v1356_v61, %v1356_v61  ;;  %v1526_v51 = vrot.slane %v1524_v2, 7  ;;  %423 = vst [vmem:[#allocation2 + $0xc4] sm:$0xff] %v390_v12   ;;  %v1258_v34 = vshll.u32 %v14628_v37, 16 }
 0x1a3   : > { %v2595_v53 = vadd.f32 %v2594_v45, %v2546_v5  ;;  %v1543_v45 = vsel %vm14038_vm3, %v10147_v27, %v1542_v15  ;;  %v10146_v48 = vrot.slane %v1519_v38, 11  ;;  %v1548_v61 = vrot.slane %v1546_v49, 7 }
 0x1a4   : > { %v1555_v25 = vshrl.u32 %v1399_v35, 16  ;;  %v1558_v26 = vshll.u32 %v1399_v35, 16  ;;  %1824 = vst [vmem:[#allocation4 + $0xf8] sm:$0xf] %v1543_v45  ;;  %v1529_v7 = vor.u32 %v1527_v4, %v1526_v51  ;;  %v1544_v9 = vrot.slane %v1526_v51, 4 }
 0x1a5   : > { %v14626_v41 = vadd.f32 %v14588_v6, %v2595_v53  ;;  %v13195_v6 = vld [vmem:[%s17005_s1 + $0x1b8] sm:$0xff]  ;;  %v1305_v53 = vunpack.c.l.b16 %v1169_v28  ;;  %v1151_v28 = vld [vmem:[#allocation2 + $0xb0] sm:$0x8]  ;;  %v1260_v23 = vrot.slane %v1258_v34, 5  ;;  %v1170_v34 = vld [vmem:[#allocation2 + $0xcc] sm:$0x1] }
 0x1a6   : > { %3418 = vmatmul.bf16.gmra.mxu2 %v10717_v50  ;;  %v1557_v17 = vrot.slane %v1555_v25, 7  ;;  %v1549_v50 = vshll.u32 %v1398_v40, 16  ;;  %4963 = vmatpush.bf16.msrb.mxu3 %v13195_v6  ;;  %v12947_v40 = vld [vmem:[#allocation4 + $0xb8] sm:$0xf0]  ;;  %v10493_v6 = vor.u32 %v12945_v21, %v10490_v20 }
 0x1a7   : > { %v14619_v22 = vpop.f32.mrf.mxu3  ;;  %v1313_v10 = vpack.c.b16 %v1305_v53, %v1305_v53 }
 0x1a8   : > { %v2499_v32 = vpop.f32.mrf.mxu0  ;;  %v2548_v3 = vpop.f32.mrf.mxu1  ;;  %v1560_v46 = vor.u32 %v1558_v26, %v1557_v17  ;;  %v1551_v16 = vor.u32 %v1549_v50, %v1548_v61  ;;  %v10496_v26 = vld [vmem:[#allocation4 + $0xb0] sm:$0xf]  ;;  %v13118_v17 = vld [vmem:[#allocation4 + $0xe8] sm:$0xf0] }
 0x1a9   : > { %v2549_v31 = vadd.f32 %v2548_v3, %v2499_v32  ;;  %v2597_v43 = vpop.f32.mrf.mxu2  ;;  %v1328_v24 = vrot.slane %v1313_v10, 5  ;;  %v1255_v3 = vshrl.u32 %v14628_v37, 16  ;;  %v10497_v4 = vor.u32 %v12947_v40, %v10496_v26  ;;  %v14670_v20 = vld [vmem:[#allocation2 + $0xc4] sm:$0xff]  }
 0x1aa   : > { %v1561_v60 = vsel %vm14038_vm3, %v1553_v30, %v1560_v46  ;;  %v1552_v32 = vsel %vm14038_vm3, %v1544_v9, %v1551_v16 }
 0x1ab   : > { %v2598_v5 = vadd.f32 %v2597_v43, %v2549_v31  ;;  %2966 = vmatmul.bf16.gmra.mxu0 %v10481_v0  ;;  %3015 = vmatmul.bf16.gmra.mxu1 %v10485_v1  ;;  %v13042_v0 = vld [vmem:[#allocation4 + $0xe0] sm:$0xf0]  ;;  %1826 = vst [vmem:[#allocation4 + $0x104] sm:$0xf] %v1561_v60  ;;  %v10892_v31 = vld [vmem:[#allocation4 + $0xe0] sm:$0xf] }
 0x1ac   : > { %3472 = vmatmul.bf16.gmra.mxu3 %v10733_v11  ;;  %v1530_v11 = vsel %vm14038_vm3, %v10146_v48, %v1529_v7  ;;  %v10729_v25 = vor.u32 %v13042_v0, %v10728_v56  ;;  %v13099_v43 = vld [vmem:[%s17005_s1 + $0x38] sm:$0xff]  ;;  %1825 = vst [vmem:[#allocation4 + $0xfc] sm:$0xff] %v1552_v32  ;;  %v1207_v48 = vunpack.c.l.b16 %v1151_v28  ;;  %v10893_v51 = vor.u32 %v13118_v17, %v10892_v31  ;;  %v10886_v28 = vld [vmem:[#allocation4 + $0xe4] sm:$0xf0] }
 0x1ad   : > { %v14645_v62 = vadd.f32 %v14609_v42, %v2598_v5  ;;  %v1327_v42 = vrot.slane %v14628_v37, 5  ;;  %1823 = vst [vmem:[#allocation4 + $0xf0] sm:$0xff] %v1530_v11  ;;  %v1257_v5 = vrot.slane %v1255_v3, 4  ;;  %4463 = vmatpush.bf16.msrb.mxu0 %v13099_v43  ;;  %v13116_v43 = vld [vmem:[#allocation4 + $0xdc] sm:$0xf] }
 0x1af   : > { %v14647_v63 = vpop.f32.mrf.mxu3  ;;  %v1329_v27 = vsel %vm609_vm4, %v1327_v42, %v1328_v24  ;;  %v1358_v15 = vunpack.c.l.b16 %v1327_v42  ;;  %v1360_v30 = vunpack.c.h.b16 %v1327_v42  ;;  %v1261_v49 = vor.u32 %v1260_v23, %v1257_v5  ;;  %v13114_v42 = vld [vmem:[%s17005_s1 + $0xb0] sm:$0xff] }
 0x1b0   : > { %v2501_v13 = vpop.f32.mrf.mxu0  ;;  %v2550_v35 = vpop.f32.mrf.mxu1  ;;  %v1361_v38 = vunpack.c.l.b16 %v1329_v27  ;;  %v13194_v24 = vld [vmem:[%s17005_s1 + $0x1b0] sm:$0xff]  ;;  %4562 = vmatpush.bf16.msrb.mxu2 %v13114_v42  ;;  %v1212_v23 = vunpack.c.h.b16 %v14670_v20 }
 0x1b1   : > { %v2551_v1 = vadd.f32 %v2550_v35, %v2501_v13  ;;  %v2599_v19 = vpop.f32.mrf.mxu2  ;;  %v1401_v33 = vpack.c.b16 %v1358_v15, %v1358_v15  ;;  %v1403_v45 = vpack.c.b16 %v1360_v30, %v1360_v30  ;;  %v1357_v10 = vunpack.c.l.b16 %v1261_v49  ;;  %4964 = vmatpush.bf16.msrb.mxu3 %v13194_v24 }
 0x1b2   : > { %v1405_v46 = vpack.c.b16 %v1361_v38, %v1361_v38 }
 0x1b3   : > { %v2600_v39 = vadd.f32 %v2599_v19, %v2551_v1  ;;  %v1576_v53 = vshrl.u32 %v1401_v33, 16  ;;  %v1581_v56 = vshrl.u32 %v1403_v45, 16  ;;  %v1584_v60 = vshll.u32 %v1403_v45, 16 }
 0x1b4   : > { %v1599_v7 = vshrl.u32 %v1405_v46, 16  ;;  %v1602_v9 = vshll.u32 %v1405_v46, 16  ;;  %v1400_v12 = vpack.c.b16 %v1357_v10, %v1207_v48  ;;  %v13745_v1 = vsel %vm13722_vm0, %v14628_v37, %v1261_v49  ;;  %v392_v49 = vld [vmem:[%s14164_s9 + $0x60] sm:$0xff]  }
 0x1b5   : > { %v14662_v2 = vadd.f32 %v14619_v22, %v2600_v39  ;;  %v10149_v22 = vrot.slane %v1576_v53, 11  ;;  %v1583_v21 = vrot.slane %v1581_v56, 7  ;;  %v1404_v19 = vpack.c.b16 %v1357_v10, %v1209_v52  ;;  %425 = vst [vmem:[#allocation2 + $0xd4] sm:$0xff] %v392_v49  }
 0x1b6   : > { %3423 = vmatmul.bf16.gmra.mxu2 %v10729_v25  ;;  %v1601_v16 = vrot.slane %v1599_v7, 7  ;;  %v13106_v25 = vld [vmem:[%s17005_s1 + $0x70] sm:$0xff]  ;;  %v1563_v32 = vshrl.u32 %v1400_v12, 16  ;;  %v1568_v3 = vshrl.u32 %v13745_v1, 16  ;;  %v1571_v39 = vshll.u32 %v13745_v1, 16 }
 0x1b7   : > { %v14664_v50 = vpop.f32.mrf.mxu3  ;;  %v1597_v26 = vrot.slane %v1583_v21, 4  ;;  %v1586_v37 = vor.u32 %v1584_v60, %v1583_v21  ;;  %v1590_v40 = vshrl.u32 %v1404_v19, 16  ;;  %v1593_v31 = vshll.u32 %v1404_v19, 16  ;;  %4513 = vmatpush.bf16.msrb.mxu1 %v13106_v25  ;;  %v13022_v7 = vld [vmem:[#allocation4 + $0x40] sm:$0xf0] }
 0x1b8   : > { %v2504_v61 = vpop.f32.mrf.mxu0  ;;  %v2553_v0 = vpop.f32.mrf.mxu1  ;;  %v1604_v52 = vor.u32 %v1602_v9, %v1601_v16  ;;  %v10148_v30 = vrot.slane %v1563_v32, 11  ;;  %v1570_v17 = vrot.slane %v1568_v3, 7  ;;  %v13117_v16 = vld [vmem:[#allocation4 + $0xe0] sm:$0xf0]  ;;  %v1263_v12 = vshrl.u32 %v14670_v20, 16 }
 0x1b9   : > { %v2554_v13 = vadd.f32 %v2553_v0, %v2504_v61  ;;  %v2602_v35 = vpop.f32.mrf.mxu2  ;;  %v1587_v27 = vsel %vm14038_vm3, %v10149_v22, %v1586_v37  ;;  %v1592_v5 = vrot.slane %v1590_v40, 7  ;;  %v10889_v61 = vor.u32 %v13116_v43, %v10886_v28  ;;  %v10652_v0 = vld [vmem:[#allocation4 + $0x38] sm:$0xf] }
 0x1ba   : > { %v1605_v15 = vsel %vm14038_vm3, %v1597_v26, %v1604_v52  ;;  %1828 = vst [vmem:[#allocation4 + $0x110] sm:$0xf] %v1587_v27  ;;  %v1573_v46 = vor.u32 %v1571_v39, %v1570_v17  ;;  %v1588_v48 = vrot.slane %v1570_v17, 4  ;;  %v1330_v22 = vrot.slane %v14670_v20, 5  ;;  %v10904_v19 = vld [vmem:[#allocation4 + $0xf8] sm:$0xf] }
 0x1bb   : > { %v2603_v11 = vadd.f32 %v2602_v35, %v2554_v13  ;;  %2971 = vmatmul.bf16.gmra.mxu0 %v10493_v6  ;;  %3020 = vmatmul.bf16.gmra.mxu1 %v10497_v4  ;;  %v1306_v6 = vunpack.c.l.b16 %v1170_v34  ;;  %1830 = vst [vmem:[#allocation4 + $0x11c] sm:$0xf] %v1605_v15  ;;  %v1595_v56 = vor.u32 %v1593_v31, %v1592_v5  ;;  %v13098_v13 = vld [vmem:[%s17005_s1 + $0x30] sm:$0xff]  ;;  %v1266_v1 = vshll.u32 %v14670_v20, 16  ;;  %v1154_v26 = vld [vmem:[#allocation2 + $0xc0] sm:$0x8] }
 0x1bc   : > { %4150 = vmatmul.bf16.vlgmr.msra.gmra.mxu3 %v10893_v51  ;;  %v1574_v9 = vsel %vm14038_vm3, %v10148_v30, %v1573_v46  ;;  %4464 = vmatpush.bf16.msrb.mxu0 %v13098_v13  ;;  %v1363_v24 = vunpack.c.l.b16 %v1330_v22  ;;  %v1365_v25 = vunpack.c.h.b16 %v1330_v22  ;;  %v1265_v52 = vrot.slane %v1263_v12, 4  ;;  %v1171_v12 = vld [vmem:[#allocation2 + $0xdc] sm:$0x1] }
 0x1bd   : > { %v14687_v33 = vadd.f32 %v14647_v63, %v2603_v11  ;;  %v1314_v60 = vpack.c.b16 %v1306_v6, %v1306_v6  ;;  %v10884_v63 = vld [vmem:[#allocation4 + $0xd8] sm:$0xf]  ;;  %v1596_v35 = vsel %vm14038_vm3, %v1588_v48, %v1595_v56  ;;  %1827 = vst [vmem:[#allocation4 + $0x108] sm:$0xff] %v1574_v9  ;;  %v13121_v11 = vld [vmem:[#allocation4 + $0x100] sm:$0xf0]  ;;  %v1268_v32 = vrot.slane %v1266_v1, 5 }
 0x1be   : > { %1829 = vst [vmem:[#allocation4 + $0x114] sm:$0xff] %v1596_v35  ;;  %v10653_v34 = vor.u32 %v13022_v7, %v10652_v0  ;;  %v10885_v39 = vor.u32 %v13117_v16, %v10884_v63  ;;  %v1407_v31 = vpack.c.b16 %v1363_v24, %v1363_v24  ;;  %v1409_v43 = vpack.c.b16 %v1365_v25, %v1365_v25  ;;  %v13113_v56 = vld [vmem:[%s17005_s1 + $0xa8] sm:$0xff]  ;;  %v14715_v0 = vld [vmem:[#allocation2 + $0xd4] sm:$0xff]  }
 0x1bf   : > { %v3438_v38 = vpop.f32.mrf.mxu3  ;;  %v1331_v21 = vrot.slane %v1314_v60, 5  ;;  %v10905_v30 = vor.u32 %v13121_v11, %v10904_v19  ;;  %v1210_v28 = vunpack.c.l.b16 %v1154_v26  ;;  %v1269_v5 = vor.u32 %v1268_v32, %v1265_v52  ;;  %4563 = vmatpush.bf16.msrb.mxu2 %v13113_v56  ;;  %v13119_v19 = vld [vmem:[#allocation4 + $0xf4] sm:$0xf]  ;;  %v10898_v11 = vld [vmem:[#allocation4 + $0xfc] sm:$0xf0] }
 0x1c0   : > { %v2506_v45 = vpop.f32.mrf.mxu0  ;;  %v2555_v4 = vpop.f32.mrf.mxu1  ;;  %v1625_v46 = vshrl.u32 %v1409_v43, 16  ;;  %v1215_v26 = vunpack.c.h.b16 %v14715_v0 }
 0x1c1   : > { %v2556_v51 = vadd.f32 %v2555_v4, %v2506_v45  ;;  %v2604_v53 = vpop.f32.mrf.mxu2  ;;  %v1332_v42 = vsel %vm609_vm4, %v1330_v22, %v1331_v21  ;;  %v1620_v4 = vshrl.u32 %v1407_v31, 16  ;;  %v13747_v35 = vsel %vm13722_vm0, %v14670_v20, %v1269_v5 }
 0x1c2   : > { %v1366_v37 = vunpack.c.l.b16 %v1332_v42  ;;  %v1612_v24 = vshrl.u32 %v13747_v35, 16  ;;  %v1615_v25 = vshll.u32 %v13747_v35, 16  ;;  %v1157_v35 = vld [vmem:[#allocation2 + $0xd0] sm:$0x8] }
 0x1c3   : > { %v2605_v10 = vadd.f32 %v2604_v53, %v2556_v51  ;;  %v1362_v51 = vunpack.c.l.b16 %v1269_v5  ;;  %v10151_v60 = vrot.slane %v1620_v4, 11  ;;  %v10896_v4 = vld [vmem:[#allocation4 + $0xf0] sm:$0xf] }
 0x1c4   : > { %v1411_v17 = vpack.c.b16 %v1366_v37, %v1366_v37 }
 0x1c5   : > { %v14702_v3 = vadd.f32 %v14664_v50, %v2605_v10  ;;  %v1628_v50 = vshll.u32 %v1409_v43, 16  ;;  %v1406_v10 = vpack.c.b16 %v1362_v51, %v1210_v28  ;;  %v1410_v21 = vpack.c.b16 %v1362_v51, %v1212_v23  ;;  %v10664_v28 = vld [vmem:[#allocation4 + $0x50] sm:$0xf]  ;;  %v13120_v51 = vld [vmem:[#allocation4 + $0xf8] sm:$0xf0] }
 0x1c6   : > { %4101 = vmatmul.bf16.vlgmr.msra.gmra.mxu2 %v10889_v61  ;;  %v1643_v49 = vshrl.u32 %v1411_v17, 16  ;;  %v1627_v61 = vrot.slane %v1625_v46, 7  ;;  %v1646_v9 = vshll.u32 %v1411_v17, 16  ;;  %v10901_v17 = vor.u32 %v13119_v19, %v10898_v11  ;;  %v13097_v46 = vld [vmem:[%s17005_s1 + $0x28] sm:$0xff] }
 0x1c7   : > { %v3440_v40 = vpop.f32.mrf.mxu3  ;;  %v1607_v16 = vshrl.u32 %v1406_v10, 16  ;;  %v1634_v32 = vshrl.u32 %v1410_v21, 16  ;;  %4465 = vmatpush.bf16.msrb.mxu0 %v13097_v46 }
 0x1c8   : > { %v2937_v27 = vpop.f32.mrf.mxu0  ;;  %v2986_v15 = vpop.f32.mrf.mxu1  ;;  %v1645_v7 = vrot.slane %v1643_v49, 7  ;;  %v1630_v63 = vor.u32 %v1628_v50, %v1627_v61  ;;  %v1641_v13 = vrot.slane %v1627_v61, 4  ;;  %v10916_v61 = vld [vmem:[#allocation4 + $0x110] sm:$0xf] }
 0x1c9   : > { %v2938_v6 = vadd.f32 %v2937_v27, %v14500_v55  ;;  %v3389_v45 = vpop.f32.mrf.mxu2  ;;  %v13193_v55 = vld [vmem:[%s17005_s1 + $0x1a8] sm:$0xff]  ;;  %v10150_v23 = vrot.slane %v1607_v16, 11  ;;  %v1614_v27 = vrot.slane %v1612_v24, 7  ;;  %v1636_v5 = vrot.slane %v1634_v32, 7 }
 0x1ca   : > { %v14705_v48 = vadd.f32 %v3438_v38, %v3389_v45  ;;  %v13105_v38 = vld [vmem:[%s17005_s1 + $0x68] sm:$0xff]  ;;  %4965 = vmatpush.bf16.msrb.mxu3 %v13193_v55  ;;  %v1648_v22 = vor.u32 %v1646_v9, %v1645_v7  ;;  %v1631_v42 = vsel %vm14038_vm3, %v10151_v60, %v1630_v63  ;;  %v13025_v45 = vld [vmem:[#allocation4 + $0x58] sm:$0xf0]  ;;  %v1271_v55 = vshrl.u32 %v14715_v0, 16 }
 0x1cb   : > { %v14707_v53 = vadd.f32 %v2986_v15, %v2938_v6  ;;  %3486 = vmatmul.bf16.vlgmr.msra.gmra.mxu0 %v10653_v34  ;;  %4052 = vmatmul.bf16.vlgmr.msra.gmra.mxu1 %v10885_v39  ;;  %1832 = vst [vmem:[#allocation4 + $0x128] sm:$0xf] %v1631_v42  ;;  %v1637_v34 = vshll.u32 %v1410_v21, 16  ;;  %v394_v39 = vld [vmem:[%s14164_s9 + $0x68] sm:$0xff]   ;;  %v1307_v15 = vunpack.c.l.b16 %v1171_v12  ;;  %v1617_v50 = vor.u32 %v1615_v25, %v1614_v27 }
 0x1cc   : > { %4155 = vmatmul.bf16.gmra.mxu3 %v10905_v30  ;;  %4514 = vmatpush.bf16.msrb.mxu1 %v13105_v38  ;;  %v1649_v20 = vsel %vm14038_vm3, %v1641_v13, %v1648_v22  ;;  %427 = vst [vmem:[#allocation2 + $0xe4] sm:$0xff] %v394_v39   ;;  %v1274_v60 = vshll.u32 %v14715_v0, 16  ;;  %v13124_v38 = vld [vmem:[#allocation4 + $0x118] sm:$0xf0]  ;;  %v1273_v22 = vrot.slane %v1271_v55, 4  ;;  %v10665_v21 = vor.u32 %v13025_v45, %v10664_v28  ;;  %v13104_v45 = vld [vmem:[%s17005_s1 + $0x60] sm:$0xff] }
 0x1cd   : > { %1834 = vst [vmem:[#allocation4 + $0x134] sm:$0xf] %v1649_v20  ;;  %v1315_v49 = vpack.c.b16 %v1307_v15, %v1307_v15  ;;  %v1639_v56 = vor.u32 %v1637_v34, %v1636_v5  ;;  %v1618_v7 = vsel %vm14038_vm3, %v10150_v23, %v1617_v50  ;;  %v10897_v16 = vor.u32 %v13120_v51, %v10896_v4  ;;  %v10910_v50 = vld [vmem:[#allocation4 + $0x114] sm:$0xf0] }
 0x1ce   : > { %1831 = vst [vmem:[#allocation4 + $0x120] sm:$0xff] %v1618_v7  ;;  %v1276_v11 = vrot.slane %v1274_v60, 5  ;;  %v10917_v25 = vor.u32 %v13124_v38, %v10916_v61  ;;  %v1213_v34 = vunpack.c.l.b16 %v1157_v35 }
 0x1cf   : > { %v14724_v1 = vpop.f32.mrf.mxu3  ;;  %v1334_v9 = vrot.slane %v1315_v49, 5 }
 0x1d0   : > { %v2939_v37 = vpop.f32.mrf.mxu0  ;;  %v2988_v52 = vpop.f32.mrf.mxu1  ;;  %v1277_v39 = vor.u32 %v1276_v11, %v1273_v22  ;;  %4515 = vmatpush.bf16.msrb.mxu1 %v13104_v45  ;;  %v1172_v11 = vld [vmem:[#allocation2 + $0xec] sm:$0x1] }
 0x1d1   : > { %v2940_v31 = vadd.f32 %v2939_v37, %v14505_v14  ;;  %v3391_v43 = vpop.f32.mrf.mxu2  ;;  %v1632_v14 = vrot.slane %v1614_v27, 4 }
 0x1d2   : > { %v14733_v30 = vadd.f32 %v3440_v40, %v3391_v43  ;;  %v1333_v40 = vrot.slane %v14715_v0, 5  ;;  %v14752_v43 = vld [vmem:[#allocation4 + $0x10c] sm:$0xf]  ;;  %v1367_v46 = vunpack.c.l.b16 %v1277_v39  ;;  %v13749_v55 = vsel %vm13722_vm0, %v14715_v0, %v1277_v39 }
 0x1d3   : > { %v14735_v6 = vadd.f32 %v2988_v52, %v2940_v31  ;;  %v1640_v10 = vsel %vm14038_vm3, %v1632_v14, %v1639_v56  ;;  %v14754_v28 = vld [vmem:[#allocation2 + $0xe4] sm:$0xff]   ;;  %v1656_v35 = vshrl.u32 %v13749_v55, 16 }
 0x1d4   : > { %v1368_v63 = vunpack.c.l.b16 %v1333_v40  ;;  %v1370_v13 = vunpack.c.h.b16 %v1333_v40  ;;  %1833 = vst [vmem:[#allocation4 + $0x12c] sm:$0xff] %v1640_v10  ;;  %v1335_v19 = vsel %vm609_vm4, %v1333_v40, %v1334_v9  ;;  %v1412_v40 = vpack.c.b16 %v1367_v46, %v1213_v34 }
 0x1d5   : > { %v1371_v37 = vunpack.c.l.b16 %v1335_v19  ;;  %v1416_v60 = vpack.c.b16 %v1367_v46, %v1215_v26  ;;  %v1218_v9 = vunpack.c.h.b16 %v14754_v28  ;;  %v1659_v26 = vshll.u32 %v13749_v55, 16 }
 0x1d6   : > { %4106 = vmatmul.bf16.gmra.mxu2 %v10901_v17  ;;  %v1413_v52 = vpack.c.b16 %v1368_v63, %v1368_v63  ;;  %v1415_v20 = vpack.c.b16 %v1370_v13, %v1370_v13  ;;  %v10913_v63 = vor.u32 %v14752_v43, %v10910_v50  ;;  %v1651_v13 = vshrl.u32 %v1412_v40, 16  ;;  %v396_v43 = vld [vmem:[%s14164_s9 + $0x70] sm:$0xff]  }
 0x1d7   : > { %v3445_v12 = vpop.f32.mrf.mxu3  ;;  %v1417_v27 = vpack.c.b16 %v1371_v37, %v1371_v37  ;;  %v1678_v19 = vshrl.u32 %v1416_v60, 16  ;;  %v1658_v37 = vrot.slane %v1656_v35, 7  ;;  %v1279_v46 = vshrl.u32 %v14754_v28, 16  ;;  %429 = vst [vmem:[#allocation2 + $0xf4] sm:$0xff] %v396_v43  }
 0x1d8   : > { %v2942_v42 = vpop.f32.mrf.mxu0  ;;  %v2991_v24 = vpop.f32.mrf.mxu1  ;;  %v1664_v15 = vshrl.u32 %v1413_v52, 16  ;;  %v1669_v17 = vshrl.u32 %v1415_v20, 16  ;;  %v1672_v4 = vshll.u32 %v1415_v20, 16  ;;  %v1681_v52 = vshll.u32 %v1416_v60, 16 }
 0x1d9   : > { %v2943_v23 = vadd.f32 %v2942_v42, %v14516_v29  ;;  %v3394_v32 = vpop.f32.mrf.mxu2  ;;  %v13112_v29 = vld [vmem:[%s17005_s1 + $0xa0] sm:$0xff]  ;;  %v1687_v51 = vshrl.u32 %v1417_v27, 16  ;;  %v1690_v56 = vshll.u32 %v1417_v27, 16  ;;  %v1680_v39 = vrot.slane %v1678_v19, 7 }
 0x1da   : > { %v14750_v31 = vadd.f32 %v14724_v1, %v3394_v32  ;;  %v13192_v1 = vld [vmem:[%s17005_s1 + $0x1a0] sm:$0xff]  ;;  %v10153_v14 = vrot.slane %v1664_v15, 11  ;;  %v1671_v49 = vrot.slane %v1669_v17, 7  ;;  %4564 = vmatpush.bf16.msrb.mxu2 %v13112_v29  ;;  %v13028_v32 = vld [vmem:[#allocation4 + $0x70] sm:$0xf0]  ;;  %v1661_v17 = vor.u32 %v1659_v26, %v1658_v37 }
 0x1db   : > { %v14756_v5 = vadd.f32 %v2991_v24, %v2943_v23  ;;  %3491 = vmatmul.bf16.gmra.mxu0 %v10665_v21  ;;  %4057 = vmatmul.bf16.gmra.mxu1 %v10897_v16  ;;  %v1689_v7 = vrot.slane %v1687_v51, 7  ;;  %v10676_v23 = vld [vmem:[#allocation4 + $0x68] sm:$0xf]  ;;  %v1676_v29 = vrot.slane %v1658_v37, 4  ;;  %v1683_v45 = vor.u32 %v1681_v52, %v1680_v39 }
 0x1dc   : > { %4160 = vmatmul.bf16.gmra.mxu3 %v10917_v25  ;;  %v1674_v61 = vor.u32 %v1672_v4, %v1671_v49  ;;  %v1685_v38 = vrot.slane %v1671_v49, 4  ;;  %v10152_v25 = vrot.slane %v1651_v13, 11  ;;  %v10908_v15 = vld [vmem:[#allocation4 + $0x108] sm:$0xf]  ;;  %v1336_v4 = vrot.slane %v14754_v28, 5 }
 0x1dd   : > { %4966 = vmatpush.bf16.msrb.mxu3 %v13192_v1  ;;  %v1692_v0 = vor.u32 %v1690_v56, %v1689_v7  ;;  %v1308_v1 = vunpack.c.l.b16 %v1172_v11  ;;  %v1282_v50 = vshll.u32 %v14754_v28, 16  ;;  %v13127_v49 = vld [vmem:[#allocation4 + $0x130] sm:$0xf0]  ;;  %v1684_v40 = vsel %vm14038_vm3, %v1676_v29, %v1683_v45  ;;  %v10922_v29 = vld [vmem:[#allocation4 + $0x12c] sm:$0xf0] }
 0x1de   : > { %v1675_v16 = vsel %vm14038_vm3, %v10153_v14, %v1674_v61  ;;  %v10928_v14 = vld [vmem:[#allocation4 + $0x128] sm:$0xf]  ;;  %v1662_v51 = vsel %vm14038_vm3, %v10152_v25, %v1661_v17  ;;  %v1373_v55 = vunpack.c.l.b16 %v1336_v4  ;;  %v1375_v60 = vunpack.c.h.b16 %v1336_v4  ;;  %v1160_v61 = vld [vmem:[#allocation2 + $0xe0] sm:$0x8]  ;;  %1837 = vst [vmem:[#allocation4 + $0x144] sm:$0xff] %v1684_v40 }
 0x1df   : > { %v14772_v10 = vpop.f32.mrf.mxu3  ;;  %1836 = vst [vmem:[#allocation4 + $0x140] sm:$0xf] %v1675_v16  ;;  %v1693_v34 = vsel %vm14038_vm3, %v1685_v38, %v1692_v0  ;;  %v1316_v56 = vpack.c.b16 %v1308_v1, %v1308_v1  ;;  %v1281_v38 = vrot.slane %v1279_v46, 4  ;;  %v10677_v7 = vor.u32 %v13028_v32, %v10676_v23  ;;  %v14800_v23 = vld [vmem:[#allocation4 + $0x124] sm:$0xf] }
 0x1e0   : > { %v2944_v22 = vpop.f32.mrf.mxu0  ;;  %v2993_v21 = vpop.f32.mrf.mxu1  ;;  %1838 = vst [vmem:[#allocation4 + $0x14c] sm:$0xf] %v1693_v34  ;;  %v10929_v26 = vor.u32 %v13127_v49, %v10928_v14  ;;  %v1419_v19 = vpack.c.b16 %v1373_v55, %v1373_v55  ;;  %v1421_v11 = vpack.c.b16 %v1375_v60, %v1375_v60  ;;  %v1216_v25 = vunpack.c.l.b16 %v1160_v61 }
 0x1e1   : > { %v2945_v42 = vadd.f32 %v2944_v22, %v14521_v44  ;;  %v3396_v24 = vpop.f32.mrf.mxu2  ;;  %v13096_v44 = vld [vmem:[%s17005_s1 + $0x20] sm:$0xff]  ;;  %1835 = vst [vmem:[#allocation4 + $0x138] sm:$0xff] %v1662_v51  ;;  %v1337_v22 = vrot.slane %v1316_v56, 5  ;;  %v10925_v55 = vor.u32 %v14800_v23, %v10922_v29 }
 0x1e2   : > { %v14778_v20 = vadd.f32 %v3445_v12, %v3396_v24  ;;  %v13123_v12 = vld [vmem:[#allocation4 + $0x110] sm:$0xf0]  ;;  %4466 = vmatpush.bf16.msrb.mxu0 %v13096_v44  ;;  %v1708_v34 = vshrl.u32 %v1419_v19, 16  ;;  %v1713_v39 = vshrl.u32 %v1421_v11, 16  ;;  %v1716_v44 = vshll.u32 %v1421_v11, 16 }
 0x1e3   : > { %v14783_v27 = vadd.f32 %v2993_v21, %v2945_v42  ;;  %v10909_v13 = vor.u32 %v13123_v12, %v10908_v15  ;;  %v1284_v21 = vrot.slane %v1282_v50, 5  ;;  %v1338_v24 = vsel %vm609_vm4, %v1336_v4, %v1337_v22  ;;  %v13191_v15 = vld [vmem:[%s17005_s1 + $0x198] sm:$0xff] }
 0x1e4   : > { %v1376_v32 = vunpack.c.l.b16 %v1338_v24  ;;  %v10155_v12 = vrot.slane %v1708_v34, 11  ;;  %v1715_v45 = vrot.slane %v1713_v39, 7  ;;  %v14813_v4 = vld [vmem:[#allocation2 + $0xf4] sm:$0xff]   ;;  %4967 = vmatpush.bf16.msrb.mxu3 %v13191_v15  ;;  %v10688_v24 = vld [vmem:[#allocation4 + $0x80] sm:$0xf] }
 0x1e5   : > { %v1285_v37 = vor.u32 %v1284_v21, %v1281_v38  ;;  %v1221_v56 = vunpack.c.h.b16 %v14813_v4  ;;  %v10920_v39 = vld [vmem:[#allocation4 + $0x120] sm:$0xf] }
 0x1e6   : > { %4111 = vmatmul.bf16.gmra.mxu2 %v10913_v63  ;;  %v1423_v1 = vpack.c.b16 %v1376_v32, %v1376_v32  ;;  %v1718_v14 = vor.u32 %v1716_v44, %v1715_v45  ;;  %v1729_v60 = vrot.slane %v1715_v45, 4  ;;  %v398_v32 = vld [vmem:[%s14164_s9 + $0x78] sm:$0xff]   ;;  %v10940_v44 = vld [vmem:[#allocation4 + $0x140] sm:$0xf] }
 0x1e7   : > { %v3450_v35 = vpop.f32.mrf.mxu3  ;;  %v1372_v17 = vunpack.c.l.b16 %v1285_v37  ;;  %v13751_v51 = vsel %vm13722_vm0, %v14754_v28, %v1285_v37  ;;  %431 = vst [vmem:[#allocation2 + $0x104] sm:$0xff] %v398_v32  }
 0x1e8   : > { %v2947_v16 = vpop.f32.mrf.mxu0  ;;  %v2996_v0 = vpop.f32.mrf.mxu1  ;;  %v1731_v49 = vshrl.u32 %v1423_v1, 16  ;;  %v1734_v61 = vshll.u32 %v1423_v1, 16  ;;  %v1700_v21 = vshrl.u32 %v13751_v51, 16  ;;  %v1339_v1 = vrot.slane %v14813_v4, 5 }
 0x1e9   : > { %v2948_v63 = vadd.f32 %v2947_v16, %v14533_v47  ;;  %v3399_v42 = vpop.f32.mrf.mxu2  ;;  %v13111_v47 = vld [vmem:[%s17005_s1 + $0x98] sm:$0xff]  ;;  %v1418_v46 = vpack.c.b16 %v1372_v17, %v1216_v25  ;;  %v1422_v50 = vpack.c.b16 %v1372_v17, %v1218_v9  ;;  %v1719_v9 = vsel %vm14038_vm3, %v10155_v12, %v1718_v14  ;;  %v13031_v25 = vld [vmem:[#allocation4 + $0x88] sm:$0xf0] }
 0x1ea   : > { %v14798_v52 = vadd.f32 %v14772_v10, %v3399_v42  ;;  %v13103_v10 = vld [vmem:[%s17005_s1 + $0x58] sm:$0xff]  ;;  %4565 = vmatpush.bf16.msrb.mxu2 %v13111_v47  ;;  %v1733_v22 = vrot.slane %v1731_v49, 7  ;;  %v1703_v16 = vshll.u32 %v13751_v51, 16  ;;  %1840 = vst [vmem:[#allocation4 + $0x158] sm:$0xf] %v1719_v9  ;;  %v1702_v23 = vrot.slane %v1700_v21, 7 }
 0x1eb   : > { %v14802_v43 = vadd.f32 %v2996_v0, %v2948_v63  ;;  %3496 = vmatmul.bf16.gmra.mxu0 %v10677_v7  ;;  %4062 = vmatmul.bf16.gmra.mxu1 %v10909_v13  ;;  %v1695_v38 = vshrl.u32 %v1418_v46, 16  ;;  %v1173_v0 = vld [vmem:[#allocation2 + $0xfc] sm:$0x1]  ;;  %v1722_v11 = vshrl.u32 %v1422_v50, 16  ;;  %v1725_v63 = vshll.u32 %v1422_v50, 16 }
 0x1ec   : > { %4165 = vmatmul.bf16.gmra.mxu3 %v10929_v26  ;;  %4516 = vmatpush.bf16.msrb.mxu1 %v13103_v10  ;;  %v1736_v37 = vor.u32 %v1734_v61, %v1733_v22  ;;  %v13095_v47 = vld [vmem:[%s17005_s1 + $0x18] sm:$0xff]  ;;  %v1309_v15 = vunpack.c.l.b16 %v1173_v0  ;;  %v13126_v10 = vld [vmem:[#allocation4 + $0x128] sm:$0xf0]  ;;  %v1705_v17 = vor.u32 %v1703_v16, %v1702_v23  ;;  %v1720_v29 = vrot.slane %v1702_v23, 4  ;;  %v1163_v22 = vld [vmem:[#allocation2 + $0xf0] sm:$0x8] }
 0x1ed   : > { %v10154_v19 = vrot.slane %v1695_v38, 11  ;;  %v13130_v12 = vld [vmem:[#allocation4 + $0x148] sm:$0xf0]  ;;  %4467 = vmatpush.bf16.msrb.mxu0 %v13095_v47  ;;  %v1287_v50 = vshrl.u32 %v14813_v4, 16  ;;  %v1290_v14 = vshll.u32 %v14813_v4, 16  ;;  %v10689_v49 = vor.u32 %v13031_v25, %v10688_v24 }
 0x1ee   : > { %v1317_v46 = vpack.c.b16 %v1309_v15, %v1309_v15  ;;  %v1378_v61 = vunpack.c.l.b16 %v1339_v1  ;;  %v10921_v38 = vor.u32 %v13126_v10, %v10920_v39  ;;  %v14848_v25 = vld [vmem:[#allocation4 + $0x13c] sm:$0xf]  ;;  %v14852_v23 = vld [vmem:[#allocation4 + $0x138] sm:$0xf]  ;;  %v14858_v47 = vld [vmem:[#allocation4 + $0x144] sm:$0xf0] }
 0x1ef   : > { %v14820_v40 = vpop.f32.mrf.mxu3  ;;  %v1706_v51 = vsel %vm14038_vm3, %v10154_v19, %v1705_v17  ;;  %v1289_v21 = vrot.slane %v1287_v50, 4  ;;  %v13110_v17 = vld [vmem:[%s17005_s1 + $0x90] sm:$0xff] }
 0x1f0   : > { %v2949_v7 = vpop.f32.mrf.mxu0  ;;  %v2998_v13 = vpop.f32.mrf.mxu1  ;;  %1839 = vst [vmem:[#allocation4 + $0x150] sm:$0xff] %v1706_v51  ;;  %v1340_v9 = vrot.slane %v1317_v46, 5  ;;  %4566 = vmatpush.bf16.msrb.mxu2 %v13110_v17 }
 0x1f1   : > { %v2950_v28 = vadd.f32 %v2949_v7, %v14540_v18  ;;  %v3401_v26 = vpop.f32.mrf.mxu2  ;;  %v1724_v18 = vrot.slane %v1722_v11, 7  ;;  %v1292_v11 = vrot.slane %v1290_v14, 5 }
 0x1f2   : > { %v14826_v42 = vadd.f32 %v3450_v35, %v3401_v26  ;;  %v1737_v35 = vsel %vm14038_vm3, %v1729_v60, %v1736_v37  ;;  %v1380_v60 = vunpack.c.h.b16 %v1339_v1  ;;  %v1425_v26 = vpack.c.b16 %v1378_v61, %v1378_v61  ;;  %v14850_v37 = vld [vmem:[#allocation4 + $0xa0] sm:$0xf0] }
 0x1f3   : > { %v14829_v34 = vadd.f32 %v2998_v13, %v2950_v28  ;;  %1842 = vst [vmem:[#allocation4 + $0x164] sm:$0xf] %v1737_v35  ;;  %v1727_v45 = vor.u32 %v1725_v63, %v1724_v18  ;;  %v10941_v28 = vor.u32 %v13130_v12, %v10940_v44  ;;  %v1341_v32 = vsel %vm609_vm4, %v1339_v1, %v1340_v9  ;;  %v14860_v18 = vld [vmem:[#allocation4 + $0x140] sm:$0xf0] }
 0x1f4   : > { %v1427_v19 = vpack.c.b16 %v1380_v60, %v1380_v60  ;;  %v1381_v15 = vunpack.c.l.b16 %v1341_v32  ;;  %v1752_v10 = vshrl.u32 %v1425_v26, 16  ;;  %v1219_v44 = vunpack.c.l.b16 %v1163_v22  ;;  %v1854_v60 = vld [vmem:[#allocation2 + $0x10c] sm:$0x1] }
 0x1f5   : > { %v1728_v13 = vsel %vm14038_vm3, %v1720_v29, %v1727_v45  ;;  %v13102_v29 = vld [vmem:[%s17005_s1 + $0x50] sm:$0xff]  ;;  %v1293_v45 = vor.u32 %v1292_v11, %v1289_v21 }
 0x1f6   : > { %4116 = vmatmul.bf16.gmra.mxu2 %v10925_v55  ;;  %v14845_v55 = vld [vmem:[#allocation4 + $0x98] sm:$0xf]  ;;  %1841 = vst [vmem:[#allocation4 + $0x15c] sm:$0xff] %v1728_v13  ;;  %v1757_v1 = vshrl.u32 %v1427_v19, 16  ;;  %v1760_v12 = vshll.u32 %v1427_v19, 16  ;;  %v1429_v50 = vpack.c.b16 %v1381_v15, %v1381_v15  ;;  %v10933_v13 = vor.u32 %v14860_v18, %v14852_v23  ;;  %4517 = vmatpush.bf16.msrb.mxu1 %v13102_v29 }
 0x1f7   : > { %v14841_v7 = vpop.f32.mrf.mxu3  ;;  %v10701_v46 = vor.u32 %v14850_v37, %v14845_v55  ;;  %v1377_v61 = vunpack.c.l.b16 %v1293_v45 }
 0x1f8   : > { %v2952_v16 = vpop.f32.mrf.mxu0  ;;  %v3001_v0 = vpop.f32.mrf.mxu1  ;;  %v1759_v51 = vrot.slane %v1757_v1, 7  ;;  %v1775_v9 = vshrl.u32 %v1429_v50, 16  ;;  %v1778_v22 = vshll.u32 %v1429_v50, 16  ;;  %v10952_v50 = vld [vmem:[#allocation4 + $0x158] sm:$0xf] }
 0x1f9   : > { %v2953_v63 = vadd.f32 %v2952_v16, %v14554_v57  ;;  %v3404_v24 = vpop.f32.mrf.mxu2  ;;  %v14862_v57 = vld [vmem:[#allocation2 + $0x104] sm:$0xff]  }
 0x1fa   : > { %v14856_v39 = vadd.f32 %v14820_v40, %v3404_v24  ;;  %v13190_v40 = vld [vmem:[%s17005_s1 + $0x190] sm:$0xff]  ;;  %v1864_v14 = vunpack.c.h.b16 %v14862_v57  ;;  %v1762_v16 = vor.u32 %v1760_v12, %v1759_v51  ;;  %v1773_v11 = vrot.slane %v1759_v51, 4 }
 0x1fb   : > { %v14864_v35 = vadd.f32 %v3001_v0, %v2953_v63  ;;  %3501 = vmatmul.bf16.gmra.mxu0 %v10689_v49  ;;  %4067 = vmatmul.bf16.gmra.mxu1 %v10921_v38  ;;  %v10157_v49 = vrot.slane %v1752_v10, 11  ;;  %v10937_v38 = vor.u32 %v14848_v25, %v14858_v47  ;;  %v1424_v0 = vpack.c.b16 %v1377_v61, %v1219_v44 }
 0x1fc   : > { %4170 = vmatmul.bf16.gmra.mxu3 %v10941_v28  ;;  %v13753_v28 = vsel %vm13722_vm0, %v14813_v4, %v1293_v45  ;;  %v1777_v63 = vrot.slane %v1775_v9, 7  ;;  %v1428_v24 = vpack.c.b16 %v1377_v61, %v1221_v56  ;;  %v1888_v25 = vunpack.c.l.b16 %v1854_v60  ;;  %v13094_v4 = vld [vmem:[%s17005_s1 + $0x10] sm:$0xff] }
 0x1fd   : > { %4968 = vmatpush.bf16.msrb.mxu3 %v13190_v40  ;;  %v1763_v15 = vsel %vm14038_vm3, %v10157_v49, %v1762_v16  ;;  %v1739_v10 = vshrl.u32 %v1424_v0, 16  ;;  %v1744_v17 = vshrl.u32 %v13753_v28, 16  ;;  %v1747_v29 = vshll.u32 %v13753_v28, 16  ;;  %v13133_v49 = vld [vmem:[#allocation4 + $0x160] sm:$0xf0]  ;;  %4468 = vmatpush.bf16.msrb.mxu0 %v13094_v4 }
 0x1fe   : > { %v1780_v40 = vor.u32 %v1778_v22, %v1777_v63  ;;  %1844 = vst [vmem:[#allocation4 + $0x170] sm:$0xf] %v1763_v15  ;;  %v1766_v1 = vshrl.u32 %v1428_v24, 16  ;;  %v1769_v45 = vshll.u32 %v1428_v24, 16  ;;  %v1890_v61 = vpack.c.b16 %v1888_v25, %v1888_v25  ;;  %v1848_v25 = vld [vmem:[#allocation2 + $0x100] sm:$0x8] }
 0x1ff   : > { %v3458_v21 = vpop.f32.mrf.mxu3  ;;  %v1746_v56 = vrot.slane %v1744_v17, 7  ;;  %v1892_v60 = vrot.slane %v14862_v57, 5  ;;  %v1871_v16 = vshrl.u32 %v14862_v57, 16  ;;  %v1874_v0 = vshll.u32 %v14862_v57, 16 }
 0x200   : > { %v2954_v26 = vpop.f32.mrf.mxu0  ;;  %v3003_v19 = vpop.f32.mrf.mxu1  ;;  %v1781_v51 = vsel %vm14038_vm3, %v1773_v11, %v1780_v40 }
 0x201   : > { %v2955_v32 = vadd.f32 %v2954_v26, %v14561_v59  ;;  %v3406_v47 = vpop.f32.mrf.mxu2  ;;  %v10156_v59 = vrot.slane %v1739_v10, 11  ;;  %1846 = vst [vmem:[#allocation4 + $0x17c] sm:$0xf] %v1781_v51  ;;  %v1749_v9 = vor.u32 %v1747_v29, %v1746_v56  ;;  %v1764_v22 = vrot.slane %v1746_v56, 4 }
 0x202   : > { %v14890_v44 = vadd.f32 %v14841_v7, %v3406_v47  ;;  %v1768_v7 = vrot.slane %v1766_v1, 7  ;;  %v1893_v26 = vrot.slane %v1890_v61, 5  ;;  %v1901_v63 = vunpack.c.h.b16 %v1892_v60 }
 0x203   : > { %v14892_v12 = vadd.f32 %v3003_v19, %v2955_v32  ;;  %v1899_v19 = vunpack.c.l.b16 %v1892_v60  ;;  %v10953_v32 = vor.u32 %v13133_v49, %v10952_v50  ;;  %v1750_v11 = vsel %vm14038_vm3, %v10156_v59, %v1749_v9 }
 0x204   : > { %v1771_v28 = vor.u32 %v1769_v45, %v1768_v7  ;;  %v1873_v47 = vrot.slane %v1871_v16, 4  ;;  %v1876_v15 = vrot.slane %v1874_v0, 5  ;;  %1843 = vst [vmem:[#allocation4 + $0x168] sm:$0xff] %v1750_v11  ;;  %v1911_v1 = vpack.c.b16 %v1901_v63, %v1901_v63  ;;  %v10946_v16 = vld [vmem:[#allocation4 + $0x15c] sm:$0xf0] }
 0x205   : > { %v1909_v29 = vpack.c.b16 %v1899_v19, %v1899_v19  ;;  %v1862_v7 = vunpack.c.l.b16 %v1848_v25 }
 0x206   : > { %4121 = vmatmul.bf16.gmra.mxu2 %v10937_v38  ;;  %v1772_v40 = vsel %vm14038_vm3, %v1764_v22, %v1771_v28  ;;  %v1894_v38 = vsel %vm609_vm4, %v1892_v60, %v1893_v26  ;;  %v1877_v50 = vor.u32 %v1876_v15, %v1873_v47  ;;  %v1939_v51 = vshrl.u32 %v1911_v1, 16  ;;  %v13101_v60 = vld [vmem:[%s17005_s1 + $0x48] sm:$0xff] }
 0x207   : > { %v3460_v24 = vpop.f32.mrf.mxu3  ;;  %1845 = vst [vmem:[#allocation4 + $0x174] sm:$0xff] %v1772_v40  ;;  %v1902_v45 = vunpack.c.l.b16 %v1894_v38  ;;  %v1934_v49 = vshrl.u32 %v1909_v29, 16  ;;  %v1942_v22 = vshll.u32 %v1911_v1, 16  ;;  %4518 = vmatpush.bf16.msrb.mxu1 %v13101_v60  ;;  %v13132_v60 = vld [vmem:[#allocation4 + $0x158] sm:$0xf0] }
 0x208   : > { %v2957_v10 = vpop.f32.mrf.mxu0  ;;  %v3006_v17 = vpop.f32.mrf.mxu1  ;;  %v1941_v37 = vrot.slane %v1939_v51, 7  ;;  %v13755_v26 = vsel %vm13722_vm0, %v14862_v57, %v1877_v50  ;;  %v13093_v51 = vld [vmem:[%s17005_s1 + $0x8] sm:$0xff] }
 0x209   : > { %v2958_v4 = vadd.f32 %v2957_v10, %v14577_v36  ;;  %v3409_v56 = vpop.f32.mrf.mxu2  ;;  %v13109_v36 = vld [vmem:[%s17005_s1 + $0x88] sm:$0xff]  ;;  %v1913_v9 = vpack.c.b16 %v1902_v45, %v1902_v45  ;;  %v10159_v55 = vrot.slane %v1934_v49, 11  ;;  %v1929_v57 = vshll.u32 %v13755_v26, 16  ;;  %v13037_v49 = vld [vmem:[#allocation4 + $0xb8] sm:$0xf0]  ;;  %4469 = vmatpush.bf16.msrb.mxu0 %v13093_v51  ;;  %v13092_v51 = vld [vmem:[%s17005_s1] sm:$0xff] }
 0x20a   : > { %v14908_v59 = vadd.f32 %v3458_v21, %v3409_v56  ;;  %v13189_v21 = vld [vmem:[%s17005_s1 + $0x188] sm:$0xff]  ;;  %4567 = vmatpush.bf16.msrb.mxu2 %v13109_v36  ;;  %v1944_v0 = vor.u32 %v1942_v22, %v1941_v37  ;;  %v1955_v63 = vrot.slane %v1941_v37, 4  ;;  %v10712_v56 = vld [vmem:[#allocation4 + $0xb0] sm:$0xf]  ;;  %v13136_v22 = vld [vmem:[#allocation4 + $0x178] sm:$0xf0] }
 0x20b   : > { %v14910_v61 = vadd.f32 %v3006_v17, %v2958_v4  ;;  %3506 = vmatmul.bf16.gmra.mxu0 %v10701_v46  ;;  %4072 = vmatmul.bf16.gmra.mxu1 %v10933_v13  ;;  %v1898_v46 = vunpack.c.l.b16 %v1877_v50  ;;  %v1957_v23 = vshrl.u32 %v1913_v9, 16  ;;  %v1960_v18 = vshll.u32 %v1913_v9, 16  ;;  %v13131_v13 = vld [vmem:[#allocation4 + $0x154] sm:$0xf]  ;;  %v10964_v9 = vld [vmem:[#allocation4 + $0x170] sm:$0xf] }
 0x20c   : > { %4175 = vmatmul.bf16.gmra.mxu3 %v10953_v32  ;;  %v1945_v15 = vsel %vm14038_vm3, %v10159_v55, %v1944_v0  ;;  %v1926_v17 = vshrl.u32 %v13755_v26, 16  ;;  %v10949_v29 = vor.u32 %v13131_v13, %v10946_v16  ;;  %v10965_v26 = vor.u32 %v13136_v22, %v10964_v9 }
 0x20d   : > { %4969 = vmatpush.bf16.msrb.mxu3 %v13189_v21  ;;  %v1908_v28 = vpack.c.b16 %v1898_v46, %v1862_v7  ;;  %v1959_v11 = vrot.slane %v1957_v23, 7  ;;  %v1912_v32 = vpack.c.b16 %v1898_v46, %v1864_v14  ;;  %2018 = vst [vmem:[#allocation4 + $0x188] sm:$0xf] %v1945_v15  ;;  %v10944_v21 = vld [vmem:[#allocation4 + $0x150] sm:$0xf]  ;;  %v10713_v23 = vor.u32 %v13037_v49, %v10712_v56  ;;  %v13108_v15 = vld [vmem:[%s17005_s1 + $0x80] sm:$0xff] }
 0x20e   : > { %v1928_v50 = vrot.slane %v1926_v17, 7  ;;  %4568 = vmatpush.bf16.msrb.mxu2 %v13108_v15  ;;  %v13134_v17 = vld [vmem:[#allocation4 + $0x16c] sm:$0xf]  ;;  %v10724_v49 = vld [vmem:[#allocation4 + $0xc8] sm:$0xf]  ;;  %4470 = vmatpush.bf16.msrb.mxu0 %v13092_v51 }
 0x20f   : > { %v3463_v19 = vpop.f32.mrf.mxu3  ;;  %v1921_v10 = vshrl.u32 %v1908_v28, 16  ;;  %v1962_v1 = vor.u32 %v1960_v18, %v1959_v11  ;;  %v1948_v7 = vshrl.u32 %v1912_v32, 16  ;;  %v1951_v36 = vshll.u32 %v1912_v32, 16 }
 0x210   : > { %v2959_v25 = vpop.f32.mrf.mxu0  ;;  %v3008_v47 = vpop.f32.mrf.mxu1  ;;  %v1946_v55 = vrot.slane %v1928_v50, 4  ;;  %v10945_v18 = vor.u32 %v13132_v60, %v10944_v21 }
 0x211   : > { %v2960_v40 = vadd.f32 %v2959_v25, %v14586_v58  ;;  %v3411_v38 = vpop.f32.mrf.mxu2  ;;  %v10158_v45 = vrot.slane %v1921_v10, 11  ;;  %v1963_v58 = vsel %vm14038_vm3, %v1955_v63, %v1962_v1  ;;  %v1950_v37 = vrot.slane %v1948_v7, 7  ;;  %v13188_v10 = vld [vmem:[%s17005_s1 + $0x180] sm:$0xff]  ;;  %v10956_v7 = vld [vmem:[#allocation4 + $0x168] sm:$0xf] }
 0x212   : > { %v14934_v4 = vadd.f32 %v3460_v24, %v3411_v38  ;;  %2020 = vst [vmem:[#allocation4 + $0x194] sm:$0xf] %v1963_v58  ;;  %v1931_v24 = vor.u32 %v1929_v57, %v1928_v50  ;;  %4970 = vmatpush.bf16.msrb.mxu3 %v13188_v10  ;;  %v13040_v58 = vld [vmem:[#allocation4 + $0xd0] sm:$0xf0] }
 0x213   : > { %v14936_v14 = vadd.f32 %v3008_v47, %v2960_v40  ;;  %v1953_v16 = vor.u32 %v1951_v36, %v1950_v37  ;;  %v10958_v40 = vld [vmem:[#allocation4 + $0x174] sm:$0xf0]  ;;  %v13135_v36 = vld [vmem:[#allocation4 + $0x170] sm:$0xf0] }
 0x214   : > { %v1932_v46 = vsel %vm14038_vm3, %v10158_v45, %v1931_v24  ;;  %v10961_v50 = vor.u32 %v13134_v17, %v10958_v40  ;;  %v10976_v21 = vld [vmem:[#allocation4 + $0x188] sm:$0xf]  ;;  %v10725_v24 = vor.u32 %v13040_v58, %v10724_v49 }
 0x215   : > { %2017 = vst [vmem:[#allocation4 + $0x180] sm:$0xff] %v1932_v46  ;;  %v1954_v32 = vsel %vm14038_vm3, %v1946_v55, %v1953_v16 }
 0x216   : > { %4126 = vmatmul.bf16.gmra.mxu2 %v10949_v29  ;;  %2019 = vst [vmem:[#allocation4 + $0x18c] sm:$0xff] %v1954_v32 }
 0x217   : > { %v3465_v13 = vpop.f32.mrf.mxu3 }
 0x218   : > { %v2962_v0 = vpop.f32.mrf.mxu0  ;;  %v3011_v28 = vpop.f32.mrf.mxu1 }
 0x219   : > { %v2963_v63 = vadd.f32 %v2962_v0, %v14605_v8  ;;  %v3414_v11 = vpop.f32.mrf.mxu2  ;;  %v13100_v8 = vld [vmem:[%s17005_s1 + $0x40] sm:$0xff]  ;;  %v13139_v60 = vld [vmem:[#allocation4 + $0x190] sm:$0xf0] }
 0x21a   : > { %v14948_v25 = vadd.f32 %v3463_v19, %v3414_v11  ;;  %4519 = vmatpush.bf16.msrb.mxu1 %v13100_v8  ;;  %v10977_v37 = vor.u32 %v13139_v60, %v10976_v21  ;;  %v10736_v8 = vld [vmem:[#allocation4 + $0xe0] sm:$0xf]  ;;  %v13291_v60 = vld [vmem:[%s17007_s3 + $0xf8] sm:$0xff] }
 0x21b   : > { %v14950_v47 = vadd.f32 %v3011_v28, %v2963_v63  ;;  %3511 = vmatmul.bf16.gmra.mxu0 %v10713_v23  ;;  %4077 = vmatmul.bf16.gmra.mxu1 %v10945_v18 }
 0x21c   : > { %4180 = vmatmul.bf16.gmra.mxu3 %v10965_v26  ;;  %v13137_v0 = vld [vmem:[#allocation4 + $0x184] sm:$0xf]  ;;  %v10968_v17 = vld [vmem:[#allocation4 + $0x180] sm:$0xf]  ;;  %7214 = vmatpush.bf16.msra.mxu2 %v13291_v60 }
 0x21d   : > { %v10970_v28 = vld [vmem:[#allocation4 + $0x18c] sm:$0xf0]  ;;  %v13138_v40 = vld [vmem:[#allocation4 + $0x188] sm:$0xf0] }
 0x21e   : > { %v10973_v10 = vor.u32 %v13137_v0, %v10970_v28 }
 0x21f   : > { %v3468_v19 = vpop.f32.mrf.mxu3 }
 0x220   : > { %v2964_v38 = vpop.f32.mrf.mxu0  ;;  %v3013_v29 = vpop.f32.mrf.mxu1 }
 0x221   : > { %v2965_v1 = vadd.f32 %v2964_v38, %v14626_v41  ;;  %v3416_v56 = vpop.f32.mrf.mxu2  ;;  %v10957_v41 = vor.u32 %v13135_v36, %v10956_v7  ;;  %v11316_v38 = vld [vmem:[#allocation4 + $0xf0] sm:$0xf] }
 0x222   : > { %v14962_v45 = vadd.f32 %v3465_v13, %v3416_v56  ;;  %v10969_v56 = vor.u32 %v13138_v40, %v10968_v17 }
 0x223   : > { %v14964_v57 = vadd.f32 %v3013_v29, %v2965_v1  ;;  %v13165_v29 = vld [vmem:[#allocation4 + $0xf8] sm:$0xf0] }
 0x224   : > { %v11317_v58 = vor.u32 %v13165_v29, %v11316_v38 }
 0x226   : > { %4131 = vmatmul.bf16.gmra.mxu2 %v10961_v50 }
 0x227   : > { %v3470_v9 = vpop.f32.mrf.mxu3 }
 0x228   : > { %v2967_v22 = vpop.f32.mrf.mxu0  ;;  %v3016_v55 = vpop.f32.mrf.mxu1 }
 0x229   : > { %v2968_v46 = vadd.f32 %v2967_v22, %v14645_v62  ;;  %v3419_v23 = vpop.f32.mrf.mxu2  ;;  %v13070_v22 = vld [vmem:[#allocation4 + $0xd0] sm:$0xf0] }
 0x22a   : > { %v14970_v18 = vadd.f32 %v3468_v19, %v3419_v23  ;;  %v13043_v19 = vld [vmem:[#allocation4 + $0xe8] sm:$0xf0] }
 0x22b   : > { %v14972_v13 = vadd.f32 %v3016_v55, %v2968_v46  ;;  %3516 = vmatmul.bf16.gmra.mxu0 %v10725_v24  ;;  %4082 = vmatmul.bf16.gmra.mxu1 %v10957_v41  ;;  %v10737_v1 = vor.u32 %v13043_v19, %v10736_v8  ;;  %v13299_v24 = vld [vmem:[%s17007_s3 + $0x138] sm:$0xff]  ;;  %v13168_v8 = vld [vmem:[#allocation4 + $0x110] sm:$0xf0] }
 0x22c   : > { %4185 = vmatmul.bf16.gmra.mxu3 %v10977_v37  ;;  %v13211_v41 = vld [vmem:[%s17005_s1 + $0x238] sm:$0xff] }
 0x22d   : > { %7263 = vmatpush.bf16.msra.mxu3 %v13299_v24  ;;  %5061 = vmatpush.bf16.msra.mxu1 %v13211_v41  ;;  %v11096_v24 = vld [vmem:[#allocation4 + $0xe0] sm:$0xf] }
 0x22f   : > { %v3473_v16 = vpop.f32.mrf.mxu3 }
 0x230   : > { %v2969_v26 = vpop.f32.mrf.mxu0  ;;  %v3018_v63 = vpop.f32.mrf.mxu1 }
 0x231   : > { %v2970_v11 = vadd.f32 %v2969_v26, %v14662_v2  ;;  %v3421_v32 = vpop.f32.mrf.mxu2  ;;  %v11076_v26 = vld [vmem:[#allocation4 + $0xc0] sm:$0xf] }
 0x232   : > { %v14975_v15 = vadd.f32 %v3470_v9, %v3421_v32  ;;  %v11084_v9 = vld [vmem:[#allocation4 + $0xc8] sm:$0xf]  ;;  %v11078_v32 = vld [vmem:[#allocation4 + $0xcc] sm:$0xf0] }
 0x233   : > { %v14977_v62 = vadd.f32 %v3018_v63, %v2970_v11  ;;  %v11085_v0 = vor.u32 %v13070_v22, %v11084_v9  ;;  %v13069_v63 = vld [vmem:[#allocation4 + $0xc8] sm:$0xf0]  ;;  %v13068_v11 = vld [vmem:[#allocation4 + $0xc4] sm:$0xf] }
 0x234   : > { %v11077_v19 = vor.u32 %v13069_v63, %v11076_v26  ;;  %v11081_v17 = vor.u32 %v13068_v11, %v11078_v32  ;;  %v13071_v26 = vld [vmem:[#allocation4 + $0xdc] sm:$0xf]  ;;  %v11090_v63 = vld [vmem:[#allocation4 + $0xe4] sm:$0xf0]  ;;  %v11340_v11 = vld [vmem:[#allocation4 + $0x120] sm:$0xf] }
 0x235   : > { %v13171_v32 = vld [vmem:[#allocation4 + $0x128] sm:$0xf0] }
 0x236   : > { %4136 = vmatmul.bf16.gmra.mxu2 %v10973_v10  ;;  %v11328_v10 = vld [vmem:[#allocation4 + $0x108] sm:$0xf] }
 0x237   : > { %v3475_v50 = vpop.f32.mrf.mxu3 }
 0x238   : > { %v2972_v49 = vpop.f32.mrf.mxu0  ;;  %v3021_v51 = vpop.f32.mrf.mxu1 }
 0x239   : > { %v2973_v2 = vadd.f32 %v2972_v49, %v14687_v33  ;;  %v3424_v7 = vpop.f32.mrf.mxu2 }
 0x23a   : > { %v14980_v36 = vadd.f32 %v3473_v16, %v3424_v7 }
 0x23b   : > { %v14982_v21 = vadd.f32 %v3021_v51, %v2973_v2  ;;  %3521 = vmatmul.bf16.gmra.mxu0 %v10737_v1  ;;  %4087 = vmatmul.bf16.gmra.mxu1 %v10969_v56  ;;  %v11329_v1 = vor.u32 %v13168_v8, %v11328_v10  ;;  %v15002_v56 = vld [vmem:[%s17006_s2] ss:$0 sm:$0xff] }
 0x23c   : > { %4971 = vmatmul.bf16.vlgmr.msrb.gmra.mxu3 %v11317_v58 }
 0x23f   : > { %v4151_v33 = vpop.f32.mrf.mxu3 }
 0x240   : > { %v2974_v55 = vpop.f32.mrf.mxu0  ;;  %v3023_v37 = vpop.f32.mrf.mxu1 }
 0x241   : > { %v2975_v46 = vadd.f32 %v2974_v55, %v14702_v3  ;;  %v3426_v23 = vpop.f32.mrf.mxu2 }
 0x242   : > { %v14994_v16 = vadd.f32 %v3475_v50, %v3426_v23 }
 0x243   : > { %v14996_v28 = vadd.f32 %v3023_v37, %v2975_v46 }
 0x246   : > { %4569 = vmatmul.bf16.vlgmr.msrb.gmra.mxu2 %v11085_v0 }
 0x247   : > { %v4153_v40 = vpop.f32.mrf.mxu3 }
 0x248   : > { %v3487_v38 = vpop.f32.mrf.mxu0  ;;  %v4053_v29 = vpop.f32.mrf.mxu1 }
 0x249   : > { %v3488_v3 = vadd.f32 %v3487_v38, %v14705_v48  ;;  %v4102_v50 = vpop.f32.mrf.mxu2  ;;  %v13073_v48 = vld [vmem:[#allocation4 + $0xe8] sm:$0xf0] }
 0x24a   : > { %v4103_v49 = vadd.f32 %v4102_v50, %v4053_v29  ;;  %v11097_v23 = vor.u32 %v13073_v48, %v11096_v24  ;;  %v11093_v29 = vor.u32 %v13071_v26, %v11090_v63  ;;  %v5216_v24 = vld [vmem:[#allocation3 + $0x1c] sm:$0x1]  ;;  %v13297_v26 = vld [vmem:[%s17007_s3 + $0x128] sm:$0xff] }
 0x24b   : > { %v3527_v51 = vadd.f32 %v3488_v3, %v14707_v53  ;;  %4471 = vmatmul.bf16.vlgmr.msrb.gmra.mxu0 %v11077_v19  ;;  %4520 = vmatmul.bf16.vlgmr.msrb.gmra.mxu1 %v11081_v17  ;;  %v11088_v53 = vld [vmem:[#allocation4 + $0xd8] sm:$0xf]  ;;  %v13290_v19 = vld [vmem:[%s17007_s3 + $0xf0] sm:$0xff] }
 0x24c   : > { %4976 = vmatmul.bf16.gmra.mxu3 %v11329_v1  ;;  %v15005_v58 = vadd.f32 %v4151_v33, %v4103_v49  ;;  %v13072_v33 = vld [vmem:[#allocation4 + $0xe0] sm:$0xf0]  ;;  %v13210_v17 = vld [vmem:[%s17005_s1 + $0x230] sm:$0xff]  ;;  %7215 = vmatpush.bf16.msra.mxu2 %v13290_v19  ;;  %v11341_v49 = vor.u32 %v13171_v32, %v11340_v11 }
 0x24d   : > { %v3546_v2 = vadd.f32 %v15002_v56, %v3527_v51  ;;  %v11089_v38 = vor.u32 %v13072_v33, %v11088_v53  ;;  %5062 = vmatpush.bf16.msra.mxu1 %v13210_v17 }
 0x24f   : > { %v3562_v7 = vmax.f32 %v3546_v2, 0.0  ;;  %v4156_v60 = vpop.f32.mrf.mxu3 }
 0x250   : > { %v3489_v41 = vpop.f32.mrf.mxu0  ;;  %v4055_v9 = vpop.f32.mrf.mxu1 }
 0x251   : > { %v3578_v22 = vpack.c.bf16 %v3562_v7, %v3562_v7  ;;  %v3490_v55 = vadd.f32 %v3489_v41, %v14733_v30  ;;  %v4104_v37 = vpop.f32.mrf.mxu2  ;;  %v13203_v30 = vld [vmem:[%s17005_s1 + $0x1f8] sm:$0xff] }
 0x252   : > { %v4105_v46 = vadd.f32 %v4104_v37, %v4055_v9  ;;  %5012 = vmatpush.bf16.msra.mxu0 %v13203_v30  ;;  %v11108_v37 = vld [vmem:[#allocation4 + $0xf8] sm:$0xf]  ;;  %v13209_v30 = vld [vmem:[%s17005_s1 + $0x228] sm:$0xff] }
 0x253   : > { %3595 = vst [vmem:[#allocation3 + $0x14] sm:$0xf] %v3578_v22  ;;  %v3528_v0 = vadd.f32 %v3490_v55, %v14735_v6  ;;  %v13298_v6 = vld [vmem:[%s17007_s3 + $0x130] sm:$0xff]  ;;  %v5352_v22 = vunpack.c.l.b16 %v5216_v24  ;;  %5063 = vmatpush.bf16.msra.mxu1 %v13209_v30 }
 0x254   : > { %v15010_v10 = vadd.f32 %v4153_v40, %v4105_v46  ;;  %7264 = vmatpush.bf16.msra.mxu3 %v13298_v6 }
 0x255   : > { %v3547_v8 = vadd.f32 %v15002_v56, %v3528_v0  ;;  %v5360_v63 = vpack.c.b16 %v5352_v22, %v5352_v22 }
 0x256   : > { %4574 = vmatmul.bf16.gmra.mxu2 %v11097_v23 }
 0x257   : > { %v3563_v40 = vmax.f32 %v3547_v8, 0.0  ;;  %v4158_v1 = vpop.f32.mrf.mxu3 }
 0x258   : > { %v3492_v3 = vpop.f32.mrf.mxu0  ;;  %v4058_v50 = vpop.f32.mrf.mxu1  ;;  %7265 = vmatpush.bf16.msra.mxu3 %v13297_v26 }
 0x259   : > { %v3579_v51 = vpack.c.bf16 %v3563_v40, %v3563_v40  ;;  %v3493_v2 = vadd.f32 %v3492_v3, %v14750_v31  ;;  %v4107_v7 = vpop.f32.mrf.mxu2  ;;  %v13076_v31 = vld [vmem:[#allocation4 + $0x100] sm:$0xf0]  ;;  %v11100_v40 = vld [vmem:[#allocation4 + $0xf0] sm:$0xf] }
 0x25a   : > { %v4108_v48 = vadd.f32 %v4107_v7, %v4058_v50  ;;  %v15030_v46 = vld [vmem:[#allocation3 + $0x14] sm:$0xf]  ;;  %v11109_v17 = vor.u32 %v13076_v31, %v11108_v37  ;;  %v5371_v7 = vrot.slane %v5360_v63, 5 }
 0x25b   : > { %3596 = vst [vmem:[#allocation3 + $0x18] sm:$0xf] %v3579_v51  ;;  %v3529_v41 = vadd.f32 %v3493_v2, %v14756_v5  ;;  %4476 = vmatmul.bf16.gmra.mxu0 %v11089_v38  ;;  %4525 = vmatmul.bf16.gmra.mxu1 %v11093_v29  ;;  %v13202_v5 = vld [vmem:[%s17005_s1 + $0x1f0] sm:$0xff]  ;;  %v13075_v38 = vld [vmem:[#allocation4 + $0xf8] sm:$0xf0]  ;;  %v5251_v29 = vunpack.c.l.b16 %v15030_v46 }
 0x25c   : > { %4981 = vmatmul.bf16.gmra.mxu3 %v11341_v49  ;;  %v15027_v9 = vadd.f32 %v4156_v60, %v4108_v48  ;;  %v13289_v60 = vld [vmem:[%s17007_s3 + $0xe8] sm:$0xff]  ;;  %5013 = vmatpush.bf16.msra.mxu0 %v13202_v5  ;;  %v13074_v50 = vld [vmem:[#allocation4 + $0xf4] sm:$0xf]  ;;  %v11102_v49 = vld [vmem:[#allocation4 + $0xfc] sm:$0xf0]  ;;  %v11101_v22 = vor.u32 %v13075_v38, %v11100_v40 }
 0x25d   : > { %v3548_v55 = vadd.f32 %v15002_v56, %v3529_v41  ;;  %7216 = vmatpush.bf16.msra.mxu2 %v13289_v60  ;;  %v11352_v48 = vld [vmem:[#allocation4 + $0x138] sm:$0xf]  ;;  %v13174_v41 = vld [vmem:[#allocation4 + $0x140] sm:$0xf0] }
 0x25f   : > { %v3564_v23 = vmax.f32 %v3548_v55, 0.0  ;;  %v15032_v53 = vpop.f32.mrf.mxu3  ;;  %v11105_v55 = vor.u32 %v13074_v50, %v11102_v49 }
 0x260   : > { %v3494_v0 = vpop.f32.mrf.mxu0  ;;  %v4060_v33 = vpop.f32.mrf.mxu1 }
 0x261   : > { %v3580_v11 = vpack.c.bf16 %v3564_v23, %v3564_v23  ;;  %v3495_v32 = vadd.f32 %v3494_v0, %v14778_v20  ;;  %v4109_v8 = vpop.f32.mrf.mxu2  ;;  %v5194_v0 = vld [vmem:[#allocation3 + $0x10] sm:$0x8] }
 0x262   : > { %v15047_v19 = vld [vmem:[#allocation3 + $0x18] sm:$0xf]  ;;  %v4110_v6 = vadd.f32 %v4109_v8, %v4060_v33 }
 0x263   : > { %v5252_v3 = vunpack.c.l.b16 %v15047_v19  ;;  %3597 = vst [vmem:[#allocation3 + $0x24] sm:$0xf] %v3580_v11  ;;  %v3530_v20 = vadd.f32 %v3495_v32, %v14783_v27 }
 0x264   : > { %v15052_v51 = vadd.f32 %v4158_v1, %v4110_v6  ;;  %v11353_v1 = vor.u32 %v13174_v41, %v11352_v48  ;;  %v5250_v6 = vunpack.c.l.b16 %v5194_v0  ;;  %v13079_v41 = vld [vmem:[#allocation4 + $0x118] sm:$0xf0] }
 0x265   : > { %v5272_v2 = vpack.c.b16 %v5252_v3, %v5251_v29  ;;  %v3549_v24 = vadd.f32 %v15002_v56, %v3530_v20 }
 0x266   : > { %4579 = vmatmul.bf16.gmra.mxu2 %v11109_v17 }
 0x267   : > { %v5288_v37 = vshrl.u32 %v5272_v2, 16  ;;  %v5291_v46 = vshll.u32 %v5272_v2, 16  ;;  %v5370_v23 = vrot.slane %v5272_v2, 5  ;;  %v3565_v31 = vmax.f32 %v3549_v24, 0.0  ;;  %v15055_v27 = vpop.f32.mrf.mxu3 }
 0x268   : > { %v3497_v33 = vpop.f32.mrf.mxu0  ;;  %v4063_v5 = vpop.f32.mrf.mxu1 }
 0x269   : > { %v5290_v60 = vrot.slane %v5288_v37, 4  ;;  %v5293_v26 = vrot.slane %v5291_v46, 5  ;;  %v5372_v63 = vsel %vm609_vm4, %v5370_v23, %v5371_v7  ;;  %v5399_v11 = vunpack.c.h.b16 %v5370_v23  ;;  %v4112_v32 = vpop.f32.mrf.mxu2  ;;  %v11120_v7 = vld [vmem:[#allocation4 + $0x110] sm:$0xf] }
 0x26a   : > { %v3581_v8 = vpack.c.bf16 %v3565_v31, %v3565_v31  ;;  %v3498_v30 = vadd.f32 %v3497_v33, %v14798_v52  ;;  %v4113_v19 = vadd.f32 %v4112_v32, %v4063_v5  ;;  %v5400_v40 = vunpack.c.l.b16 %v5372_v63  ;;  %v15063_v48 = vld [vmem:[#allocation3 + $0x24] sm:$0xf] }
 0x26b   : > { %v5294_v17 = vor.u32 %v5293_v26, %v5290_v60  ;;  %v5440_v38 = vpack.c.b16 %v5399_v11, %v5399_v11  ;;  %4481 = vmatmul.bf16.gmra.mxu0 %v11101_v22  ;;  %4530 = vmatmul.bf16.gmra.mxu1 %v11105_v55  ;;  %v5397_v50 = vunpack.c.l.b16 %v5370_v23  ;;  %v13296_v33 = vld [vmem:[%s17007_s3 + $0x120] sm:$0xff]  ;;  %v5254_v32 = vunpack.c.l.b16 %v15063_v48 }
 0x26c   : > { %3598 = vst [vmem:[#allocation3 + $0x28] sm:$0xf] %v3581_v8  ;;  %v3531_v20 = vadd.f32 %v3498_v30, %v14802_v43  ;;  %4986 = vmatmul.bf16.gmra.mxu3 %v11353_v1  ;;  %v15061_v24 = vadd.f32 %v15032_v53, %v4113_v19  ;;  %v15066_v0 = vpack.c.b16 %v5400_v40, %v5400_v40  ;;  %v13201_v43 = vld [vmem:[%s17005_s1 + $0x1e8] sm:$0xff]  ;;  %v13288_v53 = vld [vmem:[%s17007_s3 + $0xe0] sm:$0xff] }
 0x26d   : > { %v5396_v49 = vunpack.c.l.b16 %v5294_v17  ;;  %v5398_v2 = vunpack.c.h.b16 %v5294_v17  ;;  %v5438_v37 = vpack.c.b16 %v5397_v50, %v5397_v50  ;;  %v5542_v46 = vshrl.u32 %v5440_v38, 16  ;;  %v13208_v60 = vld [vmem:[%s17005_s1 + $0x220] sm:$0xff]  ;;  %5014 = vmatpush.bf16.msra.mxu0 %v13201_v43  ;;  %7217 = vmatpush.bf16.msra.mxu2 %v13288_v53  ;;  %v13077_v17 = vld [vmem:[#allocation4 + $0x10c] sm:$0xf]  ;;  %v11114_v50 = vld [vmem:[#allocation4 + $0x114] sm:$0xf0] }
 0x26e   : > { %17027 = vst [vmem:[#allocation9_spill] sm:$0xff] %v15061_v24  ;;  %v3550_v52 = vadd.f32 %v15002_v56, %v3531_v20  ;;  %v11121_v19 = vor.u32 %v13079_v41, %v11120_v7  ;;  %7266 = vmatpush.bf16.msra.mxu3 %v13296_v33  ;;  %5064 = vmatpush.bf16.msra.mxu1 %v13208_v60  ;;  %v5560_v43 = vshrl.u32 %v15066_v0, 16  ;;  %v13177_v41 = vld [vmem:[#allocation4 + $0x158] sm:$0xf0] }
 0x26f   : > { %v5437_v22 = vpack.c.b16 %v5396_v49, %v5250_v6  ;;  %v5439_v55 = vpack.c.b16 %v5398_v2, %v5251_v29  ;;  %v5441_v31 = vpack.c.b16 %v5396_v49, %v5252_v3  ;;  %v15071_v23 = vpop.f32.mrf.mxu3  ;;  %v15079_v3 = vld [vmem:[#allocation4 + $0x108] sm:$0xf]  ;;  %v5537_v26 = vshrl.u32 %v5438_v37, 16  ;;  %v13078_v6 = vld [vmem:[#allocation4 + $0x110] sm:$0xf0] }
 0x270   : > { %v3566_v5 = vmax.f32 %v3550_v52, 0.0  ;;  %v3499_v1 = vpop.f32.mrf.mxu0  ;;  %v4065_v29 = vpop.f32.mrf.mxu1  ;;  %v15084_v63 = vrot.slane %v5542_v46, 7  ;;  %v11364_v49 = vld [vmem:[#allocation4 + $0x150] sm:$0xf]  ;;  %v5545_v52 = vshll.u32 %v5440_v38, 16 }
 0x271   : > { %v5551_v11 = vshrl.u32 %v5441_v31, 16  ;;  %v3500_v8 = vadd.f32 %v3499_v1, %v14826_v42  ;;  %v4114_v30 = vpop.f32.mrf.mxu2  ;;  %v5529_v2 = vshrl.u32 %v5439_v55, 16  ;;  %v5524_v37 = vshrl.u32 %v5437_v22, 16 }
 0x272   : > { %v3582_v40 = vpack.c.bf16 %v3566_v5, %v3566_v5  ;;  %v4115_v20 = vadd.f32 %v4114_v30, %v4065_v29  ;;  %v11509_v33 = vrot.slane %v5537_v26, 11  ;;  %v5547_v5 = vor.u32 %v5545_v52, %v15084_v63 }
 0x273   : > { %v5553_v46 = vrot.slane %v5551_v11, 7  ;;  %v15088_v24 = vld [vmem:[#allocation3 + $0x28] sm:$0xf]  ;;  %v3532_v42 = vadd.f32 %v3500_v8, %v14829_v34  ;;  %v11113_v22 = vor.u32 %v13078_v6, %v15079_v3  ;;  %v5531_v1 = vrot.slane %v5529_v2, 7  ;;  %v15109_v3 = vld [vmem:[#allocation2 + $0x114] sm:$0xff]  }
 0x274   : > { %v17010_v7 = vunpack.c.l.b16 %v15088_v24  ;;  %3599 = vst [vmem:[#allocation3 + $0x34] sm:$0xf] %v3582_v40  ;;  %v15094_v53 = vadd.f32 %v15055_v27, %v4115_v20  ;;  %v5532_v29 = vshll.u32 %v5439_v55, 16  ;;  %v5554_v60 = vshll.u32 %v5441_v31, 16 }
 0x275   : > { %v3551_v38 = vadd.f32 %v15002_v56, %v3532_v42  ;;  %v11117_v11 = vor.u32 %v13077_v17, %v11114_v50  ;;  %v5548_v27 = vsel %vm14038_vm3, %v11509_v33, %v5547_v5  ;;  %v11508_v26 = vrot.slane %v5524_v37, 11  ;;  %17029 = vst [vmem:[#allocation11_spill] sm:$0xff] %v15109_v3 }
 0x276   : > { %17028 = vst [vmem:[#allocation10_spill] sm:$0xff] %v15094_v53  ;;  %v15103_v34 = vpack.c.b16 %v17010_v7, %v5254_v32  ;;  %4584 = vmatmul.bf16.gmra.mxu2 %v11121_v19  ;;  %v11365_v40 = vor.u32 %v13177_v41, %v11364_v49  ;;  %v5534_v55 = vor.u32 %v5532_v29, %v5531_v1  ;;  %v5562_v19 = vrot.slane %v5560_v43, 7  ;;  %v5197_v29 = vld [vmem:[#allocation3 + $0x20] sm:$0x8] }
 0x277   : > { %v3567_v8 = vmax.f32 %v3551_v38, 0.0  ;;  %v15107_v30 = vpop.f32.mrf.mxu3  ;;  %v5556_v31 = vor.u32 %v5554_v60, %v5553_v46  ;;  %5868 = vst [vmem:[#allocation5 + $0x20] sm:$0xf] %v5548_v27  ;;  %v5563_v43 = vshll.u32 %v15066_v0, 16  ;;  %v5558_v27 = vrot.slane %v15084_v63, 4 }
 0x278   : > { %v5296_v6 = vshrl.u32 %v15103_v34, 16  ;;  %v5299_v20 = vshll.u32 %v15103_v34, 16  ;;  %v3502_v2 = vpop.f32.mrf.mxu0  ;;  %v4068_v52 = vpop.f32.mrf.mxu1  ;;  %v5535_v46 = vsel %vm14038_vm3, %v11508_v26, %v5534_v55  ;;  %v13082_v55 = vld [vmem:[#allocation4 + $0x130] sm:$0xf0] }
 0x279   : > { %v3583_v17 = vpack.c.bf16 %v3567_v8, %v3567_v8  ;;  %v3503_v50 = vadd.f32 %v3502_v2, %v14856_v39  ;;  %v4117_v37 = vpop.f32.mrf.mxu2  ;;  %v5549_v39 = vrot.slane %v5531_v1, 4  ;;  %5867 = vst [vmem:[#allocation5 + $0x18] sm:$0xff] %v5535_v46  ;;  %v11132_v8 = vld [vmem:[#allocation4 + $0x128] sm:$0xf]  ;;  %v15132_v1 = vld [vmem:[#allocation4 + $0x128] sm:$0xf0]  ;;  %v5565_v63 = vor.u32 %v5563_v43, %v5562_v19 }
 0x27a   : > { %v5298_v33 = vrot.slane %v5296_v6, 4  ;;  %v5301_v49 = vrot.slane %v5299_v20, 5  ;;  %v4118_v41 = vadd.f32 %v4117_v37, %v4068_v52  ;;  %v13200_v20 = vld [vmem:[%s17005_s1 + $0x1e0] sm:$0xff]  ;;  %v13287_v52 = vld [vmem:[%s17007_s3 + $0xd8] sm:$0xff]  ;;  %v5253_v46 = vunpack.c.l.b16 %v5197_v29 }
 0x27b   : > { %3600 = vst [vmem:[#allocation3 + $0x38] sm:$0xf] %v3583_v17  ;;  %v3533_v5 = vadd.f32 %v3503_v50, %v14864_v35  ;;  %4486 = vmatmul.bf16.gmra.mxu0 %v11113_v22  ;;  %4535 = vmatmul.bf16.gmra.mxu1 %v11117_v11  ;;  %v1879_v35 = vshrl.u32 %v15109_v3, 16  ;;  %v1882_v22 = vshll.u32 %v15109_v3, 16  ;;  %v15128_v0 = vld [vmem:[#allocation3 + $0x34] sm:$0xf] }
 0x27c   : > { %v15119_v38 = vor.u32 %v5301_v49, %v5298_v33  ;;  %4991 = vmatmul.bf16.gmra.mxu3 %v11365_v40  ;;  %v15122_v60 = vadd.f32 %v15071_v23, %v4118_v41  ;;  %v15130_v11 = vld [vmem:[#allocation4 + $0x120] sm:$0xf]  ;;  %v5557_v23 = vsel %vm14038_vm3, %v5549_v39, %v5556_v31  ;;  %v13295_v17 = vld [vmem:[%s17007_s3 + $0x118] sm:$0xff]  ;;  %v11133_v49 = vor.u32 %v13082_v55, %v11132_v8 }
 0x27d   : > { %v3552_v26 = vadd.f32 %v15002_v56, %v3533_v5  ;;  %v1881_v50 = vrot.slane %v1879_v35, 4  ;;  %v1884_v31 = vrot.slane %v1882_v22, 5  ;;  %v13207_v41 = vld [vmem:[%s17005_s1 + $0x218] sm:$0xff]  ;;  %5869 = vst [vmem:[#allocation5 + $0x24] sm:$0xff] %v5557_v23  ;;  %v5566_v5 = vsel %vm14038_vm3, %v5558_v27, %v5565_v63  ;;  %5015 = vmatpush.bf16.msra.mxu0 %v13200_v20  ;;  %7218 = vmatpush.bf16.msra.mxu2 %v13287_v52  ;;  %v13080_v35 = vld [vmem:[#allocation4 + $0x124] sm:$0xf] }
 0x27e   : > { %17030 = vst [vmem:[#allocation12_spill] sm:$0xff] %v15122_v60  ;;  %v5403_v40 = vunpack.c.h.b16 %v15119_v38  ;;  %v17012_v37 = vunpack.c.l.b16 %v15119_v38  ;;  %v11126_v22 = vld [vmem:[#allocation4 + $0x12c] sm:$0xf0]  ;;  %v17011_v8 = vunpack.c.l.b16 %v15128_v0  ;;  %7267 = vmatpush.bf16.msra.mxu3 %v13295_v17  ;;  %v11125_v29 = vor.u32 %v15132_v1, %v15130_v11  ;;  %5065 = vmatpush.bf16.msra.mxu1 %v13207_v41  ;;  %v11376_v27 = vld [vmem:[#allocation4 + $0x168] sm:$0xf] }
 0x27f   : > { %v3568_v6 = vmax.f32 %v3552_v26, 0.0  ;;  %v15140_v2 = vpop.f32.mrf.mxu3  ;;  %v1885_v7 = vor.u32 %v1884_v31, %v1881_v50  ;;  %5870 = vst [vmem:[#allocation5 + $0x2c] sm:$0xf] %v5566_v5  ;;  %v15162_v23 = vld [vmem:[#allocation3 + $0x2c] sm:$0x1]  ;;  %v11129_v31 = vor.u32 %v13080_v35, %v11126_v22 }
 0x280   : > { %v3504_v19 = vpop.f32.mrf.mxu0  ;;  %v4070_v33 = vpop.f32.mrf.mxu1  ;;  %v13180_v20 = vld [vmem:[#allocation4 + $0x170] sm:$0xf0]  ;;  %v1851_v52 = vld [vmem:[#allocation2 + $0x110] sm:$0x8]  ;;  %v15166_v17 = vld [vmem:[#allocation4 + $0x140] sm:$0xf]  ;;  %v5443_v48 = vpack.c.b16 %v17012_v37, %v5253_v46 }
 0x281   : > { %v3584_v43 = vpack.c.bf16 %v3568_v6, %v3568_v6  ;;  %v3505_v39 = vadd.f32 %v3504_v19, %v14890_v44  ;;  %v4119_v26 = vpop.f32.mrf.mxu2  ;;  %v5445_v44 = vpack.c.b16 %v5403_v40, %v5254_v32  ;;  %v1903_v50 = vunpack.c.l.b16 %v1885_v7  ;;  %v15168_v19 = vld [vmem:[#allocation4 + $0x148] sm:$0xf0] }
 0x282   : > { %v15156_v55 = vld [vmem:[#allocation3 + $0x38] sm:$0xf]  ;;  %v4120_v42 = vadd.f32 %v4119_v26, %v4070_v33  ;;  %v1865_v11 = vunpack.c.l.b16 %v1851_v52  ;;  %v13757_v40 = vsel %vm13722_vm0, %v15109_v3, %v1885_v7  ;;  %v11377_v41 = vor.u32 %v13180_v20, %v11376_v27  ;;  %v15191_v7 = vld [vmem:[#allocation3 + $0x30] sm:$0x8] }
 0x283   : > { %v5258_v63 = vunpack.c.l.b16 %v15156_v55  ;;  %3601 = vst [vmem:[#allocation3 + $0x44] sm:$0xf] %v3584_v43  ;;  %v3534_v6 = vadd.f32 %v3505_v39, %v14892_v12  ;;  %v17032_v43 = vunpack.c.h.b16 %v15109_v3  ;;  %v5573_v39 = vshrl.u32 %v5445_v44, 16 }
 0x284   : > { %v15173_v32 = vadd.f32 %v15107_v30, %v4120_v42  ;;  %v1914_v5 = vpack.c.b16 %v1903_v50, %v1865_v11  ;;  %v5568_v52 = vshrl.u32 %v5443_v48, 16  ;;  %v1973_v37 = vshll.u32 %v13757_v40, 16 }
 0x285   : > { %v15177_v1 = vpack.c.b16 %v5258_v63, %v17011_v8  ;;  %v3553_v12 = vadd.f32 %v15002_v56, %v3534_v6  ;;  %v1918_v46 = vpack.c.b16 %v1903_v50, %v17032_v43  ;;  %v1970_v6 = vshrl.u32 %v13757_v40, 16 }
 0x286   : > { %17031 = vst [vmem:[#allocation13_spill] sm:$0xff] %v15173_v32  ;;  %4589 = vmatmul.bf16.gmra.mxu2 %v11133_v49  ;;  %v1965_v27 = vshrl.u32 %v1914_v5, 16  ;;  %v15196_v3 = vrot.slane %v5573_v39, 7  ;;  %v5256_v22 = vunpack.c.l.b16 %v15191_v7  ;;  %v17033_v32 = vunpack.c.l.b16 %v15088_v24 }
 0x287   : > { %v5304_v30 = vshrl.u32 %v15177_v1, 16  ;;  %v5307_v42 = vshll.u32 %v15177_v1, 16  ;;  %v3569_v26 = vmax.f32 %v3553_v12, 0.0  ;;  %v15187_v35 = vpop.f32.mrf.mxu3  ;;  %v1992_v20 = vshrl.u32 %v1918_v46, 16 }
 0x288   : > { %v3507_v55 = vpop.f32.mrf.mxu0  ;;  %v4073_v49 = vpop.f32.mrf.mxu1  ;;  %v17034_v5 = vunpack.c.l.b16 %v15119_v38  ;;  %v11510_v40 = vrot.slane %v5568_v52, 11  ;;  %v5576_v39 = vshll.u32 %v5445_v44, 16  ;;  %v1995_v24 = vshll.u32 %v1918_v46, 16  ;;  %v13286_v44 = vld [vmem:[%s17007_s3 + $0xd0] sm:$0xff] }
 0x289   : > { %v5306_v50 = vrot.slane %v5304_v30, 4  ;;  %v5309_v11 = vrot.slane %v5307_v42, 5  ;;  %v3585_v43 = vpack.c.bf16 %v3569_v26, %v3569_v26  ;;  %v3508_v33 = vadd.f32 %v3507_v55, %v14908_v59  ;;  %v4122_v8 = vpop.f32.mrf.mxu2  ;;  %7219 = vmatpush.bf16.msra.mxu2 %v13286_v44 }
 0x28a   : > { %v15194_v12 = vadd.f32 %v4122_v8, %v4073_v49  ;;  %v15203_v60 = vpack.c.b16 %v17034_v5, %v17033_v32  ;;  %v10160_v59 = vrot.slane %v1965_v27, 11  ;;  %v1972_v8 = vrot.slane %v1970_v6, 7  ;;  %v15227_v6 = vld [vmem:[#allocation4 + $0x140] sm:$0xf0] }
 0x28b   : > { %v5310_v48 = vor.u32 %v5309_v11, %v5306_v50  ;;  %3602 = vst [vmem:[#allocation3 + $0x48] sm:$0xf] %v3585_v43  ;;  %v3535_v30 = vadd.f32 %v3508_v33, %v14910_v61  ;;  %4491 = vmatmul.bf16.gmra.mxu0 %v11125_v29  ;;  %4540 = vmatmul.bf16.gmra.mxu1 %v11129_v31  ;;  %v1994_v7 = vrot.slane %v1992_v20, 7  ;;  %v5593_v49 = vrot.slane %v15196_v3, 4  ;;  %v13199_v29 = vld [vmem:[%s17005_s1 + $0x1d8] sm:$0xff]  ;;  %v13206_v20 = vld [vmem:[%s17005_s1 + $0x210] sm:$0xff] }
 0x28c   : > { %4996 = vmatmul.bf16.gmra.mxu3 %v11377_v41  ;;  %v1975_v55 = vor.u32 %v1973_v37, %v1972_v8  ;;  %v1990_v38 = vrot.slane %v1972_v8, 4  ;;  %v5578_v32 = vor.u32 %v5576_v39, %v15196_v3  ;;  %v13294_v37 = vld [vmem:[%s17007_s3 + $0x110] sm:$0xff]  ;;  %v15222_v33 = vld [vmem:[#allocation4 + $0x138] sm:$0xf]  ;;  %v15225_v41 = vld [vmem:[#allocation3 + $0x44] sm:$0xf]  ;;  %5016 = vmatpush.bf16.msra.mxu0 %v13199_v29 }
 0x28d   : > { %v5406_v42 = vunpack.c.l.b16 %v5310_v48  ;;  %v3554_v26 = vadd.f32 %v15002_v56, %v3535_v30  ;;  %v1997_v3 = vor.u32 %v1995_v24, %v1994_v7  ;;  %v5598_v43 = vshll.u32 %v15203_v60, 16  ;;  %v11138_v7 = vld [vmem:[#allocation4 + $0x144] sm:$0xf0]  ;;  %7268 = vmatpush.bf16.msra.mxu3 %v13294_v37  ;;  %5066 = vmatpush.bf16.msra.mxu1 %v13206_v20  ;;  %v11388_v37 = vld [vmem:[#allocation4 + $0x180] sm:$0xf] }
 0x28e   : > { %v1976_v52 = vsel %vm14038_vm3, %v10160_v59, %v1975_v55  ;;  %v5579_v11 = vsel %vm14038_vm3, %v11510_v40, %v5578_v32  ;;  %v5408_v5 = vunpack.c.h.b16 %v5310_v48  ;;  %v15249_v29 = vrot.slane %v15103_v34, 5 }
 0x28f   : > { %v15209_v50 = vpack.c.b16 %v5406_v42, %v5258_v63  ;;  %v3570_v61 = vmax.f32 %v3554_v26, 0.0  ;;  %v15214_v31 = vpop.f32.mrf.mxu3  ;;  %v5595_v63 = vshrl.u32 %v15203_v60, 16  ;;  %v13083_v26 = vld [vmem:[#allocation4 + $0x13c] sm:$0xf]  ;;  %v1998_v24 = vsel %vm14038_vm3, %v1990_v38, %v1997_v3  ;;  %2021 = vst [vmem:[#allocation4 + $0x198] sm:$0xff] %v1976_v52 }
 0x290   : > { %v3509_v46 = vpop.f32.mrf.mxu0  ;;  %v4075_v27 = vpop.f32.mrf.mxu1  ;;  %2023 = vst [vmem:[#allocation4 + $0x1a4] sm:$0xff] %v1998_v24  ;;  %v5449_v48 = vpack.c.b16 %v5406_v42, %v5256_v22  ;;  %v17035_v38 = vunpack.c.l.b16 %v15128_v0  ;;  %v11137_v44 = vor.u32 %v15227_v6, %v15222_v33  ;;  %v13183_v22 = vld [vmem:[#allocation4 + $0x188] sm:$0xf0]  ;;  %v17036_v3 = vunpack.c.l.b16 %v15162_v23 }
 0x291   : > { %v3586_v30 = vpack.c.bf16 %v3570_v61, %v3570_v61  ;;  %v3510_v8 = vadd.f32 %v3509_v46, %v14934_v4  ;;  %v4124_v39 = vpop.f32.mrf.mxu2  ;;  %v5597_v60 = vrot.slane %v5595_v63, 7  ;;  %v5639_v40 = vshrl.u32 %v15209_v50, 16  ;;  %5871 = vst [vmem:[#allocation5 + $0x30] sm:$0xff] %v5579_v11 }
 0x292   : > { %v15240_v53 = vld [vmem:[#allocation3 + $0x48] sm:$0xf]  ;;  %v4125_v59 = vadd.f32 %v4124_v39, %v4075_v27  ;;  %v5260_v4 = vunpack.c.l.b16 %v15225_v41  ;;  %v5451_v61 = vpack.c.b16 %v5408_v5, %v17035_v38  ;;  %v15256_v63 = vpack.c.b16 %v17036_v3, %v17036_v3 }
 0x293   : > { %v5261_v55 = vunpack.c.l.b16 %v15240_v53  ;;  %3603 = vst [vmem:[#allocation3 + $0x54] sm:$0xf] %v3586_v30  ;;  %v3536_v32 = vadd.f32 %v3510_v8, %v14936_v14  ;;  %v5600_v42 = vor.u32 %v5598_v43, %v5597_v60  ;;  %v11141_v0 = vor.u32 %v13083_v26, %v11138_v7  ;;  %v5203_v26 = vld [vmem:[#allocation3 + $0x40] sm:$0x8] }
 0x294   : > { %v5617_v46 = vshrl.u32 %v5451_v61, 16  ;;  %v17037_v33 = vor.u32 %v15168_v19, %v15166_v17  ;;  %v5612_v27 = vshrl.u32 %v5449_v48, 16  ;;  %v5641_v6 = vrot.slane %v5639_v40, 7 }
 0x295   : > { %v15262_v14 = vpack.c.b16 %v5261_v55, %v5260_v4  ;;  %v3555_v34 = vadd.f32 %v15002_v56, %v3536_v32  ;;  %v5601_v23 = vsel %vm14038_vm3, %v5593_v49, %v5600_v42  ;;  %v15272_v20 = vadd.f32 %v15140_v2, %v15194_v12  ;;  %v15288_v42 = vld [vmem:[#allocation4 + $0x150] sm:$0xf] }
 0x296   : > { %4594 = vmatmul.bf16.gmra.mxu2 %v17037_v33  ;;  %v11389_v30 = vor.u32 %v13183_v22, %v11388_v37  ;;  %5873 = vst [vmem:[#allocation5 + $0x3c] sm:$0xff] %v5601_v23  ;;  %v5619_v19 = vrot.slane %v5617_v46, 7  ;;  %v5620_v39 = vshll.u32 %v5451_v61, 16  ;;  %v5642_v49 = vshll.u32 %v15209_v50, 16  ;;  %v15284_v50 = vld [vmem:[#allocation4 + $0x158] sm:$0xf] }
 0x297   : > { %v5312_v52 = vshrl.u32 %v15262_v14, 16  ;;  %v5315_v11 = vshll.u32 %v15262_v14, 16  ;;  %v3571_v43 = vmax.f32 %v3555_v34, 0.0  ;;  %v15276_v5 = vpop.f32.mrf.mxu3  ;;  %v15280_v7 = vadd.f32 %v15187_v35, %v4125_v59  ;;  %v15286_v35 = vld [vmem:[#allocation4 + $0x160] sm:$0xf0] }
 0x298   : > { %v3512_v8 = vpop.f32.mrf.mxu0  ;;  %v4078_v17 = vpop.f32.mrf.mxu1  ;;  %v11512_v32 = vrot.slane %v5612_v27, 11  ;;  %v5622_v38 = vor.u32 %v5620_v39, %v5619_v19  ;;  %v5644_v37 = vor.u32 %v5642_v49, %v5641_v6  ;;  %v5259_v59 = vunpack.c.l.b16 %v5203_v26  ;;  %v13293_v6 = vld [vmem:[%s17007_s3 + $0x108] sm:$0xff] }
 0x299   : > { %v5314_v2 = vrot.slane %v5312_v52, 4  ;;  %v5317_v12 = vrot.slane %v5315_v11, 5  ;;  %v3587_v24 = vpack.c.bf16 %v3571_v43, %v3571_v43  ;;  %v3513_v60 = vadd.f32 %v3512_v8, %v14948_v25  ;;  %v4127_v48 = vpop.f32.mrf.mxu2  ;;  %v15290_v25 = vld [vmem:[#allocation4 + $0x158] sm:$0xf0]  ;;  %7269 = vmatpush.bf16.msra.mxu3 %v13293_v6  ;;  %v11400_v6 = vld [vmem:[#allocation4 + $0x198] sm:$0xf] }
 0x29a   : > { %v4128_v40 = vadd.f32 %v4127_v48, %v4078_v17  ;;  %v5623_v3 = vsel %vm14038_vm3, %v11512_v32, %v5622_v38  ;;  %v5637_v34 = vrot.slane %v5619_v19, 4  ;;  %v15302_v27 = vld [vmem:[#allocation3 + $0x54] sm:$0xf]  ;;  %v5374_v11 = vrot.slane %v15256_v63, 5  ;;  %v13285_v19 = vld [vmem:[%s17007_s3 + $0xc8] sm:$0xff] }
 0x29b   : > { %v5318_v22 = vor.u32 %v5317_v12, %v5314_v2  ;;  %3604 = vst [vmem:[#allocation3 + $0x58] sm:$0xf] %v3587_v24  ;;  %v3537_v61 = vadd.f32 %v3513_v60, %v14950_v47  ;;  %4496 = vmatmul.bf16.gmra.mxu0 %v11137_v44  ;;  %4545 = vmatmul.bf16.gmra.mxu1 %v11141_v0  ;;  %v15295_v47 = vld [vmem:[#allocation4 + $0x154] sm:$0xf]  ;;  %v15297_v44 = vld [vmem:[#allocation4 + $0x15c] sm:$0xf0]  ;;  %v5402_v43 = vunpack.c.l.b16 %v15249_v29 }
 0x29c   : > { %5001 = vmatmul.bf16.gmra.mxu3 %v11389_v30  ;;  %5875 = vst [vmem:[#allocation5 + $0x48] sm:$0xff] %v5623_v3  ;;  %v15300_v23 = vadd.f32 %v15214_v31, %v4128_v40  ;;  %v5645_v52 = vsel %vm14038_vm3, %v5637_v34, %v5644_v37  ;;  %v13198_v31 = vld [vmem:[%s17005_s1 + $0x1d0] sm:$0xff]  ;;  %v13205_v63 = vld [vmem:[%s17005_s1 + $0x208] sm:$0xff]  ;;  %v11157_v26 = vor.u32 %v15286_v35, %v15284_v50  ;;  %v5263_v40 = vunpack.c.l.b16 %v15302_v27  ;;  %v13292_v37 = vld [vmem:[%s17007_s3 + $0x100] sm:$0xff] }
 0x29d   : > { %v5411_v46 = vunpack.c.l.b16 %v5318_v22  ;;  %v3556_v33 = vadd.f32 %v15002_v56, %v3537_v61  ;;  %v5413_v0 = vunpack.c.h.b16 %v5318_v22  ;;  %5877 = vst [vmem:[#allocation5 + $0x54] sm:$0xff] %v5645_v52  ;;  %v11149_v2 = vor.u32 %v15290_v25, %v15288_v42  ;;  %5017 = vmatpush.bf16.msra.mxu0 %v13198_v31  ;;  %7220 = vmatpush.bf16.msra.mxu2 %v13285_v19  ;;  %v13186_v52 = vld [vmem:[#allocation4 + $0x1a0] sm:$0xf0]  ;;  %v11168_v25 = vld [vmem:[#allocation4 + $0x170] sm:$0xf] }
 0x29e   : > { %v11153_v12 = vor.u32 %v15295_v47, %v15297_v44  ;;  %v5375_v41 = vsel %vm609_vm4, %v15249_v29, %v5374_v11  ;;  %5067 = vmatpush.bf16.msra.mxu1 %v13205_v63  ;;  %7270 = vmatpush.bf16.msra.mxu3 %v13292_v37  ;;  %v13284_v11 = vld [vmem:[%s17007_s3 + $0xc0] sm:$0xff]  ;;  %v5206_v37 = vld [vmem:[#allocation3 + $0x50] sm:$0x8]  ;;  %v13091_v47 = vld [vmem:[#allocation4 + $0x178] sm:$0xf0] }
 0x29f   : > { %v15313_v30 = vpack.c.b16 %v5411_v46, %v5261_v55  ;;  %v3572_v8 = vmax.f32 %v3556_v33, 0.0  ;;  %v15318_v17 = vpop.f32.mrf.mxu3  ;;  %v5455_v39 = vpack.c.b16 %v5411_v46, %v5259_v59  ;;  %v5457_v53 = vpack.c.b16 %v5413_v0, %v5260_v4  ;;  %v13197_v59 = vld [vmem:[%s17005_s1 + $0x1c8] sm:$0xff] }
 0x2a0   : > { %v3514_v55 = vpop.f32.mrf.mxu0  ;;  %v4080_v49 = vpop.f32.mrf.mxu1  ;;  %v5404_v4 = vunpack.c.h.b16 %v15249_v29  ;;  %v5444_v29 = vpack.c.b16 %v5402_v43, %v5402_v43  ;;  %v5405_v33 = vunpack.c.l.b16 %v5375_v41  ;;  %v11401_v41 = vor.u32 %v13186_v52, %v11400_v6 }
 0x2a1   : > { %v3588_v24 = vpack.c.bf16 %v3572_v8, %v3572_v8  ;;  %v3515_v60 = vadd.f32 %v3514_v55, %v14962_v45  ;;  %v4129_v48 = vpop.f32.mrf.mxu2  ;;  %v5656_v22 = vshrl.u32 %v5455_v39, 16  ;;  %v5661_v45 = vshrl.u32 %v5457_v53, 16  ;;  %5018 = vmatpush.bf16.msra.mxu0 %v13197_v59  ;;  %7221 = vmatpush.bf16.msra.mxu2 %v13284_v11 }
 0x2a2   : > { %v15339_v32 = vld [vmem:[#allocation3 + $0x58] sm:$0xf]  ;;  %v4130_v38 = vadd.f32 %v4129_v48, %v4080_v49  ;;  %v5683_v35 = vshrl.u32 %v15313_v30, 16  ;;  %v5664_v34 = vshll.u32 %v5457_v53, 16  ;;  %v5446_v8 = vpack.c.b16 %v5404_v4, %v5404_v4 }
 0x2a3   : > { %v5264_v61 = vunpack.c.l.b16 %v15339_v32  ;;  %3605 = vst [vmem:[#allocation3 + $0x64] sm:$0xf] %v3588_v24  ;;  %v3538_v50 = vadd.f32 %v3515_v60, %v14964_v57  ;;  %v5663_v3 = vrot.slane %v5661_v45, 7  ;;  %v5686_v63 = vshll.u32 %v15313_v30, 16  ;;  %v5218_v24 = vld [vmem:[#allocation3 + $0x3c] sm:$0x1] }
 0x2a4   : > { %v15351_v46 = vadd.f32 %v15276_v5, %v4130_v38  ;;  %v5685_v43 = vrot.slane %v5683_v35, 7  ;;  %v11514_v5 = vrot.slane %v5656_v22, 11  ;;  %v5448_v49 = vpack.c.b16 %v5405_v33, %v5405_v33  ;;  %v13196_v30 = vld [vmem:[%s17005_s1 + $0x1c0] sm:$0xff] }
 0x2a5   : > { %v15357_v0 = vpack.c.b16 %v5264_v61, %v5263_v40  ;;  %v3557_v57 = vadd.f32 %v15002_v56, %v3538_v50  ;;  %v5666_v31 = vor.u32 %v5664_v34, %v5663_v3  ;;  %v5681_v19 = vrot.slane %v5663_v3, 4  ;;  %5019 = vmatpush.bf16.msra.mxu0 %v13196_v30 }
 0x2a6   : > { %4599 = vmatmul.bf16.gmra.mxu2 %v11157_v26  ;;  %v13204_v26 = vld [vmem:[%s17005_s1 + $0x200] sm:$0xff]  ;;  %v5688_v38 = vor.u32 %v5686_v63, %v5685_v43  ;;  %v5581_v22 = vshrl.u32 %v5444_v29, 16  ;;  %v5354_v6 = vunpack.c.l.b16 %v5218_v24  ;;  %v5604_v29 = vshrl.u32 %v5448_v49, 16 }
 0x2a7   : > { %v5320_v39 = vshrl.u32 %v15357_v0, 16  ;;  %v5323_v53 = vshll.u32 %v15357_v0, 16  ;;  %v3573_v56 = vmax.f32 %v3557_v57, 0.0  ;;  %v15366_v55 = vpop.f32.mrf.mxu3  ;;  %v5667_v4 = vsel %vm14038_vm3, %v11514_v5, %v5666_v31  ;;  %5068 = vmatpush.bf16.msra.mxu1 %v13204_v26 }
 0x2a8   : > { %v3517_v60 = vpop.f32.mrf.mxu0  ;;  %v4083_v48 = vpop.f32.mrf.mxu1  ;;  %5879 = vst [vmem:[#allocation5 + $0x60] sm:$0xff] %v5667_v4  ;;  %v5689_v33 = vsel %vm14038_vm3, %v5681_v19, %v5688_v38  ;;  %v5586_v57 = vshrl.u32 %v5446_v8, 16  ;;  %v11511_v5 = vrot.slane %v5581_v22, 11  ;;  %v5589_v19 = vshll.u32 %v5446_v8, 16  ;;  %v11160_v38 = vld [vmem:[#allocation4 + $0x168] sm:$0xf] }
 0x2a9   : > { %v5322_v45 = vrot.slane %v5320_v39, 4  ;;  %v5325_v50 = vrot.slane %v5323_v53, 5  ;;  %v3589_v35 = vpack.c.bf16 %v3573_v56, %v3573_v56  ;;  %v3518_v59 = vadd.f32 %v3517_v60, %v14970_v18  ;;  %v4132_v3 = vpop.f32.mrf.mxu2  ;;  %5881 = vst [vmem:[#allocation5 + $0x6c] sm:$0xff] %v5689_v33  ;;  %v11162_v33 = vld [vmem:[#allocation4 + $0x174] sm:$0xf0] }
 0x2aa   : > { %v4133_v34 = vadd.f32 %v4132_v3, %v4083_v48  ;;  %v5262_v18 = vunpack.c.l.b16 %v5206_v37  ;;  %v5588_v31 = vrot.slane %v5586_v57, 7  ;;  %v5607_v53 = vshll.u32 %v5448_v49, 16  ;;  %v13090_v37 = vld [vmem:[#allocation4 + $0x170] sm:$0xf0] }
 0x2ab   : > { %v5326_v52 = vor.u32 %v5325_v50, %v5322_v45  ;;  %3606 = vst [vmem:[#allocation3 + $0x68] sm:$0xf] %v3589_v35  ;;  %v3539_v11 = vadd.f32 %v3518_v59, %v14972_v13  ;;  %4501 = vmatmul.bf16.gmra.mxu0 %v11149_v2  ;;  %4550 = vmatmul.bf16.gmra.mxu1 %v11153_v12  ;;  %v15392_v13 = vld [vmem:[%s17006_s2] ss:$0 sm:$0xff]  ;;  %v5606_v2 = vrot.slane %v5604_v29, 7  ;;  %v5376_v56 = vrot.slane %v15177_v1, 5 }
 0x2ac   : > { %5006 = vmatmul.bf16.gmra.mxu3 %v11401_v41  ;;  %v15387_v43 = vadd.f32 %v15318_v17, %v4133_v34  ;;  %v5591_v12 = vor.u32 %v5589_v19, %v5588_v31  ;;  %v5602_v39 = vrot.slane %v5588_v31, 4  ;;  %v5362_v17 = vpack.c.b16 %v5354_v6, %v5354_v6  ;;  %v15400_v41 = vld [vmem:[#allocation3 + $0x64] sm:$0xf]  ;;  %v13089_v35 = vld [vmem:[#allocation4 + $0x16c] sm:$0xf] }
 0x2ad   : > { %v5416_v63 = vunpack.c.l.b16 %v5326_v52  ;;  %v3558_v42 = vadd.f32 %v15392_v13, %v3539_v11  ;;  %v5418_v44 = vunpack.c.h.b16 %v5326_v52  ;;  %v11169_v4 = vor.u32 %v13091_v47, %v11168_v25 }
 0x2ae   : > { %v5592_v49 = vsel %vm14038_vm3, %v11511_v5, %v5591_v12  ;;  %v5609_v22 = vor.u32 %v5607_v53, %v5606_v2  ;;  %v5377_v27 = vrot.slane %v5362_v17, 5  ;;  %v5266_v52 = vunpack.c.l.b16 %v15400_v41  ;;  %v11594_v17 = vld [vmem:[#allocation5 + $0x24] sm:$0xf0] }
 0x2af   : > { %v3574_v24 = vmax.f32 %v3558_v42, 0.0  ;;  %v15396_v8 = vpop.f32.mrf.mxu3  ;;  %v5461_v60 = vpack.c.b16 %v5416_v63, %v5262_v18  ;;  %v5463_v48 = vpack.c.b16 %v5418_v44, %v5263_v40  ;;  %5872 = vst [vmem:[#allocation5 + $0x38] sm:$0xf] %v5592_v49  ;;  %v5465_v40 = vpack.c.b16 %v5416_v63, %v5264_v61 }
 0x2b0   : > { %v3519_v26 = vpop.f32.mrf.mxu0  ;;  %v4085_v30 = vpop.f32.mrf.mxu1  ;;  %v5610_v6 = vsel %vm14038_vm3, %v5602_v39, %v5609_v22  ;;  %v11161_v18 = vor.u32 %v13090_v37, %v11160_v38  ;;  %v5407_v61 = vunpack.c.l.b16 %v5376_v56  ;;  %v5409_v5 = vunpack.c.h.b16 %v5376_v56  ;;  %v5209_v38 = vld [vmem:[#allocation3 + $0x60] sm:$0x8] }
 0x2b1   : > { %v3590_v45 = vpack.c.bf16 %v3574_v24, %v3574_v24  ;;  %v3520_v1 = vadd.f32 %v3519_v26, %v14975_v15  ;;  %v4134_v50 = vpop.f32.mrf.mxu2  ;;  %v5705_v59 = vshrl.u32 %v5463_v48, 16  ;;  %v5700_v57 = vshrl.u32 %v5461_v60, 16  ;;  %5874 = vst [vmem:[#allocation5 + $0x44] sm:$0xf] %v5610_v6 }
 0x2b2   : > { %v15407_v3 = vld [vmem:[#allocation3 + $0x68] sm:$0xf]  ;;  %v4135_v34 = vadd.f32 %v4134_v50, %v4085_v30  ;;  %v11165_v63 = vor.u32 %v13089_v35, %v11162_v33  ;;  %v15425_v42 = vsel %vm609_vm4, %v5376_v56, %v5377_v27  ;;  %v5727_v44 = vshrl.u32 %v5465_v40, 16 }
 0x2b3   : > { %v5267_v15 = vunpack.c.l.b16 %v15407_v3  ;;  %3607 = vst [vmem:[#allocation3 + $0x74] sm:$0xf] %v3590_v45  ;;  %v3540_v11 = vadd.f32 %v3520_v1, %v14977_v62  ;;  %v5707_v29 = vrot.slane %v5705_v59, 7  ;;  %v13260_v62 = vld [vmem:[#allocation5 + $0x1c] sm:$0xf]  ;;  %v11516_v25 = vrot.slane %v5700_v57, 11 }
 0x2b4   : > { %v15415_v32 = vadd.f32 %v15366_v55, %v4135_v34  ;;  %v5708_v55 = vshll.u32 %v5463_v48, 16  ;;  %v5730_v24 = vshll.u32 %v5465_v40, 16  ;;  %v5729_v56 = vrot.slane %v5727_v44, 7  ;;  %v15437_v33 = vld [vmem:[#allocation5 + $0x18] sm:$0xf]  ;;  %v13306_v3 = vld [vmem:[%s17007_s3 + $0x170] sm:$0xff] }
 0x2b5   : > { %v15421_v31 = vpack.c.b16 %v5267_v15, %v5266_v52  ;;  %v3559_v19 = vadd.f32 %v15392_v13, %v3540_v11  ;;  %v5725_v47 = vrot.slane %v5707_v29, 4  ;;  %v5452_v37 = vpack.c.b16 %v5409_v5, %v5409_v5  ;;  %v15439_v57 = vld [vmem:[#allocation5 + $0x20] sm:$0xf0]  ;;  %v15443_v11 = vld [vmem:[#allocation5 + $0x3c] sm:$0xf0] }
 0x2b6   : > { %4604 = vmatmul.bf16.gmra.mxu2 %v11169_v4  ;;  %v5710_v30 = vor.u32 %v5708_v55, %v5707_v29  ;;  %v15431_v4 = vpack.c.b16 %v5407_v61, %v5407_v61  ;;  %v11597_v35 = vor.u32 %v13260_v62, %v11594_v17  ;;  %v5732_v27 = vor.u32 %v5730_v24, %v5729_v56  ;;  %v15454_v62 = vld [vmem:[#allocation4 + $0xfc] sm:$0xf0]  ;;  %v13251_v24 = vld [vmem:[%s17007_s3 + $0x78] sm:$0xff] }
 0x2b7   : > { %v5328_v2 = vshrl.u32 %v15421_v31, 16  ;;  %v5331_v12 = vshll.u32 %v15421_v31, 16  ;;  %v3575_v39 = vmax.f32 %v3559_v19, 0.0  ;;  %v15429_v53 = vpop.f32.mrf.mxu3  ;;  %v5265_v6 = vunpack.c.l.b16 %v5209_v38  ;;  %7682 = vmatpush.bf16.msrb.mxu2 %v13251_v24 }
 0x2b8   : > { %v3522_v60 = vpop.f32.mrf.mxu0  ;;  %v4088_v26 = vpop.f32.mrf.mxu1  ;;  %v5711_v59 = vsel %vm14038_vm3, %v11516_v25, %v5710_v30  ;;  %v5733_v29 = vsel %vm14038_vm3, %v5725_v47, %v5732_v27  ;;  %v5625_v55 = vshrl.u32 %v15431_v4, 16  ;;  %v15500_v27 = vld [vmem:[#allocation3 + $0x70] sm:$0x8] }
 0x2b9   : > { %v5330_v48 = vrot.slane %v5328_v2, 4  ;;  %v5333_v49 = vrot.slane %v5331_v12, 5  ;;  %v3591_v22 = vpack.c.bf16 %v3575_v39, %v3575_v39  ;;  %v3523_v45 = vadd.f32 %v3522_v60, %v14980_v36  ;;  %v4137_v1 = vpop.f32.mrf.mxu2  ;;  %v15441_v36 = vld [vmem:[#allocation5 + $0x34] sm:$0xf]  ;;  %5883 = vst [vmem:[#allocation5 + $0x78] sm:$0xff] %v5711_v59  ;;  %v13259_v60 = vld [vmem:[%s17007_s3 + $0xb8] sm:$0xff] }
 0x2ba   : > { %v4138_v50 = vadd.f32 %v4137_v1, %v4088_v26  ;;  %5885 = vst [vmem:[#allocation5 + $0x84] sm:$0xff] %v5733_v29  ;;  %v15457_v44 = vld [vmem:[#allocation3 + $0x74] sm:$0xf]  ;;  %v5219_v2 = vld [vmem:[#allocation3 + $0x4c] sm:$0x1]  ;;  %v15464_v12 = vrot.slane %v15262_v14, 5  ;;  %7731 = vmatpush.bf16.msrb.mxu3 %v13259_v60 }
 0x2bb   : > { %v5334_v40 = vor.u32 %v5333_v49, %v5330_v48  ;;  %3608 = vst [vmem:[#allocation3 + $0x78] sm:$0xf] %v3591_v22  ;;  %v3541_v34 = vadd.f32 %v3523_v45, %v14982_v21  ;;  %4506 = vmatmul.bf16.gmra.mxu0 %v11161_v18  ;;  %4555 = vmatmul.bf16.gmra.mxu1 %v11165_v63  ;;  %v5410_v21 = vunpack.c.l.b16 %v15425_v42  ;;  %v5630_v18 = vshrl.u32 %v5452_v37, 16  ;;  %v15452_v63 = vld [vmem:[#allocation4 + $0xf4] sm:$0xf]  ;;  %v13243_v26 = vld [vmem:[%s17007_s3 + $0x38] sm:$0xff] }
 0x2bc   : > { %7271 = vmatmul.bf16.vlgmr.msra.gmra.mxu3 %v11597_v35  ;;  %v15448_v61 = vadd.f32 %v15396_v8, %v4138_v50  ;;  %v11593_v8 = vor.u32 %v15439_v57, %v15437_v33  ;;  %v5633_v42 = vshll.u32 %v5452_v37, 16  ;;  %v11321_v4 = vor.u32 %v15452_v63, %v15454_v62  ;;  %v15481_v37 = vld [vmem:[#allocation4 + $0xf8] sm:$0xf]  ;;  %v15483_v48 = vld [vmem:[#allocation4 + $0x100] sm:$0xf0]  ;;  %v13250_v35 = vld [vmem:[%s17007_s3 + $0x70] sm:$0xff]  ;;  %7633 = vmatpush.bf16.msrb.mxu1 %v13243_v26 }
 0x2bd   : > { %v5421_v5 = vunpack.c.l.b16 %v5334_v40  ;;  %v3560_v19 = vadd.f32 %v15392_v13, %v3541_v34  ;;  %v5423_v25 = vunpack.c.h.b16 %v5334_v40  ;;  %v15461_v47 = vrot.slane %v5630_v18, 7  ;;  %v13307_v49 = vld [vmem:[%s17007_s3 + $0x178] sm:$0xff]  ;;  %v13258_v59 = vld [vmem:[%s17007_s3 + $0xb0] sm:$0xff]  ;;  %7683 = vmatpush.bf16.msrb.mxu2 %v13250_v35 }
 0x2be   : > { %v11609_v22 = vor.u32 %v15441_v36, %v15443_v11  ;;  %v15490_v45 = vpack.c.b16 %v5410_v21, %v5410_v21  ;;  %v11513_v40 = vrot.slane %v5625_v55, 11  ;;  %v5355_v34 = vunpack.c.l.b16 %v5219_v2  ;;  %7312 = vmatpush.bf16.msrb.mxu0 %v13307_v49  ;;  %v13242_v29 = vld [vmem:[%s17007_s3 + $0x30] sm:$0xff]  ;;  %7732 = vmatpush.bf16.msrb.mxu3 %v13258_v59 }
 0x2bf   : > { %v3576_v39 = vmax.f32 %v3560_v19, 0.0  ;;  %v15466_v17 = vpop.f32.mrf.mxu3  ;;  %v5467_v30 = vpack.c.b16 %v5421_v5, %v5265_v6  ;;  %v5469_v14 = vpack.c.b16 %v5423_v25, %v5266_v52  ;;  %v5635_v41 = vor.u32 %v5633_v42, %v15461_v47 }
 0x2c0   : > { %v3524_v56 = vpop.f32.mrf.mxu0  ;;  %v4090_v38 = vpop.f32.mrf.mxu1  ;;  %v5471_v33 = vpack.c.b16 %v5421_v5, %v5267_v15  ;;  %v11325_v25 = vor.u32 %v15483_v48, %v15481_v37  ;;  %v5268_v55 = vunpack.c.l.b16 %v15500_v27  ;;  %v5646_v2 = vrot.slane %v15461_v47, 4  ;;  %7634 = vmatpush.bf16.msrb.mxu1 %v13242_v29 }
 0x2c1   : > { %v3592_v52 = vpack.c.bf16 %v3576_v39, %v3576_v39  ;;  %v3525_v1 = vadd.f32 %v3524_v56, %v14994_v16  ;;  %v4139_v50 = vpop.f32.mrf.mxu2  ;;  %v5269_v16 = vunpack.c.l.b16 %v15457_v44  ;;  %v5744_v21 = vshrl.u32 %v5467_v30, 16 }
 0x2c2   : > { %v15505_v57 = vld [vmem:[#allocation3 + $0x78] sm:$0xf]  ;;  %v4140_v6 = vadd.f32 %v4139_v50, %v4090_v38  ;;  %v5749_v15 = vshrl.u32 %v5469_v14, 16  ;;  %v5636_v5 = vsel %vm14038_vm3, %v11513_v40, %v5635_v41  ;;  %v5648_v24 = vshrl.u32 %v15490_v45, 16  ;;  %7313 = vmatpush.bf16.msrb.mxu0 %v13306_v3 }
 0x2c3   : > { %v5270_v18 = vunpack.c.l.b16 %v15505_v57  ;;  %3609 = vst [vmem:[#allocation3 + $0x84] sm:$0xf] %v3592_v52  ;;  %v3542_v19 = vadd.f32 %v3525_v1, %v14996_v28  ;;  %v5363_v60 = vpack.c.b16 %v5355_v34, %v5355_v34  ;;  %v5771_v30 = vshrl.u32 %v5471_v33, 16 }
 0x2c4   : > { %v15521_v42 = vadd.f32 %v15429_v53, %v4140_v6  ;;  %v5751_v26 = vrot.slane %v5749_v15, 7  ;;  %v5752_v53 = vshll.u32 %v5469_v14, 16  ;;  %5876 = vst [vmem:[#allocation5 + $0x50] sm:$0xf] %v5636_v5  ;;  %v5414_v56 = vunpack.c.h.b16 %v15464_v12 }
 0x2c5   : > { %v15528_v28 = vpack.c.b16 %v5270_v18, %v5269_v16  ;;  %v3561_v39 = vadd.f32 %v15392_v13, %v3542_v19  ;;  %v11518_v13 = vrot.slane %v5744_v21, 11  ;;  %v5773_v50 = vrot.slane %v5771_v30, 7  ;;  %v15560_v30 = vld [vmem:[#allocation5 + $0x4c] sm:$0xf] }
 0x2c6   : > { %7222 = vmatmul.bf16.vlgmr.msra.gmra.mxu2 %v11593_v8  ;;  %v5754_v1 = vor.u32 %v5752_v53, %v5751_v26  ;;  %v5769_v8 = vrot.slane %v5751_v26, 4  ;;  %v5774_v35 = vshll.u32 %v5471_v33, 16  ;;  %v5650_v15 = vrot.slane %v5648_v24, 7  ;;  %v13257_v33 = vld [vmem:[%s17007_s3 + $0xa8] sm:$0xff] }
 0x2c7   : > { %v5336_v38 = vshrl.u32 %v15528_v28, 16  ;;  %v5339_v37 = vshll.u32 %v15528_v28, 16  ;;  %v3577_v48 = vmax.f32 %v3561_v39, 0.0  ;;  %v15535_v49 = vpop.f32.mrf.mxu3  ;;  %v5651_v3 = vshll.u32 %v15490_v45, 16  ;;  %v11604_v45 = vld [vmem:[#allocation5 + $0x30] sm:$0xf]  ;;  %7733 = vmatpush.bf16.msrb.mxu3 %v13257_v33 }
 0x2c8   : > { %v4472_v41 = vpop.f32.mrf.mxu0  ;;  %v4521_v52 = vpop.f32.mrf.mxu1  ;;  %v5755_v29 = vsel %vm14038_vm3, %v11518_v13, %v5754_v1  ;;  %v5776_v19 = vor.u32 %v5774_v35, %v5773_v50  ;;  %v5380_v39 = vrot.slane %v5363_v60, 5  ;;  %v5412_v24 = vunpack.c.l.b16 %v15464_v12  ;;  %v13264_v26 = vld [vmem:[#allocation5 + $0x38] sm:$0xf0]  ;;  %v15562_v60 = vld [vmem:[#allocation5 + $0x54] sm:$0xf0] }
 0x2c9   : > { %v5338_v14 = vrot.slane %v5336_v38, 4  ;;  %v5341_v59 = vrot.slane %v5339_v37, 5  ;;  %v3593_v40 = vpack.c.bf16 %v3577_v48, %v3577_v48  ;;  %v4473_v34 = vadd.f32 %v4472_v41, %v15005_v58  ;;  %v4570_v6 = vpop.f32.mrf.mxu2  ;;  %v13249_v58 = vld [vmem:[%s17007_s3 + $0x68] sm:$0xff]  ;;  %5887 = vst [vmem:[#allocation5 + $0x90] sm:$0xff] %v5755_v29  ;;  %v15568_v38 = vld [vmem:[#allocation4 + $0x110] sm:$0xf] }
 0x2ca   : > { %v5777_v63 = vsel %vm14038_vm3, %v5769_v8, %v5776_v19  ;;  %v5653_v62 = vor.u32 %v5651_v3, %v5650_v15  ;;  %v15558_v53 = vld [vmem:[#allocation4 + $0x10c] sm:$0xf]  ;;  %7684 = vmatpush.bf16.msrb.mxu2 %v13249_v58  ;;  %v5381_v11 = vsel %vm609_vm4, %v15464_v12, %v5380_v39  ;;  %v5458_v41 = vpack.c.b16 %v5414_v56, %v5414_v56  ;;  %v15579_v12 = vld [vmem:[#allocation3 + $0x84] sm:$0xf]  ;;  %v15583_v8 = vld [vmem:[#allocation4 + $0x118] sm:$0xf0] }
 0x2cb   : > { %v5342_v21 = vor.u32 %v5341_v59, %v5338_v14  ;;  %3610 = vst [vmem:[#allocation3 + $0x88] sm:$0xf] %v3593_v40  ;;  %v4522_v5 = vadd.f32 %v4521_v52, %v4473_v34  ;;  %5020 = vmatmul.bf16.vlgmr.msra.gmra.mxu0 %v11321_v4  ;;  %5069 = vmatmul.bf16.vlgmr.msra.gmra.mxu1 %v11325_v25  ;;  %v13241_v37 = vld [vmem:[%s17007_s3 + $0x28] sm:$0xff]  ;;  %v5415_v13 = vunpack.c.l.b16 %v5381_v11  ;;  %v5220_v40 = vld [vmem:[#allocation3 + $0x5c] sm:$0x1] }
 0x2cc   : > { %7276 = vmatmul.bf16.gmra.mxu3 %v11609_v22  ;;  %v15566_v22 = vld [vmem:[#allocation4 + $0x114] sm:$0xf0]  ;;  %5889 = vst [vmem:[#allocation5 + $0x9c] sm:$0xff] %v5777_v63  ;;  %v5654_v48 = vsel %vm14038_vm3, %v5646_v2, %v5653_v62  ;;  %v5456_v35 = vpack.c.b16 %v5412_v24, %v5412_v24  ;;  %v15590_v2 = vrot.slane %v15357_v0, 5  ;;  %v11621_v14 = vor.u32 %v15560_v30, %v15562_v60 }
 0x2cd   : > { %v5426_v4 = vunpack.c.l.b16 %v5342_v21  ;;  %v15556_v25 = vadd.f32 %v4570_v6, %v4522_v5  ;;  %v5428_v36 = vunpack.c.h.b16 %v5342_v21  ;;  %5878 = vst [vmem:[#allocation5 + $0x5c] sm:$0xf] %v5654_v48  ;;  %7635 = vmatpush.bf16.msrb.mxu1 %v13241_v37  ;;  %v5674_v59 = vshrl.u32 %v5458_v41, 16 }
 0x2ce   : > { %v11333_v44 = vor.u32 %v15558_v53, %v15566_v22  ;;  %v5953_v0 = vunpack.c.l.b16 %v15579_v12  ;;  %v11337_v29 = vor.u32 %v15583_v8, %v15568_v38  ;;  %v5460_v15 = vpack.c.b16 %v5415_v13, %v5415_v13 }
 0x2cf   : > { %v5477_v52 = vpack.c.b16 %v5426_v4, %v5270_v18  ;;  %v15581_v1 = vpop.f32.mrf.mxu3  ;;  %v5473_v50 = vpack.c.b16 %v5426_v4, %v5268_v55  ;;  %v5475_v47 = vpack.c.b16 %v5428_v36, %v5269_v16  ;;  %v11605_v18 = vor.u32 %v13264_v26, %v11604_v45  ;;  %v15606_v45 = vld [vmem:[#allocation3 + $0x80] sm:$0x8] }
 0x2d0   : > { %v4474_v56 = vpop.f32.mrf.mxu0  ;;  %v4523_v57 = vpop.f32.mrf.mxu1  ;;  %v5669_v5 = vshrl.u32 %v5456_v35, 16  ;;  %v5356_v58 = vunpack.c.l.b16 %v5220_v40  ;;  %v5676_v26 = vrot.slane %v5674_v59, 7  ;;  %v5677_v22 = vshll.u32 %v5458_v41, 16 }
 0x2d1   : > { %v4475_v27 = vadd.f32 %v4474_v56, %v15010_v10  ;;  %v4572_v55 = vpop.f32.mrf.mxu2  ;;  %v5788_v16 = vshrl.u32 %v5473_v50, 16  ;;  %v5793_v34 = vshrl.u32 %v5475_v47, 16  ;;  %v5815_v19 = vshrl.u32 %v5477_v52, 16  ;;  %v13305_v10 = vld [vmem:[%s17007_s3 + $0x168] sm:$0xff] }
 0x2d2   : > { %v15598_v6 = vld [vmem:[#allocation3 + $0x88] sm:$0xf]  ;;  %v5796_v39 = vshll.u32 %v5475_v47, 16  ;;  %7314 = vmatpush.bf16.msrb.mxu0 %v13305_v10  ;;  %v5818_v53 = vshll.u32 %v5477_v52, 16  ;;  %v5692_v38 = vshrl.u32 %v5460_v15, 16  ;;  %v5952_v50 = vunpack.c.l.b16 %v15606_v45 }
 0x2d3   : > { %v5954_v3 = vunpack.c.l.b16 %v15598_v6  ;;  %v4524_v21 = vadd.f32 %v4523_v57, %v4475_v27  ;;  %v5795_v33 = vrot.slane %v5793_v34, 7  ;;  %v5817_v24 = vrot.slane %v5815_v19, 7  ;;  %v5221_v10 = vld [vmem:[#allocation3 + $0x6c] sm:$0x1] }
 0x2d4   : > { %v11520_v4 = vrot.slane %v5788_v16, 11  ;;  %v11515_v52 = vrot.slane %v5669_v5, 11  ;;  %v5679_v57 = vor.u32 %v5677_v22, %v5676_v26  ;;  %v5694_v34 = vrot.slane %v5692_v38, 7 }
 0x2d5   : > { %v15612_v63 = vpack.c.b16 %v5954_v3, %v5953_v0  ;;  %v15614_v62 = vadd.f32 %v4572_v55, %v4524_v21  ;;  %v5798_v36 = vor.u32 %v5796_v39, %v5795_v33  ;;  %v5813_v11 = vrot.slane %v5795_v33, 4  ;;  %v13256_v39 = vld [vmem:[%s17007_s3 + $0xa0] sm:$0xff] }
 0x2d6   : > { %7227 = vmatmul.bf16.gmra.mxu2 %v11605_v18  ;;  %v5820_v8 = vor.u32 %v5818_v53, %v5817_v24  ;;  %v5690_v18 = vrot.slane %v5676_v26, 4  ;;  %v5680_v16 = vsel %vm14038_vm3, %v11515_v52, %v5679_v57  ;;  %v5695_v19 = vshll.u32 %v5460_v15, 16  ;;  %v11616_v26 = vld [vmem:[#allocation5 + $0x48] sm:$0xf]  ;;  %7734 = vmatpush.bf16.msrb.mxu3 %v13256_v39 }
 0x2d7   : > { %v5985_v37 = vshrl.u32 %v15612_v63, 16  ;;  %v5988_v48 = vshll.u32 %v15612_v63, 16  ;;  %v15618_v13 = vpop.f32.mrf.mxu3  ;;  %v5799_v56 = vsel %vm14038_vm3, %v11520_v4, %v5798_v36  ;;  %v5364_v21 = vpack.c.b16 %v5356_v58, %v5356_v58  ;;  %5880 = vst [vmem:[#allocation5 + $0x68] sm:$0xf] %v5680_v16  ;;  %v13267_v4 = vld [vmem:[#allocation5 + $0x50] sm:$0xf0] }
 0x2d8   : > { %v4477_v47 = vpop.f32.mrf.mxu0  ;;  %v4526_v35 = vpop.f32.mrf.mxu1  ;;  %v5821_v55 = vsel %vm14038_vm3, %v5813_v11, %v5820_v8  ;;  %5891 = vst [vmem:[#allocation5 + $0xa8] sm:$0xff] %v5799_v56  ;;  %v5417_v24 = vunpack.c.l.b16 %v15590_v2  ;;  %v5419_v45 = vunpack.c.h.b16 %v15590_v2  ;;  %v5697_v15 = vor.u32 %v5695_v19, %v5694_v34  ;;  %v13240_v11 = vld [vmem:[%s17007_s3 + $0x20] sm:$0xff]  ;;  %v15654_v8 = vld [vmem:[#allocation4 + $0x12c] sm:$0xf0]  ;;  %v13172_v34 = vld [vmem:[#allocation4 + $0x130] sm:$0xf0] }
 0x2d9   : > { %v5987_v59 = vrot.slane %v5985_v37, 4  ;;  %v5990_v41 = vrot.slane %v5988_v48, 5  ;;  %v4478_v40 = vadd.f32 %v4477_v47, %v15027_v9  ;;  %v4575_v27 = vpop.f32.mrf.mxu2  ;;  %5893 = vst [vmem:[#allocation5 + $0xb4] sm:$0xff] %v5821_v55  ;;  %v13248_v9 = vld [vmem:[%s17007_s3 + $0x60] sm:$0xff]  ;;  %v5357_v36 = vunpack.c.l.b16 %v5221_v10  ;;  %7636 = vmatpush.bf16.msrb.mxu1 %v13240_v11 }
 0x2da   : > { %7685 = vmatpush.bf16.msrb.mxu2 %v13248_v9  ;;  %v5698_v22 = vsel %vm14038_vm3, %v5690_v18, %v5697_v15  ;;  %v5462_v60 = vpack.c.b16 %v5417_v24, %v5417_v24  ;;  %v15652_v48 = vld [vmem:[#allocation4 + $0x124] sm:$0xf]  ;;  %v15659_v56 = vrot.slane %v15421_v31, 5  ;;  %v11617_v57 = vor.u32 %v13267_v4, %v11616_v26  ;;  %v11630_v11 = vld [vmem:[#allocation5 + $0x6c] sm:$0xf0] }
 0x2db   : > { %v5991_v5 = vor.u32 %v5990_v41, %v5987_v59  ;;  %v4527_v33 = vadd.f32 %v4526_v35, %v4478_v40  ;;  %5025 = vmatmul.bf16.gmra.mxu0 %v11333_v44  ;;  %5074 = vmatmul.bf16.gmra.mxu1 %v11337_v29  ;;  %v5383_v44 = vrot.slane %v5364_v21, 5  ;;  %5882 = vst [vmem:[#allocation5 + $0x74] sm:$0xf] %v5698_v22  ;;  %v15662_v18 = vrot.slane %v15528_v28, 5  ;;  %v13304_v19 = vld [vmem:[%s17007_s3 + $0x160] sm:$0xff] }
 0x2dc   : > { %7281 = vmatmul.bf16.gmra.mxu3 %v11621_v14  ;;  %v5464_v14 = vpack.c.b16 %v5419_v45, %v5419_v45  ;;  %v11345_v12 = vor.u32 %v15652_v48, %v15654_v8  ;;  %v5365_v55 = vpack.c.b16 %v5357_v36, %v5357_v36  ;;  %7315 = vmatpush.bf16.msrb.mxu0 %v13304_v19  ;;  %v5222_v48 = vld [vmem:[#allocation3 + $0x7c] sm:$0x1] }
 0x2dd   : > { %v6096_v29 = vunpack.c.l.b16 %v5991_v5  ;;  %v15639_v58 = vadd.f32 %v4575_v27, %v4527_v33  ;;  %v6098_v53 = vunpack.c.h.b16 %v5991_v5  ;;  %v5384_v30 = vsel %vm609_vm4, %v15590_v2, %v5383_v44 }
 0x2de   : > { %v5420_v6 = vunpack.c.l.b16 %v5384_v30  ;;  %v5713_v27 = vshrl.u32 %v5462_v60, 16  ;;  %v5721_v15 = vshll.u32 %v5464_v14, 16 }
 0x2df   : > { %v6140_v38 = vpack.c.b16 %v6096_v29, %v5954_v3  ;;  %v15650_v37 = vpop.f32.mrf.mxu3  ;;  %v6136_v47 = vpack.c.b16 %v6096_v29, %v5952_v50  ;;  %v6138_v35 = vpack.c.b16 %v6098_v53, %v5953_v0  ;;  %v5718_v3 = vshrl.u32 %v5464_v14, 16  ;;  %v11348_v0 = vld [vmem:[#allocation4 + $0x128] sm:$0xf]  ;;  %v13269_v29 = vld [vmem:[#allocation5 + $0x64] sm:$0xf] }
 0x2e0   : > { %v4479_v2 = vpop.f32.mrf.mxu0  ;;  %v4528_v52 = vpop.f32.mrf.mxu1  ;;  %v5466_v33 = vpack.c.b16 %v5420_v6, %v5420_v6  ;;  %v11349_v44 = vor.u32 %v13172_v34, %v11348_v0  ;;  %v11517_v4 = vrot.slane %v5713_v27, 11 }
 0x2e1   : > { %v4480_v59 = vadd.f32 %v4479_v2, %v15052_v51  ;;  %v4577_v41 = vpop.f32.mrf.mxu2  ;;  %v6185_v50 = vshrl.u32 %v6136_v47, 16  ;;  %v6190_v40 = vshrl.u32 %v6138_v35, 16  ;;  %v6212_v31 = vshrl.u32 %v6140_v38, 16 }
 0x2e2   : > { %v6193_v10 = vshll.u32 %v6138_v35, 16  ;;  %v6215_v5 = vshll.u32 %v6140_v38, 16  ;;  %v5720_v9 = vrot.slane %v5718_v3, 7  ;;  %v5736_v53 = vshrl.u32 %v5466_v33, 16 }
 0x2e3   : > { %v4529_v16 = vadd.f32 %v4528_v52, %v4480_v59  ;;  %v11522_v28 = vrot.slane %v6185_v50, 11  ;;  %v6192_v21 = vrot.slane %v6190_v40, 7  ;;  %v6214_v51 = vrot.slane %v6212_v31, 7 }
 0x2e4   : > { %v5723_v30 = vor.u32 %v5721_v15, %v5720_v9  ;;  %v5734_v60 = vrot.slane %v5720_v9, 4  ;;  %v5422_v38 = vunpack.c.l.b16 %v15659_v56  ;;  %v5738_v35 = vrot.slane %v5736_v53, 7  ;;  %v13239_v9 = vld [vmem:[%s17007_s3 + $0x18] sm:$0xff] }
 0x2e5   : > { %v15670_v39 = vadd.f32 %v4577_v41, %v4529_v16  ;;  %v6195_v24 = vor.u32 %v6193_v10, %v6192_v21  ;;  %v6210_v45 = vrot.slane %v6192_v21, 4  ;;  %v6217_v26 = vor.u32 %v6215_v5, %v6214_v51  ;;  %v13255_v16 = vld [vmem:[%s17007_s3 + $0x98] sm:$0xff]  ;;  %v11628_v51 = vld [vmem:[#allocation5 + $0x60] sm:$0xf]  ;;  %7637 = vmatpush.bf16.msrb.mxu1 %v13239_v9 }
 0x2e6   : > { %7232 = vmatmul.bf16.gmra.mxu2 %v11617_v57  ;;  %v5739_v2 = vshll.u32 %v5466_v33, 16  ;;  %v5386_v52 = vrot.slane %v5365_v55, 5  ;;  %v17038_v57 = vld [vmem:[#allocation9_spill] sm:$0xff]  ;;  %v5724_v59 = vsel %vm14038_vm3, %v11517_v4, %v5723_v30  ;;  %v5424_v41 = vunpack.c.h.b16 %v15659_v56  ;;  %v13247_v55 = vld [vmem:[%s17007_s3 + $0x58] sm:$0xff]  ;;  %7735 = vmatpush.bf16.msrb.mxu3 %v13255_v16 }
 0x2e7   : > { %v15672_v36 = vpop.f32.mrf.mxu3  ;;  %v6196_v22 = vsel %vm14038_vm3, %v11522_v28, %v6195_v24  ;;  %v6218_v14 = vsel %vm14038_vm3, %v6210_v45, %v6217_v26  ;;  %v11633_v50 = vor.u32 %v13269_v29, %v11630_v11  ;;  %5884 = vst [vmem:[#allocation5 + $0x80] sm:$0xf] %v5724_v59  ;;  %v5358_v31 = vunpack.c.l.b16 %v5222_v48  ;;  %v13270_v5 = vld [vmem:[#allocation5 + $0x68] sm:$0xf0]  ;;  %7686 = vmatpush.bf16.msrb.mxu2 %v13247_v55 }
 0x2e8   : > { %v4482_v8 = vpop.f32.mrf.mxu0  ;;  %v4531_v47 = vpop.f32.mrf.mxu1  ;;  %6569 = vst [vmem:[#allocation5 + $0xc0] sm:$0xff] %v6196_v22  ;;  %v5741_v40 = vor.u32 %v5739_v2, %v5738_v35  ;;  %v5387_v0 = vsel %vm609_vm4, %v15659_v56, %v5386_v52  ;;  %v5468_v19 = vpack.c.b16 %v5422_v38, %v5422_v38  ;;  %v5470_v28 = vpack.c.b16 %v5424_v41, %v5424_v41 }
 0x2e9   : > { %v4483_v6 = vadd.f32 %v4482_v8, %v17038_v57  ;;  %v4580_v3 = vpop.f32.mrf.mxu2  ;;  %6571 = vst [vmem:[#allocation5 + $0xcc] sm:$0xff] %v6218_v14  ;;  %v5425_v34 = vunpack.c.l.b16 %v5387_v0  ;;  %v5427_v56 = vunpack.c.l.b16 %v15662_v18  ;;  %v5366_v24 = vpack.c.b16 %v5358_v31, %v5358_v31  ;;  %v13173_v8 = vld [vmem:[#allocation4 + $0x13c] sm:$0xf]  ;;  %v11360_v14 = vld [vmem:[#allocation4 + $0x140] sm:$0xf] }
 0x2ea   : > { %v5742_v21 = vsel %vm14038_vm3, %v5734_v60, %v5741_v40  ;;  %v5757_v29 = vshrl.u32 %v5468_v19, 16  ;;  %v5762_v26 = vshrl.u32 %v5470_v28, 16  ;;  %v15703_v4 = vrot.slane %v15612_v63, 5  ;;  %v17039_v60 = vld [vmem:[#allocation10_spill] sm:$0xff]  ;;  %v13303_v40 = vld [vmem:[%s17007_s3 + $0x158] sm:$0xff] }
 0x2eb   : > { %v4532_v27 = vadd.f32 %v4531_v47, %v4483_v6  ;;  %5030 = vmatmul.bf16.gmra.mxu0 %v11345_v12  ;;  %5079 = vmatmul.bf16.gmra.mxu1 %v11349_v44  ;;  %v5429_v12 = vunpack.c.h.b16 %v15662_v18  ;;  %v5472_v33 = vpack.c.b16 %v5425_v34, %v5425_v34  ;;  %5886 = vst [vmem:[#allocation5 + $0x8c] sm:$0xf] %v5742_v21  ;;  %v11354_v47 = vld [vmem:[#allocation4 + $0x144] sm:$0xf0]  ;;  %v5765_v2 = vshll.u32 %v5470_v28, 16 }
 0x2ec   : > { %7286 = vmatmul.bf16.gmra.mxu3 %v11633_v50  ;;  %v5474_v45 = vpack.c.b16 %v5427_v56, %v5427_v56  ;;  %v11629_v22 = vor.u32 %v13270_v5, %v11628_v51  ;;  %v5764_v35 = vrot.slane %v5762_v26, 7  ;;  %v5389_v6 = vrot.slane %v5366_v24, 5  ;;  %v5920_v63 = vld [vmem:[#allocation3 + $0x8c] sm:$0x1]  ;;  %7316 = vmatpush.bf16.msrb.mxu0 %v13303_v40 }
 0x2ed   : > { %v15695_v10 = vadd.f32 %v4580_v3, %v4532_v27  ;;  %v5476_v15 = vpack.c.b16 %v5429_v12, %v5429_v12  ;;  %v5780_v30 = vshrl.u32 %v5472_v33, 16  ;;  %v5783_v52 = vshll.u32 %v5472_v33, 16  ;;  %v13175_v50 = vld [vmem:[#allocation4 + $0x148] sm:$0xf0] }
 0x2ee   : > { %v5801_v3 = vshrl.u32 %v5474_v45, 16  ;;  %v11519_v0 = vrot.slane %v5757_v29, 11  ;;  %v5767_v31 = vor.u32 %v5765_v2, %v5764_v35  ;;  %v5778_v27 = vrot.slane %v5764_v35, 4  ;;  %v11642_v45 = vld [vmem:[#allocation5 + $0x84] sm:$0xf0] }
 0x2ef   : > { %v15700_v44 = vpop.f32.mrf.mxu3  ;;  %v5782_v57 = vrot.slane %v5780_v30, 7  ;;  %v5806_v59 = vshrl.u32 %v5476_v15, 16  ;;  %v5390_v16 = vsel %vm609_vm4, %v15662_v18, %v5389_v6  ;;  %v5809_v19 = vshll.u32 %v5476_v15, 16  ;;  %v13272_v18 = vld [vmem:[#allocation5 + $0x7c] sm:$0xf]  ;;  %v13246_v6 = vld [vmem:[%s17007_s3 + $0x50] sm:$0xff] }
 0x2f0   : > { %v4484_v53 = vpop.f32.mrf.mxu0  ;;  %v4533_v11 = vpop.f32.mrf.mxu1  ;;  %v5768_v21 = vsel %vm14038_vm3, %v11519_v0, %v5767_v31  ;;  %v5430_v56 = vunpack.c.l.b16 %v5390_v16  ;;  %v6056_v12 = vunpack.c.l.b16 %v5920_v63  ;;  %v11357_v51 = vor.u32 %v13173_v8, %v11354_v47  ;;  %7687 = vmatpush.bf16.msrb.mxu2 %v13246_v6 }
 0x2f1   : > { %v4485_v38 = vadd.f32 %v4484_v53, %v17039_v60  ;;  %v4582_v48 = vpop.f32.mrf.mxu2  ;;  %v5785_v55 = vor.u32 %v5783_v52, %v5782_v57  ;;  %v5808_v34 = vrot.slane %v5806_v59, 7  ;;  %v11361_v5 = vor.u32 %v13175_v50, %v11360_v14  ;;  %5888 = vst [vmem:[#allocation5 + $0x98] sm:$0xf] %v5768_v21  ;;  %v17040_v60 = vld [vmem:[#allocation12_spill] sm:$0xff] }
 0x2f2   : > { %v11521_v9 = vrot.slane %v5801_v3, 11  ;;  %v5478_v15 = vpack.c.b16 %v5430_v56, %v5430_v56  ;;  %v6064_v26 = vpack.c.b16 %v6056_v12, %v6056_v12  ;;  %v6097_v53 = vunpack.c.l.b16 %v15703_v4  ;;  %v13254_v3 = vld [vmem:[%s17007_s3 + $0x90] sm:$0xff] }
 0x2f3   : > { %v4534_v41 = vadd.f32 %v4533_v11, %v4485_v38  ;;  %v5786_v33 = vsel %vm14038_vm3, %v5778_v27, %v5785_v55  ;;  %v5811_v29 = vor.u32 %v5809_v19, %v5808_v34  ;;  %v11645_v14 = vor.u32 %v13272_v18, %v11642_v45  ;;  %7736 = vmatpush.bf16.msrb.mxu3 %v13254_v3  ;;  %v13238_v55 = vld [vmem:[%s17007_s3 + $0x10] sm:$0xff]  ;;  %v11640_v18 = vld [vmem:[#allocation5 + $0x78] sm:$0xf] }
 0x2f4   : > { %5890 = vst [vmem:[#allocation5 + $0xa4] sm:$0xf] %v5786_v33  ;;  %v5824_v47 = vshrl.u32 %v5478_v15, 16  ;;  %v6073_v35 = vrot.slane %v6064_v26, 5  ;;  %v6137_v2 = vpack.c.b16 %v6097_v53, %v6097_v53  ;;  %v5822_v59 = vrot.slane %v5808_v34, 4  ;;  %7638 = vmatpush.bf16.msrb.mxu1 %v13238_v55 }
 0x2f5   : > { %v15711_v28 = vadd.f32 %v4582_v48, %v4534_v41  ;;  %v5812_v8 = vsel %vm14038_vm3, %v11521_v9, %v5811_v29  ;;  %v5827_v41 = vshll.u32 %v5478_v15, 16  ;;  %v13273_v45 = vld [vmem:[#allocation5 + $0x80] sm:$0xf0] }
 0x2f6   : > { %7237 = vmatmul.bf16.gmra.mxu2 %v11629_v22  ;;  %v6099_v22 = vunpack.c.h.b16 %v15703_v4  ;;  %5892 = vst [vmem:[#allocation5 + $0xb0] sm:$0xf] %v5812_v8  ;;  %v5826_v63 = vrot.slane %v5824_v47, 7  ;;  %v6074_v50 = vsel %vm609_vm4, %v15703_v4, %v6073_v35  ;;  %v6198_v16 = vshrl.u32 %v6137_v2, 16  ;;  %v11366_v8 = vld [vmem:[#allocation4 + $0x15c] sm:$0xf0] }
 0x2f7   : > { %v15717_v24 = vpop.f32.mrf.mxu3  ;;  %v6100_v27 = vunpack.c.l.b16 %v6074_v50  ;;  %v11372_v47 = vld [vmem:[#allocation4 + $0x158] sm:$0xf] }
 0x2f8   : > { %v4487_v11 = vpop.f32.mrf.mxu0  ;;  %v4536_v30 = vpop.f32.mrf.mxu1  ;;  %v6139_v52 = vpack.c.b16 %v6099_v22, %v6099_v22  ;;  %v5829_v31 = vor.u32 %v5827_v41, %v5826_v63  ;;  %v11523_v29 = vrot.slane %v6198_v16, 11  ;;  %v11654_v63 = vld [vmem:[#allocation5 + $0x9c] sm:$0xf0] }
 0x2f9   : > { %v4488_v38 = vadd.f32 %v4487_v11, %v17040_v60  ;;  %v4585_v48 = vpop.f32.mrf.mxu2  ;;  %v6141_v21 = vpack.c.b16 %v6100_v27, %v6100_v27  ;;  %v13176_v11 = vld [vmem:[#allocation4 + $0x154] sm:$0xf] }
 0x2fa   : > { %v6203_v40 = vshrl.u32 %v6139_v52, 16  ;;  %v5830_v34 = vsel %vm14038_vm3, %v5822_v59, %v5829_v31  ;;  %v13275_v59 = vld [vmem:[#allocation5 + $0x94] sm:$0xf] }
 0x2fb   : > { %v4537_v57 = vadd.f32 %v4536_v30, %v4488_v38  ;;  %5035 = vmatmul.bf16.gmra.mxu0 %v11357_v51  ;;  %5084 = vmatmul.bf16.gmra.mxu1 %v11361_v5  ;;  %5894 = vst [vmem:[#allocation5 + $0xbc] sm:$0xf] %v5830_v34  ;;  %v6206_v51 = vshll.u32 %v6139_v52, 16  ;;  %v17041_v5 = vld [vmem:[#allocation13_spill] sm:$0xff]  ;;  %v6221_v15 = vshrl.u32 %v6141_v21, 16  ;;  %v13302_v30 = vld [vmem:[%s17007_s3 + $0x150] sm:$0xff]  ;;  %v11657_v55 = vor.u32 %v13275_v59, %v11654_v63 }
 0x2fc   : > { %7291 = vmatmul.bf16.gmra.mxu3 %v11645_v14  ;;  %v6205_v12 = vrot.slane %v6203_v40, 7  ;;  %v6224_v38 = vshll.u32 %v6141_v21, 16  ;;  %v13178_v14 = vld [vmem:[#allocation4 + $0x160] sm:$0xf0]  ;;  %7317 = vmatpush.bf16.msrb.mxu0 %v13302_v30  ;;  %v13245_v34 = vld [vmem:[%s17007_s3 + $0x48] sm:$0xff] }
 0x2fd   : > { %v15732_v0 = vadd.f32 %v4585_v48, %v4537_v57  ;;  %v6223_v60 = vrot.slane %v6221_v15, 7  ;;  %v11641_v48 = vor.u32 %v13273_v45, %v11640_v18  ;;  %v11369_v57 = vor.u32 %v13176_v11, %v11366_v8  ;;  %v13253_v21 = vld [vmem:[%s17007_s3 + $0x88] sm:$0xff]  ;;  %7688 = vmatpush.bf16.msrb.mxu2 %v13245_v34  ;;  %v11652_v18 = vld [vmem:[#allocation5 + $0x90] sm:$0xf]  ;;  %v17042_v8 = vld [vmem:[#allocation11_spill] sm:$0xff] }
 0x2fe   : > { %v6208_v26 = vor.u32 %v6206_v51, %v6205_v12  ;;  %v6219_v22 = vrot.slane %v6205_v12, 4  ;;  %v11373_v6 = vor.u32 %v13178_v14, %v11372_v47  ;;  %7737 = vmatpush.bf16.msrb.mxu3 %v13253_v21  ;;  %v13276_v45 = vld [vmem:[#allocation5 + $0x98] sm:$0xf0] }
 0x2ff   : > { %v15737_v19 = vpop.f32.mrf.mxu3  ;;  %v6226_v52 = vor.u32 %v6224_v38, %v6223_v60  ;;  %v11653_v30 = vor.u32 %v13276_v45, %v11652_v18  ;;  %v11384_v60 = vld [vmem:[#allocation4 + $0x170] sm:$0xf]  ;;  %v13181_v38 = vld [vmem:[#allocation4 + $0x178] sm:$0xf0] }
 0x300   : > { %v4489_v56 = vpop.f32.mrf.mxu0  ;;  %v4538_v4 = vpop.f32.mrf.mxu1  ;;  %v6209_v35 = vsel %vm14038_vm3, %v11523_v29, %v6208_v26  ;;  %v13179_v26 = vld [vmem:[#allocation4 + $0x16c] sm:$0xf] }
 0x301   : > { %v4490_v33 = vadd.f32 %v4489_v56, %v17041_v5  ;;  %v4587_v9 = vpop.f32.mrf.mxu2  ;;  %6570 = vst [vmem:[#allocation5 + $0xc8] sm:$0xf] %v6209_v35  ;;  %v6227_v41 = vsel %vm14038_vm3, %v6219_v22, %v6226_v52  ;;  %v1855_v5 = vld [vmem:[#allocation2 + $0x11c] sm:$0x1]  ;;  %v11378_v22 = vld [vmem:[#allocation4 + $0x174] sm:$0xf0]  ;;  %v11385_v35 = vor.u32 %v13181_v38, %v11384_v60 }
 0x302   : > { %6572 = vst [vmem:[#allocation5 + $0xd4] sm:$0xf] %v6227_v41  ;;  %v1889_v15 = vunpack.c.l.b16 %v1855_v5  ;;  %v11381_v14 = vor.u32 %v13179_v26, %v11378_v22  ;;  %v13244_v5 = vld [vmem:[%s17007_s3 + $0x40] sm:$0xff] }
 0x303   : > { %v4539_v53 = vadd.f32 %v4538_v4, %v4490_v33  ;;  %7689 = vmatpush.bf16.msrb.mxu2 %v13244_v5  ;;  %v13236_v60 = vld [vmem:[%s17007_s3] sm:$0xff]  ;;  %v11390_v5 = vld [vmem:[#allocation4 + $0x18c] sm:$0xf0] }
 0x304   : > { %v1891_v11 = vpack.c.b16 %v1889_v15, %v1889_v15 }
 0x305   : > { %v15747_v2 = vadd.f32 %v4587_v9, %v4539_v53  ;;  %v13301_v53 = vld [vmem:[%s17007_s3 + $0x148] sm:$0xff] }
 0x306   : > { %7242 = vmatmul.bf16.gmra.mxu2 %v11641_v48  ;;  %7318 = vmatpush.bf16.msrb.mxu0 %v13301_v53  ;;  %v1896_v47 = vrot.slane %v1891_v11, 5 }
 0x307   : > { %v15749_v3 = vpop.f32.mrf.mxu3 }
 0x308   : > { %v4492_v50 = vpop.f32.mrf.mxu0  ;;  %v4541_v40 = vpop.f32.mrf.mxu1 }
 0x309   : > { %v4493_v31 = vadd.f32 %v4492_v50, %v15272_v20  ;;  %v4590_v27 = vpop.f32.mrf.mxu2  ;;  %v13237_v20 = vld [vmem:[%s17007_s3 + $0x8] sm:$0xff] }
 0x30a   : > { %7639 = vmatpush.bf16.msrb.mxu1 %v13237_v20  ;;  %v15778_v20 = vld [vmem:[#allocation3 + $0x4] sm:$0xff]  }
 0x30b   : > { %v4542_v16 = vadd.f32 %v4541_v40, %v4493_v31  ;;  %5040 = vmatmul.bf16.gmra.mxu0 %v11369_v57  ;;  %5089 = vmatmul.bf16.gmra.mxu1 %v11373_v6  ;;  %v13278_v57 = vld [vmem:[#allocation5 + $0xac] sm:$0xf]  ;;  %v11666_v6 = vld [vmem:[#allocation5 + $0xb4] sm:$0xf0] }
 0x30c   : > { %7296 = vmatmul.bf16.gmra.mxu3 %v11657_v55  ;;  %v11669_v55 = vor.u32 %v13278_v57, %v11666_v6 }
 0x30d   : > { %v15760_v56 = vadd.f32 %v4590_v27, %v4542_v16 }
 0x30e   : > { %7640 = vmatpush.bf16.msrb.mxu1 %v13236_v60 }
 0x30f   : > { %v15765_v4 = vpop.f32.mrf.mxu3 }
 0x310   : > { %v4494_v12 = vpop.f32.mrf.mxu0  ;;  %v4543_v51 = vpop.f32.mrf.mxu1 }
 0x311   : > { %v4495_v33 = vadd.f32 %v4494_v12, %v15280_v7  ;;  %v4592_v9 = vpop.f32.mrf.mxu2  ;;  %v1895_v7 = vrot.slane %v17042_v8, 5  ;;  %v5215_v12 = vld [vmem:[#allocation3 + $0xc] sm:$0x1]  ;;  %v11664_v8 = vld [vmem:[#allocation5 + $0xa8] sm:$0xf] }
 0x313   : > { %v4544_v29 = vadd.f32 %v4543_v51, %v4495_v33  ;;  %v1897_v59 = vsel %vm609_vm4, %v1895_v7, %v1896_v47  ;;  %v1906_v50 = vunpack.c.h.b16 %v1895_v7  ;;  %v1904_v16 = vunpack.c.l.b16 %v1895_v7  ;;  %v13252_v33 = vld [vmem:[%s17007_s3 + $0x80] sm:$0xff] }
 0x314   : > { %v1907_v40 = vunpack.c.l.b16 %v1897_v59  ;;  %7738 = vmatpush.bf16.msrb.mxu3 %v13252_v33  ;;  %v5367_v47 = vrot.slane %v15778_v20, 5  ;;  %v13279_v59 = vld [vmem:[#allocation5 + $0xb0] sm:$0xf0] }
 0x315   : > { %v15771_v48 = vadd.f32 %v4592_v9, %v4544_v29  ;;  %v1917_v34 = vpack.c.b16 %v1906_v50, %v1906_v50  ;;  %v5351_v9 = vunpack.c.l.b16 %v5215_v12  ;;  %v1915_v18 = vpack.c.b16 %v1904_v16, %v1904_v16  ;;  %v11678_v16 = vld [vmem:[#allocation5 + $0xcc] sm:$0xf0] }
 0x316   : > { %7247 = vmatmul.bf16.gmra.mxu2 %v11653_v30  ;;  %v1919_v21 = vpack.c.b16 %v1907_v40, %v1907_v40  ;;  %v5392_v60 = vunpack.c.l.b16 %v5367_v47 }
 0x317   : > { %v15774_v52 = vpop.f32.mrf.mxu3  ;;  %v1983_v45 = vshrl.u32 %v1917_v34, 16  ;;  %v1986_v26 = vshll.u32 %v1917_v34, 16  ;;  %v1978_v11 = vshrl.u32 %v1915_v18, 16  ;;  %v5359_v7 = vpack.c.b16 %v5351_v9, %v5351_v9 }
 0x318   : > { %v4497_v63 = vpop.f32.mrf.mxu0  ;;  %v4546_v41 = vpop.f32.mrf.mxu1  ;;  %v2001_v15 = vshrl.u32 %v1919_v21, 16  ;;  %v2004_v53 = vshll.u32 %v1919_v21, 16  ;;  %v5394_v18 = vunpack.c.h.b16 %v5367_v47 }
 0x319   : > { %v4498_v31 = vadd.f32 %v4497_v63, %v15300_v23  ;;  %v4595_v27 = vpop.f32.mrf.mxu2  ;;  %v5249_v23 = vunpack.c.h.b16 %v15778_v20  ;;  %v1985_v30 = vrot.slane %v1983_v45, 7  ;;  %v15797_v63 = vld [vmem:[#allocation5 + $0xc4] sm:$0xf]  ;;  %v5368_v34 = vrot.slane %v5359_v7, 5 }
 0x31a   : > { %v2003_v22 = vrot.slane %v2001_v15, 7  ;;  %v11665_v15 = vor.u32 %v13279_v59, %v11664_v8 }
 0x31b   : > { %v4547_v51 = vadd.f32 %v4546_v41, %v4498_v31  ;;  %5045 = vmatmul.bf16.gmra.mxu0 %v11381_v14  ;;  %5094 = vmatmul.bf16.gmra.mxu1 %v11385_v35  ;;  %v5280_v14 = vshrl.u32 %v15778_v20, 16  ;;  %v5283_v35 = vshll.u32 %v15778_v20, 16  ;;  %v10161_v41 = vrot.slane %v1978_v11, 11  ;;  %v11396_v11 = vld [vmem:[#allocation4 + $0x188] sm:$0xf] }
 0x31c   : > { %7301 = vmatmul.bf16.gmra.mxu3 %v11669_v55  ;;  %v1988_v50 = vor.u32 %v1986_v26, %v1985_v30  ;;  %v1999_v40 = vrot.slane %v1985_v30, 4  ;;  %v2006_v31 = vor.u32 %v2004_v53, %v2003_v22  ;;  %v5369_v26 = vsel %vm609_vm4, %v5367_v47, %v5368_v34  ;;  %v13184_v30 = vld [vmem:[#allocation4 + $0x190] sm:$0xf0] }
 0x31d   : > { %v15787_v29 = vadd.f32 %v4595_v27, %v4547_v51  ;;  %v5282_v21 = vrot.slane %v5280_v14, 4  ;;  %v5285_v12 = vrot.slane %v5283_v35, 5  ;;  %v13182_v51 = vld [vmem:[#allocation4 + $0x184] sm:$0xf]  ;;  %v11681_v22 = vor.u32 %v15797_v63, %v11678_v16 }
 0x31e   : > { %v1989_v33 = vsel %vm14038_vm3, %v10161_v41, %v1988_v50  ;;  %v2007_v9 = vsel %vm14038_vm3, %v1999_v40, %v2006_v31  ;;  %v5395_v7 = vunpack.c.l.b16 %v5369_v26  ;;  %v5434_v14 = vpack.c.b16 %v5394_v18, %v5394_v18  ;;  %v5191_v40 = vld [vmem:[#allocation3] sm:$0x8] }
 0x31f   : > { %v15792_v38 = vpop.f32.mrf.mxu3  ;;  %2022 = vst [vmem:[#allocation4 + $0x1a0] sm:$0xf] %v1989_v33  ;;  %v5286_v53 = vor.u32 %v5285_v12, %v5282_v21  ;;  %v11397_v31 = vor.u32 %v13184_v30, %v11396_v11  ;;  %v5247_v34 = vunpack.c.l.b16 %v5191_v40 }
 0x320   : > { %v4499_v57 = vpop.f32.mrf.mxu0  ;;  %v4548_v6 = vpop.f32.mrf.mxu1  ;;  %2024 = vst [vmem:[#allocation4 + $0x1ac] sm:$0xf] %v2007_v9  ;;  %v5436_v59 = vpack.c.b16 %v5395_v7, %v5395_v7  ;;  %v5498_v41 = vshrl.u32 %v5434_v14, 16  ;;  %v5501_v50 = vshll.u32 %v5434_v14, 16 }
 0x321   : > { %v4500_v27 = vadd.f32 %v4499_v57, %v15351_v46  ;;  %v4597_v55 = vpop.f32.mrf.mxu2  ;;  %v13300_v46 = vld [vmem:[%s17007_s3 + $0x140] sm:$0xff]  ;;  %v11393_v57 = vor.u32 %v13182_v51, %v11390_v5  ;;  %v5391_v8 = vunpack.c.l.b16 %v5286_v53  ;;  %v13759_v47 = vsel %vm13722_vm0, %v15778_v20, %v5286_v53 }
 0x322   : > { %7319 = vmatpush.bf16.msrb.mxu0 %v13300_v46  ;;  %v5500_v12 = vrot.slane %v5498_v41, 7  ;;  %v5516_v51 = vshrl.u32 %v5436_v59, 16  ;;  %v5519_v5 = vshll.u32 %v5436_v59, 16 }
 0x323   : > { %v4549_v45 = vadd.f32 %v4548_v6, %v4500_v27  ;;  %v5432_v6 = vpack.c.b16 %v5392_v60, %v5392_v60  ;;  %v5435_v63 = vpack.c.b16 %v5391_v8, %v5249_v23  ;;  %v5431_v18 = vpack.c.b16 %v5391_v8, %v5247_v34 }
 0x324   : > { %v5503_v26 = vor.u32 %v5501_v50, %v5500_v12  ;;  %v5514_v11 = vrot.slane %v5500_v12, 4  ;;  %v5518_v30 = vrot.slane %v5516_v51, 7  ;;  %v5488_v60 = vshll.u32 %v13759_v47, 16  ;;  %v13282_v12 = vld [vmem:[#allocation5 + $0xc8] sm:$0xf0] }
 0x325   : > { %v15809_v35 = vadd.f32 %v4597_v55, %v4549_v45  ;;  %v5493_v21 = vshrl.u32 %v5432_v6, 16  ;;  %v5485_v45 = vshrl.u32 %v13759_v47, 16  ;;  %v5480_v20 = vshrl.u32 %v5431_v18, 16 }
 0x326   : > { %7252 = vmatmul.bf16.gmra.mxu2 %v11665_v15  ;;  %v5507_v15 = vshrl.u32 %v5435_v63, 16  ;;  %v5521_v14 = vor.u32 %v5519_v5, %v5518_v30  ;;  %v11408_v18 = vld [vmem:[#allocation4 + $0x1a0] sm:$0xf] }
 0x327   : > { %v15811_v27 = vpop.f32.mrf.mxu3  ;;  %v11507_v46 = vrot.slane %v5493_v21, 11  ;;  %v5487_v23 = vrot.slane %v5485_v45, 7  ;;  %v11506_v8 = vrot.slane %v5480_v20, 11  ;;  %v11676_v21 = vld [vmem:[#allocation5 + $0xc0] sm:$0xf] }
 0x328   : > { %v4502_v55 = vpop.f32.mrf.mxu0  ;;  %v4551_v16 = vpop.f32.mrf.mxu1  ;;  %v5522_v41 = vsel %vm14038_vm3, %v5514_v11, %v5521_v14  ;;  %v13187_v45 = vld [vmem:[#allocation4 + $0x1a8] sm:$0xf0] }
 0x329   : > { %v4503_v33 = vadd.f32 %v4502_v55, %v15387_v43  ;;  %v4600_v9 = vpop.f32.mrf.mxu2  ;;  %v5504_v7 = vsel %vm14038_vm3, %v11507_v46, %v5503_v26  ;;  %v5509_v43 = vrot.slane %v5507_v15, 7  ;;  %v5490_v59 = vor.u32 %v5488_v60, %v5487_v23  ;;  %5866 = vst [vmem:[#allocation5 + $0x14] sm:$0xf] %v5522_v41 }
 0x32a   : > { %5864 = vst [vmem:[#allocation5 + $0x8] sm:$0xf] %v5504_v7  ;;  %v5505_v50 = vrot.slane %v5487_v23, 4 }
 0x32b   : > { %v4552_v53 = vadd.f32 %v4551_v16, %v4503_v33  ;;  %5050 = vmatmul.bf16.gmra.mxu0 %v11393_v57  ;;  %5099 = vmatmul.bf16.gmra.mxu1 %v11397_v31  ;;  %v5510_v57 = vshll.u32 %v5435_v63, 16  ;;  %v13185_v63 = vld [vmem:[#allocation4 + $0x19c] sm:$0xf]  ;;  %v11677_v33 = vor.u32 %v13282_v12, %v11676_v21 }
 0x32c   : > { %7306 = vmatmul.bf16.gmra.mxu3 %v11681_v22  ;;  %v5491_v22 = vsel %vm14038_vm3, %v11506_v8, %v5490_v59  ;;  %v13355_v8 = vld [vmem:[%s17007_s3 + $0x238] sm:$0xff] }
 0x32d   : > { %v15820_v6 = vadd.f32 %v4600_v9, %v4552_v53  ;;  %v5512_v47 = vor.u32 %v5510_v57, %v5509_v43  ;;  %5863 = vst [vmem:[#allocation5] sm:$0xff] %v5491_v22  ;;  %v11402_v9 = vld [vmem:[#allocation4 + $0x1a4] sm:$0xf0]  ;;  %v13435_v59 = vld [vmem:[%s17007_s3 + $0xf8] sm:$0xff]  ;;  %8232 = vmatpush.bf16.msra.mxu2 %v13355_v8 }
 0x32e   : > { %v11405_v11 = vor.u32 %v13185_v63, %v11402_v9  ;;  %8845 = vmatpush.bf16.msra.mxu3 %v13435_v59  ;;  %v13262_v63 = vld [vmem:[#allocation5 + $0x28] sm:$0xf0]  ;;  %v11804_v9 = vld [vmem:[#allocation5 + $0x20] sm:$0xf] }
 0x32f   : > { %v15824_v40 = vpop.f32.mrf.mxu3  ;;  %v5513_v51 = vsel %vm14038_vm3, %v5505_v50, %v5512_v47 }
 0x330   : > { %v4504_v31 = vpop.f32.mrf.mxu0  ;;  %v4553_v34 = vpop.f32.mrf.mxu1  ;;  %5865 = vst [vmem:[#allocation5 + $0xc] sm:$0xff] %v5513_v51  ;;  %v13214_v26 = vld [vmem:[#allocation5 + $0x10] sm:$0xf0] }
 0x331   : > { %v4505_v55 = vadd.f32 %v4504_v31, %v15415_v32  ;;  %v4602_v16 = vpop.f32.mrf.mxu2  ;;  %v11792_v46 = vld [vmem:[#allocation5 + $0x8] sm:$0xf]  ;;  %v11409_v32 = vor.u32 %v13187_v45, %v11408_v18  ;;  %v13217_v18 = vld [vmem:[#allocation5 + $0x28] sm:$0xf0] }
 0x332   : > { %v11793_v20 = vor.u32 %v13214_v26, %v11792_v46 }
 0x333   : > { %v4554_v5 = vadd.f32 %v4553_v34, %v4505_v55 }
 0x334   : > { %v13212_v41 = vld [vmem:[#allocation5 + $0x4] sm:$0xf]  ;;  %v11784_v21 = vld [vmem:[#allocation5] sm:$0xf] }
 0x335   : > { %v15831_v15 = vadd.f32 %v4602_v16, %v4554_v5  ;;  %v11600_v5 = vld [vmem:[#allocation5 + $0x20] sm:$0xf] }
 0x336   : > { %7257 = vmatmul.bf16.gmra.mxu2 %v11677_v33 }
 0x337   : > { %v15834_v7 = vpop.f32.mrf.mxu3  ;;  %v11786_v50 = vld [vmem:[#allocation5 + $0xc] sm:$0xf0]  ;;  %v13213_v12 = vld [vmem:[#allocation5 + $0x8] sm:$0xf0] }
 0x338   : > { %v4507_v30 = vpop.f32.mrf.mxu0  ;;  %v4556_v53 = vpop.f32.mrf.mxu1  ;;  %v11789_v47 = vor.u32 %v13212_v41, %v11786_v50  ;;  %v11785_v33 = vor.u32 %v13213_v12, %v11784_v21  ;;  %v13215_v50 = vld [vmem:[#allocation5 + $0x1c] sm:$0xf]  ;;  %v13216_v21 = vld [vmem:[#allocation5 + $0x20] sm:$0xf0] }
 0x339   : > { %v4508_v23 = vadd.f32 %v4507_v30, %v15448_v61  ;;  %v4605_v60 = vpop.f32.mrf.mxu2  ;;  %v13347_v61 = vld [vmem:[%s17007_s3 + $0x1f8] sm:$0xff]  ;;  %v11805_v30 = vor.u32 %v13217_v18, %v11804_v9  ;;  %v13265_v12 = vld [vmem:[#allocation5 + $0x40] sm:$0xf0] }
 0x33a   : > { %8183 = vmatpush.bf16.msra.mxu1 %v13347_v61  ;;  %v13354_v18 = vld [vmem:[%s17007_s3 + $0x230] sm:$0xff] }
 0x33b   : > { %v4557_v14 = vadd.f32 %v4556_v53, %v4508_v23  ;;  %5055 = vmatmul.bf16.gmra.mxu0 %v11405_v11  ;;  %5104 = vmatmul.bf16.gmra.mxu1 %v11409_v32 }
 0x33c   : > { %7739 = vmatmul.bf16.vlgmr.msrb.gmra.mxu3 %v11793_v20  ;;  %8233 = vmatpush.bf16.msra.mxu2 %v13354_v18  ;;  %v13268_v18 = vld [vmem:[#allocation5 + $0x58] sm:$0xf0] }
 0x33d   : > { %v15836_v43 = vadd.f32 %v4605_v60, %v4557_v14  ;;  %v15857_v60 = vld [vmem:[%s17006_s2] ss:$0 sm:$0xff] }
 0x33f   : > { %v7272_v16 = vpop.f32.mrf.mxu3 }
 0x340   : > { %v4509_v57 = vpop.f32.mrf.mxu0  ;;  %v4558_v22 = vpop.f32.mrf.mxu1 }
 0x341   : > { %v4510_v31 = vadd.f32 %v4509_v57, %v15521_v42  ;;  %v4607_v34 = vpop.f32.mrf.mxu2  ;;  %v11601_v42 = vor.u32 %v13262_v63, %v11600_v5  ;;  %v11798_v57 = vld [vmem:[#allocation5 + $0x24] sm:$0xf0]  ;;  %v11816_v5 = vld [vmem:[#allocation5 + $0x38] sm:$0xf]  ;;  %v13220_v63 = vld [vmem:[#allocation5 + $0x40] sm:$0xf0] }
 0x343   : > { %v4559_v55 = vadd.f32 %v4558_v22, %v4510_v31 }
 0x345   : > { %v15848_v51 = vadd.f32 %v4607_v34, %v4559_v55  ;;  %v11801_v34 = vor.u32 %v13215_v50, %v11798_v57  ;;  %v13218_v50 = vld [vmem:[#allocation5 + $0x34] sm:$0xf]  ;;  %v11810_v57 = vld [vmem:[#allocation5 + $0x3c] sm:$0xf0] }
 0x346   : > { %7690 = vmatmul.bf16.vlgmr.msrb.gmra.mxu2 %v11789_v47  ;;  %v11796_v47 = vld [vmem:[#allocation5 + $0x18] sm:$0xf] }
 0x347   : > { %v7274_v23 = vpop.f32.mrf.mxu3 }
 0x348   : > { %v5021_v45 = vpop.f32.mrf.mxu0  ;;  %v5070_v46 = vpop.f32.mrf.mxu1 }
 0x349   : > { %v5022_v26 = vadd.f32 %v5021_v45, %v15466_v17  ;;  %v7223_v11 = vpop.f32.mrf.mxu2 }
 0x34a   : > { %v15851_v32 = vadd.f32 %v7272_v16, %v7223_v11  ;;  %v11612_v16 = vld [vmem:[#allocation5 + $0x38] sm:$0xf] }
 0x34b   : > { %v5071_v53 = vadd.f32 %v5070_v46, %v5022_v26  ;;  %7320 = vmatmul.bf16.vlgmr.msrb.gmra.mxu0 %v11601_v42  ;;  %7641 = vmatmul.bf16.vlgmr.msrb.gmra.mxu1 %v11785_v33  ;;  %v13339_v33 = vld [vmem:[%s17007_s3 + $0x1b8] sm:$0xff]  ;;  %v13346_v26 = vld [vmem:[%s17007_s3 + $0x1f0] sm:$0xff] }
 0x34c   : > { %7744 = vmatmul.bf16.gmra.mxu3 %v11805_v30  ;;  %8134 = vmatpush.bf16.msra.mxu0 %v13339_v33  ;;  %v11808_v33 = vld [vmem:[#allocation5 + $0x30] sm:$0xf] }
 0x34d   : > { %v5110_v20 = vadd.f32 %v5071_v53, %v15556_v25  ;;  %v11613_v53 = vor.u32 %v13265_v12, %v11612_v16  ;;  %8184 = vmatpush.bf16.msra.mxu1 %v13346_v26  ;;  %v13353_v16 = vld [vmem:[%s17007_s3 + $0x228] sm:$0xff] }
 0x34e   : > { %8234 = vmatpush.bf16.msra.mxu2 %v13353_v16  ;;  %v13223_v26 = vld [vmem:[#allocation5 + $0x58] sm:$0xf0]  ;;  %v11822_v16 = vld [vmem:[#allocation5 + $0x54] sm:$0xf0] }
 0x34f   : > { %v5126_v14 = vadd.f32 %v15857_v60, %v5110_v20  ;;  %v7277_v9 = vpop.f32.mrf.mxu3  ;;  %v11797_v20 = vor.u32 %v13216_v21, %v11796_v47  ;;  %v13338_v47 = vld [vmem:[%s17007_s3 + $0x1b0] sm:$0xff] }
 0x350   : > { %v5023_v17 = vpop.f32.mrf.mxu0  ;;  %v5072_v8 = vpop.f32.mrf.mxu1  ;;  %8135 = vmatpush.bf16.msra.mxu0 %v13338_v47 }
 0x351   : > { %v5142_v59 = vmax.f32 %v5126_v14, 0.0  ;;  %v5024_v61 = vadd.f32 %v5023_v17, %v15535_v49  ;;  %v7225_v41 = vpop.f32.mrf.mxu2  ;;  %v11817_v14 = vor.u32 %v13220_v63, %v11816_v5  ;;  %v11813_v63 = vor.u32 %v13218_v50, %v11810_v57 }
 0x352   : > { %v15861_v22 = vadd.f32 %v7274_v23, %v7225_v41 }
 0x353   : > { %v5158_v31 = vpack.c.bf16 %v5142_v59, %v5142_v59  ;;  %v5073_v25 = vadd.f32 %v5072_v8, %v5024_v61 }
 0x355   : > { %5175 = vst [vmem:[#allocation3 + $0x94] sm:$0xf] %v5158_v31  ;;  %v5111_v55 = vadd.f32 %v5073_v25, %v15614_v62  ;;  %v13434_v62 = vld [vmem:[%s17007_s3 + $0xf0] sm:$0xff] }
 0x356   : > { %7695 = vmatmul.bf16.gmra.mxu2 %v11801_v34  ;;  %8846 = vmatpush.bf16.msra.mxu3 %v13434_v62  ;;  %v13219_v62 = vld [vmem:[#allocation5 + $0x38] sm:$0xf0] }
 0x357   : > { %v5127_v49 = vadd.f32 %v15857_v60, %v5111_v55  ;;  %v7279_v34 = vpop.f32.mrf.mxu3 }
 0x358   : > { %v5026_v45 = vpop.f32.mrf.mxu0  ;;  %v5075_v46 = vpop.f32.mrf.mxu1 }
 0x359   : > { %v5143_v11 = vmax.f32 %v5127_v49, 0.0  ;;  %v5027_v42 = vadd.f32 %v5026_v45, %v15581_v1  ;;  %v7228_v30 = vpop.f32.mrf.mxu2 }
 0x35a   : > { %v15878_v23 = vadd.f32 %v7277_v9, %v7228_v30  ;;  %v11624_v9 = vld [vmem:[#allocation5 + $0x50] sm:$0xf] }
 0x35b   : > { %v5159_v17 = vpack.c.bf16 %v5143_v11, %v5143_v11  ;;  %v5076_v8 = vadd.f32 %v5075_v46, %v5027_v42  ;;  %7325 = vmatmul.bf16.gmra.mxu0 %v11613_v53  ;;  %7646 = vmatmul.bf16.gmra.mxu1 %v11797_v20  ;;  %v11828_v46 = vld [vmem:[#allocation5 + $0x50] sm:$0xf] }
 0x35c   : > { %7749 = vmatmul.bf16.gmra.mxu3 %v11817_v14  ;;  %v11625_v14 = vor.u32 %v13268_v18, %v11624_v9 }
 0x35d   : > { %5176 = vst [vmem:[#allocation3 + $0x98] sm:$0xf] %v5159_v17  ;;  %v5112_v59 = vadd.f32 %v5076_v8, %v15639_v58  ;;  %v13433_v58 = vld [vmem:[%s17007_s3 + $0xe8] sm:$0xff]  ;;  %v11809_v17 = vor.u32 %v13219_v62, %v11808_v33 }
 0x35e   : > { %8847 = vmatpush.bf16.msra.mxu3 %v13433_v58 }
 0x35f   : > { %v5128_v61 = vadd.f32 %v15857_v60, %v5112_v59  ;;  %v7282_v53 = vpop.f32.mrf.mxu3 }
 0x360   : > { %v5028_v1 = vpop.f32.mrf.mxu0  ;;  %v5077_v41 = vpop.f32.mrf.mxu1 }
 0x361   : > { %v5144_v31 = vmax.f32 %v5128_v61, 0.0  ;;  %v5029_v25 = vadd.f32 %v5028_v1, %v15618_v13  ;;  %v7230_v55 = vpop.f32.mrf.mxu2  ;;  %v13345_v13 = vld [vmem:[%s17007_s3 + $0x1e8] sm:$0xff]  ;;  %v11829_v61 = vor.u32 %v13223_v26, %v11828_v46 }
 0x362   : > { %v15892_v21 = vadd.f32 %v7279_v34, %v7230_v55  ;;  %8185 = vmatpush.bf16.msra.mxu1 %v13345_v13  ;;  %v13221_v55 = vld [vmem:[#allocation5 + $0x4c] sm:$0xf] }
 0x363   : > { %v5160_v12 = vpack.c.bf16 %v5144_v31, %v5144_v31  ;;  %v5078_v5 = vadd.f32 %v5077_v41, %v5029_v25  ;;  %v15904_v41 = vld [vmem:[#allocation3 + $0x94] sm:$0xf] }
 0x364   : > { %v15899_v8 = vld [vmem:[#allocation3 + $0x98] sm:$0xf]  ;;  %v5956_v25 = vunpack.c.l.b16 %v15904_v41 }
 0x365   : > { %5177 = vst [vmem:[#allocation3 + $0xa4] sm:$0xf] %v5160_v12  ;;  %v5113_v49 = vadd.f32 %v5078_v5, %v15670_v39  ;;  %v5957_v57 = vunpack.c.l.b16 %v15899_v8 }
 0x366   : > { %7700 = vmatmul.bf16.gmra.mxu2 %v11813_v63  ;;  %v13352_v63 = vld [vmem:[%s17007_s3 + $0x220] sm:$0xff] }
 0x367   : > { %v5129_v45 = vadd.f32 %v15857_v60, %v5113_v49  ;;  %v15914_v58 = vpack.c.b16 %v5957_v57, %v5956_v25  ;;  %v7284_v12 = vpop.f32.mrf.mxu3  ;;  %v13432_v49 = vld [vmem:[%s17007_s3 + $0xe0] sm:$0xff]  ;;  %8235 = vmatpush.bf16.msra.mxu2 %v13352_v63 }
 0x368   : > { %v5031_v11 = vpop.f32.mrf.mxu0  ;;  %v5080_v42 = vpop.f32.mrf.mxu1  ;;  %8848 = vmatpush.bf16.msra.mxu3 %v13432_v49 }
 0x369   : > { %v5145_v30 = vmax.f32 %v5129_v45, 0.0  ;;  %v7233_v20 = vpop.f32.mrf.mxu2  ;;  %v5032_v39 = vadd.f32 %v5031_v11, %v15650_v37  ;;  %v11825_v45 = vor.u32 %v13221_v55, %v11822_v16  ;;  %v5993_v46 = vshrl.u32 %v15914_v58, 16 }
 0x36a   : > { %v15902_v59 = vadd.f32 %v7282_v53, %v7233_v20  ;;  %v5996_v26 = vshll.u32 %v15914_v58, 16  ;;  %v11636_v53 = vld [vmem:[#allocation5 + $0x68] sm:$0xf]  ;;  %v13271_v20 = vld [vmem:[#allocation5 + $0x70] sm:$0xf0] }
 0x36b   : > { %v5161_v1 = vpack.c.bf16 %v5145_v30, %v5145_v30  ;;  %7330 = vmatmul.bf16.gmra.mxu0 %v11625_v14  ;;  %7651 = vmatmul.bf16.gmra.mxu1 %v11809_v17  ;;  %v5081_v50 = vadd.f32 %v5080_v42, %v5032_v39  ;;  %v11820_v42 = vld [vmem:[#allocation5 + $0x48] sm:$0xf]  ;;  %v13222_v30 = vld [vmem:[#allocation5 + $0x50] sm:$0xf0]  ;;  %v11637_v16 = vor.u32 %v13271_v20, %v11636_v53 }
 0x36c   : > { %7754 = vmatmul.bf16.gmra.mxu3 %v11829_v61  ;;  %v11840_v17 = vld [vmem:[#allocation5 + $0x68] sm:$0xf]  ;;  %v13226_v39 = vld [vmem:[#allocation5 + $0x70] sm:$0xf0] }
 0x36d   : > { %5178 = vst [vmem:[#allocation3 + $0xa8] sm:$0xf] %v5161_v1  ;;  %v5114_v31 = vadd.f32 %v5081_v50, %v15695_v10  ;;  %v13337_v10 = vld [vmem:[%s17007_s3 + $0x1a8] sm:$0xff]  ;;  %v11821_v50 = vor.u32 %v13222_v30, %v11820_v42  ;;  %v13351_v30 = vld [vmem:[%s17007_s3 + $0x218] sm:$0xff] }
 0x36e   : > { %8136 = vmatpush.bf16.msra.mxu0 %v13337_v10  ;;  %8236 = vmatpush.bf16.msra.mxu2 %v13351_v30 }
 0x36f   : > { %v5130_v34 = vadd.f32 %v15857_v60, %v5114_v31  ;;  %v5995_v31 = vrot.slane %v5993_v46, 4 }
 0x370   : > { %v5033_v37 = vpop.f32.mrf.mxu0  ;;  %v5082_v47 = vpop.f32.mrf.mxu1 }
 0x371   : > { %v5034_v13 = vadd.f32 %v5033_v37, %v15672_v36  ;;  %v7235_v5 = vpop.f32.mrf.mxu2  ;;  %v5146_v33 = vmax.f32 %v5130_v34, 0.0  ;;  %v13344_v36 = vld [vmem:[%s17007_s3 + $0x1e0] sm:$0xff]  ;;  %v5998_v34 = vrot.slane %v5996_v26, 5 }
 0x372   : > { %v15926_v9 = vadd.f32 %v7284_v12, %v7235_v5  ;;  %8186 = vmatpush.bf16.msra.mxu1 %v13344_v36  ;;  %v11841_v12 = vor.u32 %v13226_v39, %v11840_v17  ;;  %v5899_v17 = vld [vmem:[#allocation3 + $0x90] sm:$0x8] }
 0x373   : > { %v5083_v18 = vadd.f32 %v5082_v47, %v5034_v13  ;;  %v5162_v62 = vpack.c.bf16 %v5146_v33, %v5146_v33  ;;  %v7287_v47 = vpop.f32.mrf.mxu3  ;;  %v5999_v63 = vor.u32 %v5998_v34, %v5995_v31  ;;  %v11832_v31 = vld [vmem:[#allocation5 + $0x60] sm:$0xf]  ;;  %v13225_v34 = vld [vmem:[#allocation5 + $0x68] sm:$0xf0] }
 0x374   : > { %17043 = vst [vmem:[#allocation9_spill] sm:$0xff] %v15926_v9 }
 0x375   : > { %v5115_v11 = vadd.f32 %v5083_v18, %v15711_v28  ;;  %5179 = vst [vmem:[#allocation3 + $0xb4] sm:$0xf] %v5162_v62  ;;  %v13224_v62 = vld [vmem:[#allocation5 + $0x64] sm:$0xf]  ;;  %v6101_v46 = vunpack.c.l.b16 %v5999_v63 }
 0x376   : > { %7705 = vmatmul.bf16.gmra.mxu2 %v11825_v45  ;;  %v11834_v45 = vld [vmem:[#allocation5 + $0x6c] sm:$0xf0] }
 0x377   : > { %v5131_v14 = vadd.f32 %v15857_v60, %v5115_v11  ;;  %v13336_v11 = vld [vmem:[%s17007_s3 + $0x1a0] sm:$0xff] }
 0x378   : > { %v5036_v61 = vpop.f32.mrf.mxu0  ;;  %v5085_v1 = vpop.f32.mrf.mxu1  ;;  %8137 = vmatpush.bf16.msra.mxu0 %v13336_v11 }
 0x379   : > { %v5147_v37 = vmax.f32 %v5131_v14, 0.0  ;;  %v7238_v55 = vpop.f32.mrf.mxu2  ;;  %v5037_v28 = vadd.f32 %v5036_v61, %v15700_v44  ;;  %v11837_v61 = vor.u32 %v13224_v62, %v11834_v45 }
 0x37a   : > { %v15936_v13 = vadd.f32 %v7287_v47, %v7238_v55  ;;  %v13274_v47 = vld [vmem:[#allocation5 + $0x88] sm:$0xf0]  ;;  %v5955_v55 = vunpack.c.l.b16 %v5899_v17 }
 0x37b   : > { %v5163_v10 = vpack.c.bf16 %v5147_v37, %v5147_v37  ;;  %7335 = vmatmul.bf16.gmra.mxu0 %v11637_v16  ;;  %7656 = vmatmul.bf16.gmra.mxu1 %v11821_v50  ;;  %v5086_v5 = vadd.f32 %v5085_v1, %v5037_v28  ;;  %v7289_v26 = vpop.f32.mrf.mxu3  ;;  %v6146_v1 = vpack.c.b16 %v6101_v46, %v5957_v57  ;;  %v11648_v37 = vld [vmem:[#allocation5 + $0x80] sm:$0xf]  ;;  %v6103_v16 = vunpack.c.h.b16 %v5999_v63 }
 0x37c   : > { %17044 = vst [vmem:[#allocation10_spill] sm:$0xff] %v15936_v13  ;;  %7759 = vmatmul.bf16.gmra.mxu3 %v11841_v12  ;;  %v11852_v12 = vld [vmem:[#allocation5 + $0x80] sm:$0xf] }
 0x37d   : > { %5180 = vst [vmem:[#allocation3 + $0xb8] sm:$0xf] %v5163_v10  ;;  %v5116_v49 = vadd.f32 %v5086_v5, %v15732_v0  ;;  %v13431_v0 = vld [vmem:[%s17007_s3 + $0xd8] sm:$0xff]  ;;  %v6144_v63 = vpack.c.b16 %v6103_v16, %v5956_v25 }
 0x37e   : > { %8849 = vmatpush.bf16.msra.mxu3 %v13431_v0  ;;  %v13229_v10 = vld [vmem:[#allocation5 + $0x88] sm:$0xf0] }
 0x37f   : > { %v5132_v33 = vadd.f32 %v15857_v60, %v5116_v49 }
 0x380   : > { %v5038_v36 = vpop.f32.mrf.mxu0  ;;  %v5087_v18 = vpop.f32.mrf.mxu1 }
 0x381   : > { %v5039_v44 = vadd.f32 %v5038_v36, %v15717_v24  ;;  %v7240_v42 = vpop.f32.mrf.mxu2  ;;  %v5148_v53 = vmax.f32 %v5132_v33, 0.0  ;;  %v13343_v24 = vld [vmem:[%s17007_s3 + $0x1d8] sm:$0xff]  ;;  %v6256_v33 = vshrl.u32 %v6146_v1, 16 }
 0x382   : > { %v15950_v20 = vadd.f32 %v7289_v26, %v7240_v42  ;;  %8187 = vmatpush.bf16.msra.mxu1 %v13343_v24  ;;  %v6142_v26 = vpack.c.b16 %v6101_v46, %v5955_v55  ;;  %v6259_v24 = vshll.u32 %v6146_v1, 16  ;;  %v13227_v46 = vld [vmem:[#allocation5 + $0x7c] sm:$0xf]  ;;  %v13430_v1 = vld [vmem:[%s17007_s3 + $0xd0] sm:$0xff] }
 0x383   : > { %v5088_v14 = vadd.f32 %v5087_v18, %v5039_v44  ;;  %v5164_v39 = vpack.c.bf16 %v5148_v53, %v5148_v53  ;;  %v7292_v8 = vpop.f32.mrf.mxu3  ;;  %v11649_v18 = vor.u32 %v13274_v47, %v11648_v37  ;;  %v11853_v44 = vor.u32 %v13229_v10, %v11852_v12  ;;  %8850 = vmatpush.bf16.msra.mxu3 %v13430_v1  ;;  %v11858_v1 = vld [vmem:[#allocation5 + $0x9c] sm:$0xf0] }
 0x384   : > { %17045 = vst [vmem:[#allocation12_spill] sm:$0xff] %v15950_v20  ;;  %v6258_v30 = vrot.slane %v6256_v33, 7  ;;  %v6229_v53 = vshrl.u32 %v6142_v26, 16  ;;  %v6237_v47 = vshll.u32 %v6144_v63, 16 }
 0x385   : > { %v5117_v50 = vadd.f32 %v5088_v14, %v15747_v2  ;;  %5181 = vst [vmem:[#allocation3 + $0xc4] sm:$0xf] %v5164_v39  ;;  %v11833_v2 = vor.u32 %v13225_v34, %v11832_v31  ;;  %v6234_v14 = vshrl.u32 %v6144_v63, 16  ;;  %v13335_v31 = vld [vmem:[%s17007_s3 + $0x198] sm:$0xff]  ;;  %v11864_v63 = vld [vmem:[#allocation5 + $0x98] sm:$0xf] }
 0x386   : > { %7710 = vmatmul.bf16.gmra.mxu2 %v11837_v61  ;;  %v11846_v61 = vld [vmem:[#allocation5 + $0x84] sm:$0xf0]  ;;  %v6261_v41 = vor.u32 %v6259_v24, %v6258_v30  ;;  %8138 = vmatpush.bf16.msra.mxu0 %v13335_v31 }
 0x387   : > { %v5133_v28 = vadd.f32 %v15857_v60, %v5117_v50  ;;  %v6236_v37 = vrot.slane %v6234_v14, 7  ;;  %v11849_v33 = vor.u32 %v13227_v46, %v11846_v61 }
 0x388   : > { %v5041_v5 = vpop.f32.mrf.mxu0  ;;  %v5090_v49 = vpop.f32.mrf.mxu1 }
 0x389   : > { %v5149_v36 = vmax.f32 %v5133_v28, 0.0  ;;  %v7243_v57 = vpop.f32.mrf.mxu2  ;;  %v5042_v62 = vadd.f32 %v5041_v5, %v15737_v19  ;;  %v11524_v28 = vrot.slane %v6229_v53, 11  ;;  %v6239_v10 = vor.u32 %v6237_v47, %v6236_v37 }
 0x38a   : > { %v15960_v45 = vadd.f32 %v7292_v8, %v7243_v57  ;;  %v6254_v5 = vrot.slane %v6236_v37, 4  ;;  %v11844_v8 = vld [vmem:[#allocation5 + $0x78] sm:$0xf]  ;;  %v13228_v57 = vld [vmem:[#allocation5 + $0x80] sm:$0xf0] }
 0x38b   : > { %v5165_v11 = vpack.c.bf16 %v5149_v36, %v5149_v36  ;;  %7340 = vmatmul.bf16.gmra.mxu0 %v11649_v18  ;;  %7661 = vmatmul.bf16.gmra.mxu1 %v11833_v2  ;;  %v5091_v42 = vadd.f32 %v5090_v49, %v5042_v62  ;;  %v7294_v50 = vpop.f32.mrf.mxu3  ;;  %v6240_v18 = vsel %vm14038_vm3, %v11524_v28, %v6239_v10  ;;  %v11660_v62 = vld [vmem:[#allocation5 + $0x98] sm:$0xf] }
 0x38c   : > { %17046 = vst [vmem:[#allocation13_spill] sm:$0xff] %v15960_v45  ;;  %7764 = vmatmul.bf16.gmra.mxu3 %v11853_v44  ;;  %v6262_v2 = vsel %vm14038_vm3, %v6254_v5, %v6261_v41  ;;  %v13277_v44 = vld [vmem:[#allocation5 + $0xa0] sm:$0xf0]  ;;  %v11845_v14 = vor.u32 %v13228_v57, %v11844_v8  ;;  %v15990_v41 = vld [vmem:[#allocation3 + $0xa8] sm:$0xf] }
 0x38d   : > { %5182 = vst [vmem:[#allocation3 + $0xc8] sm:$0xf] %v5165_v11  ;;  %v5118_v0 = vadd.f32 %v5091_v42, %v15760_v56  ;;  %v13350_v56 = vld [vmem:[%s17007_s3 + $0x210] sm:$0xff]  ;;  %v11661_v24 = vor.u32 %v13277_v44, %v11660_v62  ;;  %v17019_v37 = vunpack.c.l.b16 %v15990_v41  ;;  %v11856_v57 = vld [vmem:[#allocation5 + $0x90] sm:$0xf] }
 0x38e   : > { %8237 = vmatpush.bf16.msra.mxu2 %v13350_v56  ;;  %v13232_v11 = vld [vmem:[#allocation5 + $0xa0] sm:$0xf0]  ;;  %6573 = vst [vmem:[#allocation5 + $0xd8] sm:$0xff] %v6240_v18  ;;  %v13231_v18 = vld [vmem:[#allocation5 + $0x98] sm:$0xf0] }
 0x38f   : > { %v5134_v19 = vadd.f32 %v15857_v60, %v5118_v0  ;;  %6575 = vst [vmem:[#allocation5 + $0xe4] sm:$0xff] %v6262_v2  ;;  %v16019_v62 = vld [vmem:[#allocation3 + $0xb8] sm:$0xf] }
 0x390   : > { %v5043_v17 = vpop.f32.mrf.mxu0  ;;  %v5092_v39 = vpop.f32.mrf.mxu1 }
 0x391   : > { %v5044_v25 = vadd.f32 %v5043_v17, %v15749_v3  ;;  %v7245_v34 = vpop.f32.mrf.mxu2  ;;  %v5150_v55 = vmax.f32 %v5134_v19, 0.0  ;;  %v13342_v3 = vld [vmem:[%s17007_s3 + $0x1d0] sm:$0xff] }
 0x392   : > { %v15976_v16 = vadd.f32 %v7294_v50, %v7245_v34  ;;  %8188 = vmatpush.bf16.msra.mxu1 %v13342_v3  ;;  %v15993_v50 = vld [vmem:[#allocation3 + $0xa4] sm:$0xf]  ;;  %v13334_v3 = vld [vmem:[%s17007_s3 + $0x190] sm:$0xff] }
 0x393   : > { %v5093_v12 = vadd.f32 %v5092_v39, %v5044_v25  ;;  %v5166_v49 = vpack.c.bf16 %v5150_v55, %v5150_v55  ;;  %v7297_v0 = vpop.f32.mrf.mxu3  ;;  %v11865_v39 = vor.u32 %v13232_v11, %v11864_v63  ;;  %8139 = vmatpush.bf16.msra.mxu0 %v13334_v3  ;;  %v11876_v63 = vld [vmem:[#allocation5 + $0xb0] sm:$0xf]  ;;  %v13280_v11 = vld [vmem:[#allocation5 + $0xb8] sm:$0xf0]  ;;  %v5921_v3 = vld [vmem:[#allocation3 + $0x9c] sm:$0x1] }
 0x394   : > { %17047 = vst [vmem:[#allocation11_spill] sm:$0xff] %v15976_v16 }
 0x395   : > { %v5119_v36 = vadd.f32 %v5093_v12, %v15771_v48  ;;  %5183 = vst [vmem:[#allocation3 + $0xd4] sm:$0xf] %v5166_v49  ;;  %v13429_v12 = vld [vmem:[%s17007_s3 + $0xc8] sm:$0xff]  ;;  %v17018_v49 = vunpack.c.l.b16 %v15993_v50 }
 0x396   : > { %7715 = vmatmul.bf16.gmra.mxu2 %v11849_v33  ;;  %8851 = vmatpush.bf16.msra.mxu3 %v13429_v12 }
 0x397   : > { %v5135_v26 = vadd.f32 %v15857_v60, %v5119_v36  ;;  %v16017_v2 = vpack.c.b16 %v17019_v37, %v17018_v49  ;;  %v16111_v37 = vld [vmem:[#allocation5 + $0x4c] sm:$0xf] }
 0x398   : > { %v5046_v42 = vpop.f32.mrf.mxu0  ;;  %v5095_v30 = vpop.f32.mrf.mxu1 }
 0x399   : > { %v5151_v48 = vmax.f32 %v5135_v26, 0.0  ;;  %v7248_v53 = vpop.f32.mrf.mxu2  ;;  %v5047_v19 = vadd.f32 %v5046_v42, %v15765_v4  ;;  %v13230_v4 = vld [vmem:[#allocation5 + $0x94] sm:$0xf]  ;;  %v11672_v26 = vld [vmem:[#allocation5 + $0xb0] sm:$0xf]  ;;  %v16191_v9 = vrot.slane %v16017_v2, 5 }
 0x39a   : > { %v15988_v17 = vadd.f32 %v7297_v0, %v7248_v53  ;;  %v11861_v8 = vor.u32 %v13230_v4, %v11858_v1  ;;  %v13235_v42 = vld [vmem:[#allocation5 + $0xb8] sm:$0xf0]  ;;  %v17017_v0 = vunpack.c.l.b16 %v16019_v62 }
 0x39b   : > { %v5167_v46 = vpack.c.bf16 %v5151_v48, %v5151_v48  ;;  %7345 = vmatmul.bf16.gmra.mxu0 %v11661_v24  ;;  %7666 = vmatmul.bf16.gmra.mxu1 %v11845_v14  ;;  %v5096_v61 = vadd.f32 %v5095_v30, %v5047_v19  ;;  %v7299_v55 = vpop.f32.mrf.mxu3  ;;  %v16022_v30 = vld [vmem:[#allocation3 + $0xb4] sm:$0xf]  ;;  %v11857_v14 = vor.u32 %v13231_v18, %v11856_v57  ;;  %v6001_v19 = vshrl.u32 %v16017_v2, 16 }
 0x39c   : > { %17048 = vst [vmem:[#allocation14_spill] sm:$0xff] %v15988_v17  ;;  %7769 = vmatmul.bf16.gmra.mxu3 %v11865_v39  ;;  %v5902_v17 = vld [vmem:[#allocation3 + $0xa0] sm:$0x8] }
 0x39d   : > { %5184 = vst [vmem:[#allocation3 + $0xd8] sm:$0xf] %v5167_v46  ;;  %v5120_v25 = vadd.f32 %v5096_v61, %v15787_v29  ;;  %v13349_v29 = vld [vmem:[%s17007_s3 + $0x208] sm:$0xff]  ;;  %v11673_v61 = vor.u32 %v13280_v11, %v11672_v26  ;;  %v6003_v12 = vrot.slane %v6001_v19, 4  ;;  %v13428_v19 = vld [vmem:[%s17007_s3 + $0xc0] sm:$0xff] }
 0x39e   : > { %8238 = vmatpush.bf16.msra.mxu2 %v13349_v29  ;;  %v6057_v29 = vunpack.c.l.b16 %v5921_v3  ;;  %v11868_v3 = vld [vmem:[#allocation5 + $0xa8] sm:$0xf]  ;;  %8852 = vmatpush.bf16.msra.mxu3 %v13428_v19 }
 0x39f   : > { %v5136_v31 = vadd.f32 %v15857_v60, %v5120_v25  ;;  %v11877_v25 = vor.u32 %v13235_v42, %v11876_v63 }
 0x3a0   : > { %v5048_v34 = vpop.f32.mrf.mxu0  ;;  %v5097_v56 = vpop.f32.mrf.mxu1  ;;  %v6065_v57 = vpack.c.b16 %v6057_v29, %v6057_v29  ;;  %v16072_v29 = vld [vmem:[#allocation5 + $0x38] sm:$0xf0] }
 0x3a1   : > { %v5049_v47 = vadd.f32 %v5048_v34, %v15774_v52  ;;  %v7250_v28 = vpop.f32.mrf.mxu2  ;;  %v5152_v10 = vmax.f32 %v5136_v31, 0.0  ;;  %v13341_v52 = vld [vmem:[%s17007_s3 + $0x1c8] sm:$0xff]  ;;  %v6004_v31 = vshll.u32 %v16017_v2, 16  ;;  %v17016_v34 = vunpack.c.l.b16 %v16022_v30 }
 0x3a2   : > { %v16007_v5 = vadd.f32 %v7299_v55, %v7250_v28  ;;  %8189 = vmatpush.bf16.msra.mxu1 %v13341_v52  ;;  %v13233_v28 = vld [vmem:[#allocation5 + $0xac] sm:$0xf] }
 0x3a3   : > { %v5098_v33 = vadd.f32 %v5097_v56, %v5049_v47  ;;  %v5168_v36 = vpack.c.bf16 %v5152_v10, %v5152_v10  ;;  %v7302_v46 = vpop.f32.mrf.mxu3  ;;  %v16036_v47 = vpack.c.b16 %v17017_v0, %v17016_v34  ;;  %v6006_v10 = vrot.slane %v6004_v31, 5  ;;  %v13340_v31 = vld [vmem:[%s17007_s3 + $0x1c0] sm:$0xff]  ;;  %v16096_v34 = vld [vmem:[#allocation5 + $0x3c] sm:$0xf0] }
 0x3a4   : > { %17049 = vst [vmem:[#allocation15_spill] sm:$0xff] %v16007_v5 }
 0x3a5   : > { %v5121_v44 = vadd.f32 %v5098_v33, %v15809_v35  ;;  %5185 = vst [vmem:[#allocation3 + $0xe4] sm:$0xf] %v5168_v36  ;;  %v11870_v33 = vld [vmem:[#allocation5 + $0xb4] sm:$0xf0]  ;;  %v6075_v36 = vrot.slane %v15914_v58, 5  ;;  %v6009_v18 = vshrl.u32 %v16036_v47, 16 }
 0x3a6   : > { %7720 = vmatmul.bf16.gmra.mxu2 %v11861_v8  ;;  %v16042_v8 = vld [vmem:[#allocation3 + $0xc4] sm:$0xf]  ;;  %8190 = vmatpush.bf16.msra.mxu1 %v13340_v31 }
 0x3a7   : > { %v5137_v48 = vadd.f32 %v15857_v60, %v5121_v44  ;;  %v6012_v44 = vshll.u32 %v16036_v47, 16 }
 0x3a8   : > { %v5051_v53 = vpop.f32.mrf.mxu0  ;;  %v5100_v24 = vpop.f32.mrf.mxu1 }
 0x3a9   : > { %v5153_v39 = vmax.f32 %v5137_v48, 0.0  ;;  %v7253_v35 = vpop.f32.mrf.mxu2  ;;  %v5052_v56 = vadd.f32 %v5051_v53, %v15792_v38  ;;  %v16038_v38 = vld [vmem:[#allocation3 + $0xc8] sm:$0xf] }
 0x3aa   : > { %v16030_v4 = vadd.f32 %v7302_v46, %v7253_v35  ;;  %v17015_v42 = vunpack.c.l.b16 %v16038_v38  ;;  %v6076_v46 = vrot.slane %v6065_v57, 5  ;;  %v16060_v35 = vor.u32 %v6006_v10, %v6003_v12 }
 0x3ab   : > { %v5169_v1 = vpack.c.bf16 %v5153_v39, %v5153_v39  ;;  %7350 = vmatmul.bf16.gmra.mxu0 %v11673_v61  ;;  %7671 = vmatmul.bf16.gmra.mxu1 %v11857_v14  ;;  %v5101_v55 = vadd.f32 %v5100_v24, %v5052_v56  ;;  %v7304_v53 = vpop.f32.mrf.mxu3  ;;  %v11873_v24 = vor.u32 %v13233_v28, %v11870_v33  ;;  %v13348_v14 = vld [vmem:[%s17007_s3 + $0x200] sm:$0xff]  ;;  %v16058_v39 = vld [vmem:[#allocation5 + $0x38] sm:$0xf]  ;;  %v16068_v56 = vld [vmem:[#allocation5 + $0x40] sm:$0xf0]  ;;  %v6102_v10 = vunpack.c.l.b16 %v6075_v36 }
 0x3ac   : > { %17050 = vst [vmem:[#allocation16_spill] sm:$0xff] %v16030_v4  ;;  %7774 = vmatmul.bf16.gmra.mxu3 %v11877_v25  ;;  %8239 = vmatpush.bf16.msra.mxu2 %v13348_v14  ;;  %v13234_v28 = vld [vmem:[#allocation5 + $0xb0] sm:$0xf0]  ;;  %v6077_v12 = vsel %vm609_vm4, %v6075_v36, %v6076_v46  ;;  %v6011_v33 = vrot.slane %v6009_v18, 4  ;;  %v6014_v57 = vrot.slane %v6012_v44, 5 }
 0x3ad   : > { %5186 = vst [vmem:[#allocation3 + $0xe8] sm:$0xf] %v5169_v1  ;;  %v5122_v52 = vadd.f32 %v5101_v55, %v15820_v6  ;;  %v13333_v6 = vld [vmem:[%s17007_s3 + $0x188] sm:$0xff]  ;;  %v16070_v1 = vld [vmem:[#allocation5 + $0x30] sm:$0xf]  ;;  %v6143_v14 = vpack.c.b16 %v6102_v10, %v6102_v10 }
 0x3ae   : > { %8140 = vmatpush.bf16.msra.mxu0 %v13333_v6  ;;  %v12264_v6 = vld [vmem:[#allocation5 + $0xd8] sm:$0xf]  ;;  %v13405_v18 = vld [vmem:[#allocation5 + $0xe0] sm:$0xf0]  ;;  %v16090_v10 = vor.u32 %v6014_v57, %v6011_v33  ;;  %v16100_v33 = vld [vmem:[#allocation5 + $0x50] sm:$0xf] }
 0x3af   : > { %v5138_v26 = vadd.f32 %v15857_v60, %v5122_v52  ;;  %v6104_v52 = vunpack.c.h.b16 %v6075_v36  ;;  %v16082_v36 = vld [vmem:[#allocation3 + $0xd8] sm:$0xf]  ;;  %v6242_v44 = vshrl.u32 %v6143_v14, 16  ;;  %v16102_v57 = vld [vmem:[#allocation5 + $0x58] sm:$0xf0] }
 0x3b0   : > { %v5053_v63 = vpop.f32.mrf.mxu0  ;;  %v5102_v11 = vpop.f32.mrf.mxu1  ;;  %v16109_v14 = vld [vmem:[#allocation5 + $0x50] sm:$0xf0]  ;;  %v17062_v16 = vunpack.c.l.b16 %v16090_v10 }
 0x3b1   : > { %v5054_v48 = vadd.f32 %v5053_v63, %v15811_v27  ;;  %v7255_v58 = vpop.f32.mrf.mxu2  ;;  %v17014_v27 = vunpack.c.l.b16 %v16042_v8  ;;  %v5154_v61 = vmax.f32 %v5138_v26, 0.0  ;;  %v11684_v63 = vld [vmem:[#allocation5 + $0xc8] sm:$0xf]  ;;  %v6145_v46 = vpack.c.b16 %v6104_v52, %v6104_v52  ;;  %v16092_v52 = vld [vmem:[#allocation3 + $0xd4] sm:$0xf] }
 0x3b2   : > { %v16063_v25 = vadd.f32 %v7304_v53, %v7255_v58  ;;  %v13283_v53 = vld [vmem:[#allocation5 + $0xd0] sm:$0xf0]  ;;  %v6105_v58 = vunpack.c.l.b16 %v6077_v12  ;;  %v11525_v5 = vrot.slane %v6242_v44, 11  ;;  %v17057_v44 = vunpack.c.l.b16 %v16082_v36 }
 0x3b3   : > { %v5103_v55 = vadd.f32 %v5102_v11, %v5054_v48  ;;  %v5170_v26 = vpack.c.bf16 %v5154_v61, %v5154_v61  ;;  %v16079_v11 = vpack.c.b16 %v17015_v42, %v17014_v27  ;;  %v11685_v12 = vor.u32 %v13283_v53, %v11684_v63  ;;  %v16094_v42 = vld [vmem:[#allocation5 + $0x34] sm:$0xf] }
 0x3b4   : > { %17051 = vst [vmem:[#allocation17_spill] sm:$0xff] %v16063_v25  ;;  %v6147_v61 = vpack.c.b16 %v6105_v58, %v6105_v58  ;;  %v11869_v27 = vor.u32 %v13234_v28, %v11868_v3  ;;  %v7307_v28 = vpop.f32.mrf.mxu3  ;;  %v6250_v63 = vshll.u32 %v6145_v46, 16  ;;  %v16183_v45 = vld [vmem:[#allocation3 + $0xe8] sm:$0xf] }
 0x3b5   : > { %v5123_v48 = vadd.f32 %v5103_v55, %v15831_v15  ;;  %5187 = vst [vmem:[#allocation3 + $0xf4] sm:$0xf] %v5170_v26  ;;  %v6247_v15 = vshrl.u32 %v6145_v46, 16  ;;  %v6017_v58 = vshrl.u32 %v16079_v11, 16  ;;  %v16107_v55 = vld [vmem:[#allocation5 + $0x48] sm:$0xf] }
 0x3b6   : > { %7725 = vmatmul.bf16.gmra.mxu2 %v11873_v24  ;;  %v6265_v19 = vshrl.u32 %v6147_v61, 16 }
 0x3b7   : > { %v5139_v31 = vadd.f32 %v15857_v60, %v5123_v48  ;;  %v12265_v48 = vor.u32 %v13405_v18, %v12264_v6  ;;  %v6249_v25 = vrot.slane %v6247_v15, 7  ;;  %v16114_v6 = vld [vmem:[#allocation5 + $0x54] sm:$0xf0]  ;;  %v16116_v18 = vld [vmem:[#allocation5 + $0x68] sm:$0xf] }
 0x3b8   : > { %v5056_v24 = vpop.f32.mrf.mxu0  ;;  %v5105_v26 = vpop.f32.mrf.mxu1 }
 0x3b9   : > { %v5155_v3 = vmax.f32 %v5139_v31, 0.0  ;;  %v7258_v53 = vpop.f32.mrf.mxu2  ;;  %v5057_v0 = vadd.f32 %v5056_v24, %v15824_v40  ;;  %v6267_v40 = vrot.slane %v6265_v19, 7  ;;  %v6268_v24 = vshll.u32 %v6147_v61, 16  ;;  %v16131_v19 = vld [vmem:[#allocation5 + $0x68] sm:$0xf0] }
 0x3ba   : > { %v16105_v49 = vadd.f32 %v7307_v28, %v7258_v53  ;;  %v16118_v53 = vld [vmem:[#allocation5 + $0x70] sm:$0xf0]  ;;  %v6252_v15 = vor.u32 %v6250_v63, %v6249_v25  ;;  %v6263_v46 = vrot.slane %v6249_v25, 4  ;;  %v17054_v31 = vunpack.c.l.b16 %v15990_v41 }
 0x3bb   : > { %v5171_v4 = vpack.c.bf16 %v5155_v3, %v5155_v3  ;;  %7355 = vmatmul.bf16.gmra.mxu0 %v11685_v12  ;;  %7676 = vmatmul.bf16.gmra.mxu1 %v11869_v27  ;;  %v5106_v28 = vadd.f32 %v5105_v26, %v5057_v0  ;;  %v17055_v12 = vunpack.c.l.b16 %v16060_v35  ;;  %v6020_v3 = vshll.u32 %v16079_v11, 16 }
 0x3bc   : > { %17052 = vst [vmem:[#allocation18_spill] sm:$0xff] %v16105_v49  ;;  %8853 = vmatmul.bf16.vlgmr.msra.gmra.mxu3 %v12265_v48  ;;  %v16120_v49 = vld [vmem:[#allocation5 + $0x60] sm:$0xf]  ;;  %v6270_v61 = vor.u32 %v6268_v24, %v6267_v40  ;;  %v17056_v26 = vunpack.c.l.b16 %v16092_v52  ;;  %v16150_v24 = vld [vmem:[#allocation5 + $0x64] sm:$0xf]  ;;  %v7309_v0 = vpop.f32.mrf.mxu3 }
 0x3bd   : > { %17053 = vst [vmem:[#allocation19_spill] sm:$0xff] %v16120_v49  ;;  %v16126_v27 = vpack.c.b16 %v17055_v12, %v17054_v31  ;;  %v5124_v41 = vadd.f32 %v5106_v28, %v15836_v43  ;;  %v16152_v12 = vld [vmem:[#allocation5 + $0x6c] sm:$0xf0]  ;;  %v5922_v40 = vld [vmem:[#allocation3 + $0xac] sm:$0x1]  ;;  %v6022_v48 = vrot.slane %v6020_v3, 5  ;;  %v17061_v49 = vunpack.c.l.b16 %v16019_v62 }
 0x3be   : > { %5188 = vst [vmem:[#allocation3 + $0xf8] sm:$0xf] %v5171_v4  ;;  %v16137_v25 = vpack.c.b16 %v17057_v44, %v17056_v26  ;;  %v6253_v4 = vsel %vm14038_vm3, %v11525_v5, %v6252_v15  ;;  %v6271_v43 = vsel %vm14038_vm3, %v6263_v46, %v6270_v61  ;;  %v6019_v5 = vrot.slane %v6017_v58, 4  ;;  %v13332_v46 = vld [vmem:[%s17007_s3 + $0x180] sm:$0xff]  ;;  %v13387_v58 = vld [vmem:[%s17007_s3 + $0x38] sm:$0xff] }
 0x3bf   : > { %17058 = vst [vmem:[#allocation20_spill] sm:$0xff] %v16152_v12  ;;  %v5140_v15 = vadd.f32 %v15857_v60, %v5124_v41  ;;  %v13395_v41 = vld [vmem:[%s17007_s3 + $0x78] sm:$0xff]  ;;  %v6300_v3 = vshrl.u32 %v16126_v27, 16  ;;  %8141 = vmatpush.bf16.msra.mxu0 %v13332_v46  ;;  %9264 = vmatpush.bf16.msrb.mxu2 %v13387_v58  ;;  %v6058_v13 = vunpack.c.l.b16 %v5922_v40  ;;  %v16197_v12 = vpack.c.b16 %v17062_v16, %v17061_v49  ;;  %v13450_v40 = vld [vmem:[%s17007_s3 + $0x170] sm:$0xff] }
 0x3c0   : > { %6574 = vst [vmem:[#allocation5 + $0xe0] sm:$0xf] %v6253_v4  ;;  %v5058_v26 = vpop.f32.mrf.mxu0  ;;  %v5107_v44 = vpop.f32.mrf.mxu1  ;;  %v6108_v4 = vunpack.c.h.b16 %v16060_v35  ;;  %v13451_v31 = vld [vmem:[%s17007_s3 + $0x178] sm:$0xff]  ;;  %9313 = vmatpush.bf16.msrb.mxu3 %v13395_v41  ;;  %v6028_v2 = vshll.u32 %v16137_v25, 16  ;;  %v17063_v16 = vunpack.c.l.b16 %v16060_v35  ;;  %v16212_v46 = vor.u32 %v6022_v48, %v6019_v5  ;;  %v16214_v41 = vld [vmem:[#allocation3 + $0xe4] sm:$0xf] }
 0x3c1   : > { %6576 = vst [vmem:[#allocation5 + $0xec] sm:$0xf] %v6271_v43  ;;  %v5059_v63 = vadd.f32 %v5058_v26, %v15834_v7  ;;  %v7260_v61 = vpop.f32.mrf.mxu2  ;;  %v6025_v7 = vshrl.u32 %v16137_v25, 16  ;;  %v5156_v43 = vmax.f32 %v5140_v15, 0.0  ;;  %v13443_v28 = vld [vmem:[%s17007_s3 + $0x138] sm:$0xff]  ;;  %v5958_v15 = vunpack.c.l.b16 %v5902_v17  ;;  %8943 = vmatpush.bf16.msrb.mxu1 %v13451_v31  ;;  %v13442_v31 = vld [vmem:[%s17007_s3 + $0x130] sm:$0xff] }
 0x3c2   : > { %v16173_v26 = vadd.f32 %v7309_v0, %v7260_v61  ;;  %v17060_v0 = vunpack.c.l.b16 %v15993_v50  ;;  %v6302_v17 = vrot.slane %v6300_v3, 7  ;;  %v13394_v50 = vld [vmem:[%s17007_s3 + $0x70] sm:$0xff]  ;;  %v6066_v48 = vpack.c.b16 %v6058_v13, %v6058_v13 }
 0x3c3   : > { %v5108_v20 = vadd.f32 %v5107_v44, %v5059_v63  ;;  %v5172_v63 = vpack.c.bf16 %v5156_v43, %v5156_v43  ;;  %8894 = vmatpush.bf16.msrb.mxu0 %v13443_v28  ;;  %v6148_v49 = vpack.c.b16 %v17063_v16, %v5958_v15  ;;  %v6027_v58 = vrot.slane %v6025_v7, 4  ;;  %v5905_v43 = vld [vmem:[#allocation3 + $0xb0] sm:$0x8] }
 0x3c4   : > { %17059 = vst [vmem:[#allocation21_spill] sm:$0xff] %v16173_v26  ;;  %v6150_v61 = vpack.c.b16 %v6108_v4, %v17060_v0  ;;  %v13386_v26 = vld [vmem:[%s17007_s3 + $0x30] sm:$0xff]  ;;  %v5972_v4 = vunpack.c.l.b16 %v16183_v45  ;;  %9314 = vmatpush.bf16.msrb.mxu3 %v13394_v50  ;;  %v6113_v16 = vunpack.c.h.b16 %v16090_v10  ;;  %v16228_v50 = vld [vmem:[#allocation5 + $0x88] sm:$0xf0] }
 0x3c5   : > { %v5125_v62 = vadd.f32 %v5108_v20, %v15848_v51  ;;  %5189 = vst [vmem:[#allocation3 + $0x104] sm:$0xf] %v5172_v63  ;;  %v17064_v51 = vor.u32 %v16068_v56, %v16058_v39  ;;  %v6303_v20 = vshll.u32 %v16126_v27, 16  ;;  %v6273_v28 = vshrl.u32 %v6148_v49, 16  ;;  %9265 = vmatpush.bf16.msrb.mxu2 %v13386_v26  ;;  %8944 = vmatpush.bf16.msrb.mxu1 %v13450_v40 }
 0x3c6   : > { %v6278_v44 = vshrl.u32 %v6150_v61, 16  ;;  %v6281_v15 = vshll.u32 %v6150_v61, 16  ;;  %v5961_v63 = vunpack.c.l.b16 %v5905_v43  ;;  %v6030_v39 = vrot.slane %v6028_v2, 5 }
 0x3c7   : > { %8240 = vmatmul.bf16.vlgmr.msra.gmra.mxu2 %v17064_v51  ;;  %v5141_v35 = vadd.f32 %v15857_v60, %v5125_v62  ;;  %v6305_v0 = vor.u32 %v6303_v20, %v6302_v17  ;;  %v17022_v56 = vunpack.c.l.b16 %v16214_v41  ;;  %v7740_v51 = vpop.f32.mrf.mxu3  ;;  %8895 = vmatpush.bf16.msrb.mxu0 %v13442_v31  ;;  %v6344_v26 = vshrl.u32 %v16197_v12, 16  ;;  %v16226_v17 = vld [vmem:[#allocation5 + $0x80] sm:$0xf] }
 0x3c8   : > { %v6280_v3 = vrot.slane %v6278_v44, 7  ;;  %v7321_v5 = vpop.f32.mrf.mxu0  ;;  %v7642_v7 = vpop.f32.mrf.mxu1  ;;  %v11526_v62 = vrot.slane %v6273_v28, 11  ;;  %v17065_v44 = vor.u32 %v16072_v29, %v16070_v1  ;;  %v17067_v31 = vunpack.c.l.b16 %v16090_v10  ;;  %v13393_v28 = vld [vmem:[%s17007_s3 + $0x68] sm:$0xff] }
 0x3c9   : > { %v5157_v27 = vmax.f32 %v5141_v35, 0.0  ;;  %v7691_v60 = vpop.f32.mrf.mxu2  ;;  %v7322_v13 = vadd.f32 %v7321_v5, %v15851_v32  ;;  %v16234_v40 = vpack.c.b16 %v5972_v4, %v17022_v56  ;;  %v17066_v32 = vor.u32 %v16094_v42, %v16096_v34  ;;  %v13385_v35 = vld [vmem:[%s17007_s3 + $0x28] sm:$0xff]  ;;  %9315 = vmatpush.bf16.msrb.mxu3 %v13393_v28 }
 0x3ca   : > { %v6283_v49 = vor.u32 %v6281_v15, %v6280_v3  ;;  %v6298_v61 = vrot.slane %v6280_v3, 4  ;;  %v6154_v20 = vpack.c.b16 %v17067_v31, %v5961_v63  ;;  %v6079_v3 = vrot.slane %v6066_v48, 5  ;;  %9266 = vmatpush.bf16.msrb.mxu2 %v13385_v35  ;;  %v16277_v35 = vld [vmem:[#allocation5 + $0x78] sm:$0xf] }
 0x3cb   : > { %v5173_v2 = vpack.c.bf16 %v5157_v27, %v5157_v27  ;;  %8142 = vmatmul.bf16.vlgmr.msra.gmra.mxu0 %v17065_v44  ;;  %8191 = vmatmul.bf16.vlgmr.msra.gmra.mxu1 %v17066_v32  ;;  %v7643_v43 = vadd.f32 %v7642_v7, %v7322_v13  ;;  %v17068_v42 = vunpack.c.l.b16 %v16022_v30  ;;  %v6116_v10 = vunpack.c.l.b16 %v16212_v46 }
 0x3cc   : > { %v6284_v1 = vsel %vm14038_vm3, %v11526_v62, %v6283_v49  ;;  %v6306_v34 = vsel %vm14038_vm3, %v6298_v61, %v6305_v0  ;;  %v6346_v5 = vrot.slane %v6344_v26, 7  ;;  %v12069_v15 = vor.u32 %v16228_v50, %v16226_v17  ;;  %v16459_v17 = vld [vmem:[#allocation5 + $0xa0] sm:$0xf0] }
 0x3cd   : > { %v6156_v29 = vpack.c.b16 %v6113_v16, %v17068_v42  ;;  %5190 = vst [vmem:[#allocation3 + $0x108] sm:$0xf] %v5173_v2  ;;  %v6107_v48 = vunpack.c.l.b16 %v16191_v9  ;;  %v7692_v7 = vadd.f32 %v7691_v60, %v7643_v43  ;;  %v6317_v63 = vshrl.u32 %v6154_v20, 16  ;;  %v13449_v16 = vld [vmem:[%s17007_s3 + $0x168] sm:$0xff]  ;;  %v16279_v43 = vld [vmem:[#allocation5 + $0x80] sm:$0xf0] }
 0x3ce   : > { %6577 = vst [vmem:[#allocation5 + $0xf0] sm:$0xff] %v6284_v1  ;;  %v6347_v0 = vshll.u32 %v16197_v12, 16  ;;  %v16261_v13 = vor.u32 %v6030_v39, %v6027_v58  ;;  %v6033_v30 = vshrl.u32 %v16234_v40, 16  ;;  %v6080_v26 = vsel %vm609_vm4, %v16191_v9, %v6079_v3  ;;  %8945 = vmatpush.bf16.msrb.mxu1 %v13449_v16  ;;  %v16281_v1 = vld [vmem:[#allocation5 + $0x7c] sm:$0xf] }
 0x3cf   : > { %v6322_v27 = vshrl.u32 %v6156_v29, 16  ;;  %6579 = vst [vmem:[#allocation5 + $0xfc] sm:$0xff] %v6306_v34  ;;  %v6109_v62 = vunpack.c.h.b16 %v16191_v9  ;;  %v16270_v60 = vadd.f32 %v7740_v51, %v7692_v7  ;;  %v6325_v12 = vshll.u32 %v6156_v29, 16  ;;  %v7742_v31 = vpop.f32.mrf.mxu3  ;;  %v16292_v29 = vld [vmem:[#allocation3 + $0xf8] sm:$0xf] }
 0x3d0   : > { %v7323_v49 = vpop.f32.mrf.mxu0  ;;  %v7644_v61 = vpop.f32.mrf.mxu1  ;;  %v6349_v58 = vor.u32 %v6347_v0, %v6346_v5  ;;  %v16273_v39 = vrot.slane %v16036_v47, 5  ;;  %v6036_v44 = vshll.u32 %v16234_v40, 16  ;;  %v6149_v9 = vpack.c.b16 %v6107_v48, %v6107_v48  ;;  %v13441_v48 = vld [vmem:[%s17007_s3 + $0x128] sm:$0xff]  ;;  %v16297_v7 = vld [vmem:[#allocation5 + $0x84] sm:$0xf0] }
 0x3d1   : > { %v6324_v2 = vrot.slane %v6322_v27, 7  ;;  %v7324_v32 = vadd.f32 %v7323_v49, %v15861_v22  ;;  %v7693_v20 = vpop.f32.mrf.mxu2  ;;  %v11528_v51 = vrot.slane %v6317_v63, 11  ;;  %v6110_v34 = vunpack.c.l.b16 %v6080_v26  ;;  %v5923_v16 = vld [vmem:[#allocation3 + $0xbc] sm:$0x1]  ;;  %8896 = vmatpush.bf16.msrb.mxu0 %v13441_v48 }
 0x3d2   : > { %v16284_v47 = vrot.slane %v16079_v11, 5  ;;  %v17069_v42 = vunpack.c.l.b16 %v16038_v38  ;;  %v6151_v63 = vpack.c.b16 %v6109_v62, %v6109_v62  ;;  %v6121_v27 = vunpack.c.l.b16 %v16261_v13 }
 0x3d3   : > { %v6327_v28 = vor.u32 %v6325_v12, %v6324_v2  ;;  %v6342_v3 = vrot.slane %v6324_v2, 4  ;;  %v7645_v5 = vadd.f32 %v7644_v61, %v7324_v32  ;;  %v6035_v11 = vrot.slane %v6033_v30, 4  ;;  %v16306_v32 = vld [vmem:[#allocation3 + $0xf4] sm:$0xf] }
 0x3d4   : > { %v16290_v22 = vpack.c.b16 %v6116_v10, %v17069_v42  ;;  %v6038_v26 = vrot.slane %v6036_v44, 5  ;;  %v16304_v2 = vpack.c.b16 %v6110_v34, %v6110_v34  ;;  %v6291_v12 = vshrl.u32 %v6151_v63, 16  ;;  %v5908_v34 = vld [vmem:[#allocation3 + $0xc0] sm:$0x8] }
 0x3d5   : > { %v6328_v38 = vsel %vm14038_vm3, %v11528_v51, %v6327_v28  ;;  %v6350_v0 = vsel %vm14038_vm3, %v6342_v3, %v6349_v58  ;;  %v7694_v49 = vadd.f32 %v7693_v20, %v7645_v5  ;;  %v12276_v61 = vld [vmem:[#allocation5 + $0xf0] sm:$0xf]  ;;  %v5975_v62 = vunpack.c.l.b16 %v16292_v29  ;;  %v5926_v29 = vld [vmem:[#allocation3 + $0xec] sm:$0x1] }
 0x3d6   : > { %6581 = vst [vmem:[#allocation5 + $0x108] sm:$0xff] %v6328_v38  ;;  %v13408_v30 = vld [vmem:[#allocation5 + $0xf8] sm:$0xf0]  ;;  %v17070_v51 = vor.u32 %v16102_v57, %v16100_v33  ;;  %v12061_v58 = vor.u32 %v16279_v43, %v16277_v35  ;;  %v6286_v20 = vshrl.u32 %v6149_v9, 16  ;;  %v6118_v42 = vunpack.c.h.b16 %v16212_v46 }
 0x3d7   : > { %6583 = vst [vmem:[#allocation5 + $0x114] sm:$0xff] %v6350_v0  ;;  %v16316_v28 = vadd.f32 %v7742_v31, %v7694_v49  ;;  %v12277_v3 = vor.u32 %v13408_v30, %v12276_v61  ;;  %v6059_v5 = vunpack.c.l.b16 %v5923_v16  ;;  %v5964_v56 = vunpack.c.l.b16 %v5908_v34  ;;  %v7745_v49 = vpop.f32.mrf.mxu3 }
 0x3d8   : > { %8245 = vmatmul.bf16.gmra.mxu2 %v17070_v51  ;;  %v7326_v48 = vpop.f32.mrf.mxu0  ;;  %v7647_v38 = vpop.f32.mrf.mxu1  ;;  %v6388_v33 = vshrl.u32 %v16290_v22, 16  ;;  %v6293_v57 = vrot.slane %v6291_v12, 7  ;;  %v6294_v0 = vshll.u32 %v6151_v63, 16  ;;  %v17071_v51 = vunpack.c.l.b16 %v16082_v36 }
 0x3d9   : > { %v5974_v31 = vunpack.c.l.b16 %v16306_v32  ;;  %8858 = vmatmul.bf16.gmra.mxu3 %v12277_v3  ;;  %v7327_v9 = vadd.f32 %v7326_v48, %v15878_v23  ;;  %v7696_v16 = vpop.f32.mrf.mxu2  ;;  %v6309_v61 = vshrl.u32 %v16304_v2, 16  ;;  %v6160_v30 = vpack.c.b16 %v6116_v10, %v5964_v56  ;;  %v13392_v56 = vld [vmem:[%s17007_s3 + $0x60] sm:$0xff]  ;;  %v13389_v32 = vld [vmem:[%s17007_s3 + $0x48] sm:$0xff] }
 0x3da   : > { %v16324_v44 = vpack.c.b16 %v6121_v27, %v17071_v51  ;;  %v17072_v63 = vunpack.c.l.b16 %v16042_v8  ;;  %v6390_v36 = vrot.slane %v6388_v33, 7  ;;  %v6296_v34 = vor.u32 %v6294_v0, %v6293_v57  ;;  %v13384_v8 = vld [vmem:[%s17007_s3 + $0x20] sm:$0xff]  ;;  %9316 = vmatpush.bf16.msrb.mxu3 %v13392_v56 }
 0x3db   : > { %v16337_v51 = vpack.c.b16 %v5975_v62, %v5974_v31  ;;  %v7648_v3 = vadd.f32 %v7647_v38, %v7327_v9  ;;  %v17073_v23 = vor.u32 %v16109_v14, %v16107_v55  ;;  %v17074_v46 = vor.u32 %v16111_v37, %v16114_v6  ;;  %9267 = vmatpush.bf16.msrb.mxu2 %v13384_v8 }
 0x3dc   : > { %v6162_v12 = vpack.c.b16 %v6118_v42, %v17072_v63  ;;  %v11527_v10 = vrot.slane %v6286_v20, 11  ;;  %v6067_v42 = vpack.c.b16 %v6059_v5, %v6059_v5  ;;  %v16351_v48 = vor.u32 %v6038_v26, %v6035_v11 }
 0x3dd   : > { %8147 = vmatmul.bf16.gmra.mxu0 %v17073_v23  ;;  %8196 = vmatmul.bf16.gmra.mxu1 %v17074_v46  ;;  %v6361_v38 = vshrl.u32 %v6160_v30, 16  ;;  %v6391_v55 = vshll.u32 %v16290_v22, 16  ;;  %v7697_v14 = vadd.f32 %v7696_v16, %v7648_v3  ;;  %v6312_v6 = vshll.u32 %v16304_v2, 16  ;;  %v13448_v22 = vld [vmem:[%s17007_s3 + $0x160] sm:$0xff] }
 0x3de   : > { %v6366_v33 = vshrl.u32 %v6162_v12, 16  ;;  %v6369_v0 = vshll.u32 %v6162_v12, 16  ;;  %v6297_v37 = vsel %vm14038_vm3, %v11527_v10, %v6296_v34  ;;  %v6307_v23 = vrot.slane %v6293_v57, 4  ;;  %v5924_v57 = vld [vmem:[#allocation3 + $0xcc] sm:$0x1]  ;;  %8946 = vmatpush.bf16.msrb.mxu1 %v13448_v22 }
 0x3df   : > { %v6393_v63 = vor.u32 %v6391_v55, %v6390_v36  ;;  %v6311_v20 = vrot.slane %v6309_v61, 7  ;;  %6578 = vst [vmem:[#allocation5 + $0xf8] sm:$0xf] %v6297_v37  ;;  %v6041_v11 = vshrl.u32 %v16337_v51, 16  ;;  %v16358_v26 = vadd.f32 %v7745_v49, %v7697_v14  ;;  %v7747_v49 = vpop.f32.mrf.mxu3  ;;  %v13440_v37 = vld [vmem:[%s17007_s3 + $0x120] sm:$0xff] }
 0x3e0   : > { %v6368_v9 = vrot.slane %v6366_v33, 7  ;;  %v6082_v5 = vrot.slane %v6067_v42, 5  ;;  %v6112_v16 = vunpack.c.l.b16 %v16273_v39  ;;  %v7328_v30 = vpop.f32.mrf.mxu0  ;;  %v7649_v12 = vpop.f32.mrf.mxu1  ;;  %v11530_v34 = vrot.slane %v6361_v38, 11  ;;  %8897 = vmatpush.bf16.msrb.mxu0 %v13440_v37 }
 0x3e1   : > { %v6314_v36 = vor.u32 %v6312_v6, %v6311_v20  ;;  %v6044_v61 = vshll.u32 %v16337_v51, 16  ;;  %v7329_v46 = vadd.f32 %v7328_v30, %v15892_v21  ;;  %v7698_v8 = vpop.f32.mrf.mxu2  ;;  %v6114_v10 = vunpack.c.h.b16 %v16273_v39  ;;  %v12288_v21 = vld [vmem:[#allocation5 + $0x108] sm:$0xf] }
 0x3e2   : > { %v6371_v2 = vor.u32 %v6369_v0, %v6368_v9  ;;  %v6386_v3 = vrot.slane %v6368_v9, 4  ;;  %v6083_v56 = vsel %vm609_vm4, %v16273_v39, %v6082_v5  ;;  %v13411_v0 = vld [vmem:[#allocation5 + $0x110] sm:$0xf0]  ;;  %v6155_v6 = vpack.c.b16 %v6112_v16, %v6112_v16 }
 0x3e3   : > { %v6315_v33 = vsel %vm14038_vm3, %v6307_v23, %v6314_v36  ;;  %v6115_v55 = vunpack.c.l.b16 %v6083_v56  ;;  %v7650_v14 = vadd.f32 %v7649_v12, %v7329_v46  ;;  %v6157_v39 = vpack.c.b16 %v6114_v10, %v6114_v10 }
 0x3e4   : > { %v6372_v42 = vsel %vm14038_vm3, %v11530_v34, %v6371_v2  ;;  %v6394_v38 = vsel %vm14038_vm3, %v6386_v3, %v6393_v63  ;;  %v6060_v9 = vunpack.c.l.b16 %v5924_v57  ;;  %v16379_v20 = vrot.slane %v16137_v25, 5  ;;  %6580 = vst [vmem:[#allocation5 + $0x104] sm:$0xf] %v6315_v33 }
 0x3e5   : > { %6585 = vst [vmem:[#allocation5 + $0x120] sm:$0xff] %v6372_v42  ;;  %v6126_v63 = vunpack.c.l.b16 %v16351_v48  ;;  %v6043_v22 = vrot.slane %v6041_v11, 4  ;;  %v6159_v23 = vpack.c.b16 %v6115_v55, %v6115_v55  ;;  %v6046_v5 = vrot.slane %v6044_v61, 5  ;;  %v5911_v11 = vld [vmem:[#allocation3 + $0xd0] sm:$0x8] }
 0x3e6   : > { %6587 = vst [vmem:[#allocation5 + $0x12c] sm:$0xff] %v6394_v38  ;;  %v7699_v30 = vadd.f32 %v7698_v8, %v7650_v14  ;;  %v6330_v12 = vshrl.u32 %v6155_v6, 16  ;;  %v6335_v34 = vshrl.u32 %v6157_v39, 16  ;;  %v12289_v2 = vor.u32 %v13411_v0, %v12288_v21 }
 0x3e7   : > { %v17075_v16 = vor.u32 %v16118_v53, %v16116_v18  ;;  %v6353_v3 = vshrl.u32 %v6159_v23, 16  ;;  %v6068_v36 = vpack.c.b16 %v6060_v9, %v6060_v9  ;;  %v6117_v25 = vunpack.c.l.b16 %v16284_v47  ;;  %v7750_v53 = vpop.f32.mrf.mxu3 }
 0x3e8   : > { %v16386_v57 = vadd.f32 %v7747_v49, %v7699_v30  ;;  %v6123_v46 = vunpack.c.h.b16 %v16261_v13  ;;  %v6432_v61 = vshrl.u32 %v16324_v44, 16  ;;  %v6338_v8 = vshll.u32 %v6157_v39, 16  ;;  %v7331_v56 = vpop.f32.mrf.mxu0  ;;  %v7652_v10 = vpop.f32.mrf.mxu1  ;;  %v13383_v13 = vld [vmem:[%s17007_s3 + $0x18] sm:$0xff] }
 0x3e9   : > { %8250 = vmatmul.bf16.gmra.mxu2 %v17075_v16  ;;  %v5967_v42 = vunpack.c.l.b16 %v5911_v11  ;;  %v6337_v38 = vrot.slane %v6335_v34, 7  ;;  %v6355_v33 = vrot.slane %v6353_v3, 7  ;;  %v6356_v55 = vshll.u32 %v6159_v23, 16  ;;  %8863 = vmatmul.bf16.gmra.mxu3 %v12289_v2  ;;  %v7701_v14 = vpop.f32.mrf.mxu2  ;;  %v17077_v34 = vld [vmem:[#allocation19_spill] sm:$0xff] }
 0x3ea   : > { %v7332_v18 = vadd.f32 %v7331_v56, %v15902_v59  ;;  %v17076_v49 = vunpack.c.l.b16 %v16092_v52  ;;  %v6434_v0 = vrot.slane %v6432_v61, 7  ;;  %v11529_v37 = vrot.slane %v6330_v12, 11  ;;  %v17079_v59 = vld [vmem:[#allocation20_spill] sm:$0xff]  ;;  %9268 = vmatpush.bf16.msrb.mxu2 %v13383_v13 }
 0x3eb   : > { %v6166_v6 = vpack.c.b16 %v6121_v27, %v5967_v42  ;;  %v6340_v39 = vor.u32 %v6338_v8, %v6337_v38  ;;  %v6351_v9 = vrot.slane %v6337_v38, 4  ;;  %v6085_v30 = vrot.slane %v6068_v36, 5  ;;  %v13391_v27 = vld [vmem:[%s17007_s3 + $0x58] sm:$0xff]  ;;  %v16416_v42 = vld [vmem:[#allocation3 + $0x104] sm:$0xf] }
 0x3ec   : > { %v6168_v21 = vpack.c.b16 %v6123_v46, %v17076_v49  ;;  %v7653_v16 = vadd.f32 %v7652_v10, %v7332_v18  ;;  %v17078_v23 = vor.u32 %v16131_v19, %v17077_v34  ;;  %v17080_v2 = vor.u32 %v16150_v24, %v17079_v59  ;;  %9317 = vmatpush.bf16.msrb.mxu3 %v13391_v27  ;;  %v12300_v27 = vld [vmem:[#allocation5 + $0x120] sm:$0xf] }
 0x3ed   : > { %v6435_v52 = vshll.u32 %v16324_v44, 16  ;;  %v6119_v12 = vunpack.c.h.b16 %v16284_v47  ;;  %v6405_v36 = vshrl.u32 %v6166_v6, 16  ;;  %v6341_v19 = vsel %vm14038_vm3, %v11529_v37, %v6340_v39  ;;  %v17081_v6 = vld [vmem:[#allocation9_spill] sm:$0xff] }
 0x3ee   : > { %8152 = vmatmul.bf16.gmra.mxu0 %v17078_v23  ;;  %8201 = vmatmul.bf16.gmra.mxu1 %v17080_v2  ;;  %v6410_v3 = vshrl.u32 %v6168_v21, 16  ;;  %v6358_v11 = vor.u32 %v6356_v55, %v6355_v33  ;;  %v6161_v24 = vpack.c.b16 %v6117_v25, %v6117_v25  ;;  %v7702_v46 = vadd.f32 %v7701_v14, %v7653_v16  ;;  %v5925_v33 = vld [vmem:[#allocation3 + $0xdc] sm:$0x1] }
 0x3ef   : > { %v6413_v8 = vshll.u32 %v6168_v21, 16  ;;  %v6437_v44 = vor.u32 %v6435_v52, %v6434_v0  ;;  %6582 = vst [vmem:[#allocation5 + $0x110] sm:$0xf] %v6341_v19  ;;  %v16412_v56 = vrot.slane %v16234_v40, 5  ;;  %v16414_v10 = vor.u32 %v6046_v5, %v6043_v22  ;;  %v13447_v40 = vld [vmem:[%s17007_s3 + $0x158] sm:$0xff] }
 0x3f0   : > { %v6412_v61 = vrot.slane %v6410_v3, 7  ;;  %v6359_v38 = vsel %vm14038_vm3, %v6351_v9, %v6358_v11  ;;  %v6086_v25 = vsel %vm609_vm4, %v16284_v47, %v6085_v30  ;;  %v16422_v55 = vadd.f32 %v7750_v53, %v7702_v46  ;;  %v16433_v5 = vld [vmem:[#allocation3 + $0x108] sm:$0xf]  ;;  %v7333_v47 = vpop.f32.mrf.mxu0  ;;  %v7654_v21 = vpop.f32.mrf.mxu1  ;;  %8947 = vmatpush.bf16.msrb.mxu1 %v13447_v40  ;;  %v13414_v19 = vld [vmem:[#allocation5 + $0x128] sm:$0xf0] }
 0x3f1   : > { %v11532_v18 = vrot.slane %v6405_v36, 11  ;;  %6584 = vst [vmem:[#allocation5 + $0x11c] sm:$0xf] %v6359_v38  ;;  %v16431_v22 = vpack.c.b16 %v6126_v63, %v5972_v4  ;;  %v6120_v53 = vunpack.c.l.b16 %v6086_v25  ;;  %v6163_v0 = vpack.c.b16 %v6119_v12, %v6119_v12  ;;  %v7752_v9 = vpop.f32.mrf.mxu3  ;;  %v7703_v30 = vpop.f32.mrf.mxu2  ;;  %v13439_v12 = vld [vmem:[%s17007_s3 + $0x118] sm:$0xff] }
 0x3f2   : > { %v6415_v14 = vor.u32 %v6413_v8, %v6412_v61  ;;  %v6430_v49 = vrot.slane %v6412_v61, 4  ;;  %v6061_v37 = vunpack.c.l.b16 %v5925_v33  ;;  %v7334_v39 = vadd.f32 %v7333_v47, %v17081_v6  ;;  %8898 = vmatpush.bf16.msrb.mxu0 %v13439_v12 }
 0x3f3   : > { %v6374_v4 = vshrl.u32 %v6161_v24, 16  ;;  %v6617_v34 = vunpack.c.l.b16 %v16416_v42  ;;  %v6165_v23 = vpack.c.b16 %v6120_v53, %v6120_v53  ;;  %v6379_v59 = vshrl.u32 %v6163_v0, 16  ;;  %v13388_v42 = vld [vmem:[%s17007_s3 + $0x40] sm:$0xff] }
 0x3f4   : > { %v6416_v16 = vsel %vm14038_vm3, %v11532_v18, %v6415_v14  ;;  %v6438_v45 = vsel %vm14038_vm3, %v6430_v49, %v6437_v44  ;;  %v6069_v2 = vpack.c.b16 %v6061_v37, %v6061_v37  ;;  %v6131_v3 = vunpack.c.l.b16 %v16414_v10 }
 0x3f5   : > { %6589 = vst [vmem:[#allocation5 + $0x138] sm:$0xff] %v6416_v16  ;;  %v6618_v52 = vunpack.c.l.b16 %v16433_v5  ;;  %v7655_v13 = vadd.f32 %v7654_v21, %v7334_v39  ;;  %v6382_v36 = vshll.u32 %v6163_v0, 16  ;;  %v6381_v11 = vrot.slane %v6379_v59, 7  ;;  %v5914_v21 = vld [vmem:[#allocation3 + $0xe0] sm:$0x8] }
 0x3f6   : > { %6591 = vst [vmem:[#allocation5 + $0x144] sm:$0xff] %v6438_v45  ;;  %v6397_v24 = vshrl.u32 %v6165_v23, 16  ;;  %v6088_v46 = vrot.slane %v6069_v2, 5  ;;  %v6122_v61 = vunpack.c.l.b16 %v16379_v20  ;;  %v11531_v44 = vrot.slane %v6374_v4, 11  ;;  %v16457_v39 = vld [vmem:[#allocation5 + $0x98] sm:$0xf] }
 0x3f7   : > { %v7704_v8 = vadd.f32 %v7703_v30, %v7655_v13  ;;  %v6400_v38 = vshll.u32 %v6165_v23, 16  ;;  %v6124_v25 = vunpack.c.h.b16 %v16379_v20  ;;  %v6384_v33 = vor.u32 %v6382_v36, %v6381_v11 }
 0x3f8   : > { %v6395_v18 = vrot.slane %v6381_v11, 4  ;;  %v6399_v14 = vrot.slane %v6397_v24, 7  ;;  %v6089_v49 = vsel %vm609_vm4, %v16379_v20, %v6088_v46  ;;  %v12301_v47 = vor.u32 %v13414_v19, %v12300_v27  ;;  %v7336_v37 = vpop.f32.mrf.mxu0  ;;  %v7657_v6 = vpop.f32.mrf.mxu1 }
 0x3f9   : > { %8255 = vmatmul.bf16.gmra.mxu2 %v12069_v15  ;;  %v16453_v40 = vadd.f32 %v7752_v9, %v7704_v8  ;;  %v6128_v53 = vunpack.c.h.b16 %v16351_v48  ;;  %v6476_v0 = vshrl.u32 %v16431_v22, 16  ;;  %v5970_v50 = vunpack.c.l.b16 %v5914_v21  ;;  %v17082_v9 = vld [vmem:[#allocation10_spill] sm:$0xff]  ;;  %v7755_v45 = vpop.f32.mrf.mxu3  ;;  %v7706_v4 = vpop.f32.mrf.mxu2 }
 0x3fa   : > { %v6385_v15 = vsel %vm14038_vm3, %v11531_v44, %v6384_v33  ;;  %v6402_v30 = vor.u32 %v6400_v38, %v6399_v14  ;;  %v6167_v20 = vpack.c.b16 %v6122_v61, %v6122_v61  ;;  %8868 = vmatmul.bf16.gmra.mxu3 %v12301_v47  ;;  %v7337_v16 = vadd.f32 %v7336_v37, %v17082_v9  ;;  %v13390_v61 = vld [vmem:[%s17007_s3 + $0x50] sm:$0xff] }
 0x3fb   : > { %v17083_v23 = vunpack.c.l.b16 %v16214_v41  ;;  %v6478_v2 = vrot.slane %v6476_v0, 7  ;;  %v6125_v13 = vunpack.c.l.b16 %v6089_v49  ;;  %v16470_v27 = vpack.c.b16 %v6618_v52, %v6617_v34  ;;  %6586 = vst [vmem:[#allocation5 + $0x128] sm:$0xf] %v6385_v15  ;;  %9318 = vmatpush.bf16.msrb.mxu3 %v13390_v61  ;;  %v13446_v47 = vld [vmem:[%s17007_s3 + $0x150] sm:$0xff] }
 0x3fc   : > { %v6172_v12 = vpack.c.b16 %v6126_v63, %v5970_v50  ;;  %v6403_v36 = vsel %vm14038_vm3, %v6395_v18, %v6402_v30  ;;  %v6169_v19 = vpack.c.b16 %v6124_v25, %v6124_v25  ;;  %v7658_v11 = vadd.f32 %v7657_v6, %v7337_v16  ;;  %v13382_v63 = vld [vmem:[%s17007_s3 + $0x10] sm:$0xff]  ;;  %v17085_v30 = vld [vmem:[#allocation12_spill] sm:$0xff]  ;;  %8948 = vmatpush.bf16.msrb.mxu1 %v13446_v47 }
 0x3fd   : > { %v6174_v59 = vpack.c.b16 %v6128_v53, %v17083_v23  ;;  %v17084_v41 = vor.u32 %v16281_v1, %v16297_v7  ;;  %v12081_v24 = vor.u32 %v16459_v17, %v16457_v39  ;;  %v6479_v48 = vshll.u32 %v16431_v22, 16  ;;  %6588 = vst [vmem:[#allocation5 + $0x134] sm:$0xf] %v6403_v36  ;;  %9269 = vmatpush.bf16.msrb.mxu2 %v13382_v63 }
 0x3fe   : > { %8157 = vmatmul.bf16.gmra.mxu0 %v12061_v58  ;;  %v16495_v35 = vpack.c.b16 %v6131_v3, %v5975_v62  ;;  %v6449_v43 = vshrl.u32 %v6172_v12, 16  ;;  %v6171_v7 = vpack.c.b16 %v6125_v13, %v6125_v13  ;;  %v7707_v58 = vadd.f32 %v7706_v4, %v7658_v11 }
 0x3ff   : > { %8206 = vmatmul.bf16.gmra.mxu1 %v17084_v41  ;;  %v6454_v46 = vshrl.u32 %v6174_v59, 16  ;;  %v6457_v1 = vshll.u32 %v6174_v59, 16  ;;  %v6481_v8 = vor.u32 %v6479_v48, %v6478_v2  ;;  %v6418_v44 = vshrl.u32 %v6167_v20, 16  ;;  %v12072_v59 = vld [vmem:[#allocation5 + $0x90] sm:$0xf]  ;;  %9319 = vmatpush.bf16.msrb.mxu3 %v13389_v32 }
 0x400   : > { %v6625_v38 = vshrl.u32 %v16470_v27, 16  ;;  %v6628_v25 = vshll.u32 %v16470_v27, 16  ;;  %v11534_v33 = vrot.slane %v6449_v43, 11  ;;  %v6423_v18 = vshrl.u32 %v6169_v19, 16  ;;  %v7338_v53 = vpop.f32.mrf.mxu0  ;;  %v7659_v0 = vpop.f32.mrf.mxu1  ;;  %v13321_v41 = vld [vmem:[#allocation5 + $0x98] sm:$0xf0] }
 0x401   : > { %v6456_v22 = vrot.slane %v6454_v46, 7  ;;  %v16499_v14 = vadd.f32 %v7755_v45, %v7707_v58  ;;  %v6426_v21 = vshll.u32 %v6169_v19, 16  ;;  %v11533_v37 = vrot.slane %v6418_v44, 11  ;;  %v7757_v9 = vpop.f32.mrf.mxu3  ;;  %v7708_v16 = vpop.f32.mrf.mxu2  ;;  %v13438_v46 = vld [vmem:[%s17007_s3 + $0x110] sm:$0xff]  ;;  %v12312_v43 = vld [vmem:[#allocation5 + $0x138] sm:$0xf] }
 0x402   : > { %v6425_v6 = vrot.slane %v6423_v18, 7  ;;  %v6441_v50 = vshrl.u32 %v6171_v7, 16  ;;  %v6062_v15 = vunpack.c.l.b16 %v5926_v29  ;;  %v7339_v20 = vadd.f32 %v7338_v53, %v17085_v30  ;;  %v13320_v44 = vld [vmem:[#allocation5 + $0x94] sm:$0xf]  ;;  %8899 = vmatpush.bf16.msrb.mxu0 %v13438_v46 }
 0x403   : > { %v6459_v62 = vor.u32 %v6457_v1, %v6456_v22  ;;  %v6474_v49 = vrot.slane %v6456_v22, 4  ;;  %v6444_v23 = vshll.u32 %v6171_v7, 16  ;;  %v6627_v19 = vrot.slane %v6625_v38, 4  ;;  %v13417_v1 = vld [vmem:[#allocation5 + $0x140] sm:$0xf0]  ;;  %9320 = vmatpush.bf16.msrb.mxu3 %v13388_v42 }
 0x404   : > { %v6428_v2 = vor.u32 %v6426_v21, %v6425_v6  ;;  %v6439_v13 = vrot.slane %v6425_v6, 4  ;;  %v6443_v12 = vrot.slane %v6441_v50, 7  ;;  %v6070_v36 = vpack.c.b16 %v6062_v15, %v6062_v15  ;;  %v12074_v38 = vld [vmem:[#allocation5 + $0x9c] sm:$0xf0]  ;;  %v17086_v15 = vld [vmem:[#allocation13_spill] sm:$0xff] }
 0x405   : > { %v6460_v45 = vsel %vm14038_vm3, %v11534_v33, %v6459_v62  ;;  %v6482_v4 = vsel %vm14038_vm3, %v6474_v49, %v6481_v8  ;;  %v7660_v11 = vadd.f32 %v7659_v0, %v7339_v20  ;;  %v6127_v48 = vunpack.c.l.b16 %v16412_v56  ;;  %v5917_v21 = vld [vmem:[#allocation3 + $0xf0] sm:$0x8] }
 0x406   : > { %6593 = vst [vmem:[#allocation5 + $0x150] sm:$0xff] %v6460_v45  ;;  %v6129_v63 = vunpack.c.h.b16 %v16412_v56  ;;  %v6630_v61 = vrot.slane %v6628_v25, 5  ;;  %v6429_v7 = vsel %vm14038_vm3, %v11533_v37, %v6428_v2  ;;  %v6446_v58 = vor.u32 %v6444_v23, %v6443_v12 }
 0x407   : > { %6595 = vst [vmem:[#allocation5 + $0x15c] sm:$0xff] %v6482_v4  ;;  %v6091_v22 = vrot.slane %v6070_v36, 5  ;;  %v7709_v8 = vadd.f32 %v7708_v16, %v7660_v11  ;;  %v12073_v18 = vor.u32 %v13321_v41, %v12072_v59  ;;  %v6173_v62 = vpack.c.b16 %v6127_v48, %v6127_v48  ;;  %v13381_v36 = vld [vmem:[%s17007_s3 + $0x8] sm:$0xff] }
 0x408   : > { %6590 = vst [vmem:[#allocation5 + $0x140] sm:$0xf] %v6429_v7  ;;  %v6175_v33 = vpack.c.b16 %v6129_v63, %v6129_v63  ;;  %v6447_v25 = vsel %vm14038_vm3, %v6439_v13, %v6446_v58  ;;  %v12313_v47 = vor.u32 %v13417_v1, %v12312_v43  ;;  %v6133_v53 = vunpack.c.h.b16 %v16414_v10  ;;  %v7341_v39 = vpop.f32.mrf.mxu0  ;;  %v7662_v17 = vpop.f32.mrf.mxu1  ;;  %9270 = vmatpush.bf16.msrb.mxu2 %v13381_v36  ;;  %v12086_v36 = vld [vmem:[#allocation5 + $0xb4] sm:$0xf0] }
 0x409   : > { %8260 = vmatmul.bf16.gmra.mxu2 %v12081_v24  ;;  %v6092_v29 = vsel %vm609_vm4, %v16412_v56, %v6091_v22  ;;  %v16523_v49 = vadd.f32 %v7757_v9, %v7709_v8  ;;  %v6520_v0 = vshrl.u32 %v16495_v35, 16  ;;  %6592 = vst [vmem:[#allocation5 + $0x14c] sm:$0xf] %v6447_v25  ;;  %v16527_v37 = vor.u32 %v6630_v61, %v6627_v19  ;;  %v7760_v30 = vpop.f32.mrf.mxu3  ;;  %v7711_v20 = vpop.f32.mrf.mxu2  ;;  %v5927_v8 = vld [vmem:[#allocation3 + $0xfc] sm:$0x1] }
 0x40a   : > { %v12077_v24 = vor.u32 %v13320_v44, %v12074_v38  ;;  %v5973_v6 = vunpack.c.l.b16 %v5917_v21  ;;  %v6130_v50 = vunpack.c.l.b16 %v6092_v29  ;;  %8873 = vmatmul.bf16.gmra.mxu3 %v12313_v47  ;;  %v7342_v56 = vadd.f32 %v7341_v39, %v17086_v15  ;;  %v17087_v47 = vld [vmem:[#allocation11_spill] sm:$0xff]  ;;  %v13325_v39 = vld [vmem:[#allocation5 + $0xb8] sm:$0xf0] }
 0x40b   : > { %v6180_v9 = vpack.c.b16 %v6133_v53, %v5974_v31  ;;  %v6522_v16 = vrot.slane %v6520_v0, 7  ;;  %v6467_v45 = vshrl.u32 %v6175_v33, 16  ;;  %v6462_v59 = vshrl.u32 %v6173_v62, 16  ;;  %v12092_v0 = vld [vmem:[#allocation5 + $0xb0] sm:$0xf] }
 0x40c   : > { %v6178_v4 = vpack.c.b16 %v6131_v3, %v5973_v6  ;;  %v6177_v23 = vpack.c.b16 %v6130_v50, %v6130_v50  ;;  %v7663_v2 = vadd.f32 %v7662_v17, %v7342_v56  ;;  %v6523_v12 = vshll.u32 %v16495_v35, 16 }
 0x40d   : > { %v6498_v13 = vshrl.u32 %v6180_v9, 16  ;;  %v6093_v31 = vrot.slane %v16337_v51, 5  ;;  %v6652_v10 = vunpack.c.l.b16 %v16527_v37  ;;  %v6501_v19 = vshll.u32 %v6180_v9, 16  ;;  %v13445_v51 = vld [vmem:[%s17007_s3 + $0x148] sm:$0xff] }
 0x40e   : > { %8162 = vmatmul.bf16.gmra.mxu0 %v12073_v18  ;;  %v6493_v3 = vshrl.u32 %v6178_v4, 16  ;;  %v7712_v11 = vadd.f32 %v7711_v20, %v7663_v2  ;;  %v6525_v46 = vor.u32 %v6523_v12, %v6522_v16  ;;  %v6469_v35 = vrot.slane %v6467_v45, 7  ;;  %8949 = vmatpush.bf16.msrb.mxu1 %v13445_v51  ;;  %v12324_v20 = vld [vmem:[#allocation5 + $0x150] sm:$0xf]  ;;  %v13437_v9 = vld [vmem:[%s17007_s3 + $0x108] sm:$0xff] }
 0x40f   : > { %8211 = vmatmul.bf16.gmra.mxu1 %v12077_v24  ;;  %v6500_v41 = vrot.slane %v6498_v13, 7  ;;  %v11535_v63 = vrot.slane %v6462_v59, 11  ;;  %v6470_v61 = vshll.u32 %v6175_v33, 16  ;;  %v6485_v43 = vshrl.u32 %v6177_v23, 16  ;;  %v13420_v4 = vld [vmem:[#allocation5 + $0x158] sm:$0xf0]  ;;  %8900 = vmatpush.bf16.msrb.mxu0 %v13437_v9 }
 0x410   : > { %v11536_v48 = vrot.slane %v6493_v3, 11  ;;  %v16543_v1 = vadd.f32 %v7760_v30, %v7712_v11  ;;  %v6488_v22 = vshll.u32 %v6177_v23, 16  ;;  %v7343_v44 = vpop.f32.mrf.mxu0  ;;  %v7664_v38 = vpop.f32.mrf.mxu1  ;;  %v6483_v25 = vrot.slane %v6469_v35, 4  ;;  %v12084_v13 = vld [vmem:[#allocation5 + $0xa8] sm:$0xf]  ;;  %v17088_v51 = vld [vmem:[#allocation14_spill] sm:$0xff] }
 0x411   : > { %v6503_v7 = vor.u32 %v6501_v19, %v6500_v41  ;;  %v6518_v58 = vrot.slane %v6500_v41, 4  ;;  %v6472_v18 = vor.u32 %v6470_v61, %v6469_v35  ;;  %v6487_v29 = vrot.slane %v6485_v43, 7  ;;  %v7762_v33 = vpop.f32.mrf.mxu3  ;;  %v7713_v53 = vpop.f32.mrf.mxu2  ;;  %v13324_v12 = vld [vmem:[#allocation5 + $0xb0] sm:$0xf0] }
 0x412   : > { %v6063_v62 = vunpack.c.l.b16 %v5927_v8  ;;  %v7344_v21 = vadd.f32 %v7343_v44, %v17087_v47  ;;  %v6666_v56 = vpack.c.b16 %v6652_v10, %v6618_v52  ;;  %v6132_v16 = vunpack.c.l.b16 %v6093_v31  ;;  %v13323_v52 = vld [vmem:[#allocation5 + $0xac] sm:$0xf] }
 0x413   : > { %v6504_v17 = vsel %vm14038_vm3, %v11536_v48, %v6503_v7  ;;  %v6526_v24 = vsel %vm14038_vm3, %v6518_v58, %v6525_v46  ;;  %v6473_v6 = vsel %vm14038_vm3, %v11535_v63, %v6472_v18  ;;  %v6490_v50 = vor.u32 %v6488_v22, %v6487_v29  ;;  %v6602_v46 = vld [vmem:[#allocation3 + $0x100] sm:$0x8] }
 0x414   : > { %6597 = vst [vmem:[#allocation5 + $0x168] sm:$0xff] %v6504_v17  ;;  %v6071_v15 = vpack.c.b16 %v6063_v62, %v6063_v62  ;;  %v7665_v30 = vadd.f32 %v7664_v38, %v7344_v21  ;;  %v6134_v45 = vunpack.c.h.b16 %v6093_v31  ;;  %v12093_v23 = vor.u32 %v13325_v39, %v12092_v0  ;;  %v13380_v0 = vld [vmem:[%s17007_s3] sm:$0xff] }
 0x415   : > { %6599 = vst [vmem:[#allocation5 + $0x174] sm:$0xff] %v6526_v24  ;;  %v6491_v59 = vsel %vm14038_vm3, %v6483_v25, %v6490_v50  ;;  %v6179_v3 = vpack.c.b16 %v6132_v16, %v6132_v16  ;;  %v12325_v41 = vor.u32 %v13420_v4, %v12324_v20  ;;  %v6654_v35 = vunpack.c.h.b16 %v16527_v37  ;;  %9271 = vmatpush.bf16.msrb.mxu2 %v13380_v0  ;;  %v6608_v20 = vld [vmem:[#allocation3 + $0x10c] sm:$0x1] }
 0x416   : > { %6594 = vst [vmem:[#allocation5 + $0x158] sm:$0xf] %v6473_v6  ;;  %v6094_v2 = vrot.slane %v6071_v15, 5  ;;  %v7714_v5 = vadd.f32 %v7713_v53, %v7665_v30  ;;  %v6181_v19 = vpack.c.b16 %v6134_v45, %v6134_v45  ;;  %v6702_v48 = vshrl.u32 %v6666_v56, 16 }
 0x417   : > { %6596 = vst [vmem:[#allocation5 + $0x164] sm:$0xf] %v6491_v59  ;;  %v12085_v43 = vor.u32 %v13324_v12, %v12084_v13  ;;  %v6616_v7 = vunpack.c.l.b16 %v6602_v46  ;;  %v6664_v38 = vpack.c.b16 %v6654_v35, %v6617_v34  ;;  %v6506_v62 = vshrl.u32 %v6179_v3, 16 }
 0x418   : > { %v6095_v32 = vsel %vm609_vm4, %v6093_v31, %v6094_v2  ;;  %v16565_v11 = vadd.f32 %v7762_v33, %v7714_v5  ;;  %v7346_v63 = vpop.f32.mrf.mxu0  ;;  %v7667_v61 = vpop.f32.mrf.mxu1  ;;  %v12089_v31 = vor.u32 %v13323_v52, %v12086_v36  ;;  %v6704_v18 = vrot.slane %v6702_v48, 7  ;;  %v17089_v52 = vld [vmem:[#allocation15_spill] sm:$0xff] }
 0x419   : > { %8265 = vmatmul.bf16.gmra.mxu2 %v12093_v23  ;;  %v6135_v58 = vunpack.c.l.b16 %v6095_v32  ;;  %v7347_v22 = vadd.f32 %v7346_v63, %v17088_v51  ;;  %v7765_v8 = vpop.f32.mrf.mxu3  ;;  %v7716_v44 = vpop.f32.mrf.mxu2  ;;  %v6662_v25 = vpack.c.b16 %v6652_v10, %v6616_v7  ;;  %v6511_v47 = vshrl.u32 %v6181_v19, 16 }
 0x41a   : > { %8878 = vmatmul.bf16.gmra.mxu3 %v12325_v41  ;;  %v6680_v33 = vshrl.u32 %v6664_v38, 16  ;;  %v6705_v53 = vshll.u32 %v6666_v56, 16  ;;  %v6646_v34 = vrot.slane %v16470_v27, 5  ;;  %v6514_v10 = vshll.u32 %v6181_v19, 16  ;;  %v13444_v27 = vld [vmem:[%s17007_s3 + $0x140] sm:$0xff] }
 0x41b   : > { %v6183_v29 = vpack.c.b16 %v6135_v58, %v6135_v58  ;;  %v7668_v21 = vadd.f32 %v7667_v61, %v7347_v22  ;;  %v6675_v37 = vshrl.u32 %v6662_v25, 16  ;;  %v6683_v24 = vshll.u32 %v6664_v38, 16  ;;  %v12104_v19 = vld [vmem:[#allocation5 + $0xc8] sm:$0xf]  ;;  %v13328_v41 = vld [vmem:[#allocation5 + $0xd0] sm:$0xf0]  ;;  %8950 = vmatpush.bf16.msrb.mxu1 %v13444_v27 }
 0x41c   : > { %v6682_v17 = vrot.slane %v6680_v33, 7  ;;  %v6707_v6 = vor.u32 %v6705_v53, %v6704_v18  ;;  %v11537_v15 = vrot.slane %v6506_v62, 11  ;;  %v6513_v56 = vrot.slane %v6511_v47, 7  ;;  %v12336_v7 = vld [vmem:[#allocation5 + $0x168] sm:$0xf]  ;;  %v13436_v58 = vld [vmem:[%s17007_s3 + $0x100] sm:$0xff] }
 0x41d   : > { %v7717_v39 = vadd.f32 %v7716_v44, %v7668_v21  ;;  %v11538_v50 = vrot.slane %v6675_v37, 11  ;;  %v6529_v30 = vshrl.u32 %v6183_v29, 16  ;;  %v6532_v4 = vshll.u32 %v6183_v29, 16  ;;  %v12096_v25 = vld [vmem:[#allocation5 + $0xc0] sm:$0xf]  ;;  %8901 = vmatpush.bf16.msrb.mxu0 %v13436_v58 }
 0x41e   : > { %8167 = vmatmul.bf16.gmra.mxu0 %v12085_v43  ;;  %v6685_v16 = vor.u32 %v6683_v24, %v6682_v17  ;;  %v6700_v45 = vrot.slane %v6682_v17, 4  ;;  %v6516_v2 = vor.u32 %v6514_v10, %v6513_v56  ;;  %v6527_v5 = vrot.slane %v6513_v56, 4  ;;  %v13327_v47 = vld [vmem:[#allocation5 + $0xc8] sm:$0xf0]  ;;  %v13326_v21 = vld [vmem:[#allocation5 + $0xc4] sm:$0xf] }
 0x41f   : > { %8216 = vmatmul.bf16.gmra.mxu1 %v12089_v31  ;;  %v16580_v9 = vadd.f32 %v7765_v8, %v7717_v39  ;;  %v6531_v13 = vrot.slane %v6529_v30, 7  ;;  %v6642_v12 = vunpack.c.l.b16 %v6608_v20  ;;  %v6653_v51 = vunpack.c.l.b16 %v6646_v34  ;;  %v13423_v8 = vld [vmem:[#allocation5 + $0x170] sm:$0xf0]  ;;  %v12098_v33 = vld [vmem:[#allocation5 + $0xcc] sm:$0xf0] }
 0x420   : > { %v7348_v23 = vpop.f32.mrf.mxu0  ;;  %v7669_v59 = vpop.f32.mrf.mxu1  ;;  %v6686_v46 = vsel %vm14038_vm3, %v11538_v50, %v6685_v16  ;;  %v6708_v35 = vsel %vm14038_vm3, %v6700_v45, %v6707_v6  ;;  %v6517_v48 = vsel %vm14038_vm3, %v11537_v15, %v6516_v2  ;;  %v6655_v22 = vunpack.c.h.b16 %v6646_v34  ;;  %v17090_v6 = vld [vmem:[#allocation16_spill] sm:$0xff] }
 0x421   : > { %v7349_v36 = vadd.f32 %v7348_v23, %v17089_v52  ;;  %v7767_v32 = vpop.f32.mrf.mxu3  ;;  %v7718_v3 = vpop.f32.mrf.mxu2  ;;  %6771 = vst [vmem:[#allocation5 + $0x180] sm:$0xff] %v6686_v46  ;;  %v6534_v63 = vor.u32 %v6532_v4, %v6531_v13  ;;  %v6644_v61 = vpack.c.b16 %v6642_v12, %v6642_v12  ;;  %v12105_v44 = vor.u32 %v13328_v41, %v12104_v19  ;;  %v13491_v16 = vld [vmem:[%s17007_s3 + $0x1f8] sm:$0xff]  ;;  %v17091_v46 = vld [vmem:[#allocation17_spill] sm:$0xff] }
 0x422   : > { %6773 = vst [vmem:[#allocation5 + $0x18c] sm:$0xff] %v6708_v35  ;;  %v6663_v29 = vpack.c.b16 %v6653_v51, %v6653_v51  ;;  %v6665_v62 = vpack.c.b16 %v6655_v22, %v6655_v22  ;;  %v12337_v42 = vor.u32 %v13423_v8, %v12336_v7  ;;  %v12097_v30 = vor.u32 %v13327_v47, %v12096_v25  ;;  %v13483_v51 = vld [vmem:[%s17007_s3 + $0x1b8] sm:$0xff]  ;;  %v12108_v25 = vld [vmem:[#allocation5 + $0xd8] sm:$0xf] }
 0x423   : > { %v7670_v43 = vadd.f32 %v7669_v59, %v7349_v36  ;;  %v6535_v31 = vsel %vm14038_vm3, %v6527_v5, %v6534_v63  ;;  %6598 = vst [vmem:[#allocation5 + $0x170] sm:$0xf] %v6517_v48  ;;  %v6647_v38 = vrot.slane %v6644_v61, 5  ;;  %v12101_v20 = vor.u32 %v13326_v21, %v12098_v33  ;;  %9813 = vmatpush.bf16.msra.mxu2 %v13491_v16  ;;  %v12116_v61 = vld [vmem:[#allocation5 + $0xe0] sm:$0xf]  ;;  %v13403_v22 = vld [vmem:[%s17007_s3 + $0xb8] sm:$0xff] }
 0x424   : > { %6600 = vst [vmem:[#allocation5 + $0x17c] sm:$0xf] %v6535_v31  ;;  %v6693_v10 = vshrl.u32 %v6665_v62, 16  ;;  %v6688_v24 = vshrl.u32 %v6663_v29, 16  ;;  %v6696_v4 = vshll.u32 %v6665_v62, 16  ;;  %9764 = vmatpush.bf16.msra.mxu1 %v13483_v51  ;;  %9362 = vmatpush.bf16.msra.mxu0 %v13403_v22 }
 0x425   : > { %v7719_v18 = vadd.f32 %v7718_v3, %v7670_v43  ;;  %v6648_v53 = vsel %vm609_vm4, %v6646_v34, %v6647_v38  ;;  %v13499_v34 = vld [vmem:[%s17007_s3 + $0x238] sm:$0xff]  ;;  %v13330_v29 = vld [vmem:[#allocation5 + $0xe0] sm:$0xf0]  ;;  %v13329_v62 = vld [vmem:[#allocation5 + $0xdc] sm:$0xf] }
 0x426   : > { %v6656_v37 = vunpack.c.l.b16 %v6648_v53  ;;  %v6695_v45 = vrot.slane %v6693_v10, 7  ;;  %9862 = vmatpush.bf16.msra.mxu3 %v13499_v34  ;;  %v11539_v59 = vrot.slane %v6688_v24, 11  ;;  %v13331_v43 = vld [vmem:[#allocation5 + $0xe8] sm:$0xf0]  ;;  %v12110_v47 = vld [vmem:[#allocation5 + $0xe4] sm:$0xf0]  ;;  %v12109_v24 = vor.u32 %v13330_v29, %v12108_v25 }
 0x427   : > { %v16598_v0 = vadd.f32 %v7767_v32, %v7719_v18  ;;  %v12117_v31 = vor.u32 %v13331_v43, %v12116_v61  ;;  %v13489_v25 = vld [vmem:[%s17007_s3 + $0x1e8] sm:$0xff] }
 0x428   : > { %v7351_v39 = vpop.f32.mrf.mxu0  ;;  %v7672_v17 = vpop.f32.mrf.mxu1  ;;  %v6667_v27 = vpack.c.b16 %v6656_v37, %v6656_v37  ;;  %v6698_v2 = vor.u32 %v6696_v4, %v6695_v45  ;;  %v6709_v3 = vrot.slane %v6695_v45, 4  ;;  %v12348_v8 = vld [vmem:[#allocation5 + $0x180] sm:$0xf]  ;;  %v17092_v37 = vld [vmem:[#allocation18_spill] sm:$0xff]  ;;  %v17093_v45 = vld [vmem:[#allocation21_spill] sm:$0xff] }
 0x429   : > { %8270 = vmatmul.bf16.gmra.mxu2 %v12105_v44  ;;  %v7352_v50 = vadd.f32 %v7351_v39, %v17090_v6  ;;  %v7770_v15 = vpop.f32.mrf.mxu3  ;;  %v7721_v56 = vpop.f32.mrf.mxu2  ;;  %v13426_v44 = vld [vmem:[#allocation5 + $0x188] sm:$0xf0]  ;;  %v12113_v6 = vor.u32 %v13329_v62, %v12110_v47  ;;  %v13497_v29 = vld [vmem:[%s17007_s3 + $0x228] sm:$0xff]  ;;  %v13502_v62 = vld [vmem:[%s14164_s9] sm:$0xff]  }
 0x42a   : > { %8883 = vmatmul.bf16.gmra.mxu3 %v12337_v42  ;;  %v6699_v13 = vsel %vm14038_vm3, %v11539_v59, %v6698_v2  ;;  %v6711_v12 = vshrl.u32 %v6667_v27, 16  ;;  %v6714_v41 = vshll.u32 %v6667_v27, 16  ;;  %v12349_v33 = vor.u32 %v13426_v44, %v12348_v8  ;;  %v12456_v59 = vld [vmem:[#allocation5 + $0xc0] sm:$0xf]  ;;  %v13357_v2 = vld [vmem:[#allocation5 + $0xc8] sm:$0xf0] }
 0x42b   : > { %v7673_v23 = vadd.f32 %v7672_v17, %v7352_v50  ;;  %6772 = vst [vmem:[#allocation5 + $0x188] sm:$0xf] %v6699_v13  ;;  %v13482_v13 = vld [vmem:[%s17007_s3 + $0x1b0] sm:$0xff] }
 0x42c   : > { %v6713_v19 = vrot.slane %v6711_v12, 7  ;;  %v13356_v12 = vld [vmem:[#allocation5 + $0xc4] sm:$0xf]  ;;  %9765 = vmatpush.bf16.msra.mxu1 %v13482_v13 }
 0x42d   : > { %v7722_v5 = vadd.f32 %v7721_v56, %v7673_v23 }
 0x42e   : > { %8172 = vmatmul.bf16.gmra.mxu0 %v12097_v30  ;;  %v6716_v7 = vor.u32 %v6714_v41, %v6713_v19  ;;  %v13490_v30 = vld [vmem:[%s17007_s3 + $0x1f0] sm:$0xff] }
 0x42f   : > { %8221 = vmatmul.bf16.gmra.mxu1 %v12101_v20  ;;  %v16609_v52 = vadd.f32 %v7770_v15, %v7722_v5  ;;  %v13498_v20 = vld [vmem:[%s17007_s3 + $0x230] sm:$0xff]  ;;  %9814 = vmatpush.bf16.msra.mxu2 %v13490_v30 }
 0x430   : > { %v7353_v36 = vpop.f32.mrf.mxu0  ;;  %v7674_v32 = vpop.f32.mrf.mxu1  ;;  %v6717_v38 = vsel %vm14038_vm3, %v6709_v3, %v6716_v7  ;;  %9863 = vmatpush.bf16.msra.mxu3 %v13498_v20  ;;  %v13402_v3 = vld [vmem:[%s17007_s3 + $0xb0] sm:$0xff]  ;;  %v13401_v20 = vld [vmem:[%s17007_s3 + $0xa8] sm:$0xff] }
 0x431   : > { %v7354_v35 = vadd.f32 %v7353_v36, %v17091_v46  ;;  %v7772_v48 = vpop.f32.mrf.mxu3  ;;  %v7723_v63 = vpop.f32.mrf.mxu2  ;;  %6774 = vst [vmem:[#allocation5 + $0x194] sm:$0xf] %v6717_v38  ;;  %v12458_v36 = vld [vmem:[#allocation5 + $0xcc] sm:$0xf0]  ;;  %v12272_v41 = vld [vmem:[#allocation5 + $0xe0] sm:$0xf]  ;;  %9363 = vmatpush.bf16.msra.mxu0 %v13402_v3 }
 0x432   : > { %v13404_v46 = vld [vmem:[#allocation5 + $0xdc] sm:$0xf]  ;;  %v12461_v61 = vor.u32 %v13356_v12, %v12458_v36 }
 0x433   : > { %v7675_v58 = vadd.f32 %v7674_v32, %v7354_v35  ;;  %v12457_v32 = vor.u32 %v13357_v2, %v12456_v59  ;;  %v12266_v35 = vld [vmem:[#allocation5 + $0xe4] sm:$0xf0]  ;;  %9815 = vmatpush.bf16.msra.mxu2 %v13489_v25  ;;  %v12480_v25 = vld [vmem:[#allocation5 + $0xf0] sm:$0xf] }
 0x434   : > { %v12269_v8 = vor.u32 %v13404_v46, %v12266_v35  ;;  %9864 = vmatpush.bf16.msra.mxu3 %v13497_v29  ;;  %v13363_v29 = vld [vmem:[#allocation5 + $0xf8] sm:$0xf0] }
 0x435   : > { %v7724_v18 = vadd.f32 %v7723_v63, %v7675_v58  ;;  %9364 = vmatpush.bf16.msra.mxu0 %v13401_v20 }
 0x437   : > { %v16620_v21 = vadd.f32 %v7772_v48, %v7724_v18  ;;  %v13406_v48 = vld [vmem:[#allocation5 + $0xe8] sm:$0xf0]  ;;  %v16646_v18 = vld [vmem:[%s17008_s4] ss:$0 sm:$0xff] }
 0x438   : > { %v7356_v53 = vpop.f32.mrf.mxu0  ;;  %v7677_v42 = vpop.f32.mrf.mxu1  ;;  %v12273_v44 = vor.u32 %v13406_v48, %v12272_v41 }
 0x439   : > { %8275 = vmatmul.bf16.gmra.mxu2 %v12117_v31  ;;  %v7357_v10 = vadd.f32 %v7356_v53, %v17092_v37  ;;  %v7775_v39 = vpop.f32.mrf.mxu3  ;;  %v7726_v17 = vpop.f32.mrf.mxu2  ;;  %v13360_v37 = vld [vmem:[#allocation5 + $0xe0] sm:$0xf0] }
 0x43a   : > { %8888 = vmatmul.bf16.gmra.mxu3 %v12349_v33 }
 0x43b   : > { %v7678_v50 = vadd.f32 %v7677_v42, %v7357_v10 }
 0x43d   : > { %v7727_v15 = vadd.f32 %v7726_v17, %v7678_v50  ;;  %v13503_v17 = vunpack.c.l.bf16 %v13502_v62  ;;  %v13359_v50 = vld [vmem:[#allocation5 + $0xdc] sm:$0xf] }
 0x43e   : > { %8177 = vmatmul.bf16.gmra.mxu0 %v12109_v24 }
 0x43f   : > { %8226 = vmatmul.bf16.gmra.mxu1 %v12113_v6  ;;  %v16623_v56 = vadd.f32 %v7775_v39, %v7727_v15  ;;  %v13481_v6 = vld [vmem:[%s17007_s3 + $0x1a8] sm:$0xff]  ;;  %v12470_v15 = vld [vmem:[#allocation5 + $0xe4] sm:$0xf0] }
 0x440   : > { %v7358_v16 = vpop.f32.mrf.mxu0  ;;  %v7679_v34 = vpop.f32.mrf.mxu1  ;;  %9766 = vmatpush.bf16.msra.mxu1 %v13481_v6  ;;  %v13410_v6 = vld [vmem:[#allocation5 + $0x10c] sm:$0xf] }
 0x441   : > { %v7359_v27 = vadd.f32 %v7358_v16, %v17093_v45  ;;  %v7777_v4 = vpop.f32.mrf.mxu3  ;;  %v7728_v23 = vpop.f32.mrf.mxu2  ;;  %v13407_v45 = vld [vmem:[#allocation5 + $0xf4] sm:$0xf] }
 0x443   : > { %v7680_v5 = vadd.f32 %v7679_v34, %v7359_v27  ;;  %v13504_v34 = vunpack.c.h.bf16 %v13502_v62  ;;  %v12278_v27 = vld [vmem:[#allocation5 + $0xfc] sm:$0xf0] }
 0x444   : > { %v12281_v3 = vor.u32 %v13407_v45, %v12278_v27 }
 0x445   : > { %v7729_v19 = vadd.f32 %v7728_v23, %v7680_v5  ;;  %v13409_v23 = vld [vmem:[#allocation5 + $0x100] sm:$0xf0]  ;;  %v12473_v5 = vor.u32 %v13359_v50, %v12470_v15  ;;  %v12290_v50 = vld [vmem:[#allocation5 + $0x114] sm:$0xf0]  ;;  %v12296_v15 = vld [vmem:[#allocation5 + $0x110] sm:$0xf] }
 0x447   : > { %v16638_v63 = vadd.f32 %v7777_v4, %v7729_v19  ;;  %v12284_v4 = vld [vmem:[#allocation5 + $0xf8] sm:$0xf] }
 0x448   : > { %v8143_v43 = vpop.f32.mrf.mxu0  ;;  %v8192_v7 = vpop.f32.mrf.mxu1  ;;  %v12285_v19 = vor.u32 %v13409_v23, %v12284_v4 }
 0x449   : > { %9272 = vmatmul.bf16.vlgmr.msrb.gmra.mxu2 %v12457_v32  ;;  %v8193_v58 = vadd.f32 %v8192_v7, %v8143_v43  ;;  %v16640_v51 = vpop.f32.mrf.mxu3  ;;  %v13488_v7 = vld [vmem:[%s17007_s3 + $0x1e0] sm:$0xff] }
 0x44a   : > { %9321 = vmatmul.bf16.vlgmr.msrb.gmra.mxu3 %v12461_v61  ;;  %v8241_v22 = vpop.f32.mrf.mxu2  ;;  %9816 = vmatpush.bf16.msra.mxu2 %v13488_v7  ;;  %v12492_v7 = vld [vmem:[#allocation5 + $0x108] sm:$0xf] }
 0x44b   : > { %v8242_v31 = vadd.f32 %v8241_v22, %v8193_v58  ;;  %v13496_v58 = vld [vmem:[%s17007_s3 + $0x220] sm:$0xff]  ;;  %v13645_v22 = vld [vmem:[%s14164_s9 + $0x8] sm:$0xff]  }
 0x44c   : > { %9865 = vmatpush.bf16.msra.mxu3 %v13496_v58  ;;  %v13366_v58 = vld [vmem:[#allocation5 + $0x110] sm:$0xf0] }
 0x44d   : > { %v8281_v38 = vadd.f32 %v8242_v31, %v16270_v60  ;;  %v12468_v60 = vld [vmem:[#allocation5 + $0xd8] sm:$0xf] }
 0x44e   : > { %8902 = vmatmul.bf16.vlgmr.msrb.gmra.mxu0 %v12269_v8  ;;  %v12469_v30 = vor.u32 %v13360_v37, %v12468_v60  ;;  %v12482_v60 = vld [vmem:[#allocation5 + $0xfc] sm:$0xf0]  ;;  %v12481_v37 = vor.u32 %v13363_v29, %v12480_v25  ;;  %v12494_v25 = vld [vmem:[#allocation5 + $0x114] sm:$0xf0]  ;;  %v12493_v29 = vor.u32 %v13366_v58, %v12492_v7  ;;  %v12506_v7 = vld [vmem:[#allocation5 + $0x12c] sm:$0xf0] }
 0x44f   : > { %8951 = vmatmul.bf16.vlgmr.msrb.gmra.mxu1 %v12273_v44  ;;  %v8300_v39 = vadd.f32 %v16646_v18, %v8281_v38 }
 0x450   : > { %v8145_v47 = vpop.f32.mrf.mxu0  ;;  %v8194_v33 = vpop.f32.mrf.mxu1 }
 0x451   : > { %v8195_v53 = vadd.f32 %v8194_v33, %v8145_v47  ;;  %v16655_v10 = vpop.f32.mrf.mxu3  ;;  %v8348_v59 = vadd.f32 %v13503_v17, %v8300_v39  ;;  %v13480_v33 = vld [vmem:[%s17007_s3 + $0x1a0] sm:$0xff] }
 0x452   : > { %v8243_v42 = vpop.f32.mrf.mxu2  ;;  %v13400_v39 = vld [vmem:[%s17007_s3 + $0xa0] sm:$0xff]  ;;  %9767 = vmatpush.bf16.msra.mxu1 %v13480_v33  ;;  %v13413_v33 = vld [vmem:[#allocation5 + $0x124] sm:$0xf] }
 0x453   : > { %v8244_v24 = vadd.f32 %v8243_v42, %v8195_v53  ;;  %v8364_v41 = vmax.f32 %v8348_v59, 0.0  ;;  %v13362_v42 = vld [vmem:[#allocation5 + $0xf4] sm:$0xf]  ;;  %9365 = vmatpush.bf16.msra.mxu0 %v13400_v39  ;;  %v12293_v59 = vor.u32 %v13410_v6, %v12290_v50 }
 0x455   : > { %v8282_v16 = vadd.f32 %v8244_v24, %v16316_v28  ;;  %v13508_v24 = vunpack.c.h.bf16 %v13645_v22 }
 0x457   : > { %v8301_v2 = vadd.f32 %v16646_v18, %v8282_v16 }
 0x459   : > { %9277 = vmatmul.bf16.gmra.mxu2 %v12469_v30  ;;  %v8349_v36 = vadd.f32 %v13504_v34, %v8301_v2  ;;  %v13412_v30 = vld [vmem:[#allocation5 + $0x118] sm:$0xf0]  ;;  %v12485_v34 = vor.u32 %v13362_v42, %v12482_v60  ;;  %v12302_v42 = vld [vmem:[#allocation5 + $0x12c] sm:$0xf0]  ;;  %v12308_v60 = vld [vmem:[#allocation5 + $0x128] sm:$0xf] }
 0x45a   : > { %v8148_v13 = vpop.f32.mrf.mxu0  ;;  %v8197_v12 = vpop.f32.mrf.mxu1  ;;  %9326 = vmatmul.bf16.gmra.mxu3 %v12473_v5  ;;  %v12297_v2 = vor.u32 %v13412_v30, %v12296_v15 }
 0x45b   : > { %v8198_v32 = vadd.f32 %v8197_v12, %v8148_v13  ;;  %v8246_v28 = vpop.f32.mrf.mxu2  ;;  %v8365_v46 = vmax.f32 %v8349_v36, 0.0 }
 0x45c   : > { %v16669_v48 = vpop.f32.mrf.mxu3 }
 0x45d   : > { %v8247_v35 = vadd.f32 %v8246_v28, %v8198_v32  ;;  %v13536_v61 = vpack.c.bf16 %v8365_v46, %v8364_v41  ;;  %v13646_v41 = vld [vmem:[%s14164_s9 + $0x10] sm:$0xff]  }
 0x45e   : > { %8907 = vmatmul.bf16.gmra.mxu0 %v12281_v3  ;;  %v13487_v3 = vld [vmem:[%s17007_s3 + $0x1d8] sm:$0xff] }
 0x45f   : > { %8956 = vmatmul.bf16.gmra.mxu1 %v12285_v19  ;;  %13537 = vst [vmem:[%s16671_s12] sm:$0xff] %v13536_v61   ;;  %v8283_v43 = vadd.f32 %v8247_v35, %v16358_v26  ;;  %v13507_v26 = vunpack.c.l.bf16 %v13645_v22  ;;  %v13495_v19 = vld [vmem:[%s17007_s3 + $0x218] sm:$0xff]  ;;  %9817 = vmatpush.bf16.msra.mxu2 %v13487_v3  ;;  %v12504_v3 = vld [vmem:[#allocation5 + $0x120] sm:$0xf] }
 0x460   : > { %9866 = vmatpush.bf16.msra.mxu3 %v13495_v19  ;;  %v13369_v19 = vld [vmem:[#allocation5 + $0x128] sm:$0xf0] }
 0x461   : > { %v8302_v62 = vadd.f32 %v16646_v18, %v8283_v43  ;;  %v12505_v58 = vor.u32 %v13369_v19, %v12504_v3  ;;  %v12518_v3 = vld [vmem:[#allocation5 + $0x144] sm:$0xf0] }
 0x462   : > { %v8150_v8 = vpop.f32.mrf.mxu0  ;;  %v8199_v44 = vpop.f32.mrf.mxu1 }
 0x463   : > { %v8200_v31 = vadd.f32 %v8199_v44, %v8150_v8  ;;  %v8248_v38 = vpop.f32.mrf.mxu2  ;;  %v8350_v20 = vadd.f32 %v13507_v26, %v8302_v62  ;;  %v13479_v44 = vld [vmem:[%s17007_s3 + $0x198] sm:$0xff] }
 0x464   : > { %v16686_v53 = vpop.f32.mrf.mxu3  ;;  %v13399_v62 = vld [vmem:[%s17007_s3 + $0x98] sm:$0xff]  ;;  %9768 = vmatpush.bf16.msra.mxu1 %v13479_v44  ;;  %v13416_v44 = vld [vmem:[#allocation5 + $0x13c] sm:$0xf] }
 0x465   : > { %v8249_v47 = vadd.f32 %v8248_v38, %v8200_v31  ;;  %v8366_v5 = vmax.f32 %v8350_v20, 0.0  ;;  %v13365_v38 = vld [vmem:[#allocation5 + $0x10c] sm:$0xf]  ;;  %9366 = vmatpush.bf16.msra.mxu0 %v13399_v62  ;;  %v12305_v20 = vor.u32 %v13413_v33, %v12302_v42 }
 0x467   : > { %v8284_v17 = vadd.f32 %v8249_v47, %v16386_v57  ;;  %v13512_v47 = vunpack.c.h.bf16 %v13646_v41 }
 0x469   : > { %9282 = vmatmul.bf16.gmra.mxu2 %v12481_v37  ;;  %v8303_v16 = vadd.f32 %v16646_v18, %v8284_v17  ;;  %v13415_v37 = vld [vmem:[#allocation5 + $0x130] sm:$0xf0] }
 0x46a   : > { %9331 = vmatmul.bf16.gmra.mxu3 %v12485_v34 }
 0x46b   : > { %v8153_v45 = vpop.f32.mrf.mxu0  ;;  %v8202_v27 = vpop.f32.mrf.mxu1  ;;  %v8351_v4 = vadd.f32 %v13508_v24, %v8303_v16  ;;  %v12497_v24 = vor.u32 %v13365_v38, %v12494_v25  ;;  %v12309_v16 = vor.u32 %v13415_v37, %v12308_v60  ;;  %v12314_v38 = vld [vmem:[#allocation5 + $0x144] sm:$0xf0]  ;;  %v12320_v25 = vld [vmem:[#allocation5 + $0x140] sm:$0xf] }
 0x46c   : > { %v8203_v23 = vadd.f32 %v8202_v27, %v8153_v45  ;;  %v8251_v57 = vpop.f32.mrf.mxu2  ;;  %v16693_v36 = vpop.f32.mrf.mxu3 }
 0x46d   : > { %v8367_v13 = vmax.f32 %v8351_v4, 0.0 }
 0x46e   : > { %v8252_v12 = vadd.f32 %v8251_v57, %v8203_v23  ;;  %8912 = vmatmul.bf16.gmra.mxu0 %v12293_v59  ;;  %v13486_v59 = vld [vmem:[%s17007_s3 + $0x1d0] sm:$0xff] }
 0x46f   : > { %8961 = vmatmul.bf16.gmra.mxu1 %v12297_v2  ;;  %v13541_v32 = vpack.c.bf16 %v8367_v13, %v8366_v5  ;;  %v13494_v2 = vld [vmem:[%s17007_s3 + $0x210] sm:$0xff]  ;;  %v13647_v5 = vld [vmem:[%s14164_s9 + $0x18] sm:$0xff]   ;;  %9818 = vmatpush.bf16.msra.mxu2 %v13486_v59  ;;  %v12516_v59 = vld [vmem:[#allocation5 + $0x138] sm:$0xf] }
 0x470   : > { %v8285_v28 = vadd.f32 %v8252_v12, %v16422_v55  ;;  %v13511_v55 = vunpack.c.l.bf16 %v13646_v41  ;;  %9867 = vmatpush.bf16.msra.mxu3 %v13494_v2  ;;  %v13372_v2 = vld [vmem:[#allocation5 + $0x140] sm:$0xf0] }
 0x471   : > { %13652 = vst [vmem:[%s16671_s12 + $0x8] sm:$0xff] %v13541_v32   ;;  %v12517_v19 = vor.u32 %v13372_v2, %v12516_v59  ;;  %v12530_v59 = vld [vmem:[#allocation5 + $0x15c] sm:$0xf0] }
 0x472   : > { %v8304_v22 = vadd.f32 %v16646_v18, %v8285_v28 }
 0x473   : > { %v8155_v46 = vpop.f32.mrf.mxu0  ;;  %v8204_v35 = vpop.f32.mrf.mxu1 }
 0x474   : > { %v8205_v61 = vadd.f32 %v8204_v35, %v8155_v46  ;;  %v8253_v43 = vpop.f32.mrf.mxu2  ;;  %v16708_v31 = vpop.f32.mrf.mxu3  ;;  %v8352_v39 = vadd.f32 %v13511_v55, %v8304_v22  ;;  %v13478_v35 = vld [vmem:[%s17007_s3 + $0x190] sm:$0xff] }
 0x475   : > { %v13398_v22 = vld [vmem:[%s17007_s3 + $0x90] sm:$0xff]  ;;  %9769 = vmatpush.bf16.msra.mxu1 %v13478_v35  ;;  %v13419_v35 = vld [vmem:[#allocation5 + $0x154] sm:$0xf] }
 0x476   : > { %v8254_v8 = vadd.f32 %v8253_v43, %v8205_v61  ;;  %v8368_v34 = vmax.f32 %v8352_v39, 0.0  ;;  %v13368_v43 = vld [vmem:[#allocation5 + $0x124] sm:$0xf]  ;;  %9367 = vmatpush.bf16.msra.mxu0 %v13398_v22  ;;  %v12317_v39 = vor.u32 %v13416_v44, %v12314_v38 }
 0x478   : > { %v8286_v26 = vadd.f32 %v8254_v8, %v16453_v40  ;;  %v13516_v8 = vunpack.c.h.bf16 %v13647_v5 }
 0x479   : > { %9287 = vmatmul.bf16.gmra.mxu2 %v12493_v29  ;;  %v13418_v29 = vld [vmem:[#allocation5 + $0x148] sm:$0xf0] }
 0x47a   : > { %v8305_v17 = vadd.f32 %v16646_v18, %v8286_v26  ;;  %9336 = vmatmul.bf16.gmra.mxu3 %v12497_v24 }
 0x47b   : > { %v8158_v6 = vpop.f32.mrf.mxu0 }
 0x47c   : > { %v8207_v50 = vpop.f32.mrf.mxu1  ;;  %v8353_v15 = vadd.f32 %v13512_v47, %v8305_v17  ;;  %v8256_v40 = vpop.f32.mrf.mxu2  ;;  %v12509_v47 = vor.u32 %v13368_v43, %v12506_v7  ;;  %v12321_v17 = vor.u32 %v13418_v29, %v12320_v25  ;;  %v12326_v43 = vld [vmem:[#allocation5 + $0x15c] sm:$0xf0]  ;;  %v12332_v7 = vld [vmem:[#allocation5 + $0x158] sm:$0xf] }
 0x47d   : > { %v8208_v30 = vadd.f32 %v8207_v50, %v8158_v6  ;;  %v16715_v4 = vpop.f32.mrf.mxu3 }
 0x47e   : > { %v8369_v45 = vmax.f32 %v8353_v15, 0.0  ;;  %8917 = vmatmul.bf16.gmra.mxu0 %v12305_v20  ;;  %v13485_v20 = vld [vmem:[%s17007_s3 + $0x1c8] sm:$0xff] }
 0x47f   : > { %v8257_v27 = vadd.f32 %v8256_v40, %v8208_v30  ;;  %8966 = vmatmul.bf16.gmra.mxu1 %v12309_v16  ;;  %v13493_v16 = vld [vmem:[%s17007_s3 + $0x208] sm:$0xff]  ;;  %9819 = vmatpush.bf16.msra.mxu2 %v13485_v20  ;;  %v12528_v20 = vld [vmem:[#allocation5 + $0x150] sm:$0xf] }
 0x480   : > { %v13546_v23 = vpack.c.bf16 %v8369_v45, %v8368_v34  ;;  %v13648_v34 = vld [vmem:[%s14164_s9 + $0x20] sm:$0xff]   ;;  %9868 = vmatpush.bf16.msra.mxu3 %v13493_v16  ;;  %v13375_v16 = vld [vmem:[#allocation5 + $0x158] sm:$0xf0] }
 0x481   : > { %v8287_v57 = vadd.f32 %v8257_v27, %v16499_v14  ;;  %v13515_v14 = vunpack.c.l.bf16 %v13647_v5  ;;  %v12529_v2 = vor.u32 %v13375_v16, %v12528_v20 }
 0x482   : > { %13653 = vst [vmem:[%s16671_s12 + $0x10] sm:$0xff] %v13546_v23  }
 0x483   : > { %v8160_v13 = vpop.f32.mrf.mxu0  ;;  %v8306_v41 = vadd.f32 %v16646_v18, %v8287_v57 }
 0x484   : > { %v8209_v12 = vpop.f32.mrf.mxu1  ;;  %v8258_v28 = vpop.f32.mrf.mxu2 }
 0x485   : > { %v8210_v32 = vadd.f32 %v8209_v12, %v8160_v13  ;;  %v16730_v61 = vpop.f32.mrf.mxu3  ;;  %v8354_v62 = vadd.f32 %v13515_v14, %v8306_v41  ;;  %v13477_v12 = vld [vmem:[%s17007_s3 + $0x188] sm:$0xff] }
 0x486   : > { %v13397_v41 = vld [vmem:[%s17007_s3 + $0x88] sm:$0xff]  ;;  %9770 = vmatpush.bf16.msra.mxu1 %v13477_v12  ;;  %v13422_v12 = vld [vmem:[#allocation5 + $0x16c] sm:$0xf] }
 0x487   : > { %v8259_v46 = vadd.f32 %v8258_v28, %v8210_v32  ;;  %v8370_v24 = vmax.f32 %v8354_v62, 0.0  ;;  %v13371_v28 = vld [vmem:[#allocation5 + $0x13c] sm:$0xf]  ;;  %9368 = vmatpush.bf16.msra.mxu0 %v13397_v41  ;;  %v12329_v62 = vor.u32 %v13419_v35, %v12326_v43 }
 0x489   : > { %v8288_v55 = vadd.f32 %v8259_v46, %v16523_v49  ;;  %9292 = vmatmul.bf16.gmra.mxu2 %v12505_v58  ;;  %v13520_v46 = vunpack.c.h.bf16 %v13648_v34  ;;  %v13421_v58 = vld [vmem:[#allocation5 + $0x160] sm:$0xf0] }
 0x48a   : > { %9341 = vmatmul.bf16.gmra.mxu3 %v12509_v47 }
 0x48b   : > { %v8307_v26 = vadd.f32 %v16646_v18, %v8288_v55  ;;  %v8163_v33 = vpop.f32.mrf.mxu0 }
 0x48c   : > { %v8212_v42 = vpop.f32.mrf.mxu1  ;;  %v8261_v49 = vpop.f32.mrf.mxu2 }
 0x48d   : > { %v8355_v60 = vadd.f32 %v13516_v8, %v8307_v26  ;;  %v8213_v37 = vadd.f32 %v8212_v42, %v8163_v33  ;;  %v16737_v15 = vpop.f32.mrf.mxu3  ;;  %v12521_v8 = vor.u32 %v13371_v28, %v12518_v3  ;;  %v12333_v26 = vor.u32 %v13421_v58, %v12332_v7  ;;  %v12338_v28 = vld [vmem:[#allocation5 + $0x174] sm:$0xf0]  ;;  %v12344_v3 = vld [vmem:[#allocation5 + $0x170] sm:$0xf] }
 0x48e   : > { %8922 = vmatmul.bf16.gmra.mxu0 %v12317_v39  ;;  %v13484_v39 = vld [vmem:[%s17007_s3 + $0x1c0] sm:$0xff] }
 0x48f   : > { %v8371_v6 = vmax.f32 %v8355_v60, 0.0  ;;  %v8262_v50 = vadd.f32 %v8261_v49, %v8213_v37  ;;  %8971 = vmatmul.bf16.gmra.mxu1 %v12321_v17  ;;  %v13492_v17 = vld [vmem:[%s17007_s3 + $0x200] sm:$0xff]  ;;  %9820 = vmatpush.bf16.msra.mxu2 %v13484_v39 }
 0x490   : > { %9869 = vmatpush.bf16.msra.mxu3 %v13492_v17 }
 0x491   : > { %v13551_v30 = vpack.c.bf16 %v8371_v6, %v8370_v24  ;;  %v8289_v40 = vadd.f32 %v8262_v50, %v16543_v1  ;;  %v13519_v1 = vunpack.c.l.bf16 %v13648_v34  ;;  %v13649_v24 = vld [vmem:[%s14164_s9 + $0x28] sm:$0xff]  }
 0x493   : > { %13654 = vst [vmem:[%s16671_s12 + $0x18] sm:$0xff] %v13551_v30   ;;  %v8165_v45 = vpop.f32.mrf.mxu0  ;;  %v8308_v5 = vadd.f32 %v16646_v18, %v8289_v40 }
 0x494   : > { %v8214_v27 = vpop.f32.mrf.mxu1  ;;  %v8263_v57 = vpop.f32.mrf.mxu2 }
 0x495   : > { %v8215_v23 = vadd.f32 %v8214_v27, %v8165_v45  ;;  %v16752_v32 = vpop.f32.mrf.mxu3  ;;  %v8356_v22 = vadd.f32 %v13519_v1, %v8308_v5  ;;  %v13476_v27 = vld [vmem:[%s17007_s3 + $0x180] sm:$0xff] }
 0x496   : > { %v13396_v5 = vld [vmem:[%s17007_s3 + $0x80] sm:$0xff]  ;;  %9771 = vmatpush.bf16.msra.mxu1 %v13476_v27 }
 0x497   : > { %v8264_v13 = vadd.f32 %v8263_v57, %v8215_v23  ;;  %v8372_v47 = vmax.f32 %v8356_v22, 0.0  ;;  %v13374_v57 = vld [vmem:[#allocation5 + $0x154] sm:$0xf]  ;;  %9369 = vmatpush.bf16.msra.mxu0 %v13396_v5  ;;  %v12341_v22 = vor.u32 %v13422_v12, %v12338_v28 }
 0x499   : > { %v8290_v14 = vadd.f32 %v8264_v13, %v16565_v11  ;;  %9297 = vmatmul.bf16.gmra.mxu2 %v12517_v19  ;;  %v13524_v13 = vunpack.c.h.bf16 %v13649_v24  ;;  %v13424_v19 = vld [vmem:[#allocation5 + $0x178] sm:$0xf0] }
 0x49a   : > { %9346 = vmatmul.bf16.gmra.mxu3 %v12521_v8 }
 0x49b   : > { %v8309_v55 = vadd.f32 %v16646_v18, %v8290_v14  ;;  %v8168_v44 = vpop.f32.mrf.mxu0 }
 0x49c   : > { %v8217_v38 = vpop.f32.mrf.mxu1  ;;  %v8266_v11 = vpop.f32.mrf.mxu2 }
 0x49d   : > { %v8357_v25 = vadd.f32 %v13520_v46, %v8309_v55  ;;  %v8218_v29 = vadd.f32 %v8217_v38, %v8168_v44  ;;  %v16759_v60 = vpop.f32.mrf.mxu3  ;;  %v12533_v46 = vor.u32 %v13374_v57, %v12530_v59  ;;  %v12345_v55 = vor.u32 %v13424_v19, %v12344_v3 }
 0x49e   : > { %8927 = vmatmul.bf16.gmra.mxu0 %v12329_v62  ;;  %v13650_v62 = vld [vmem:[%s14164_s9 + $0x30] sm:$0xff]  }
 0x49f   : > { %v8373_v33 = vmax.f32 %v8357_v25, 0.0  ;;  %v8267_v42 = vadd.f32 %v8266_v11, %v8218_v29  ;;  %8976 = vmatmul.bf16.gmra.mxu1 %v12333_v26  ;;  %v13527_v17 = vunpack.c.l.bf16 %v13650_v62  ;;  %v13528_v16 = vunpack.c.h.bf16 %v13650_v62  ;;  %v12704_v62 = vld [vmem:[#allocation5 + $0xf8] sm:$0xf] }
 0x4a1   : > { %v13556_v37 = vpack.c.bf16 %v8373_v33, %v8372_v47  ;;  %v8291_v49 = vadd.f32 %v8267_v42, %v16580_v9  ;;  %v13523_v9 = vunpack.c.l.bf16 %v13649_v24 }
 0x4a3   : > { %13655 = vst [vmem:[%s16671_s12 + $0x20] sm:$0xff] %v13556_v37   ;;  %v8170_v6 = vpop.f32.mrf.mxu0  ;;  %v8310_v34 = vadd.f32 %v16646_v18, %v8291_v49  ;;  %v12540_v37 = vld [vmem:[#allocation5 + $0x168] sm:$0xf]  ;;  %v13378_v49 = vld [vmem:[#allocation5 + $0x170] sm:$0xf0] }
 0x4a4   : > { %v8219_v50 = vpop.f32.mrf.mxu1  ;;  %v8268_v40 = vpop.f32.mrf.mxu2 }
 0x4a5   : > { %v8220_v30 = vadd.f32 %v8219_v50, %v8170_v6  ;;  %v16774_v23 = vpop.f32.mrf.mxu3  ;;  %v8358_v41 = vadd.f32 %v13523_v9, %v8310_v34  ;;  %v13377_v50 = vld [vmem:[#allocation5 + $0x16c] sm:$0xf]  ;;  %v13425_v34 = vld [vmem:[#allocation5 + $0x184] sm:$0xf]  ;;  %v12350_v9 = vld [vmem:[#allocation5 + $0x18c] sm:$0xf0] }
 0x4a6   : > { %v12353_v28 = vor.u32 %v13425_v34, %v12350_v9 }
 0x4a7   : > { %v8269_v45 = vadd.f32 %v8268_v40, %v8220_v30  ;;  %v8374_v8 = vmax.f32 %v8358_v41, 0.0  ;;  %v12542_v30 = vld [vmem:[#allocation5 + $0x174] sm:$0xf0]  ;;  %v12541_v40 = vor.u32 %v13378_v49, %v12540_v37  ;;  %v13358_v37 = vld [vmem:[#allocation5 + $0xd0] sm:$0xf0] }
 0x4a8   : > { %v12545_v59 = vor.u32 %v13377_v50, %v12542_v30  ;;  %v12696_v49 = vld [vmem:[#allocation5 + $0xf0] sm:$0xf] }
 0x4a9   : > { %v8292_v1 = vadd.f32 %v8269_v45, %v16598_v0  ;;  %9302 = vmatmul.bf16.gmra.mxu2 %v12529_v2  ;;  %v13427_v45 = vld [vmem:[#allocation5 + $0x190] sm:$0xf0] }
 0x4aa   : > { %9351 = vmatmul.bf16.gmra.mxu3 %v12533_v46 }
 0x4ab   : > { %v8311_v14 = vadd.f32 %v16646_v18, %v8292_v1  ;;  %v8173_v35 = vpop.f32.mrf.mxu0 }
 0x4ac   : > { %v8222_v43 = vpop.f32.mrf.mxu1  ;;  %v8271_v0 = vpop.f32.mrf.mxu2 }
 0x4ad   : > { %v8359_v7 = vadd.f32 %v13524_v13, %v8311_v14  ;;  %v8223_v58 = vadd.f32 %v8222_v43, %v8173_v35  ;;  %v16781_v25 = vpop.f32.mrf.mxu3  ;;  %v13651_v43 = vld [vmem:[%s14164_s9 + $0x38] sm:$0xff]  }
 0x4ae   : > { %8932 = vmatmul.bf16.gmra.mxu0 %v12341_v22 }
 0x4af   : > { %v8375_v44 = vmax.f32 %v8359_v7, 0.0  ;;  %v8272_v38 = vadd.f32 %v8271_v0, %v8223_v58  ;;  %8981 = vmatmul.bf16.gmra.mxu1 %v12345_v55  ;;  %v13452_v55 = vld [vmem:[#allocation5 + $0xf4] sm:$0xf] }
 0x4b1   : > { %v13561_v29 = vpack.c.bf16 %v8375_v44, %v8374_v8  ;;  %v8293_v11 = vadd.f32 %v8272_v38, %v16609_v52  ;;  %v12356_v52 = vld [vmem:[#allocation5 + $0x188] sm:$0xf]  ;;  %v12698_v8 = vld [vmem:[#allocation5 + $0xfc] sm:$0xf0]  ;;  %v13531_v38 = vunpack.c.l.bf16 %v13651_v43 }
 0x4b3   : > { %13656 = vst [vmem:[%s16671_s12 + $0x28] sm:$0xff] %v13561_v29   ;;  %v8175_v26 = vpop.f32.mrf.mxu0  ;;  %v8312_v39 = vadd.f32 %v16646_v18, %v8293_v11 }
 0x4b4   : > { %v8224_v47 = vpop.f32.mrf.mxu1  ;;  %v8273_v42 = vpop.f32.mrf.mxu2 }
 0x4b5   : > { %v8225_v33 = vadd.f32 %v8224_v47, %v8175_v26  ;;  %v16787_v6 = vpop.f32.mrf.mxu3  ;;  %v8360_v27 = vadd.f32 %v13527_v17, %v8312_v39  ;;  %v13454_v26 = vld [vmem:[#allocation5 + $0x100] sm:$0xf0]  ;;  %v12701_v47 = vor.u32 %v13452_v55, %v12698_v8  ;;  %v13453_v39 = vld [vmem:[#allocation5 + $0xf8] sm:$0xf0] }
 0x4b6   : > { %v12705_v50 = vor.u32 %v13454_v26, %v12704_v62 }
 0x4b7   : > { %v8274_v24 = vadd.f32 %v8273_v42, %v8225_v33  ;;  %v8376_v3 = vmax.f32 %v8360_v27, 0.0  ;;  %v13532_v42 = vunpack.c.h.bf16 %v13651_v43  ;;  %v13361_v43 = vld [vmem:[#allocation5 + $0xe8] sm:$0xf0] }
 0x4b9   : > { %v8294_v20 = vadd.f32 %v8274_v24, %v16620_v21  ;;  %9307 = vmatmul.bf16.gmra.mxu2 %v12541_v40  ;;  %v12357_v21 = vor.u32 %v13427_v45, %v12356_v52 }
 0x4ba   : > { %9356 = vmatmul.bf16.gmra.mxu3 %v12545_v59 }
 0x4bb   : > { %v8313_v57 = vadd.f32 %v16646_v18, %v8294_v20  ;;  %v8178_v2 = vpop.f32.mrf.mxu0 }
 0x4bc   : > { %v8227_v5 = vpop.f32.mrf.mxu1  ;;  %v8276_v12 = vpop.f32.mrf.mxu2 }
 0x4bd   : > { %v8361_v1 = vadd.f32 %v13528_v16, %v8313_v57  ;;  %v8228_v13 = vadd.f32 %v8227_v5, %v8178_v2  ;;  %v16791_v14 = vpop.f32.mrf.mxu3 }
 0x4be   : > { %8937 = vmatmul.bf16.gmra.mxu0 %v12353_v28 }
 0x4bf   : > { %v8377_v19 = vmax.f32 %v8361_v1, 0.0  ;;  %v8277_v41 = vadd.f32 %v8276_v12, %v8228_v13  ;;  %8986 = vmatmul.bf16.gmra.mxu1 %v12357_v21  ;;  %v12710_v12 = vld [vmem:[#allocation5 + $0x114] sm:$0xf0] }
 0x4c1   : > { %v13566_v46 = vpack.c.bf16 %v8377_v19, %v8376_v3  ;;  %v8295_v35 = vadd.f32 %v8277_v41, %v16623_v56  ;;  %v12464_v56 = vld [vmem:[#allocation5 + $0xc8] sm:$0xf]  ;;  %v12716_v3 = vld [vmem:[#allocation5 + $0x110] sm:$0xf]  ;;  %v13457_v19 = vld [vmem:[#allocation5 + $0x118] sm:$0xf0] }
 0x4c2   : > { %v12465_v34 = vor.u32 %v13358_v37, %v12464_v56  ;;  %v13458_v37 = vld [vmem:[#allocation5 + $0x124] sm:$0xf] }
 0x4c3   : > { %13657 = vst [vmem:[%s16671_s12 + $0x30] sm:$0xff] %v13566_v46   ;;  %v8180_v7 = vpop.f32.mrf.mxu0  ;;  %v8314_v44 = vadd.f32 %v16646_v18, %v8295_v35  ;;  %v12476_v35 = vld [vmem:[#allocation5 + $0xe0] sm:$0xf] }
 0x4c4   : > { %v8229_v58 = vpop.f32.mrf.mxu1  ;;  %v8278_v22 = vpop.f32.mrf.mxu2 }
 0x4c5   : > { %v8230_v0 = vadd.f32 %v8229_v58, %v8180_v7  ;;  %v16797_v11 = vpop.f32.mrf.mxu3  ;;  %v8362_v17 = vadd.f32 %v13531_v38, %v8314_v44  ;;  %v12708_v7 = vld [vmem:[#allocation5 + $0x108] sm:$0xf]  ;;  %v13456_v58 = vld [vmem:[#allocation5 + $0x110] sm:$0xf0]  ;;  %v12477_v44 = vor.u32 %v13361_v43, %v12476_v35  ;;  %v13463_v43 = vld [vmem:[#allocation5 + $0x148] sm:$0xf0] }
 0x4c6   : > { %v12709_v38 = vor.u32 %v13456_v58, %v12708_v7 }
 0x4c7   : > { %v8279_v29 = vadd.f32 %v8278_v22, %v8230_v0  ;;  %v8378_v9 = vmax.f32 %v8362_v17, 0.0  ;;  %v12717_v0 = vor.u32 %v13457_v19, %v12716_v3  ;;  %v13461_v3 = vld [vmem:[#allocation5 + $0x13c] sm:$0xf]  ;;  %v12734_v19 = vld [vmem:[#allocation5 + $0x144] sm:$0xf0] }
 0x4c8   : > { %v12737_v7 = vor.u32 %v13461_v3, %v12734_v19 }
 0x4c9   : > { %v8296_v33 = vadd.f32 %v8279_v29, %v16638_v63  ;;  %9821 = vmatmul.bf16.vlgmr.msra.gmra.mxu2 %v12701_v47  ;;  %v12697_v63 = vor.u32 %v13453_v39, %v12696_v49  ;;  %v12722_v49 = vld [vmem:[#allocation5 + $0x12c] sm:$0xf0] }
 0x4ca   : > { %9870 = vmatmul.bf16.vlgmr.msra.gmra.mxu3 %v12705_v50  ;;  %v12725_v50 = vor.u32 %v13458_v37, %v12722_v49 }
 0x4cb   : > { %v8315_v24 = vadd.f32 %v16646_v18, %v8296_v33  ;;  %v8903_v30 = vpop.f32.mrf.mxu0 }
 0x4cc   : > { %v8952_v40 = vpop.f32.mrf.mxu1  ;;  %v8904_v16 = vadd.f32 %v8903_v30, %v16640_v51  ;;  %v9273_v52 = vpop.f32.mrf.mxu2  ;;  %v13455_v51 = vld [vmem:[#allocation5 + $0x10c] sm:$0xf] }
 0x4cd   : > { %v8363_v20 = vadd.f32 %v13532_v42, %v8315_v24  ;;  %v16802_v57 = vpop.f32.mrf.mxu3  ;;  %v12713_v41 = vor.u32 %v13455_v51, %v12710_v12  ;;  %v13460_v24 = vld [vmem:[#allocation5 + $0x130] sm:$0xf0] }
 0x4ce   : > { %v8953_v27 = vadd.f32 %v8952_v40, %v8904_v16  ;;  %9370 = vmatmul.bf16.vlgmr.msra.gmra.mxu0 %v12465_v34  ;;  %v12488_v40 = vld [vmem:[#allocation5 + $0xf8] sm:$0xf]  ;;  %v12720_v16 = vld [vmem:[#allocation5 + $0x120] sm:$0xf] }
 0x4cf   : > { %v8379_v45 = vmax.f32 %v8363_v20, 0.0  ;;  %9772 = vmatmul.bf16.vlgmr.msra.gmra.mxu1 %v12697_v63  ;;  %v13364_v20 = vld [vmem:[#allocation5 + $0x100] sm:$0xf0] }
 0x4d0   : > { %v16804_v18 = vadd.f32 %v9273_v52, %v8953_v27  ;;  %v13459_v52 = vld [vmem:[#allocation5 + $0x128] sm:$0xf0]  ;;  %v12489_v27 = vor.u32 %v13364_v20, %v12488_v40  ;;  %v12746_v40 = vld [vmem:[#allocation5 + $0x15c] sm:$0xf0] }
 0x4d1   : > { %v13571_v59 = vpack.c.bf16 %v8379_v45, %v8378_v9 }
 0x4d3   : > { %13658 = vst [vmem:[%s16671_s12 + $0x38] sm:$0xff] %v13571_v59   ;;  %v8905_v2 = vpop.f32.mrf.mxu0  ;;  %v12721_v59 = vor.u32 %v13459_v52, %v12720_v16  ;;  %v13466_v52 = vld [vmem:[#allocation5 + $0x160] sm:$0xf0] }
 0x4d4   : > { %v8954_v5 = vpop.f32.mrf.mxu1  ;;  %v8906_v1 = vadd.f32 %v8905_v2, %v16655_v10  ;;  %v9275_v13 = vpop.f32.mrf.mxu2 }
 0x4d5   : > { %v16808_v21 = vpop.f32.mrf.mxu3 }
 0x4d6   : > { %v8955_v28 = vadd.f32 %v8954_v5, %v8906_v1 }
 0x4d8   : > { %v16810_v46 = vadd.f32 %v9275_v13, %v8955_v28 }
 0x4d9   : > { %9826 = vmatmul.bf16.gmra.mxu2 %v12713_v41 }
 0x4da   : > { %9875 = vmatmul.bf16.gmra.mxu3 %v12717_v0  ;;  %v12500_v0 = vld [vmem:[#allocation5 + $0x110] sm:$0xf] }
 0x4db   : > { %v8908_v22 = vpop.f32.mrf.mxu0 }
 0x4dc   : > { %v8957_v55 = vpop.f32.mrf.mxu1  ;;  %v8909_v10 = vadd.f32 %v8908_v22, %v16669_v48  ;;  %v9278_v8 = vpop.f32.mrf.mxu2  ;;  %v12728_v48 = vld [vmem:[#allocation5 + $0x128] sm:$0xf]  ;;  %v13367_v22 = vld [vmem:[#allocation5 + $0x118] sm:$0xf0] }
 0x4dd   : > { %v16813_v62 = vpop.f32.mrf.mxu3  ;;  %v12729_v34 = vor.u32 %v13460_v24, %v12728_v48 }
 0x4de   : > { %v8958_v29 = vadd.f32 %v8957_v55, %v8909_v10  ;;  %9375 = vmatmul.bf16.gmra.mxu0 %v12477_v44  ;;  %v12732_v55 = vld [vmem:[#allocation5 + $0x138] sm:$0xf]  ;;  %v13462_v10 = vld [vmem:[#allocation5 + $0x140] sm:$0xf0] }
 0x4df   : > { %9777 = vmatmul.bf16.gmra.mxu1 %v12709_v38 }
 0x4e0   : > { %v16815_v26 = vadd.f32 %v9278_v8, %v8958_v29 }
 0x4e3   : > { %v8910_v47 = vpop.f32.mrf.mxu0 }
 0x4e4   : > { %v8959_v33 = vpop.f32.mrf.mxu1  ;;  %v8911_v42 = vadd.f32 %v8910_v47, %v16686_v53  ;;  %v9280_v56 = vpop.f32.mrf.mxu2  ;;  %v12501_v47 = vor.u32 %v13367_v22, %v12500_v0  ;;  %v13467_v22 = vld [vmem:[#allocation5 + $0x16c] sm:$0xf] }
 0x4e5   : > { %v16818_v17 = vpop.f32.mrf.mxu3 }
 0x4e6   : > { %v8960_v39 = vadd.f32 %v8959_v33, %v8911_v42  ;;  %v12733_v33 = vor.u32 %v13462_v10, %v12732_v55  ;;  %v12758_v55 = vld [vmem:[#allocation5 + $0x174] sm:$0xf0] }
 0x4e8   : > { %v16820_v30 = vadd.f32 %v9280_v56, %v8960_v39 }
 0x4e9   : > { %9831 = vmatmul.bf16.gmra.mxu2 %v12725_v50  ;;  %v13464_v50 = vld [vmem:[#allocation5 + $0x154] sm:$0xf] }
 0x4ea   : > { %9880 = vmatmul.bf16.gmra.mxu3 %v12729_v34  ;;  %v12749_v34 = vor.u32 %v13464_v50, %v12746_v40 }
 0x4eb   : > { %v8913_v63 = vpop.f32.mrf.mxu0 }
 0x4ec   : > { %v8962_v9 = vpop.f32.mrf.mxu1  ;;  %v8914_v53 = vadd.f32 %v8913_v63, %v16693_v36  ;;  %v9283_v45 = vpop.f32.mrf.mxu2  ;;  %v12740_v36 = vld [vmem:[#allocation5 + $0x140] sm:$0xf] }
 0x4ed   : > { %v16823_v5 = vpop.f32.mrf.mxu3  ;;  %v12741_v8 = vor.u32 %v13463_v43, %v12740_v36 }
 0x4ee   : > { %v8963_v2 = vadd.f32 %v8962_v9, %v8914_v53  ;;  %9380 = vmatmul.bf16.gmra.mxu0 %v12489_v27  ;;  %v12512_v9 = vld [vmem:[#allocation5 + $0x128] sm:$0xf]  ;;  %v13370_v53 = vld [vmem:[#allocation5 + $0x130] sm:$0xf0]  ;;  %v13465_v27 = vld [vmem:[#allocation5 + $0x158] sm:$0xf0] }
 0x4ef   : > { %9782 = vmatmul.bf16.gmra.mxu1 %v12721_v59 }
 0x4f0   : > { %v16825_v1 = vadd.f32 %v9283_v45, %v8963_v2  ;;  %v12744_v45 = vld [vmem:[#allocation5 + $0x150] sm:$0xf] }
 0x4f3   : > { %v8915_v13 = vpop.f32.mrf.mxu0 }
 0x4f4   : > { %v8964_v51 = vpop.f32.mrf.mxu1  ;;  %v8916_v12 = vadd.f32 %v8915_v13, %v16708_v31  ;;  %v9285_v28 = vpop.f32.mrf.mxu2 }
 0x4f5   : > { %v16828_v35 = vpop.f32.mrf.mxu3 }
 0x4f6   : > { %v8965_v41 = vadd.f32 %v8964_v51, %v8916_v12  ;;  %v12513_v12 = vor.u32 %v13370_v53, %v12512_v9 }
 0x4f8   : > { %v16830_v58 = vadd.f32 %v9285_v28, %v8965_v41  ;;  %v12745_v28 = vor.u32 %v13465_v27, %v12744_v45 }
 0x4f9   : > { %9836 = vmatmul.bf16.gmra.mxu2 %v12737_v7 }
 0x4fa   : > { %9885 = vmatmul.bf16.gmra.mxu3 %v12741_v8 }
 0x4fb   : > { %v8918_v44 = vpop.f32.mrf.mxu0 }
 0x4fc   : > { %v8967_v38 = vpop.f32.mrf.mxu1  ;;  %v8919_v31 = vadd.f32 %v8918_v44, %v16715_v4  ;;  %v9288_v29 = vpop.f32.mrf.mxu2  ;;  %v12752_v4 = vld [vmem:[#allocation5 + $0x158] sm:$0xf]  ;;  %v13469_v44 = vld [vmem:[#allocation5 + $0x178] sm:$0xf0] }
 0x4fd   : > { %v16833_v56 = vpop.f32.mrf.mxu3  ;;  %v12753_v59 = vor.u32 %v13466_v52, %v12752_v4 }
 0x4fe   : > { %v8968_v42 = vadd.f32 %v8967_v38, %v8919_v31  ;;  %9385 = vmatmul.bf16.gmra.mxu0 %v12501_v47  ;;  %v12761_v38 = vor.u32 %v13467_v22, %v12758_v55  ;;  %v16852_v47 = vld [vmem:[#allocation3 + $0x114] sm:$0xff]  }
 0x4ff   : > { %9787 = vmatmul.bf16.gmra.mxu1 %v12733_v33  ;;  %v6609_v33 = vld [vmem:[#allocation3 + $0x11c] sm:$0x1]  ;;  %v6649_v53 = vrot.slane %v16852_v47, 5 }
 0x500   : > { %v16835_v37 = vadd.f32 %v9288_v29, %v8968_v42  ;;  %v12524_v29 = vld [vmem:[#allocation5 + $0x140] sm:$0xf]  ;;  %v13373_v42 = vld [vmem:[#allocation5 + $0x148] sm:$0xf0] }
 0x503   : > { %v8920_v49 = vpop.f32.mrf.mxu0 }
 0x504   : > { %v8969_v39 = vpop.f32.mrf.mxu1  ;;  %v8921_v48 = vadd.f32 %v8920_v49, %v16730_v61  ;;  %v9290_v24 = vpop.f32.mrf.mxu2  ;;  %v12756_v49 = vld [vmem:[#allocation5 + $0x168] sm:$0xf] }
 0x505   : > { %v16838_v16 = vpop.f32.mrf.mxu3 }
 0x506   : > { %v8970_v20 = vadd.f32 %v8969_v39, %v8921_v48  ;;  %v13468_v39 = vld [vmem:[#allocation5 + $0x170] sm:$0xf0]  ;;  %v6643_v48 = vunpack.c.l.b16 %v6609_v33 }
 0x507   : > { %v12757_v9 = vor.u32 %v13468_v39, %v12756_v49  ;;  %v13470_v49 = vld [vmem:[#allocation5 + $0x184] sm:$0xf]  ;;  %v12770_v39 = vld [vmem:[#allocation5 + $0x18c] sm:$0xf0] }
 0x508   : > { %v16840_v63 = vadd.f32 %v9290_v24, %v8970_v20  ;;  %v6645_v20 = vpack.c.b16 %v6643_v48, %v6643_v48 }
 0x509   : > { %9841 = vmatmul.bf16.gmra.mxu2 %v12749_v34  ;;  %v12525_v34 = vor.u32 %v13373_v42, %v12524_v29 }
 0x50a   : > { %9890 = vmatmul.bf16.gmra.mxu3 %v12753_v59  ;;  %v6650_v45 = vrot.slane %v6645_v20, 5 }
 0x50b   : > { %v8923_v2 = vpop.f32.mrf.mxu0 }
 0x50c   : > { %v8972_v13 = vpop.f32.mrf.mxu1  ;;  %v8924_v61 = vadd.f32 %v8923_v2, %v16737_v15  ;;  %v9293_v51 = vpop.f32.mrf.mxu2  ;;  %v12764_v15 = vld [vmem:[#allocation5 + $0x170] sm:$0xf]  ;;  %v6651_v2 = vsel %vm609_vm4, %v6649_v53, %v6650_v45 }
 0x50d   : > { %v16843_v19 = vpop.f32.mrf.mxu3  ;;  %v12765_v24 = vor.u32 %v13469_v44, %v12764_v15 }
 0x50e   : > { %v8973_v3 = vadd.f32 %v8972_v13, %v8924_v61  ;;  %9390 = vmatmul.bf16.gmra.mxu0 %v12513_v12  ;;  %v6658_v13 = vunpack.c.l.b16 %v6649_v53  ;;  %v6660_v61 = vunpack.c.h.b16 %v6649_v53 }
 0x50f   : > { %9792 = vmatmul.bf16.gmra.mxu1 %v12745_v28  ;;  %v6605_v28 = vld [vmem:[#allocation3 + $0x110] sm:$0x8] }
 0x510   : > { %v16845_v41 = vadd.f32 %v9293_v51, %v8973_v3  ;;  %v6633_v51 = vshrl.u32 %v16852_v47, 16  ;;  %v6636_v3 = vshll.u32 %v16852_v47, 16  ;;  %v6619_v29 = vunpack.c.l.b16 %v6605_v28 }
 0x512   : > { %v6638_v22 = vrot.slane %v6636_v3, 5 }
 0x513   : > { %v8925_v36 = vpop.f32.mrf.mxu0 }
 0x514   : > { %v8974_v43 = vpop.f32.mrf.mxu1  ;;  %v8926_v7 = vadd.f32 %v8925_v36, %v16752_v32  ;;  %v9295_v0 = vpop.f32.mrf.mxu2  ;;  %v6621_v32 = vunpack.c.h.b16 %v16852_v47  ;;  %v6669_v36 = vpack.c.b16 %v6658_v13, %v6658_v13 }
 0x515   : > { %v16848_v8 = vpop.f32.mrf.mxu3 }
 0x516   : > { %v8975_v10 = vadd.f32 %v8974_v43, %v8926_v7  ;;  %v6671_v43 = vpack.c.b16 %v6660_v61, %v6660_v61  ;;  %v6635_v7 = vrot.slane %v6633_v51, 4  ;;  %v6732_v15 = vshrl.u32 %v6669_v36, 16  ;;  %v13376_v51 = vld [vmem:[#allocation5 + $0x160] sm:$0xf0] }
 0x518   : > { %v16850_v31 = vadd.f32 %v9295_v0, %v8975_v10  ;;  %v6737_v44 = vshrl.u32 %v6671_v43, 16 }
 0x519   : > { %9846 = vmatmul.bf16.gmra.mxu2 %v12761_v38  ;;  %v6740_v38 = vshll.u32 %v6671_v43, 16  ;;  %v12768_v43 = vld [vmem:[#allocation5 + $0x180] sm:$0xf] }
 0x51a   : > { %9895 = vmatmul.bf16.gmra.mxu3 %v12765_v24  ;;  %v6739_v20 = vrot.slane %v6737_v44, 7 }
 0x51b   : > { %v8928_v50 = vpop.f32.mrf.mxu0 }
 0x51c   : > { %v8977_v40 = vpop.f32.mrf.mxu1  ;;  %v8929_v4 = vadd.f32 %v8928_v50, %v16759_v60  ;;  %v9298_v52 = vpop.f32.mrf.mxu2  ;;  %v6661_v60 = vunpack.c.l.b16 %v6651_v2  ;;  %v6639_v50 = vor.u32 %v6638_v22, %v6635_v7  ;;  %v6742_v2 = vor.u32 %v6740_v38, %v6739_v20  ;;  %v13471_v7 = vld [vmem:[#allocation5 + $0x188] sm:$0xf0] }
 0x51d   : > { %v16857_v59 = vpop.f32.mrf.mxu3  ;;  %v6753_v13 = vrot.slane %v6739_v20, 4 }
 0x51e   : > { %v8978_v27 = vadd.f32 %v8977_v40, %v8929_v4  ;;  %9395 = vmatmul.bf16.gmra.mxu0 %v12525_v34  ;;  %v6673_v0 = vpack.c.b16 %v6661_v60, %v6661_v60  ;;  %v11541_v40 = vrot.slane %v6732_v15, 11  ;;  %v13472_v34 = vld [vmem:[#allocation5 + $0x190] sm:$0xf0]  ;;  %v6657_v53 = vunpack.c.l.b16 %v6639_v50 }
 0x51f   : > { %9797 = vmatmul.bf16.gmra.mxu1 %v12757_v9  ;;  %v13761_v3 = vsel %vm13722_vm0, %v16852_v47, %v6639_v50 }
 0x520   : > { %v16861_v12 = vadd.f32 %v9298_v52, %v8978_v27  ;;  %v6755_v48 = vshrl.u32 %v6673_v0, 16  ;;  %v6758_v24 = vshll.u32 %v6673_v0, 16  ;;  %v12776_v52 = vld [vmem:[#allocation5 + $0x188] sm:$0xf]  ;;  %v12773_v27 = vor.u32 %v13470_v49, %v12770_v39 }
 0x521   : > { %v6668_v28 = vpack.c.b16 %v6657_v53, %v6619_v29  ;;  %v12777_v36 = vor.u32 %v13472_v34, %v12776_v52  ;;  %v6743_v0 = vsel %vm14038_vm3, %v11541_v40, %v6742_v2  ;;  %v6672_v22 = vpack.c.b16 %v6657_v53, %v6621_v32 }
 0x522   : > { %v6757_v9 = vrot.slane %v6755_v48, 7  ;;  %6776 = vst [vmem:[#allocation5 + $0x1a0] sm:$0xf] %v6743_v0  ;;  %v6724_v15 = vshrl.u32 %v13761_v3, 16  ;;  %v6727_v44 = vshll.u32 %v13761_v3, 16 }
 0x523   : > { %v8930_v55 = vpop.f32.mrf.mxu0  ;;  %v6749_v49 = vshll.u32 %v6672_v22, 16  ;;  %v12548_v0 = vld [vmem:[#allocation5 + $0x170] sm:$0xf] }
 0x524   : > { %v8979_v10 = vpop.f32.mrf.mxu1  ;;  %v8931_v33 = vadd.f32 %v8930_v55, %v16774_v23  ;;  %v9300_v42 = vpop.f32.mrf.mxu2  ;;  %v12536_v23 = vld [vmem:[#allocation5 + $0x158] sm:$0xf]  ;;  %v6760_v60 = vor.u32 %v6758_v24, %v6757_v9  ;;  %v12769_v24 = vor.u32 %v13471_v7, %v12768_v43  ;;  %v6726_v32 = vrot.slane %v6724_v15, 7 }
 0x525   : > { %v16865_v45 = vpop.f32.mrf.mxu3 }
 0x526   : > { %v8980_v4 = vadd.f32 %v8979_v10, %v8931_v33  ;;  %v6761_v55 = vsel %vm14038_vm3, %v6753_v13, %v6760_v60  ;;  %v6719_v10 = vshrl.u32 %v6668_v28, 16  ;;  %v12537_v33 = vor.u32 %v13376_v51, %v12536_v23 }
 0x527   : > { %6778 = vst [vmem:[#allocation5 + $0x1ac] sm:$0xf] %v6761_v55  ;;  %v6729_v20 = vor.u32 %v6727_v44, %v6726_v32  ;;  %v13379_v55 = vld [vmem:[#allocation5 + $0x178] sm:$0xf0] }
 0x528   : > { %v16867_v61 = vadd.f32 %v9300_v42, %v8980_v4  ;;  %v6746_v42 = vshrl.u32 %v6672_v22, 16  ;;  %v11540_v47 = vrot.slane %v6719_v10, 11  ;;  %v6744_v4 = vrot.slane %v6726_v32, 4 }
 0x529   : > { %9851 = vmatmul.bf16.gmra.mxu2 %v12773_v27  ;;  %v12788_v51 = vld [vmem:[#allocation5 + $0x1a0] sm:$0xf] }
 0x52a   : > { %9900 = vmatmul.bf16.gmra.mxu3 %v12777_v36  ;;  %v6748_v50 = vrot.slane %v6746_v42, 7  ;;  %v6730_v53 = vsel %vm14038_vm3, %v11540_v47, %v6729_v20  ;;  %v12549_v42 = vor.u32 %v13379_v55, %v12548_v0  ;;  %v9325_v0 = vadd.f32 %v16808_v21, %v16810_v46 }
 0x52b   : > { %v8933_v38 = vpop.f32.mrf.mxu0  ;;  %6775 = vst [vmem:[#allocation5 + $0x198] sm:$0xff] %v6730_v53 }
 0x52c   : > { %v8982_v29 = vpop.f32.mrf.mxu1  ;;  %v8934_v39 = vadd.f32 %v8933_v38, %v16781_v25  ;;  %v9303_v48 = vpop.f32.mrf.mxu2  ;;  %v6751_v34 = vor.u32 %v6749_v49, %v6748_v50 }
 0x52d   : > { %v16878_v52 = vpop.f32.mrf.mxu3 }
 0x52e   : > { %v8983_v40 = vadd.f32 %v8982_v29, %v8934_v39  ;;  %9400 = vmatmul.bf16.gmra.mxu0 %v12537_v33  ;;  %v6752_v25 = vsel %vm14038_vm3, %v6744_v4, %v6751_v34  ;;  %v13475_v60 = vld [vmem:[#allocation5 + $0x1a8] sm:$0xf0] }
 0x52f   : > { %9802 = vmatmul.bf16.gmra.mxu1 %v12769_v24  ;;  %6777 = vst [vmem:[#allocation5 + $0x1a4] sm:$0xff] %v6752_v25  ;;  %v12789_v43 = vor.u32 %v13475_v60, %v12788_v51 }
 0x530   : > { %v16880_v9 = vadd.f32 %v9303_v48, %v8983_v40 }
 0x532   : > { %v13473_v7 = vld [vmem:[#allocation5 + $0x19c] sm:$0xf]  ;;  %v12780_v22 = vld [vmem:[#allocation5 + $0x198] sm:$0xf] }
 0x533   : > { %v8935_v27 = vpop.f32.mrf.mxu0 }
 0x534   : > { %v8984_v2 = vpop.f32.mrf.mxu1  ;;  %v8936_v13 = vadd.f32 %v8935_v27, %v16787_v6  ;;  %v9305_v23 = vpop.f32.mrf.mxu2 }
 0x535   : > { %v16887_v3 = vpop.f32.mrf.mxu3 }
 0x536   : > { %v8985_v28 = vadd.f32 %v8984_v2, %v8936_v13  ;;  %v12782_v54 = vld [vmem:[#allocation5 + $0x1a4] sm:$0xf0]  ;;  %v13474_v10 = vld [vmem:[#allocation5 + $0x1a0] sm:$0xf0]  ;;  %v9323_v2 = vadd.f32 %v16802_v57, %v16804_v18 }
 0x537   : > { %v12785_v15 = vor.u32 %v13473_v7, %v12782_v54  ;;  %v12781_v44 = vor.u32 %v13474_v10, %v12780_v22  ;;  %v16909_v54 = vld [vmem:[%s17008_s4] ss:$0 sm:$0xff] }
 0x538   : > { %v16889_v36 = vadd.f32 %v9305_v23, %v8985_v28 }
 0x539   : > { %9856 = vmatmul.bf16.gmra.mxu2 %v12785_v15 }
 0x53a   : > { %9905 = vmatmul.bf16.gmra.mxu3 %v12789_v43  ;;  %v13659_v43 = vld [vmem:[%s14164_s9 + $0x40] sm:$0xff]  }
 0x53b   : > { %v8938_v38 = vpop.f32.mrf.mxu0  ;;  %v13575_v57 = vunpack.c.l.bf16 %v13659_v43 }
 0x53c   : > { %v8987_v29 = vpop.f32.mrf.mxu1  ;;  %v8939_v6 = vadd.f32 %v8938_v38, %v16791_v14  ;;  %v9308_v33 = vpop.f32.mrf.mxu2 }
 0x53d   : > { %v16892_v39 = vpop.f32.mrf.mxu3 }
 0x53e   : > { %v8988_v49 = vadd.f32 %v8987_v29, %v8939_v6  ;;  %9405 = vmatmul.bf16.gmra.mxu0 %v12549_v42 }
 0x53f   : > { %9807 = vmatmul.bf16.gmra.mxu1 %v12781_v44  ;;  %v13576_v44 = vunpack.c.h.bf16 %v13659_v43 }
 0x540   : > { %v16894_v48 = vadd.f32 %v9308_v33, %v8988_v49 }
 0x543   : > { %v8940_v24 = vpop.f32.mrf.mxu0 }
 0x544   : > { %v8989_v47 = vpop.f32.mrf.mxu1  ;;  %v8941_v32 = vadd.f32 %v8940_v24, %v16797_v11  ;;  %v9310_v50 = vpop.f32.mrf.mxu2 }
 0x545   : > { %v16897_v20 = vpop.f32.mrf.mxu3 }
 0x546   : > { %v8990_v40 = vadd.f32 %v8989_v47, %v8941_v32  ;;  %v9328_v32 = vadd.f32 %v16813_v62, %v16815_v26 }
 0x548   : > { %v16899_v14 = vadd.f32 %v9310_v50, %v8990_v40 }
 0x54b   : > { %v9371_v4 = vpop.f32.mrf.mxu0 }
 0x54c   : > { %v9773_v34 = vpop.f32.mrf.mxu1  ;;  %v9822_v53 = vpop.f32.mrf.mxu2  ;;  %v9372_v23 = vadd.f32 %v9371_v4, %v9323_v2  ;;  %v13660_v2 = vld [vmem:[%s14164_s9 + $0x48] sm:$0xff]  }
 0x54d   : > { %v9823_v25 = vadd.f32 %v9822_v53, %v9773_v34  ;;  %v9871_v27 = vpop.f32.mrf.mxu3  ;;  %v13580_v26 = vunpack.c.h.bf16 %v13660_v2 }
 0x54f   : > { %v9872_v13 = vadd.f32 %v9871_v27, %v9823_v25 }
 0x551   : > { %v9911_v11 = vadd.f32 %v9872_v13, %v9372_v23  ;;  %v9330_v23 = vadd.f32 %v16818_v17, %v16820_v30 }
 0x553   : > { %v9373_v51 = vpop.f32.mrf.mxu0  ;;  %v9927_v55 = vadd.f32 %v16909_v54, %v9911_v11  ;;  %v13579_v11 = vunpack.c.l.bf16 %v13660_v2 }
 0x554   : > { %v9775_v60 = vpop.f32.mrf.mxu1  ;;  %v9824_v28 = vpop.f32.mrf.mxu2  ;;  %v9374_v18 = vadd.f32 %v9373_v51, %v9325_v0 }
 0x555   : > { %v9825_v7 = vadd.f32 %v9824_v28, %v9775_v60  ;;  %v9873_v22 = vpop.f32.mrf.mxu3  ;;  %v9976_v6 = vadd.f32 %v13575_v57, %v9927_v55 }
 0x557   : > { %v9874_v10 = vadd.f32 %v9873_v22, %v9825_v7  ;;  %v9992_v24 = vmax.f32 %v9976_v6, 0.0 }
 0x559   : > { %v9912_v15 = vadd.f32 %v9874_v10, %v9374_v18 }
 0x55b   : > { %v9376_v38 = vpop.f32.mrf.mxu0  ;;  %v9928_v33 = vadd.f32 %v16909_v54, %v9912_v15 }
 0x55c   : > { %v9778_v29 = vpop.f32.mrf.mxu1  ;;  %v9827_v21 = vpop.f32.mrf.mxu2  ;;  %v9377_v4 = vadd.f32 %v9376_v38, %v9328_v32 }
 0x55d   : > { %v9828_v46 = vadd.f32 %v9827_v21, %v9778_v29  ;;  %v9977_v42 = vadd.f32 %v13576_v44, %v9928_v33  ;;  %v9876_v49 = vpop.f32.mrf.mxu3  ;;  %v9333_v44 = vadd.f32 %v16823_v5, %v16825_v1 }
 0x55f   : > { %v9993_v47 = vmax.f32 %v9977_v42, 0.0  ;;  %v9877_v50 = vadd.f32 %v9876_v49, %v9828_v46  ;;  %v13661_v49 = vld [vmem:[%s14164_s9 + $0x50] sm:$0xff]  }
 0x560   : > { %v13584_v1 = vunpack.c.h.bf16 %v13661_v49 }
 0x561   : > { %v13608_v40 = vpack.c.bf16 %v9993_v47, %v9992_v24  ;;  %v9913_v25 = vadd.f32 %v9877_v50, %v9377_v4  ;;  %v9335_v47 = vadd.f32 %v16828_v35, %v16830_v58 }
 0x563   : > { %v9378_v34 = vpop.f32.mrf.mxu0  ;;  %13667 = vst [vmem:[%s16671_s12 + $0x40] sm:$0xff] %v13608_v40   ;;  %v9929_v60 = vadd.f32 %v16909_v54, %v9913_v25  ;;  %v13583_v40 = vunpack.c.l.bf16 %v13661_v49 }
 0x564   : > { %v9780_v53 = vpop.f32.mrf.mxu1  ;;  %v9829_v27 = vpop.f32.mrf.mxu2  ;;  %v9379_v28 = vadd.f32 %v9378_v34, %v9330_v23 }
 0x565   : > { %v9830_v13 = vadd.f32 %v9829_v27, %v9780_v53  ;;  %v9878_v51 = vpop.f32.mrf.mxu3  ;;  %v9978_v22 = vadd.f32 %v13579_v11, %v9929_v60  ;;  %v9338_v11 = vadd.f32 %v16833_v56, %v16835_v37 }
 0x567   : > { %v9879_v43 = vadd.f32 %v9878_v51, %v9830_v13  ;;  %v9994_v17 = vmax.f32 %v9978_v22, 0.0 }
 0x569   : > { %v9914_v62 = vadd.f32 %v9879_v43, %v9379_v28 }
 0x56b   : > { %v9381_v7 = vpop.f32.mrf.mxu0  ;;  %v9930_v55 = vadd.f32 %v16909_v54, %v9914_v62 }
 0x56c   : > { %v9783_v0 = vpop.f32.mrf.mxu1  ;;  %v9832_v57 = vpop.f32.mrf.mxu2  ;;  %v9382_v6 = vadd.f32 %v9381_v7, %v9333_v44 }
 0x56d   : > { %v9833_v18 = vadd.f32 %v9832_v57, %v9783_v0  ;;  %v9979_v10 = vadd.f32 %v13580_v26, %v9930_v55  ;;  %v9881_v15 = vpop.f32.mrf.mxu3  ;;  %v13662_v55 = vld [vmem:[%s14164_s9 + $0x58] sm:$0xff]  }
 0x56e   : > { %v13588_v37 = vunpack.c.h.bf16 %v13662_v55 }
 0x56f   : > { %v9995_v30 = vmax.f32 %v9979_v10, 0.0  ;;  %v9882_v38 = vadd.f32 %v9881_v15, %v9833_v18  ;;  %v9340_v18 = vadd.f32 %v16838_v16, %v16840_v63 }
 0x571   : > { %v13613_v29 = vpack.c.bf16 %v9995_v30, %v9994_v17  ;;  %v9915_v46 = vadd.f32 %v9882_v38, %v9382_v6  ;;  %v13587_v17 = vunpack.c.l.bf16 %v13662_v55 }
 0x573   : > { %v9383_v33 = vpop.f32.mrf.mxu0  ;;  %13668 = vst [vmem:[%s16671_s12 + $0x48] sm:$0xff] %v13613_v29   ;;  %v9931_v50 = vadd.f32 %v16909_v54, %v9915_v46 }
 0x574   : > { %v9785_v21 = vpop.f32.mrf.mxu1  ;;  %v9834_v42 = vpop.f32.mrf.mxu2  ;;  %v9384_v4 = vadd.f32 %v9383_v33, %v9335_v47 }
 0x575   : > { %v9835_v24 = vadd.f32 %v9834_v42, %v9785_v21  ;;  %v9883_v32 = vpop.f32.mrf.mxu3  ;;  %v9980_v27 = vadd.f32 %v13583_v40, %v9931_v50 }
 0x577   : > { %v9884_v34 = vadd.f32 %v9883_v32, %v9835_v24  ;;  %v9996_v35 = vmax.f32 %v9980_v27, 0.0  ;;  %v9343_v24 = vadd.f32 %v16843_v19, %v16845_v41 }
 0x579   : > { %v9916_v5 = vadd.f32 %v9884_v34, %v9384_v4 }
 0x57b   : > { %v9386_v53 = vpop.f32.mrf.mxu0  ;;  %v9932_v2 = vadd.f32 %v16909_v54, %v9916_v5 }
 0x57c   : > { %v9788_v25 = vpop.f32.mrf.mxu1  ;;  %v9837_v13 = vpop.f32.mrf.mxu2  ;;  %v9387_v62 = vadd.f32 %v9386_v53, %v9338_v11 }
 0x57d   : > { %v9838_v23 = vadd.f32 %v9837_v13, %v9788_v25  ;;  %v9981_v51 = vadd.f32 %v13584_v1, %v9932_v2  ;;  %v9886_v60 = vpop.f32.mrf.mxu3  ;;  %v13663_v1 = vld [vmem:[%s14164_s9 + $0x60] sm:$0xff]   ;;  %v9345_v25 = vadd.f32 %v16848_v8, %v16850_v31 }
 0x57e   : > { %v13591_v13 = vunpack.c.l.bf16 %v13663_v1  ;;  %v13592_v41 = vunpack.c.h.bf16 %v13663_v1 }
 0x57f   : > { %v9997_v58 = vmax.f32 %v9981_v51, 0.0  ;;  %v9887_v28 = vadd.f32 %v9886_v60, %v9838_v23 }
 0x581   : > { %v13618_v43 = vpack.c.bf16 %v9997_v58, %v9996_v35  ;;  %v9917_v0 = vadd.f32 %v9887_v28, %v9387_v62 }
 0x583   : > { %v9388_v26 = vpop.f32.mrf.mxu0  ;;  %13669 = vst [vmem:[%s16671_s12 + $0x50] sm:$0xff] %v13618_v43   ;;  %v9933_v15 = vadd.f32 %v16909_v54, %v9917_v0 }
 0x584   : > { %v9790_v7 = vpop.f32.mrf.mxu1  ;;  %v9839_v22 = vpop.f32.mrf.mxu2  ;;  %v9389_v30 = vadd.f32 %v9388_v26, %v9340_v18 }
 0x585   : > { %v9840_v57 = vadd.f32 %v9839_v22, %v9790_v7  ;;  %v9888_v10 = vpop.f32.mrf.mxu3  ;;  %v9982_v6 = vadd.f32 %v13587_v17, %v9933_v15  ;;  %v9348_v7 = vadd.f32 %v16857_v59, %v16861_v12  ;;  %v13664_v17 = vld [vmem:[%s14164_s9 + $0x68] sm:$0xff]  }
 0x586   : > { %v13596_v12 = vunpack.c.h.bf16 %v13664_v17 }
 0x587   : > { %v9889_v44 = vadd.f32 %v9888_v10, %v9840_v57  ;;  %v9998_v16 = vmax.f32 %v9982_v6, 0.0 }
 0x589   : > { %v9918_v56 = vadd.f32 %v9889_v44, %v9389_v30  ;;  %v9350_v44 = vadd.f32 %v16865_v45, %v16867_v61 }
 0x58b   : > { %v9391_v38 = vpop.f32.mrf.mxu0  ;;  %v9934_v33 = vadd.f32 %v16909_v54, %v9918_v56 }
 0x58c   : > { %v9793_v29 = vpop.f32.mrf.mxu1  ;;  %v9842_v21 = vpop.f32.mrf.mxu2  ;;  %v9392_v50 = vadd.f32 %v9391_v38, %v9343_v24  ;;  %v13595_v38 = vunpack.c.l.bf16 %v13664_v17 }
 0x58d   : > { %v9843_v46 = vadd.f32 %v9842_v21, %v9793_v29  ;;  %v9983_v42 = vadd.f32 %v13588_v37, %v9934_v33  ;;  %v9891_v49 = vpop.f32.mrf.mxu3 }
 0x58f   : > { %v9999_v63 = vmax.f32 %v9983_v42, 0.0  ;;  %v9892_v47 = vadd.f32 %v9891_v49, %v9843_v46 }
 0x591   : > { %v13623_v32 = vpack.c.bf16 %v9999_v63, %v9998_v16  ;;  %v9919_v34 = vadd.f32 %v9892_v47, %v9392_v50  ;;  %v9353_v47 = vadd.f32 %v16878_v52, %v16880_v9 }
 0x593   : > { %v9393_v40 = vpop.f32.mrf.mxu0  ;;  %13670 = vst [vmem:[%s16671_s12 + $0x58] sm:$0xff] %v13623_v32   ;;  %v9935_v2 = vadd.f32 %v16909_v54, %v9919_v34 }
 0x594   : > { %v9795_v4 = vpop.f32.mrf.mxu1  ;;  %v9844_v5 = vpop.f32.mrf.mxu2  ;;  %v9394_v23 = vadd.f32 %v9393_v40, %v9345_v25 }
 0x595   : > { %v9845_v53 = vadd.f32 %v9844_v5, %v9795_v4  ;;  %v9893_v27 = vpop.f32.mrf.mxu3  ;;  %v9984_v58 = vadd.f32 %v13591_v13, %v9935_v2 }
 0x597   : > { %v9894_v51 = vadd.f32 %v9893_v27, %v9845_v53  ;;  %v10000_v8 = vmax.f32 %v9984_v58, 0.0  ;;  %v13665_v53 = vld [vmem:[%s14164_s9 + $0x70] sm:$0xff]   ;;  %v9355_v27 = vadd.f32 %v16887_v3, %v16889_v36 }
 0x598   : > { %v13600_v9 = vunpack.c.h.bf16 %v13665_v53 }
 0x599   : > { %v9920_v19 = vadd.f32 %v9894_v51, %v9394_v23  ;;  %v13599_v23 = vunpack.c.l.bf16 %v13665_v53 }
 0x59b   : > { %v9396_v60 = vpop.f32.mrf.mxu0  ;;  %v9936_v11 = vadd.f32 %v16909_v54, %v9920_v19 }
 0x59c   : > { %v9798_v35 = vpop.f32.mrf.mxu1  ;;  %v9847_v28 = vpop.f32.mrf.mxu2  ;;  %v9397_v55 = vadd.f32 %v9396_v60, %v9348_v7 }
 0x59d   : > { %v9848_v43 = vadd.f32 %v9847_v28, %v9798_v35  ;;  %v9985_v62 = vadd.f32 %v13592_v41, %v9936_v11  ;;  %v9896_v26 = vpop.f32.mrf.mxu3 }
 0x59f   : > { %v10001_v31 = vmax.f32 %v9985_v62, 0.0  ;;  %v9897_v0 = vadd.f32 %v9896_v26, %v9848_v43 }
 0x5a1   : > { %v13628_v22 = vpack.c.bf16 %v10001_v31, %v10000_v8  ;;  %v9921_v10 = vadd.f32 %v9897_v0, %v9397_v55  ;;  %v9358_v8 = vadd.f32 %v16892_v39, %v16894_v48  ;;  %v13666_v55 = vld [vmem:[%s14164_s9 + $0x78] sm:$0xff]  }
 0x5a3   : > { %v9398_v57 = vpop.f32.mrf.mxu0  ;;  %13671 = vst [vmem:[%s16671_s12 + $0x60] sm:$0xff] %v13628_v22   ;;  %v9937_v37 = vadd.f32 %v16909_v54, %v9921_v10  ;;  %v9360_v10 = vadd.f32 %v16897_v20, %v16899_v14 }
 0x5a4   : > { %v9800_v18 = vpop.f32.mrf.mxu1  ;;  %v9849_v15 = vpop.f32.mrf.mxu2  ;;  %v9399_v29 = vadd.f32 %v9398_v57, %v9350_v44  ;;  %v13603_v44 = vunpack.c.l.bf16 %v13666_v55 }
 0x5a5   : > { %v9850_v30 = vadd.f32 %v9849_v15, %v9800_v18  ;;  %v9898_v56 = vpop.f32.mrf.mxu3  ;;  %v9986_v46 = vadd.f32 %v13595_v38, %v9937_v37  ;;  %v13604_v37 = vunpack.c.h.bf16 %v13666_v55 }
 0x5a7   : > { %v9899_v6 = vadd.f32 %v9898_v56, %v9850_v30  ;;  %v10002_v45 = vmax.f32 %v9986_v46, 0.0 }
 0x5a9   : > { %v9922_v59 = vadd.f32 %v9899_v6, %v9399_v29 }
 0x5ab   : > { %v9401_v33 = vpop.f32.mrf.mxu0  ;;  %v9938_v42 = vadd.f32 %v16909_v54, %v9922_v59 }
 0x5ac   : > { %v9803_v21 = vpop.f32.mrf.mxu1  ;;  %v9852_v49 = vpop.f32.mrf.mxu2  ;;  %v9402_v40 = vadd.f32 %v9401_v33, %v9353_v47 }
 0x5ad   : > { %v9853_v16 = vadd.f32 %v9852_v49, %v9803_v21  ;;  %v9987_v63 = vadd.f32 %v13596_v12, %v9938_v42  ;;  %v9901_v24 = vpop.f32.mrf.mxu3 }
 0x5af   : > { %v10003_v61 = vmax.f32 %v9987_v63, 0.0  ;;  %v9902_v32 = vadd.f32 %v9901_v24, %v9853_v16 }
 0x5b1   : > { %v13633_v50 = vpack.c.bf16 %v10003_v61, %v10002_v45  ;;  %v9923_v5 = vadd.f32 %v9902_v32, %v9402_v40 }
 0x5b3   : > { %v9403_v4 = vpop.f32.mrf.mxu0  ;;  %13672 = vst [vmem:[%s16671_s12 + $0x68] sm:$0xff] %v13633_v50   ;;  %v9939_v13 = vadd.f32 %v16909_v54, %v9923_v5 }
 0x5b4   : > { %v9805_v34 = vpop.f32.mrf.mxu1  ;;  %v9854_v1 = vpop.f32.mrf.mxu2  ;;  %v9404_v51 = vadd.f32 %v9403_v4, %v9355_v27 }
 0x5b5   : > { %v9855_v25 = vadd.f32 %v9854_v1, %v9805_v34  ;;  %v9903_v2 = vpop.f32.mrf.mxu3  ;;  %v9988_v41 = vadd.f32 %v13599_v23, %v9939_v13 }
 0x5b7   : > { %v9904_v19 = vadd.f32 %v9903_v2, %v9855_v25  ;;  %v10004_v62 = vmax.f32 %v9988_v41, 0.0 }
 0x5b9   : > { %v9924_v52 = vadd.f32 %v9904_v19, %v9404_v51 }
 0x5bb   : > { %v9940_v60 = vadd.f32 %v16909_v54, %v9924_v52  ;;  %v9406_v35 = vpop.f32.mrf.mxu0 }
 0x5bc   : > { %v9808_v58 = vpop.f32.mrf.mxu1  ;;  %v9857_v43 = vpop.f32.mrf.mxu2  ;;  %v9407_v7 = vadd.f32 %v9406_v35, %v9358_v8 }
 0x5bd   : > { %v9989_v11 = vadd.f32 %v13600_v9, %v9940_v60  ;;  %v9906_v28 = vpop.f32.mrf.mxu3  ;;  %v9858_v36 = vadd.f32 %v9857_v43, %v9808_v58 }
 0x5bf   : > { %v10005_v3 = vmax.f32 %v9989_v11, 0.0  ;;  %v9907_v31 = vadd.f32 %v9906_v28, %v9858_v36 }
 0x5c1   : > { %v13638_v26 = vpack.c.bf16 %v10005_v3, %v10004_v62  ;;  %v9925_v0 = vadd.f32 %v9907_v31, %v9407_v7 }
 0x5c3   : > { %13673 = vst [vmem:[%s16671_s12 + $0x70] sm:$0xff] %v13638_v26   ;;  %v9408_v22 = vpop.f32.mrf.mxu0  ;;  %v9941_v30 = vadd.f32 %v16909_v54, %v9925_v0 }
 0x5c4   : > { %v9810_v57 = vpop.f32.mrf.mxu1  ;;  %v9859_v18 = vpop.f32.mrf.mxu2  ;;  %v9409_v56 = vadd.f32 %v9408_v22, %v9360_v10 }
 0x5c5   : > { %v9860_v15 = vadd.f32 %v9859_v18, %v9810_v57  ;;  %v9908_v17 = vpop.f32.mrf.mxu3  ;;  %v9990_v38 = vadd.f32 %v13603_v44, %v9941_v30 }
 0x5c7   : > { %v9909_v39 = vadd.f32 %v9908_v17, %v9860_v15  ;;  %v10006_v14 = vmax.f32 %v9990_v38, 0.0 }
 0x5c9   : > { %v9926_v48 = vadd.f32 %v9909_v39, %v9409_v56 }
 0x5cb   : > { %v9942_v29 = vadd.f32 %v16909_v54, %v9926_v48 }
 0x5cd   : > { %v9991_v20 = vadd.f32 %v13604_v37, %v9942_v29 }
 0x5cf   : > { %v10007_v6 = vmax.f32 %v9991_v20, 0.0 }
 0x5d1   : > { %v13643_v59 = vpack.c.bf16 %v10007_v6, %v10006_v14 }
 0x5d3   : > { %13674 = vst [vmem:[%s16671_s12 + $0x78] sm:$0xff] %v13643_v59  }
 0x5d4   : > { %13789 = shalt.err (!%p13786_p3)
}
 0x5d5   : > { %s13827_s10 = smov 64   ;;  %s13828_s12 = smov 4  }
 0x5d6   : > { %13675 = dma.vmem_to_hbm [thread:$0]  (%p13897_p5), %s10055_s25, 2048, %s10057_s26, %s10042_s22, %s13827_s10, %s13827_s10, %s13828_s12  }
 0x5d7 PF: > { %p13681_p4 = scmp.ge.s32.totalorder %s13824_s21, 2  ;;  %s10071_s15 = sand.u32 1, %s13812_s18  }
 0x5d8   : > { %s10072_s16 = scalar_lea.sflag [#allocation7], %s10071_s15 }
 0x5d9   : > { %p13678_p7 = pnand %p13681_p4, %p13901_p6 }
 0x5db   : > { %p13679_p8 = pneg %p13678_p7 }
 0x5dd   : > { %13807 = dma.done.wait (%p13679_p8), %s10072_s16, 2048  }
 0x5de   : > { %13809 = vsyncadd (%p13679_p8), %s10072_s16, 4294965248  ;;  %p15_p9 = scmp.ge.s32.totalorder %s13884_s24, 4   ;;  %s17094_s18 = smov %s13816_s19 }
 0x5df   : > { %s17095_s19 = smov %s13820_s20  ;;  %s17096_s20 = smov %s13895_s27 }
 0x5e0   : > { %s17097_s21 = smov %s13884_s24  ;;  %17 = sbr.rel (!%p15_p9) target bundleno = 3 (0x3), region = 100 }
 0x5e5   :  { %10078 = vsyncpa [#allocation7], 1 }
 0x5e6   :  { %10080 = vsyncpa [#allocation7 + $0x1], 1 }

</bundles_post_ra>
